<compile_context>
chip_gen: v5e
topology: v5e:2x2
jax: 0.10.0
libtpu: 0.0.40
codegen_flags: <defaults>
</compile_context>

<pallas_src>
import jax
import jax.numpy as jnp
from jax.experimental import pallas as pl
from jax.experimental.pallas import tpu as pltpu


def _ceil_to(n, m):
    return ((n + m - 1) // m) * m


def _pad2d(a, rows, cols):
    return jnp.pad(a, ((0, rows - a.shape[0]), (0, cols - a.shape[1])))


def _make_decoder_kernel(nlayers, use_onehot):
    """Kernel over refs:
       use_onehot=True : (didx, pidx, drug_tab, prot_tab, [W_l, b_l]*L, wf, bf, out)
       use_onehot=False: (pair_feats,                    [W_l, b_l]*L, wf, bf, out)
    """

    def kernel(*refs):
        if use_onehot:
            didx_ref, pidx_ref, dtab_ref, ptab_ref = refs[:4]
            rest = refs[4:]
            tile = didx_ref.shape[0]
            # One-hot MXU gather: (T, R) bf16 @ (R, F) bf16 -> (T, F) f32.
            oh_d = (jax.lax.broadcasted_iota(jnp.int32, (tile, dtab_ref.shape[0]), 1)
                    == didx_ref[...]).astype(jnp.bfloat16)
            oh_p = (jax.lax.broadcasted_iota(jnp.int32, (tile, ptab_ref.shape[0]), 1)
                    == pidx_ref[...]).astype(jnp.bfloat16)
            drug = jnp.dot(oh_d, dtab_ref[...], preferred_element_type=jnp.float32)
            prot = jnp.dot(oh_p, ptab_ref[...], preferred_element_type=jnp.float32)
            # pair_nodes_features = protein_features * drug_features (f32 VPU)
            x = drug * prot
        else:
            rest = refs[1:]
            x = refs[0][...]                      # pre-gathered pair features (bf16)

        out_ref = rest[-1]
        wf_ref, bf_ref = rest[-3], rest[-2]
        layer_refs = rest[:2 * nlayers]

        # (dropout: identity in inference mode; BatchNorm folded into W / b)
        for l in range(nlayers):
            w = layer_refs[2 * l][...]            # bf16 weights
            b = layer_refs[2 * l + 1][...]        # f32 bias (1, N)
            x = jnp.dot(x.astype(jnp.bfloat16), w,
                        preferred_element_type=jnp.float32) + b
            x = jnp.maximum(x, 0.0)               # ReLU in f32

        # Lane-dense final projection without materializing x.T:
        # (1, P) contracted against (T, P) on their last dims -> (1, T).
        logits = jax.lax.dot_general(
            wf_ref[...], x.astype(jnp.bfloat16),
            dimension_numbers=(((1,), (1,)), ((), ())),
            preferred_element_type=jnp.float32)
        logits = logits + bf_ref[...]
        out_ref[0] = jax.nn.sigmoid(logits)       # (1, T)

    return kernel


def dti_decoder_forward(final_emb_drug, final_emb_target, edge_index, params,
                        *, tile_edges=2048, onehot_row_limit=1024):
    """params: dict with
         'W'  : list of (F_in, F_out) weights
         'b'  : list of (F_out,) biases
         'bn' : list of (gamma, beta, running_mean, running_var) tuples
         'Wf' : (F_last, 1), 'bf': (1,)
    """
    f32 = jnp.float32
    bf16 = jnp.bfloat16
    eps = 1e-5
    nlayers = len(params["W"])

    # ---- fold eval-mode BatchNorm of layer l into layer l+1 / final proj (in f32):
    #      (h*s + t) @ W + b  ==  h @ (s[:,None]*W) + (t @ W + b)
    Ws = [params["W"][l].astype(f32) for l in range(nlayers)] + [params["Wf"].astype(f32)]
    bs = [params["b"][l].astype(f32) for l in range(nlayers)] + [params["bf"].astype(f32).reshape(-1)]
    fold_W = [Ws[0]]
    fold_b = [bs[0]]
    for l in range(nlayers):
        gamma, beta, rmean, rvar = [a.astype(f32) for a in params["bn"][l]]
        s = gamma / jnp.sqrt(rvar + eps)
        t = beta - rmean * s
        fold_W.append(s[:, None] * Ws[l + 1])
        fold_b.append(t @ Ws[l + 1] + bs[l + 1])

    # ---- zero-pad all feature dims to multiples of 128 (lane-dense)
    dims = [final_emb_drug.shape[1]] + [w.shape[1] for w in fold_W[:nlayers]]
    pdims = [_ceil_to(d, 128) for d in dims]

    layer_args, layer_specs = [], []
    for l in range(nlayers):
        W = _pad2d(fold_W[l], pdims[l], pdims[l + 1]).astype(bf16)   # bf16 weights
        b = _pad2d(fold_b[l].reshape(1, -1), 1, pdims[l + 1])        # f32 biases
        layer_args += [W, b]
        layer_specs += [pl.BlockSpec(W.shape, lambda i: (0, 0)),
                        pl.BlockSpec(b.shape, lambda i: (0, 0))]

    wf_row = _pad2d(fold_W[nlayers], pdims[nlayers], 1).T.astype(bf16)  # (1, P_last)
    bf = fold_b[nlayers].reshape(1, 1).astype(f32)                      # (1, 1)

    # ---- edge indices / tile sizing (keep >=2 grid steps for megacore sharding)
    E = edge_index.shape[0]
    if E > 256:
        tile_edges = min(tile_edges, _ceil_to((E + 1) // 2, 128))
    tile_edges = max(128, min(tile_edges, _ceil_to(E, 128)))
    tile_edges = _ceil_to(tile_edges, 128)
    E_pad = _ceil_to(E, tile_edges)
    grid = (E_pad // tile_edges,)

    didx = jnp.pad(edge_index[:, 0].astype(jnp.int32), (0, E_pad - E))
    pidx = jnp.pad(edge_index[:, 1].astype(jnp.int32), (0, E_pad - E))

    n_rows_max = max(final_emb_drug.shape[0], final_emb_target.shape[0])
    use_onehot = n_rows_max <= onehot_row_limit

    if use_onehot:
        # Small tables: keep whole tables VMEM-resident (bf16) and gather
        # in-kernel via one-hot MXU matmuls.
        Rd = _ceil_to(final_emb_drug.shape[0], 128)
        Rp = _ceil_to(final_emb_target.shape[0], 128)
        drug_tab = _pad2d(final_emb_drug.astype(f32), Rd, pdims[0]).astype(bf16)
        prot_tab = _pad2d(final_emb_target.astype(f32), Rp, pdims[0]).astype(bf16)
        gather_args = [didx.reshape(E_pad, 1), pidx.reshape(E_pad, 1),
                       drug_tab, prot_tab]
        gather_specs = [pl.BlockSpec((tile_edges, 1), lambda i: (i, 0)),
                        pl.BlockSpec((tile_edges, 1), lambda i: (i, 0)),
                        pl.BlockSpec(drug_tab.shape, lambda i: (0, 0)),
                        pl.BlockSpec(prot_tab.shape, lambda i: (0, 0))]
        gather_flops = 2 * (Rd + Rp) * pdims[0]
    else:
        # Large tables: XLA-side gather + multiply in the wrapper; the kernel
        # only streams tiled pair features (VMEM use independent of table size).
        d = jnp.take(final_emb_drug.astype(f32), didx, axis=0)
        p = jnp.take(final_emb_target.astype(f32), pidx, axis=0)
        x0 = _pad2d(p * d, E_pad, pdims[0]).astype(bf16)
        gather_args = [x0]
        gather_specs = [pl.BlockSpec((tile_edges, pdims[0]), lambda i: (i, 0))]
        gather_flops = 0

    in_specs = (gather_specs + layer_specs
                + [pl.BlockSpec(wf_row.shape, lambda i: (0, 0)),
                   pl.BlockSpec(bf.shape, lambda i: (0, 0))])
    out_spec = pl.BlockSpec((1, 1, tile_edges), lambda i: (i, 0, 0))

    # ---- advisory cost estimate for XLA scheduling around the custom call
    flops_per_edge = gather_flops + 2 * pdims[nlayers]
    for l in range(nlayers):
        flops_per_edge += 2 * pdims[l] * pdims[l + 1]
    all_args = gather_args + layer_args + [wf_row, bf]
    bytes_accessed = sum(int(a.size) * a.dtype.itemsize for a in all_args) + E_pad * 4
    cost = pl.CostEstimate(flops=int(E_pad) * int(flops_per_edge),
                           transcendentals=int(E_pad),
                           bytes_accessed=int(bytes_accessed))

    kernel = _make_decoder_kernel(nlayers, use_onehot)

    out = pl.pallas_call(
        kernel,
        out_shape=jax.ShapeDtypeStruct((grid[0], 1, tile_edges), f32),
        grid_spec=pltpu.PrefetchScalarGridSpec(
            num_scalar_prefetch=0,
            grid=grid,
            in_specs=in_specs,
            out_specs=out_spec,
        ),
        compiler_params=pltpu.CompilerParams(
            dimension_semantics=("parallel",),
            vmem_limit_bytes=48 * 1024 * 1024),
        cost_estimate=cost,
    )(*all_args)

    return out.reshape(E_pad, 1)[:E]


def init_params(key, nodefeat_size, nhidden):
    """Deterministic synthetic parameter init (PyTorch-Linear-like uniform)."""
    nlayers = len(nhidden)
    params = {"W": [], "b": [], "bn": []}
    dims = [nodefeat_size] + list(nhidden)
    for l in range(nlayers):
        fan_in = dims[l]
        bound = 1.0 / jnp.sqrt(fan_in)
        key, k1, k2, k3, k4, k5, k6 = jax.random.split(key, 7)
        params["W"].append(
            jax.random.uniform(k1, (dims[l], dims[l + 1]), jnp.float32, -bound, bound))
        params["b"].append(
            jax.random.uniform(k2, (dims[l + 1],), jnp.float32, -bound, bound))
        gamma = 1.0 + 0.1 * jax.random.normal(k3, (dims[l + 1],), jnp.float32)
        beta = 0.1 * jax.random.normal(k4, (dims[l + 1],), jnp.float32)
        rmean = 0.1 * jax.random.normal(k5, (dims[l + 1],), jnp.float32)
        rvar = 1.0 + 0.1 * jax.random.uniform(k6, (dims[l + 1],), jnp.float32)
        params["bn"].append((gamma, beta, rmean, rvar))
    key, k1, k2 = jax.random.split(key, 3)
    bound = 1.0 / jnp.sqrt(dims[-1])
    params["Wf"] = jax.random.uniform(k1, (dims[-1], 1), jnp.float32, -bound, bound)
    params["bf"] = jax.random.uniform(k2, (1,), jnp.float32, -bound, bound)
    return params


def reference_forward(final_emb_drug, final_emb_target, edge_index, params):
    """Pure-JAX f32 reference (inference-mode) for a sanity check."""
    eps = 1e-5
    d = jnp.take(final_emb_drug, edge_index[:, 0], axis=0)
    p = jnp.take(final_emb_target, edge_index[:, 1], axis=0)
    x = p * d
    for l in range(len(params["W"])):
        x = jax.nn.relu(x @ params["W"][l] + params["b"][l])
        gamma, beta, rmean, rvar = params["bn"][l]
        x = (x - rmean) / jnp.sqrt(rvar + eps) * gamma + beta
    return jax.nn.sigmoid(x @ params["Wf"] + params["bf"])


if __name__ == "__main__":
    key = jax.random.PRNGKey(0)

    # Small synthetic problem (module's Drug_num/Protein_num constants are
    # unused by forward; we use small embedding tables).
    n_drugs, n_proteins = 64, 48
    nodefeat_size = 32          # Nodefeat_size
    nhidden = [32, 32]          # nhidden, nlayers = 2
    n_edges = 5000              # -> 3 grid steps of 2048 edges (padded)

    key, kd, kt, ke1, ke2, kp = jax.random.split(key, 6)
    final_emb_drug = jax.random.normal(kd, (n_drugs, nodefeat_size), jnp.float32)
    final_emb_target = jax.random.normal(kt, (n_proteins, nodefeat_size), jnp.float32)
    edge_index = jnp.stack(
        [jax.random.randint(ke1, (n_edges,), 0, n_drugs),      # drug index
         jax.random.randint(ke2, (n_edges,), 0, n_proteins)],  # protein index
        axis=1).astype(jnp.int32)

    params = init_params(kp, nodefeat_size, nhidden)
    ref = reference_forward(final_emb_drug, final_emb_target, edge_index, params)

    # Path A: in-kernel one-hot MXU gather (small tables).
    out_a = dti_decoder_forward(final_emb_drug, final_emb_target, edge_index,
                                params, tile_edges=2048)
    out_a = jax.block_until_ready(out_a)
    assert out_a.shape == (n_edges, 1)
    assert bool(jnp.all(jnp.isfinite(out_a)))
    err_a = float(jnp.max(jnp.abs(out_a - ref)))
    assert err_a < 3e-2, f"one-hot path mismatch vs JAX reference: {err_a}"

    # Path B: wrapper-side gather (large-table fallback), forced here for coverage.
    out_b = dti_decoder_forward(final_emb_drug, final_emb_target, edge_index,
                                params, tile_edges=2048, onehot_row_limit=0)
    out_b = jax.block_until_ready(out_b)
    assert out_b.shape == (n_edges, 1)
    assert bool(jnp.all(jnp.isfinite(out_b)))
    err_b = float(jnp.max(jnp.abs(out_b - ref)))
    assert err_b < 3e-2, f"wrapper-gather path mismatch vs JAX reference: {err_b}"

    print("KERNEL_OK")
</pallas_src>

<mosaic_0001>
module attributes {stable_mosaic.version = 11 : i64} {
  func.func @kernel(%arg0: i32, %arg1: memref<2048x1xi32, #tpu.memory_space<vmem>>, %arg2: memref<2048x1xi32, #tpu.memory_space<vmem>>, %arg3: memref<128x128xbf16, #tpu.memory_space<vmem>>, %arg4: memref<128x128xbf16, #tpu.memory_space<vmem>>, %arg5: memref<128x128xbf16, #tpu.memory_space<vmem>>, %arg6: memref<1x128xf32, #tpu.memory_space<vmem>>, %arg7: memref<128x128xbf16, #tpu.memory_space<vmem>>, %arg8: memref<1x128xf32, #tpu.memory_space<vmem>>, %arg9: memref<1x128xbf16, #tpu.memory_space<vmem>>, %arg10: memref<1x1xf32, #tpu.memory_space<vmem>>, %arg11: memref<1x1x2048xf32, #tpu.memory_space<vmem>>) attributes {dimension_semantics = [#tpu.dimension_semantics<parallel>], iteration_bounds = array<i64: 3>, scalar_prefetch = 0 : i64, scratch_operands = 0 : i64, tpu.core_type = #tpu.core_type<tc>, window_params = [{transform_indices = @transform_0, window_bounds = array<i64: 2048, 1>}, {transform_indices = @transform_1, window_bounds = array<i64: 2048, 1>}, {pipeline_mode = #tpu.pipeline_mode<synchronous>, transform_indices = @transform_2, window_bounds = array<i64: 128, 128>}, {pipeline_mode = #tpu.pipeline_mode<synchronous>, transform_indices = @transform_3, window_bounds = array<i64: 128, 128>}, {pipeline_mode = #tpu.pipeline_mode<synchronous>, transform_indices = @transform_4, window_bounds = array<i64: 128, 128>}, {pipeline_mode = #tpu.pipeline_mode<synchronous>, transform_indices = @transform_5, window_bounds = array<i64: 1, 128>}, {pipeline_mode = #tpu.pipeline_mode<synchronous>, transform_indices = @transform_6, window_bounds = array<i64: 128, 128>}, {pipeline_mode = #tpu.pipeline_mode<synchronous>, transform_indices = @transform_7, window_bounds = array<i64: 1, 128>}, {pipeline_mode = #tpu.pipeline_mode<synchronous>, transform_indices = @transform_8, window_bounds = array<i64: 1, 128>}, {pipeline_mode = #tpu.pipeline_mode<synchronous>, transform_indices = @transform_9, window_bounds = array<i64: 1, 1>}, {transform_indices = @transform_10, window_bounds = array<i64: 1, 1, 2048>}]} {
    %0 = tpu.iota {dimensions = array<i32: 1>} : vector<2048x128xi32>
    %c0 = arith.constant 0 : index
    %c0_0 = arith.constant 0 : index
    %1 = vector.load %arg1[%c0, %c0_0] : memref<2048x1xi32, #tpu.memory_space<vmem>>, vector<2048x1xi32>
    %2 = vector.broadcast %1 : vector<2048x1xi32> to vector<2048x128xi32>
    %3 = arith.cmpi eq, %0, %2 : vector<2048x128xi32>
    %4 = arith.extui %3 : vector<2048x128xi1> to vector<2048x128xi32>
    %5 = arith.sitofp %4 : vector<2048x128xi32> to vector<2048x128xf32>
    %6 = arith.truncf %5 : vector<2048x128xf32> to vector<2048x128xbf16>
    %7 = tpu.iota {dimensions = array<i32: 1>} : vector<2048x128xi32>
    %c0_1 = arith.constant 0 : index
    %c0_2 = arith.constant 0 : index
    %8 = vector.load %arg2[%c0_1, %c0_2] : memref<2048x1xi32, #tpu.memory_space<vmem>>, vector<2048x1xi32>
    %9 = vector.broadcast %8 : vector<2048x1xi32> to vector<2048x128xi32>
    %10 = arith.cmpi eq, %7, %9 : vector<2048x128xi32>
    %11 = arith.extui %10 : vector<2048x128xi1> to vector<2048x128xi32>
    %12 = arith.sitofp %11 : vector<2048x128xi32> to vector<2048x128xf32>
    %13 = arith.truncf %12 : vector<2048x128xf32> to vector<2048x128xbf16>
    %c0_3 = arith.constant 0 : index
    %c0_4 = arith.constant 0 : index
    %14 = vector.load %arg3[%c0_3, %c0_4] : memref<128x128xbf16, #tpu.memory_space<vmem>>, vector<128x128xbf16>
    %cst = arith.constant dense<0.000000e+00> : vector<2048x128xf32>
    %15 = tpu.matmul %6, %14, %cst {dimension_numbers = #tpu.dot_dimension_numbers<[1], [0], [0], [1], [0, 0, 1, 1], [], []>} : vector<2048x128xbf16>, vector<128x128xbf16>, vector<2048x128xf32> -> vector<2048x128xf32>
    %c0_5 = arith.constant 0 : index
    %c0_6 = arith.constant 0 : index
    %16 = vector.load %arg4[%c0_5, %c0_6] : memref<128x128xbf16, #tpu.memory_space<vmem>>, vector<128x128xbf16>
    %cst_7 = arith.constant dense<0.000000e+00> : vector<2048x128xf32>
    %17 = tpu.matmul %13, %16, %cst_7 {dimension_numbers = #tpu.dot_dimension_numbers<[1], [0], [0], [1], [0, 0, 1, 1], [], []>} : vector<2048x128xbf16>, vector<128x128xbf16>, vector<2048x128xf32> -> vector<2048x128xf32>
    %18 = arith.mulf %15, %17 : vector<2048x128xf32>
    %c0_8 = arith.constant 0 : index
    %c0_9 = arith.constant 0 : index
    %19 = vector.load %arg5[%c0_8, %c0_9] : memref<128x128xbf16, #tpu.memory_space<vmem>>, vector<128x128xbf16>
    %c0_10 = arith.constant 0 : index
    %c0_11 = arith.constant 0 : index
    %20 = vector.load %arg6[%c0_10, %c0_11] : memref<1x128xf32, #tpu.memory_space<vmem>>, vector<1x128xf32>
    %21 = arith.truncf %18 : vector<2048x128xf32> to vector<2048x128xbf16>
    %cst_12 = arith.constant dense<0.000000e+00> : vector<2048x128xf32>
    %22 = tpu.matmul %21, %19, %cst_12 {dimension_numbers = #tpu.dot_dimension_numbers<[1], [0], [0], [1], [0, 0, 1, 1], [], []>} : vector<2048x128xbf16>, vector<128x128xbf16>, vector<2048x128xf32> -> vector<2048x128xf32>
    %23 = vector.broadcast %20 : vector<1x128xf32> to vector<2048x128xf32>
    %24 = arith.addf %22, %23 : vector<2048x128xf32>
    %cst_13 = arith.constant 0.000000e+00 : f32
    %25 = vector.broadcast %cst_13 : f32 to vector<2048x128xf32>
    %26 = arith.maximumf %24, %25 : vector<2048x128xf32>
    %c0_14 = arith.constant 0 : index
    %c0_15 = arith.constant 0 : index
    %27 = vector.load %arg7[%c0_14, %c0_15] : memref<128x128xbf16, #tpu.memory_space<vmem>>, vector<128x128xbf16>
    %c0_16 = arith.constant 0 : index
    %c0_17 = arith.constant 0 : index
    %28 = vector.load %arg8[%c0_16, %c0_17] : memref<1x128xf32, #tpu.memory_space<vmem>>, vector<1x128xf32>
    %29 = arith.truncf %26 : vector<2048x128xf32> to vector<2048x128xbf16>
    %cst_18 = arith.constant dense<0.000000e+00> : vector<2048x128xf32>
    %30 = tpu.matmul %29, %27, %cst_18 {dimension_numbers = #tpu.dot_dimension_numbers<[1], [0], [0], [1], [0, 0, 1, 1], [], []>} : vector<2048x128xbf16>, vector<128x128xbf16>, vector<2048x128xf32> -> vector<2048x128xf32>
    %31 = vector.broadcast %28 : vector<1x128xf32> to vector<2048x128xf32>
    %32 = arith.addf %30, %31 : vector<2048x128xf32>
    %cst_19 = arith.constant 0.000000e+00 : f32
    %33 = vector.broadcast %cst_19 : f32 to vector<2048x128xf32>
    %34 = arith.maximumf %32, %33 : vector<2048x128xf32>
    %c0_20 = arith.constant 0 : index
    %c0_21 = arith.constant 0 : index
    %35 = vector.load %arg9[%c0_20, %c0_21] : memref<1x128xbf16, #tpu.memory_space<vmem>>, vector<1x128xbf16>
    %36 = arith.truncf %34 : vector<2048x128xf32> to vector<2048x128xbf16>
    %cst_22 = arith.constant dense<0.000000e+00> : vector<1x2048xf32>
    %37 = tpu.matmul %35, %36, %cst_22 {dimension_numbers = #tpu.dot_dimension_numbers<[1], [1], [0], [0], [0, 0, 1, 0], [], []>} : vector<1x128xbf16>, vector<2048x128xbf16>, vector<1x2048xf32> -> vector<1x2048xf32>
    %c0_23 = arith.constant 0 : index
    %c0_24 = arith.constant 0 : index
    %38 = vector.load %arg10[%c0_23, %c0_24] : memref<1x1xf32, #tpu.memory_space<vmem>>, vector<1x1xf32>
    %39 = vector.broadcast %38 : vector<1x1xf32> to vector<1x2048xf32>
    %40 = arith.addf %37, %39 : vector<1x2048xf32>
    %41 = arith.negf %40 : vector<1x2048xf32>
    %42 = math.exp %41 : vector<1x2048xf32>
    %cst_25 = arith.constant 1.000000e+00 : f32
    %43 = vector.broadcast %cst_25 : f32 to vector<1x2048xf32>
    %44 = arith.addf %43, %42 : vector<1x2048xf32>
    %45 = arith.divf %43, %44 : vector<1x2048xf32>
    %c0_26 = arith.constant 0 : index
    %c0_27 = arith.constant 0 : index
    %c0_28 = arith.constant 0 : index
    %46 = vector.load %arg11[%c0_26, %c0_27, %c0_28] : memref<1x1x2048xf32, #tpu.memory_space<vmem>>, vector<1x1x2048xf32>
    %47 = vector.shape_cast %46 : vector<1x1x2048xf32> to vector<1x2048xf32>
    %48 = vector.shape_cast %45 : vector<1x2048xf32> to vector<1x1x2048xf32>
    tpu.vector_store %arg11[%c0_26, %c0_27, %c0_28], %48 {strides = array<i32>} : memref<1x1x2048xf32, #tpu.memory_space<vmem>>, vector<1x1x2048xf32>,
    return
  }
  func.func @transform_0(%arg0: i32) -> (i32, i32) {
    %c0_i32 = arith.constant 0 : i32
    %c0_i32_0 = arith.constant 0 : i32
    return %arg0, %c0_i32 : i32, i32
  }
  func.func @transform_1(%arg0: i32) -> (i32, i32) {
    %c0_i32 = arith.constant 0 : i32
    %c0_i32_0 = arith.constant 0 : i32
    return %arg0, %c0_i32 : i32, i32
  }
  func.func @transform_2(%arg0: i32) -> (i32, i32) {
    %c0_i32 = arith.constant 0 : i32
    %c0_i32_0 = arith.constant 0 : i32
    %c0_i32_1 = arith.constant 0 : i32
    return %c0_i32, %c0_i32_0 : i32, i32
  }
  func.func @transform_3(%arg0: i32) -> (i32, i32) {
    %c0_i32 = arith.constant 0 : i32
    %c0_i32_0 = arith.constant 0 : i32
    %c0_i32_1 = arith.constant 0 : i32
    return %c0_i32, %c0_i32_0 : i32, i32
  }
  func.func @transform_4(%arg0: i32) -> (i32, i32) {
    %c0_i32 = arith.constant 0 : i32
    %c0_i32_0 = arith.constant 0 : i32
    %c0_i32_1 = arith.constant 0 : i32
    return %c0_i32, %c0_i32_0 : i32, i32
  }
  func.func @transform_5(%arg0: i32) -> (i32, i32) {
    %c0_i32 = arith.constant 0 : i32
    %c0_i32_0 = arith.constant 0 : i32
    %c0_i32_1 = arith.constant 0 : i32
    return %c0_i32, %c0_i32_0 : i32, i32
  }
  func.func @transform_6(%arg0: i32) -> (i32, i32) {
    %c0_i32 = arith.constant 0 : i32
    %c0_i32_0 = arith.constant 0 : i32
    %c0_i32_1 = arith.constant 0 : i32
    return %c0_i32, %c0_i32_0 : i32, i32
  }
  func.func @transform_7(%arg0: i32) -> (i32, i32) {
    %c0_i32 = arith.constant 0 : i32
    %c0_i32_0 = arith.constant 0 : i32
    %c0_i32_1 = arith.constant 0 : i32
    return %c0_i32, %c0_i32_0 : i32, i32
  }
  func.func @transform_8(%arg0: i32) -> (i32, i32) {
    %c0_i32 = arith.constant 0 : i32
    %c0_i32_0 = arith.constant 0 : i32
    %c0_i32_1 = arith.constant 0 : i32
    return %c0_i32, %c0_i32_0 : i32, i32
  }
  func.func @transform_9(%arg0: i32) -> (i32, i32) {
    %c0_i32 = arith.constant 0 : i32
    %c0_i32_0 = arith.constant 0 : i32
    %c0_i32_1 = arith.constant 0 : i32
    return %c0_i32, %c0_i32_0 : i32, i32
  }
  func.func @transform_10(%arg0: i32) -> (i32, i32, i32) {
    %c0_i32 = arith.constant 0 : i32
    %c0_i32_0 = arith.constant 0 : i32
    %c0_i32_1 = arith.constant 0 : i32
    return %arg0, %c0_i32, %c0_i32_0 : i32, i32, i32
  }
}

</mosaic_0001>

<bundles_post_ra>
// kernel: tpu_custom_call.1
= control target key start
LH: loop header
LB: loop body
LE: loop exit
PB: predicated region body
PF: predicated region fallthrough
CT: control target
= control target key end

     0   :  { %s15433_s0 = inlined_call_operand.vmem [shape: s32[6144,1], index: 0, kind: input, shape index: {}]   ;;  %s15434_s1 = inlined_call_operand.vmem [shape: s32[6144,1], index: 1, kind: input, shape index: {}]   ;;  %s15435_s2 = inlined_call_operand.vmem [shape: bf16[128,128], index: 2, kind: input, shape index: {}]   ;;  %s15436_s3 = inlined_call_operand.vmem [shape: bf16[128,128], index: 3, kind: input, shape index: {}]   ;;  %s15437_s4 = inlined_call_operand.vmem [shape: bf16[128,128], index: 4, kind: input, shape index: {}]   ;;  %s15438_s5 = inlined_call_operand.vmem [shape: f32[1,128], index: 5, kind: input, shape index: {}]   ;;  %s15439_s6 = inlined_call_operand.vmem [shape: bf16[128,128], index: 6, kind: input, shape index: {}]   ;;  %s15440_s7 = inlined_call_operand.vmem [shape: f32[1,128], index: 7, kind: input, shape index: {}]   ;;  %s15441_s8 = inlined_call_operand.vmem [shape: bf16[1,128], index: 8, kind: input, shape index: {}]   ;;  %s15442_s9 = inlined_call_operand.<no memory space> [shape: f32[1,1], index: 9, kind: input, shape index: {}]   ;;  %s15443_s10 = inlined_call_operand.hbm [shape: f32[3,1,2048], index: 10, kind: output, shape index: {}]  }
   0x1   :  { %v15_v0 = vstv %s15442_s9 }
   0x2   :  { %16 = vst [vmem:[#allocation2] sm:$0x1] %v15_v0 }
   0x3   :  { %17 = vsyncpa [#allocation4], 0 }
   0x4   :  { %19 = vsyncpa [#allocation4 + $0x1], 0  ;;  %s10365_s15 = smov 0   ;;  %s10367_s16 = smov 0  }
   0x5   :  { %s10369_s17 = smov 0   ;;  %s10371_s18 = smov 0  }
   0x6 LB: > { %s10386_s9 = sadd.s32 4294967295, %s10303_s18   ;;  %s8900_s19 = sadd.s32 4294967294, %s10303_s18   ;;  %s10303_s18 = sphi %s10371_s18, %s16285_s18   ;;  %s10299_s17 = sphi %s10369_s17, %s16284_s17   ;;  %s10295_s16 = sphi %s10367_s16, %s16283_s16   ;;  %s10291_s15 = sphi %s10365_s15, %s16282_s15  }
   0x7   : > { %s10390_s20 = sadd.s32 1, %s10303_s18   ;;  %s252_s21 = sadd.s32 1, %s10299_s17 }
   0x8   : > { %s249_s22 = ssub.s32 %s10303_s18, %s10390_s20  ;;  %p262_p0 = scmp.ne.s32.totalorder %s10299_s17, %s10295_s16 }
   0x9   : > { %p250_p1 = scmp.eq.s32.totalorder %s249_s22, 0  ;;  %p263_p2 = scmp.eq.s32.totalorder %s10386_s9, 2 }
   0xa   : > { %p268_p3 = scmp.ne.s32.totalorder %s10295_s16, %s10291_s15  ;;  %p269_p4 = scmp.eq.s32.totalorder %s8900_s19, 2 }
   0xb   : > { %s10401_s23 = scalar_select %p250_p1, %s10299_s17, %s252_s21  }
   0xc   : > { %p10403_p5 = por %p263_p2, %p262_p0  ;;  %p10407_p6 = por %p269_p4, %p268_p3 }
   0xd   : > { %p8903_p7 = scmp.ge.s32.totalorder %s10303_s18, 1  ;;  %p329_p8 = scmp.lt.s32.totalorder %s10303_s18, 4 }
   0xf   : > { %p330_p9 = pnand %p8903_p7, %p329_p8 }
  0x11   : > { %333 = sbr.rel (%p330_p9) target bundleno = 2995 (0xbb3), region = 60 }
  0x16   : > { %s8905_s26 = sshll.u32 %s10386_s9, 8  ;;  %v10305_v1 = vmov 0   ;;  %v10088_v26 = vld [vmem:[%s15435_s2 + $0x38] sm:$0xff]  ;;  %v10087_v30 = vld [vmem:[%s15435_s2 + $0x30] sm:$0xff]  ;;  %v10086_v31 = vld [vmem:[%s15435_s2 + $0x28] sm:$0xff]  ;;  %v384_v61 = vlaneseq  ;;  %s10078_s22 = sshll.u32 %s10386_s9, 4 }
  0x17   : > { %10156 = vset.pattern.permute.xlu2 %v10305_v1  ;;  %10155 = vset.pattern.permute.xlu1 %v10305_v1  ;;  %p373_p10 = scmp.lt.s32.totalorder %s8905_s26, 767  ;;  %v10085_v35 = vld [vmem:[%s15435_s2 + $0x20] sm:$0xff]  ;;  %v10084_v36 = vld [vmem:[%s15435_s2 + $0x18] sm:$0xff]  ;;  %v10083_v40 = vld [vmem:[%s15435_s2 + $0x10] sm:$0xff] }
  0x18   : > { %10154 = vset.pattern.permute.xlu0 %v10305_v1  ;;  %4290 = vmatpush.bf16.msra.mxu0 %v10088_v26  ;;  %v10082_v41 = vld [vmem:[%s15435_s2 + $0x8] sm:$0xff]  ;;  %v10081_v45 = vld [vmem:[%s15435_s2] sm:$0xff]  ;;  %v10504_v1 = vand.u32 127, %v384_v61 }
  0x19   : > { %s16287_s26 = smov (!%p373_p10, %s8905_s26), 767 }
  0x1a   : > { %s8906_s27 = sshll.u32 %s16287_s26, 3  ;;  %s8824_s26 = scalar_lea.hbm %s15443_s10, %s10078_s22 }
  0x1b   : > { %s10422_s30 = scalar_lea.vmem %s15433_s0, %s8906_s27  ;;  %s10540_s11 = scalar_lea.vmem %s15434_s1, %s8906_s27 }
  0x1c   : > { %v390_v2 = vld [vmem:[%s10422_s30 + $0x20] sm:$0xff]  ;;  %v388_v3 = vld [vmem:[%s10422_s30 + $0x10] sm:$0xff]  ;;  %v391_v5 = vld [vmem:[%s10422_s30 + $0x28] sm:$0xff]  ;;  %4291 = vmatpush.bf16.msra.mxu0 %v10087_v30  ;;  %s8828_s27 = sshll.u32 %s8824_s26, 4  ;;  %s10261_s22 = scalar_lea.hbm %s15443_s10, 48  ;;  %s8829_s27 = int_to_ptr.hbm [resolvable:$true] %s8828_s27 }
  0x1d   : > { %v386_v4 = vld [vmem:[%s10422_s30] sm:$0xff]  ;;  %655 = vperm.xlu2 %10156, %v390_v2   ;;  %649 = vperm.xlu1 %10155, %v388_v3   ;;  %v389_v6 = vld [vmem:[%s10422_s30 + $0x18] sm:$0xff]  ;;  %v387_v7 = vld [vmem:[%s10422_s30 + $0x8] sm:$0xff]  ;;  %s10255_s13 = sshra.s32 %s8829_s27, 4  ;;  %s10256_s13 = int_to_ptr.hbm [resolvable:$true] %s10255_s13 }
  0x1e   : > { %643 = vperm.xlu0 %10154, %v386_v4   ;;  %v394_v8 = vld [vmem:[%s10422_s30 + $0x40] sm:$0xff]  ;;  %v393_v9 = vld [vmem:[%s10422_s30 + $0x38] sm:$0xff]  ;;  %v392_v10 = vld [vmem:[%s10422_s30 + $0x30] sm:$0xff]  ;;  %s10257_s14 = scalar_lea.hbm %s10256_s13, 16  ;;  %p10262_p0 = scmp.lt.s32.totalorder %s10256_s13, %s15443_s10 }
  0x1f   : > { %v397_v11 = vld [vmem:[%s10422_s30 + $0x58] sm:$0xff]  ;;  %v396_v12 = vld [vmem:[%s10422_s30 + $0x50] sm:$0xff]  ;;  %v395_v13 = vld [vmem:[%s10422_s30 + $0x48] sm:$0xff]  ;;  %p10258_p11 = scmp.ne.s32.totalorder %s10256_s13, %s10257_s14  ;;  %p10263_p1 = scmp.lt.s32.totalorder %s10261_s22, %s10257_s14 }
  0x20   : > { %v400_v14 = vld [vmem:[%s10422_s30 + $0x70] sm:$0xff]  ;;  %v399_v15 = vld [vmem:[%s10422_s30 + $0x68] sm:$0xff]  ;;  %v398_v16 = vld [vmem:[%s10422_s30 + $0x60] sm:$0xff]  ;;  %4292 = vmatpush.bf16.msra.mxu0 %v10086_v31 }
  0x21   : > { %v403_v17 = vld [vmem:[%s10422_s30 + $0x88] sm:$0xff]  ;;  %v402_v18 = vld [vmem:[%s10422_s30 + $0x80] sm:$0xff]  ;;  %v401_v19 = vld [vmem:[%s10422_s30 + $0x78] sm:$0xff]  ;;  %p10259_p12 = pnand %p10258_p11, %p10403_p5  ;;  %p10264_p2 = por %p10263_p1, %p10262_p0 }
  0x22   : > { %v406_v20 = vld [vmem:[%s10422_s30 + $0xa0] sm:$0xff]  ;;  %v405_v21 = vld [vmem:[%s10422_s30 + $0x98] sm:$0xff]  ;;  %v404_v22 = vld [vmem:[%s10422_s30 + $0x90] sm:$0xff] }
  0x23   : > { %v409_v23 = vld [vmem:[%s10422_s30 + $0xb8] sm:$0xff]  ;;  %v408_v24 = vld [vmem:[%s10422_s30 + $0xb0] sm:$0xff]  ;;  %v407_v25 = vld [vmem:[%s10422_s30 + $0xa8] sm:$0xff]  ;;  %p10260_p13 = pneg %p10259_p12 }
  0x24   : > { %v412_v27 = vld [vmem:[%s10422_s30 + $0xd0] sm:$0xff]  ;;  %v411_v28 = vld [vmem:[%s10422_s30 + $0xc8] sm:$0xff]  ;;  %v410_v29 = vld [vmem:[%s10422_s30 + $0xc0] sm:$0xff]  ;;  %4293 = vmatpush.bf16.msra.mxu0 %v10085_v35 }
  0x25   : > { %658 = vperm.xlu2 %10156, %v391_v5   ;;  %652 = vperm.xlu1 %10155, %v389_v6   ;;  %v415_v32 = vld [vmem:[%s10422_s30 + $0xe8] sm:$0xff]  ;;  %v414_v33 = vld [vmem:[%s10422_s30 + $0xe0] sm:$0xff]  ;;  %v413_v34 = vld [vmem:[%s10422_s30 + $0xd8] sm:$0xff]  ;;  %p10265_p3 = pnand %p10264_p2, %p10260_p13 }
  0x26   : > { %646 = vperm.xlu0 %10154, %v387_v7   ;;  %v418_v37 = vld [vmem:[%s10422_s30 + $0x100] sm:$0xff]  ;;  %v417_v38 = vld [vmem:[%s10422_s30 + $0xf8] sm:$0xff]  ;;  %v416_v39 = vld [vmem:[%s10422_s30 + $0xf0] sm:$0xff]  ;;  %v15444_v7 = vmov 1.0|1.0  }
  0x27   : > { %v421_v42 = vld [vmem:[%s10422_s30 + $0x118] sm:$0xff]  ;;  %v420_v43 = vld [vmem:[%s10422_s30 + $0x110] sm:$0xff]  ;;  %v419_v44 = vld [vmem:[%s10422_s30 + $0x108] sm:$0xff] }
  0x28   : > { %4294 = vmatpush.bf16.msra.mxu0 %v10084_v36  ;;  %v424_v47 = vld [vmem:[%s10422_s30 + $0x130] sm:$0xff]  ;;  %v423_v48 = vld [vmem:[%s10422_s30 + $0x128] sm:$0xff]  ;;  %v422_v49 = vld [vmem:[%s10422_s30 + $0x120] sm:$0xff] }
  0x29   : > { %v427_v51 = vld [vmem:[%s10422_s30 + $0x148] sm:$0xff]  ;;  %v426_v52 = vld [vmem:[%s10422_s30 + $0x140] sm:$0xff]  ;;  %v425_v53 = vld [vmem:[%s10422_s30 + $0x138] sm:$0xff] }
  0x2a   : > { %v430_v55 = vld [vmem:[%s10422_s30 + $0x160] sm:$0xff]  ;;  %v429_v56 = vld [vmem:[%s10422_s30 + $0x158] sm:$0xff]  ;;  %v428_v57 = vld [vmem:[%s10422_s30 + $0x150] sm:$0xff] }
  0x2b   : > { %v433_v62 = vld [vmem:[%s10422_s30 + $0x178] sm:$0xff]  ;;  %v432_v63 = vld [vmem:[%s10422_s30 + $0x170] sm:$0xff]  ;;  %v431_v0 = vld [vmem:[%s10422_s30 + $0x168] sm:$0xff] }
  0x2c   : > { %4295 = vmatpush.bf16.msra.mxu0 %v10083_v40  ;;  %v436_v5 = vld [vmem:[%s10422_s30 + $0x190] sm:$0xff]  ;;  %v435_v6 = vld [vmem:[%s10422_s30 + $0x188] sm:$0xff]  ;;  %v2309_v31 = vld [vmem:[%s10540_s11 + $0x18] sm:$0xff] }
  0x2d   : > { %667 = vperm.xlu2 %10156, %v394_v8   ;;  %664 = vperm.xlu1 %10155, %v393_v9   ;;  %v434_v8 = vld [vmem:[%s10422_s30 + $0x180] sm:$0xff]  ;;  %v443_v26 = vld [vmem:[%s10422_s30 + $0x1c8] sm:$0xff]  ;;  %v444_v30 = vld [vmem:[%s10422_s30 + $0x1d0] sm:$0xff] }
  0x2e   : > { %661 = vperm.xlu0 %10154, %v392_v10   ;;  %v445_v36 = vld [vmem:[%s10422_s30 + $0x1d8] sm:$0xff] }
  0x30   : > { %4296 = vmatpush.bf16.msra.mxu0 %v10082_v41 }
  0x34   : > { %4297 = vmatpush.bf16.msra.mxu0 %v10081_v45 }
  0x35   : > { %676 = vperm.xlu2 %10156, %v397_v11   ;;  %673 = vperm.xlu1 %10155, %v396_v12   ;;  %v439_v12 = vld [vmem:[%s10422_s30 + $0x1a8] sm:$0xff] }
  0x36   : > { %670 = vperm.xlu0 %10154, %v395_v13   ;;  %v438_v13 = vld [vmem:[%s10422_s30 + $0x1a0] sm:$0xff] }
  0x3d   : > { %685 = vperm.xlu2 %10156, %v400_v14   ;;  %682 = vperm.xlu1 %10155, %v399_v15   ;;  %v437_v14 = vld [vmem:[%s10422_s30 + $0x198] sm:$0xff] }
  0x3e   : > { %679 = vperm.xlu0 %10154, %v398_v16  }
  0x45   : > { %694 = vperm.xlu2 %10156, %v403_v17   ;;  %691 = vperm.xlu1 %10155, %v402_v18   ;;  %v442_v18 = vld [vmem:[%s10422_s30 + $0x1c0] sm:$0xff] }
  0x46   : > { %688 = vperm.xlu0 %10154, %v401_v19   ;;  %v441_v19 = vld [vmem:[%s10422_s30 + $0x1b8] sm:$0xff] }
  0x4d   : > { %703 = vperm.xlu2 %10156, %v406_v20   ;;  %700 = vperm.xlu1 %10155, %v405_v21   ;;  %v440_v20 = vld [vmem:[%s10422_s30 + $0x1b0] sm:$0xff] }
  0x4e   : > { %697 = vperm.xlu0 %10154, %v404_v22  }
  0x55   : > { %712 = vperm.xlu2 %10156, %v409_v23   ;;  %709 = vperm.xlu1 %10155, %v408_v24   ;;  %v2307_v24 = vld [vmem:[%s10540_s11 + $0x8] sm:$0xff] }
  0x56   : > { %706 = vperm.xlu0 %10154, %v407_v25   ;;  %v2306_v25 = vld [vmem:[%s10540_s11] sm:$0xff] }
  0x5d   : > { %721 = vperm.xlu2 %10156, %v412_v27   ;;  %718 = vperm.xlu1 %10155, %v411_v28  }
  0x5e   : > { %715 = vperm.xlu0 %10154, %v410_v29  }
  0x65   : > { %730 = vperm.xlu2 %10156, %v415_v32   ;;  %727 = vperm.xlu1 %10155, %v414_v33   ;;  %v2308_v32 = vld [vmem:[%s10540_s11 + $0x10] sm:$0xff] }
  0x66   : > { %724 = vperm.xlu0 %10154, %v413_v34  }
  0x6d   : > { %739 = vperm.xlu2 %10156, %v418_v37   ;;  %736 = vperm.xlu1 %10155, %v417_v38   ;;  %v2311_v37 = vld [vmem:[%s10540_s11 + $0x28] sm:$0xff]  ;;  %v2310_v38 = vld [vmem:[%s10540_s11 + $0x20] sm:$0xff] }
  0x6e   : > { %733 = vperm.xlu0 %10154, %v416_v39  }
  0x75   : > { %748 = vperm.xlu2 %10156, %v421_v42   ;;  %745 = vperm.xlu1 %10155, %v420_v43   ;;  %v2314_v42 = vld [vmem:[%s10540_s11 + $0x40] sm:$0xff]  ;;  %v2313_v43 = vld [vmem:[%s10540_s11 + $0x38] sm:$0xff] }
  0x76   : > { %742 = vperm.xlu0 %10154, %v419_v44   ;;  %v2312_v44 = vld [vmem:[%s10540_s11 + $0x30] sm:$0xff] }
  0x77   : > { %v10484_v46 = vpop.permute.xlu2 %655 }
  0x78   : > { %vm1414_vm6 = vcmp.eq.s32.totalorder %v10504_v1, %v10484_v46 }
  0x7d   : > { %757 = vperm.xlu2 %10156, %v424_v47   ;;  %754 = vperm.xlu1 %10155, %v423_v48   ;;  %v2316_v48 = vld [vmem:[%s10540_s11 + $0x50] sm:$0xff] }
  0x7e   : > { %751 = vperm.xlu0 %10154, %v422_v49   ;;  %v446_v49 = vld [vmem:[%s10422_s30 + $0x1e0] sm:$0xff] }
  0x7f   : > { %v10489_v50 = vpop.permute.xlu2 %658 }
  0x80   : > { %vm1415_vm7 = vcmp.eq.s32.totalorder %v10504_v1, %v10489_v50  ;;  %v2315_v50 = vld [vmem:[%s10540_s11 + $0x48] sm:$0xff] }
  0x81   : > { %vm9457_vm8 = vmpackc.low %vm1415_vm7, %vm1414_vm6 }
  0x85   : > { %766 = vperm.xlu2 %10156, %v427_v51   ;;  %763 = vperm.xlu1 %10155, %v426_v52  }
  0x86   : > { %760 = vperm.xlu0 %10154, %v425_v53  }
  0x87   : > { %v10494_v54 = vpop.permute.xlu2 %667 }
  0x88   : > { %vm1418_vm13 = vcmp.eq.s32.totalorder %v10504_v1, %v10494_v54  ;;  %v2320_v54 = vld [vmem:[%s10540_s11 + $0x70] sm:$0xff] }
  0x8d   : > { %775 = vperm.xlu2 %10156, %v430_v55   ;;  %772 = vperm.xlu1 %10155, %v429_v56   ;;  %v2318_v55 = vld [vmem:[%s10540_s11 + $0x60] sm:$0xff]  ;;  %v447_v56 = vld [vmem:[%s10422_s30 + $0x1e8] sm:$0xff] }
  0x8e   : > { %769 = vperm.xlu0 %10154, %v428_v57   ;;  %v2317_v57 = vld [vmem:[%s10540_s11 + $0x58] sm:$0xff] }
  0x8f   : > { %v10499_v58 = vpop.permute.xlu2 %676  ;;  %v650_v59 = vpop.permute.xlu1 %649 }
  0x90   : > { %v644_v60 = vpop.permute.xlu0 %643  ;;  %vm1412_vm4 = vcmp.eq.s32.totalorder %v10504_v1, %v650_v59 }
  0x91   : > { %vm1410_vm0 = vcmp.eq.s32.totalorder %v10504_v1, %v644_v60 }
  0x95   : > { %784 = vperm.xlu2 %10156, %v433_v62   ;;  %781 = vperm.xlu1 %10155, %v432_v63   ;;  %v2321_v62 = vld [vmem:[%s10540_s11 + $0x78] sm:$0xff]  ;;  %v2319_v63 = vld [vmem:[%s10540_s11 + $0x68] sm:$0xff] }
  0x96   : > { %778 = vperm.xlu0 %10154, %v431_v0  }
  0x97   : > { %v10507_v2 = vpop.permute.xlu2 %685  ;;  %v653_v3 = vpop.permute.xlu1 %652 }
  0x98   : > { %v647_v4 = vpop.permute.xlu0 %646  ;;  %vm1413_vm3 = vcmp.eq.s32.totalorder %v10504_v1, %v653_v3  ;;  %vm1424_vm6 = vcmp.eq.s32.totalorder %v10504_v1, %v10507_v2  ;;  %v2333_v2 = vld [vmem:[%s10540_s11 + $0xd8] sm:$0xff] }
  0x99   : > { %vm1411_vm1 = vcmp.eq.s32.totalorder %v10504_v1, %v647_v4  ;;  %vm9455_vm5 = vmpackc.low %vm1413_vm3, %vm1412_vm4 }
  0x9a   : > { %vm9453_vm2 = vmpackc.low %vm1411_vm1, %vm1410_vm0  ;;  %vm1421_vm0 = vcmp.eq.s32.totalorder %v10504_v1, %v10499_v58  ;;  %v10095_v58 = vld [vmem:[%s15436_s3 + $0x30] sm:$0xff] }
  0x9b   : > { %9454 = vmatmul.msk.bf16.vlgmr.msra.gmra.mxu0 %vm9453_vm2, %v15444_v7 }
  0x9d   : > { %793 = vperm.xlu2 %10156, %v436_v5   ;;  %790 = vperm.xlu1 %10155, %v435_v6   ;;  %v2323_v5 = vld [vmem:[%s10540_s11 + $0x88] sm:$0xff]  ;;  %v2322_v6 = vld [vmem:[%s10540_s11 + $0x80] sm:$0xff] }
  0x9e   : > { %787 = vperm.xlu0 %10154, %v434_v8   ;;  %v10096_v8 = vld [vmem:[%s15436_s3 + $0x38] sm:$0xff] }
  0x9f   : > { %v10514_v9 = vpop.permute.xlu2 %694  ;;  %v665_v10 = vpop.permute.xlu1 %664  ;;  %5003 = vmatpush.bf16.msra.mxu1 %v10096_v8 }
  0xa0   : > { %v662_v11 = vpop.permute.xlu0 %661  ;;  %vm1417_vm9 = vcmp.eq.s32.totalorder %v10504_v1, %v665_v10  ;;  %v448_v10 = vld [vmem:[%s10422_s30 + $0x1f0] sm:$0xff] }
  0xa1   : > { %vm1416_vm10 = vcmp.eq.s32.totalorder %v10504_v1, %v662_v11 }
  0xa2   : > { %vm9459_vm11 = vmpackc.low %vm1417_vm9, %vm1416_vm10  ;;  %vm1427_vm9 = vcmp.eq.s32.totalorder %v10504_v1, %v10514_v9  ;;  %v2337_v9 = vld [vmem:[%s10540_s11 + $0xf8] sm:$0xff] }
  0xa3   : > { %5004 = vmatpush.bf16.msra.mxu1 %v10095_v58 }
  0xa5   : > { %802 = vperm.xlu2 %10156, %v439_v12   ;;  %799 = vperm.xlu1 %10155, %v438_v13  }
  0xa6   : > { %796 = vperm.xlu0 %10154, %v437_v14   ;;  %v2325_v14 = vld [vmem:[%s10540_s11 + $0x98] sm:$0xff] }
  0xa7   : > { %v10520_v15 = vpop.permute.xlu2 %703  ;;  %v10522_v16 = vpop.permute.xlu1 %673 }
  0xa8   : > { %v10524_v17 = vpop.permute.xlu0 %670  ;;  %vm1420_vm15 = vcmp.eq.s32.totalorder %v10504_v1, %v10522_v16  ;;  %v2324_v16 = vld [vmem:[%s10540_s11 + $0x90] sm:$0xff] }
  0xa9   : > { %vm1419_vm12 = vcmp.eq.s32.totalorder %v10504_v1, %v10524_v17  ;;  %vm9463_vm1 = vmpackc.low %vm1421_vm0, %vm1420_vm15  ;;  %v10094_v17 = vld [vmem:[%s15436_s3 + $0x28] sm:$0xff] }
  0xaa   : > { %vm9461_vm14 = vmpackc.low %vm1419_vm12, %vm1418_vm13  ;;  %5005 = vmatpush.bf16.msra.mxu1 %v10094_v17  ;;  %v453_v17 = vld [vmem:[%s10422_s30 + $0x218] sm:$0xff] }
  0xab   : > { %9456 = vmatmul.msk.bf16.gmra.mxu0 %vm9455_vm5, %v15444_v7 }
  0xad   : > { %811 = vperm.xlu2 %10156, %v442_v18   ;;  %808 = vperm.xlu1 %10155, %v441_v19   ;;  %v449_v18 = vld [vmem:[%s10422_s30 + $0x1f8] sm:$0xff]  ;;  %v10093_v19 = vld [vmem:[%s15436_s3 + $0x20] sm:$0xff] }
  0xae   : > { %805 = vperm.xlu0 %10154, %v440_v20   ;;  %5006 = vmatpush.bf16.msra.mxu1 %v10093_v19 }
  0xaf   : > { %v10531_v21 = vpop.permute.xlu2 %712  ;;  %v10533_v22 = vpop.permute.xlu1 %682 }
  0xb0   : > { %v10542_v23 = vpop.permute.xlu0 %679  ;;  %vm1423_vm2 = vcmp.eq.s32.totalorder %v10504_v1, %v10533_v22  ;;  %v2327_v22 = vld [vmem:[%s10540_s11 + $0xa8] sm:$0xff] }
  0xb1   : > { %vm1422_vm3 = vcmp.eq.s32.totalorder %v10504_v1, %v10542_v23  ;;  %v10092_v23 = vld [vmem:[%s15436_s3 + $0x18] sm:$0xff] }
  0xb2   : > { %vm9465_vm4 = vmpackc.low %vm1423_vm2, %vm1422_vm3  ;;  %5007 = vmatpush.bf16.msra.mxu1 %v10092_v23  ;;  %v2339_v23 = vld [vmem:[%s10540_s11 + $0x108] sm:$0xff] }
  0xb5   : > { %2566 = vperm.xlu2 %10156, %v2307_v24   ;;  %2563 = vperm.xlu1 %10155, %v2306_v25  }
  0xb6   : > { %814 = vperm.xlu0 %10154, %v443_v26   ;;  %v450_v26 = vld [vmem:[%s10422_s30 + $0x200] sm:$0xff] }
  0xb7   : > { %v10551_v27 = vpop.permute.xlu2 %721  ;;  %v10553_v28 = vpop.permute.xlu1 %691 }
  0xb8   : > { %v10555_v29 = vpop.permute.xlu0 %688 }
  0xb9   : > { %vm1425_vm5 = vcmp.eq.s32.totalorder %v10504_v1, %v10555_v29 }
  0xba   : > { %vm9467_vm7 = vmpackc.low %vm1425_vm5, %vm1424_vm6 }
  0xbb   : > { %9458 = vmatmul.msk.bf16.gmra.mxu0 %vm9457_vm8, %v15444_v7  ;;  %vm1426_vm8 = vcmp.eq.s32.totalorder %v10504_v1, %v10553_v28  ;;  %v2335_v28 = vld [vmem:[%s10540_s11 + $0xe8] sm:$0xff] }
  0xbc   : > { %vm9469_vm10 = vmpackc.low %vm1427_vm9, %vm1426_vm8 }
  0xbd   : > { %817 = vperm.xlu2 %10156, %v444_v30   ;;  %2572 = vperm.xlu1 %10155, %v2309_v31   ;;  %v2326_v30 = vld [vmem:[%s10540_s11 + $0xa0] sm:$0xff]  ;;  %v10091_v31 = vld [vmem:[%s15436_s3 + $0x10] sm:$0xff] }
  0xbe   : > { %2569 = vperm.xlu0 %10154, %v2308_v32   ;;  %5008 = vmatpush.bf16.msra.mxu1 %v10091_v31 }
  0xbf   : > { %v10561_v33 = vpop.permute.xlu2 %730  ;;  %v10563_v34 = vpop.permute.xlu1 %700 }
  0xc0   : > { %v10565_v35 = vpop.permute.xlu0 %697 }
  0xc1   : > { %vm1428_vm12 = vcmp.eq.s32.totalorder %v10504_v1, %v10565_v35  ;;  %v2340_v35 = vld [vmem:[%s10540_s11 + $0x110] sm:$0xff] }
  0xc5   : > { %820 = vperm.xlu2 %10156, %v445_v36   ;;  %2578 = vperm.xlu1 %10155, %v2311_v37  }
  0xc6   : > { %2575 = vperm.xlu0 %10154, %v2310_v38   ;;  %v451_v38 = vld [vmem:[%s10422_s30 + $0x208] sm:$0xff] }
  0xc7   : > { %v10572_v39 = vpop.permute.xlu2 %739  ;;  %v10574_v40 = vpop.permute.xlu1 %709 }
  0xc8   : > { %v10576_v41 = vpop.permute.xlu0 %706  ;;  %vm1432_vm9 = vcmp.eq.s32.totalorder %v10504_v1, %v10574_v40  ;;  %v2348_v40 = vld [vmem:[%s10540_s11 + $0x150] sm:$0xff] }
  0xc9   : > { %vm1431_vm3 = vcmp.eq.s32.totalorder %v10504_v1, %v10576_v41  ;;  %v2344_v41 = vld [vmem:[%s10540_s11 + $0x130] sm:$0xff] }
  0xcb   : > { %9460 = vmatmul.msk.bf16.gmra.mxu0 %vm9459_vm11, %v15444_v7  ;;  %vm1429_vm11 = vcmp.eq.s32.totalorder %v10504_v1, %v10563_v34  ;;  %v2341_v34 = vld [vmem:[%s10540_s11 + $0x118] sm:$0xff] }
  0xcc   : > { %vm9471_vm0 = vmpackc.low %vm1429_vm11, %vm1428_vm12 }
  0xcd   : > { %2587 = vperm.xlu2 %10156, %v2314_v42   ;;  %2584 = vperm.xlu1 %10155, %v2313_v43   ;;  %v2329_v42 = vld [vmem:[%s10540_s11 + $0xb8] sm:$0xff]  ;;  %v10090_v43 = vld [vmem:[%s15436_s3 + $0x8] sm:$0xff] }
  0xce   : > { %2581 = vperm.xlu0 %10154, %v2312_v44   ;;  %v2328_v44 = vld [vmem:[%s10540_s11 + $0xb0] sm:$0xff]  ;;  %5009 = vmatpush.bf16.msra.mxu1 %v10090_v43 }
  0xcf   : > { %v10582_v45 = vpop.permute.xlu2 %748  ;;  %v10584_v46 = vpop.permute.xlu1 %718 }
  0xd0   : > { %v10586_v47 = vpop.permute.xlu0 %715 }
  0xd5   : > { %2593 = vperm.xlu2 %10156, %v2316_v48   ;;  %823 = vperm.xlu1 %10155, %v446_v49   ;;  %v10089_v48 = vld [vmem:[%s15436_s3] sm:$0xff] }
  0xd6   : > { %2590 = vperm.xlu0 %10154, %v2315_v50   ;;  %5010 = vmatpush.bf16.msra.mxu1 %v10089_v48 }
  0xd7   : > { %v10593_v51 = vpop.permute.xlu2 %757  ;;  %v10595_v52 = vpop.permute.xlu1 %727 }
  0xd8   : > { %v10597_v53 = vpop.permute.xlu0 %724 }
  0xdb   : > { %9462 = vmatmul.msk.bf16.gmra.mxu0 %vm9461_vm14, %v15444_v7 }
  0xdd   : > { %2599 = vperm.xlu2 %10156, %v2318_v55   ;;  %826 = vperm.xlu1 %10155, %v447_v56   ;;  %v2332_v56 = vld [vmem:[%s10540_s11 + $0xd0] sm:$0xff] }
  0xde   : > { %2596 = vperm.xlu0 %10154, %v2317_v57   ;;  %v2331_v57 = vld [vmem:[%s10540_s11 + $0xc8] sm:$0xff] }
  0xdf   : > { %v10605_v59 = vpop.permute.xlu2 %766  ;;  %v10607_v60 = vpop.permute.xlu1 %736 }
  0xe0   : > { %v10609_v61 = vpop.permute.xlu0 %733 }
  0xe5   : > { %2608 = vperm.xlu2 %10156, %v2321_v62   ;;  %2605 = vperm.xlu1 %10155, %v2320_v54   ;;  %v2330_v62 = vld [vmem:[%s10540_s11 + $0xc0] sm:$0xff] }
  0xe6   : > { %2602 = vperm.xlu0 %10154, %v2319_v63  }
  0xe7   : > { %v10616_v0 = vpop.permute.xlu2 %775  ;;  %v10618_v3 = vpop.permute.xlu1 %745 }
  0xe8   : > { %v10622_v4 = vpop.permute.xlu0 %742 }
  0xeb   : > { %9464 = vmatmul.msk.bf16.gmra.mxu0 %vm9463_vm1, %v15444_v7 }
  0xed   : > { %2614 = vperm.xlu2 %10156, %v2323_v5   ;;  %2611 = vperm.xlu1 %10155, %v2322_v6   ;;  %v2334_v5 = vld [vmem:[%s10540_s11 + $0xe0] sm:$0xff]  ;;  %v452_v6 = vld [vmem:[%s10422_s30 + $0x210] sm:$0xff] }
  0xee   : > { %829 = vperm.xlu0 %10154, %v448_v10  }
  0xef   : > { %v10634_v11 = vpop.permute.xlu2 %784  ;;  %v10636_v12 = vpop.permute.xlu1 %754 }
  0xf0   : > { %v10638_v13 = vpop.permute.xlu0 %751 }
  0xf5   : > { %2620 = vperm.xlu2 %10156, %v2325_v14   ;;  %2617 = vperm.xlu1 %10155, %v2324_v16   ;;  %v2336_v16 = vld [vmem:[%s10540_s11 + $0xf0] sm:$0xff] }
  0xf6   : > { %832 = vperm.xlu0 %10154, %v449_v18  }
  0xf7   : > { %v10653_v20 = vpop.permute.xlu2 %793  ;;  %v10655_v24 = vpop.permute.xlu1 %763 }
  0xf8   : > { %15499 = vst [vmem:[#allocation6_spill] sm:$0xff] %v10653_v20  ;;  %v10657_v25 = vpop.permute.xlu0 %760  ;;  %v464_v20 = vld [vmem:[%s10422_s30 + $0x270] sm:$0xff] }
  0xfb   : > { %9466 = vmatmul.msk.bf16.gmra.mxu0 %vm9465_vm4, %v15444_v7  ;;  %vm1430_vm4 = vcmp.eq.s32.totalorder %v10504_v1, %v10520_v15 }
  0xfc   : > { %vm9473_vm6 = vmpackc.low %vm1431_vm3, %vm1430_vm4  ;;  %vm1437_vm4 = vcmp.eq.s32.totalorder %v10504_v1, %v10597_v53  ;;  %v2359_v53 = vld [vmem:[%s10540_s11 + $0x1a8] sm:$0xff] }
  0xfd   : > { %835 = vperm.xlu2 %10156, %v450_v26   ;;  %2626 = vperm.xlu1 %10155, %v2327_v22  }
  0xfe   : > { %2623 = vperm.xlu0 %10154, %v2326_v30   ;;  %v2338_v30 = vld [vmem:[%s10540_s11 + $0x100] sm:$0xff] }
  0xff   : > { %v10669_v32 = vpop.permute.xlu2 %802  ;;  %v10671_v36 = vpop.permute.xlu1 %772 }
 0x100   : > { %15500 = vst [vmem:[#allocation7_spill] sm:$0xff] %v10669_v32  ;;  %v10673_v37 = vpop.permute.xlu0 %769  ;;  %v2365_v32 = vld [vmem:[%s10540_s11 + $0x1d8] sm:$0xff] }
 0x105   : > { %838 = vperm.xlu2 %10156, %v451_v38   ;;  %2632 = vperm.xlu1 %10155, %v2329_v42  }
 0x106   : > { %2629 = vperm.xlu0 %10154, %v2328_v44   ;;  %v454_v44 = vld [vmem:[%s10422_s30 + $0x220] sm:$0xff] }
 0x107   : > { %v10686_v49 = vpop.permute.xlu2 %811  ;;  %v10688_v50 = vpop.permute.xlu1 %781 }
 0x108   : > { %15501 = vst [vmem:[#allocation8_spill] sm:$0xff] %v10686_v49  ;;  %v10690_v55 = vpop.permute.xlu0 %778  ;;  %v461_v49 = vld [vmem:[%s10422_s30 + $0x258] sm:$0xff] }
 0x10b   : > { %9468 = vmatmul.msk.bf16.gmra.mxu0 %vm9467_vm7, %v15444_v7 }
 0x10d   : > { %2641 = vperm.xlu2 %10156, %v2332_v56   ;;  %2638 = vperm.xlu1 %10155, %v2331_v57  }
 0x10e   : > { %2635 = vperm.xlu0 %10154, %v2330_v62  }
 0x10f   : > { %v2567_v29 = vpop.permute.xlu2 %2566  ;;  %v10698_v54 = vpop.permute.xlu1 %790 }
 0x110   : > { %v10700_v63 = vpop.permute.xlu0 %787  ;;  %vm3331_vm13 = vcmp.eq.s32.totalorder %v10504_v1, %v2567_v29  ;;  %v2343_v29 = vld [vmem:[%s10540_s11 + $0x128] sm:$0xff] }
 0x115   : > { %2647 = vperm.xlu2 %10156, %v2334_v5   ;;  %841 = vperm.xlu1 %10155, %v452_v6   ;;  %v2342_v5 = vld [vmem:[%s10540_s11 + $0x120] sm:$0xff]  ;;  %v455_v6 = vld [vmem:[%s10422_s30 + $0x228] sm:$0xff] }
 0x116   : > { %2644 = vperm.xlu0 %10154, %v2333_v2  }
 0x117   : > { %v10707_v8 = vpop.permute.xlu2 %817  ;;  %v10709_v10 = vpop.permute.xlu1 %799 }
 0x118   : > { %15502 = vst [vmem:[#allocation9_spill] sm:$0xff] %v10707_v8  ;;  %v10711_v58 = vpop.f32.mrf.mxu0  ;;  %v10713_v14 = vpop.permute.xlu0 %796  ;;  %v2355_v8 = vld [vmem:[%s10540_s11 + $0x188] sm:$0xff] }
 0x119   : > { %15503 = vst [vmem:[#allocation10_spill] sm:$0xff] %v10709_v10  ;;  %v2370_v10 = vld [vmem:[%s10540_s11 + $0x200] sm:$0xff] }
 0x11b   : > { %9470 = vmatmul.msk.bf16.gmra.mxu0 %vm9469_vm10, %v15444_v7  ;;  %vm1433_vm10 = vcmp.eq.s32.totalorder %v10504_v1, %v10531_v21 }
 0x11c   : > { %vm9475_vm12 = vmpackc.low %vm1433_vm10, %vm1432_vm9  ;;  %vm1438_vm10 = vcmp.eq.s32.totalorder %v10504_v1, %v10595_v52  ;;  %v462_v52 = vld [vmem:[%s10422_s30 + $0x260] sm:$0xff] }
 0x11d   : > { %2653 = vperm.xlu2 %10156, %v2336_v16   ;;  %844 = vperm.xlu1 %10155, %v453_v17  }
 0x11e   : > { %2650 = vperm.xlu0 %10154, %v2335_v28  }
 0x11f   : > { %v10721_v18 = vpop.permute.xlu2 %820  ;;  %v10723_v19 = vpop.permute.xlu1 %808 }
 0x120   : > { %15504 = vst [vmem:[#allocation11_spill] sm:$0xff] %v10721_v18  ;;  %v10725_v26 = vpop.f32.mrf.mxu0  ;;  %v10727_v22 = vpop.permute.xlu0 %805  ;;  %v10104_v18 = vld [vmem:[%s15437_s4 + $0x38] sm:$0xff] }
 0x121   : > { %15505 = vst [vmem:[#allocation12_spill] sm:$0xff] %v10723_v19  ;;  %6104 = vmatpush.bf16.msra.mxu2 %v10104_v18  ;;  %v463_v19 = vld [vmem:[%s10422_s30 + $0x268] sm:$0xff] }
 0x122   : > { %15506 = vst [vmem:[#allocation13_spill] sm:$0xff] %v10727_v22 }
 0x125   : > { %2662 = vperm.xlu2 %10156, %v2339_v23   ;;  %2659 = vperm.xlu1 %10155, %v2338_v30   ;;  %v456_v23 = vld [vmem:[%s10422_s30 + $0x230] sm:$0xff]  ;;  %v2345_v30 = vld [vmem:[%s10540_s11 + $0x138] sm:$0xff] }
 0x126   : > { %2656 = vperm.xlu0 %10154, %v2337_v9  }
 0x127   : > { %v10736_v31 = vpop.permute.xlu2 %2587  ;;  %v2564_v38 = vpop.permute.xlu1 %2563 }
 0x128   : > { %vm3330_vm14 = vcmp.eq.s32.totalorder %v10504_v1, %v2564_v38  ;;  %v10740_v42 = vpop.f32.mrf.mxu0  ;;  %v10742_v43 = vpop.permute.xlu0 %814 }
 0x129   : > { %15507 = vst [vmem:[#allocation14_spill] sm:$0xff] %v10742_v43  ;;  %vm9741_vm15 = vmpackc.low %vm3331_vm13, %vm3330_vm14 }
 0x12a   : > { %9742 = vmatmul.msk.bf16.vlgmr.msra.gmra.mxu1 %vm9741_vm15, %v15444_v7  ;;  %vm1435_vm15 = vcmp.eq.s32.totalorder %v10504_v1, %v10584_v46  ;;  %v459_v46 = vld [vmem:[%s10422_s30 + $0x248] sm:$0xff] }
 0x12b   : > { %9472 = vmatmul.msk.bf16.gmra.mxu0 %vm9471_vm0, %v15444_v7  ;;  %vm1434_vm0 = vcmp.eq.s32.totalorder %v10504_v1, %v10586_v47  ;;  %v2353_v47 = vld [vmem:[%s10540_s11 + $0x178] sm:$0xff] }
 0x12d   : > { %2668 = vperm.xlu2 %10156, %v2341_v34   ;;  %2665 = vperm.xlu1 %10155, %v2340_v35   ;;  %v457_v35 = vld [vmem:[%s10422_s30 + $0x238] sm:$0xff] }
 0x12e   : > { %847 = vperm.xlu0 %10154, %v454_v44   ;;  %v2347_v44 = vld [vmem:[%s10540_s11 + $0x148] sm:$0xff] }
 0x12f   : > { %v10749_v48 = vpop.permute.xlu2 %2593  ;;  %v2573_v56 = vpop.permute.xlu1 %2572 }
 0x130   : > { %v10751_v57 = vpop.f32.mrf.mxu0  ;;  %v2570_v62 = vpop.permute.xlu0 %2569  ;;  %vm3333_vm1 = vcmp.eq.s32.totalorder %v10504_v1, %v2573_v56  ;;  %v2346_v56 = vld [vmem:[%s10540_s11 + $0x140] sm:$0xff] }
 0x131   : > { %vm3332_vm2 = vcmp.eq.s32.totalorder %v10504_v1, %v2570_v62 }
 0x132   : > { %vm9743_vm5 = vmpackc.low %vm3333_vm1, %vm3332_vm2 }
 0x133   : > { %vm9477_vm2 = vmpackc.low %vm1435_vm15, %vm1434_vm0  ;;  %vm1441_vm0 = vcmp.eq.s32.totalorder %v10504_v1, %v10607_v60  ;;  %v2368_v60 = vld [vmem:[%s10540_s11 + $0x1f0] sm:$0xff] }
 0x135   : > { %2674 = vperm.xlu2 %10156, %v2343_v29   ;;  %2671 = vperm.xlu1 %10155, %v2342_v5  }
 0x136   : > { %850 = vperm.xlu0 %10154, %v455_v6  }
 0x137   : > { %v10760_v2 = vpop.permute.xlu2 %2599  ;;  %v2579_v16 = vpop.permute.xlu1 %2578 }
 0x138   : > { %v10762_v17 = vpop.f32.mrf.mxu0  ;;  %v2576_v28 = vpop.permute.xlu0 %2575  ;;  %vm3335_vm7 = vcmp.eq.s32.totalorder %v10504_v1, %v2579_v16  ;;  %v2350_v16 = vld [vmem:[%s10540_s11 + $0x160] sm:$0xff] }
 0x139   : > { %vm3334_vm8 = vcmp.eq.s32.totalorder %v10504_v1, %v2576_v28  ;;  %v2349_v28 = vld [vmem:[%s10540_s11 + $0x158] sm:$0xff] }
 0x13a   : > { %9744 = vmatmul.msk.bf16.gmra.mxu1 %vm9743_vm5, %v15444_v7  ;;  %vm9745_vm11 = vmpackc.low %vm3335_vm7, %vm3334_vm8  ;;  %vm3338_vm5 = vcmp.eq.s32.totalorder %v10504_v1, %v10736_v31 }
 0x13b   : > { %9474 = vmatmul.msk.bf16.gmra.mxu0 %vm9473_vm6, %v15444_v7  ;;  %vm1436_vm6 = vcmp.eq.s32.totalorder %v10504_v1, %v10551_v27 }
 0x13c   : > { %vm9479_vm8 = vmpackc.low %vm1437_vm4, %vm1436_vm6  ;;  %vm1443_vm6 = vcmp.eq.s32.totalorder %v10504_v1, %v10622_v4  ;;  %v2372_v4 = vld [vmem:[%s10540_s11 + $0x210] sm:$0xff] }
 0x13d   : > { %853 = vperm.xlu2 %10156, %v456_v23   ;;  %2680 = vperm.xlu1 %10155, %v2345_v30  }
 0x13e   : > { %2677 = vperm.xlu0 %10154, %v2344_v41  }
 0x13f   : > { %v10771_v9 = vpop.permute.xlu2 %2608  ;;  %v2585_v38 = vpop.permute.xlu1 %2584 }
 0x140   : > { %v10773_v34 = vpop.f32.mrf.mxu0  ;;  %v2582_v15 = vpop.permute.xlu0 %2581  ;;  %vm3337_vm13 = vcmp.eq.s32.totalorder %v10504_v1, %v2585_v38  ;;  %v2354_v38 = vld [vmem:[%s10540_s11 + $0x180] sm:$0xff] }
 0x141   : > { %vm3336_vm14 = vcmp.eq.s32.totalorder %v10504_v1, %v2582_v15 }
 0x142   : > { %vm9747_vm1 = vmpackc.low %vm3337_vm13, %vm3336_vm14 }
 0x145   : > { %856 = vperm.xlu2 %10156, %v457_v35   ;;  %2686 = vperm.xlu1 %10155, %v2347_v44   ;;  %v2352_v35 = vld [vmem:[%s10540_s11 + $0x170] sm:$0xff]  ;;  %v458_v44 = vld [vmem:[%s10422_s30 + $0x240] sm:$0xff] }
 0x146   : > { %2683 = vperm.xlu0 %10154, %v2346_v56   ;;  %v2351_v56 = vld [vmem:[%s10540_s11 + $0x168] sm:$0xff] }
 0x147   : > { %v10782_v62 = vpop.permute.xlu2 %2614  ;;  %v10784_v29 = vpop.permute.xlu1 %823 }
 0x148   : > { %15508 = vst [vmem:[#allocation15_spill] sm:$0xff] %v10784_v29  ;;  %v10786_v5 = vpop.f32.mrf.mxu0  ;;  %v2591_v6 = vpop.permute.xlu0 %2590  ;;  %v2357_v29 = vld [vmem:[%s10540_s11 + $0x198] sm:$0xff] }
 0x149   : > { %vm3339_vm3 = vcmp.eq.s32.totalorder %v10504_v1, %v2591_v6  ;;  %v460_v6 = vld [vmem:[%s10422_s30 + $0x250] sm:$0xff] }
 0x14a   : > { %9746 = vmatmul.msk.bf16.gmra.mxu1 %vm9745_vm11, %v15444_v7  ;;  %vm9749_vm7 = vmpackc.low %vm3339_vm3, %vm3338_vm5  ;;  %vm3340_vm11 = vcmp.eq.s32.totalorder %v10504_v1, %v10749_v48  ;;  %v2362_v48 = vld [vmem:[%s10540_s11 + $0x1c0] sm:$0xff] }
 0x14b   : > { %9476 = vmatmul.msk.bf16.gmra.mxu0 %vm9475_vm12, %v15444_v7  ;;  %vm1439_vm12 = vcmp.eq.s32.totalorder %v10504_v1, %v10561_v33 }
 0x14c   : > { %vm9481_vm14 = vmpackc.low %vm1439_vm12, %vm1438_vm10  ;;  %vm1444_vm12 = vcmp.eq.s32.totalorder %v10504_v1, %v10618_v3  ;;  %v2377_v3 = vld [vmem:[%s10540_s11 + $0x238] sm:$0xff] }
 0x14d   : > { %2695 = vperm.xlu2 %10156, %v2350_v16   ;;  %2692 = vperm.xlu1 %10155, %v2349_v28  }
 0x14e   : > { %2689 = vperm.xlu0 %10154, %v2348_v40  }
 0x14f   : > { %v10795_v23 = vpop.permute.xlu2 %2620  ;;  %v10797_v30 = vpop.permute.xlu1 %826 }
 0x150   : > { %15509 = vst [vmem:[#allocation16_spill] sm:$0xff] %v10797_v30  ;;  %v10799_v41 = vpop.f32.mrf.mxu0  ;;  %v10801_v21 = vpop.permute.xlu0 %2596  ;;  %v2356_v30 = vld [vmem:[%s10540_s11 + $0x190] sm:$0xff] }
 0x151   : > { %vm3341_vm9 = vcmp.eq.s32.totalorder %v10504_v1, %v10801_v21  ;;  %v10102_v21 = vld [vmem:[%s15437_s4 + $0x28] sm:$0xff] }
 0x152   : > { %vm9751_vm13 = vmpackc.low %vm3341_vm9, %vm3340_vm11 }
 0x155   : > { %2701 = vperm.xlu2 %10156, %v2352_v35   ;;  %859 = vperm.xlu1 %10155, %v458_v44  }
 0x156   : > { %2698 = vperm.xlu0 %10154, %v2351_v56  }
 0x157   : > { %v10812_v16 = vpop.permute.xlu2 %835  ;;  %v10814_v28 = vpop.permute.xlu1 %2605 }
 0x158   : > { %15510 = vst [vmem:[#allocation17_spill] sm:$0xff] %v10812_v16  ;;  %v10816_v40 = vpop.f32.mrf.mxu0  ;;  %v10818_v35 = vpop.permute.xlu0 %2602  ;;  %vm3344_vm5 = vcmp.eq.s32.totalorder %v10504_v1, %v10814_v28 }
 0x159   : > { %vm3343_vm15 = vcmp.eq.s32.totalorder %v10504_v1, %v10818_v35  ;;  %v10099_v35 = vld [vmem:[%s15437_s4 + $0x10] sm:$0xff] }
 0x15a   : > { %9748 = vmatmul.msk.bf16.gmra.mxu1 %vm9747_vm1, %v15444_v7  ;;  %vm1440_vm1 = vcmp.eq.s32.totalorder %v10504_v1, %v10609_v61  ;;  %v2367_v61 = vld [vmem:[%s10540_s11 + $0x1e8] sm:$0xff] }
 0x15b   : > { %9478 = vmatmul.msk.bf16.gmra.mxu0 %vm9477_vm2, %v15444_v7  ;;  %vm3342_vm2 = vcmp.eq.s32.totalorder %v10504_v1, %v10760_v2  ;;  %vm9483_vm4 = vmpackc.low %vm1441_vm0, %vm1440_vm1  ;;  %v2366_v2 = vld [vmem:[%s10540_s11 + $0x1e0] sm:$0xff] }
 0x15c   : > { %vm9753_vm3 = vmpackc.low %vm3343_vm15, %vm3342_vm2  ;;  %vm1447_vm2 = vcmp.eq.s32.totalorder %v10504_v1, %v10636_v12  ;;  %v468_v12 = vld [vmem:[%s10422_s30 + $0x290] sm:$0xff] }
 0x15d   : > { %2707 = vperm.xlu2 %10156, %v2354_v38   ;;  %862 = vperm.xlu1 %10155, %v459_v46  }
 0x15e   : > { %2704 = vperm.xlu0 %10154, %v2353_v47  }
 0x15f   : > { %v10825_v15 = vpop.permute.xlu2 %838  ;;  %v10827_v44 = vpop.permute.xlu1 %2611 }
 0x160   : > { %15511 = vst [vmem:[#allocation18_spill] sm:$0xff] %v10825_v15  ;;  %v10829_v56 = vpop.f32.mrf.mxu0  ;;  %v10831_v16 = vpop.permute.xlu0 %829  ;;  %vm3346_vm11 = vcmp.eq.s32.totalorder %v10504_v1, %v10827_v44  ;;  %v2376_v44 = vld [vmem:[%s10540_s11 + $0x230] sm:$0xff] }
 0x161   : > { %15512 = vst [vmem:[#allocation19_spill] sm:$0xff] %v10831_v16  ;;  %v2361_v16 = vld [vmem:[%s10540_s11 + $0x1b8] sm:$0xff] }
 0x165   : > { %2716 = vperm.xlu2 %10156, %v2357_v29   ;;  %2713 = vperm.xlu1 %10155, %v2356_v30   ;;  %v2358_v29 = vld [vmem:[%s10540_s11 + $0x1a0] sm:$0xff] }
 0x166   : > { %2710 = vperm.xlu0 %10154, %v2355_v8   ;;  %v15514_v8 = vmov 1.0|1.0  }
 0x167   : > { %v10839_v38 = vpop.permute.xlu2 %2641  ;;  %v10841_v46 = vpop.permute.xlu1 %2617 }
 0x168   : > { %v10845_v47 = vpop.f32.mrf.mxu0  ;;  %v10847_v7 = vpop.permute.xlu0 %832  ;;  %vm3348_vm1 = vcmp.eq.s32.totalorder %v10504_v1, %v10841_v46  ;;  %v2380_v46 = vld [vmem:[%s10540_s11 + $0x250] sm:$0xff] }
 0x169   : > { %15513 = vst [vmem:[#allocation20_spill] sm:$0xff] %v10847_v7  ;;  %v2360_v7 = vld [vmem:[%s10540_s11 + $0x1b0] sm:$0xff] }
 0x16a   : > { %9750 = vmatmul.msk.bf16.gmra.mxu1 %vm9749_vm7, %v15514_v8  ;;  %vm3345_vm7 = vcmp.eq.s32.totalorder %v10504_v1, %v10771_v9 }
 0x16b   : > { %9480 = vmatmul.msk.bf16.gmra.mxu0 %vm9479_vm8, %v15514_v8  ;;  %vm1442_vm8 = vcmp.eq.s32.totalorder %v10504_v1, %v10572_v39  ;;  %vm9755_vm9 = vmpackc.low %vm3345_vm7, %vm3344_vm5 }
 0x16c   : > { %vm9485_vm10 = vmpackc.low %vm1443_vm6, %vm1442_vm8 }
 0x16d   : > { %2722 = vperm.xlu2 %10156, %v2359_v53   ;;  %2719 = vperm.xlu1 %10155, %v2358_v29  }
 0x16e   : > { %865 = vperm.xlu0 %10154, %v460_v6  }
 0x16f   : > { %v10856_v31 = vpop.permute.xlu2 %2647  ;;  %v10858_v30 = vpop.permute.xlu1 %2626 }
 0x170   : > { %v10860_v15 = vpop.f32.mrf.mxu0  ;;  %v10862_v27 = vpop.permute.xlu0 %2623  ;;  %vm3351_vm7 = vcmp.eq.s32.totalorder %v10504_v1, %v10858_v30  ;;  %v2386_v30 = vld [vmem:[%s10540_s11 + $0x280] sm:$0xff] }
 0x171   : > { %vm3350_vm8 = vcmp.eq.s32.totalorder %v10504_v1, %v10862_v27  ;;  %v2384_v27 = vld [vmem:[%s10540_s11 + $0x270] sm:$0xff] }
 0x175   : > { %2728 = vperm.xlu2 %10156, %v2361_v16   ;;  %2725 = vperm.xlu1 %10155, %v2360_v7   ;;  %v10103_v7 = vld [vmem:[%s15437_s4 + $0x30] sm:$0xff] }
 0x176   : > { %868 = vperm.xlu0 %10154, %v461_v49   ;;  %v2363_v49 = vld [vmem:[%s10540_s11 + $0x1c8] sm:$0xff]  ;;  %6105 = vmatpush.bf16.msra.mxu2 %v10103_v7  ;;  %v10101_v7 = vld [vmem:[%s15437_s4 + $0x20] sm:$0xff] }
 0x177   : > { %v10874_v53 = vpop.permute.xlu2 %2653  ;;  %v10876_v29 = vpop.permute.xlu1 %2632 }
 0x178   : > { %v10880_v18 = vpop.f32.mrf.mxu0  ;;  %v10882_v16 = vpop.permute.xlu0 %2629 }
 0x17a   : > { %9752 = vmatmul.msk.bf16.gmra.mxu1 %vm9751_vm13, %v15514_v8  ;;  %6106 = vmatpush.bf16.msra.mxu2 %v10102_v21  ;;  %vm3347_vm13 = vcmp.eq.s32.totalorder %v10504_v1, %v10782_v62  ;;  %v466_v62 = vld [vmem:[%s10422_s30 + $0x280] sm:$0xff] }
 0x17b   : > { %9482 = vmatmul.msk.bf16.gmra.mxu0 %vm9481_vm14, %v15514_v8  ;;  %vm1445_vm14 = vcmp.eq.s32.totalorder %v10504_v1, %v10582_v45  ;;  %vm9757_vm15 = vmpackc.low %vm3347_vm13, %vm3346_vm11  ;;  %vm3353_vm13 = vcmp.eq.s32.totalorder %v10504_v1, %v10876_v29  ;;  %v2390_v29 = vld [vmem:[%s10540_s11 + $0x2a0] sm:$0xff] }
 0x17c   : > { %vm9487_vm0 = vmpackc.low %vm1445_vm14, %vm1444_vm12  ;;  %vm3352_vm14 = vcmp.eq.s32.totalorder %v10504_v1, %v10882_v16  ;;  %v2389_v16 = vld [vmem:[%s10540_s11 + $0x298] sm:$0xff] }
 0x17d   : > { %871 = vperm.xlu2 %10156, %v462_v52   ;;  %2734 = vperm.xlu1 %10155, %v2363_v49   ;;  %v10100_v52 = vld [vmem:[%s15437_s4 + $0x18] sm:$0xff]  ;;  %v2364_v49 = vld [vmem:[%s10540_s11 + $0x1d0] sm:$0xff]  ;;  %vm9761_vm11 = vmpackc.low %vm3351_vm7, %vm3350_vm8 }
 0x17e   : > { %2731 = vperm.xlu0 %10154, %v2362_v48   ;;  %6107 = vmatpush.bf16.msra.mxu2 %v10101_v7  ;;  %v10098_v7 = vld [vmem:[%s15437_s4 + $0x8] sm:$0xff] }
 0x17f   : > { %v10897_v33 = vpop.permute.xlu2 %2662  ;;  %v10899_v6 = vpop.permute.xlu1 %2638 }
 0x180   : > { %15515 = vst [vmem:[#allocation21_spill] sm:$0xff] %v10897_v33  ;;  %v10901_v43 = vpop.f32.mrf.mxu0  ;;  %v10903_v22 = vpop.permute.xlu0 %2635  ;;  %v2369_v33 = vld [vmem:[%s10540_s11 + $0x1f8] sm:$0xff] }
 0x182   : > { %6108 = vmatpush.bf16.msra.mxu2 %v10100_v52 }
 0x185   : > { %874 = vperm.xlu2 %10156, %v463_v19   ;;  %2740 = vperm.xlu1 %10155, %v2365_v32  }
 0x186   : > { %2737 = vperm.xlu0 %10154, %v2364_v49   ;;  %6109 = vmatpush.bf16.msra.mxu2 %v10099_v35  ;;  %v10097_v35 = vld [vmem:[%s15437_s4] sm:$0xff] }
 0x187   : > { %v10920_v48 = vpop.permute.xlu2 %2668  ;;  %v10922_v21 = vpop.permute.xlu1 %841 }
 0x188   : > { %15516 = vst [vmem:[#allocation22_spill] sm:$0xff] %v10920_v48  ;;  %v10926_v32 = vpop.f32.mrf.mxu0  ;;  %v10928_v19 = vpop.permute.xlu0 %2644 }
 0x189   : > { %15517 = vst [vmem:[#allocation23_spill] sm:$0xff] %v10922_v21 }
 0x18a   : > { %9754 = vmatmul.msk.bf16.gmra.mxu1 %vm9753_vm3, %v15514_v8  ;;  %6110 = vmatpush.bf16.msra.mxu2 %v10098_v7  ;;  %vm1446_vm3 = vcmp.eq.s32.totalorder %v10504_v1, %v10638_v13  ;;  %v2381_v13 = vld [vmem:[%s10540_s11 + $0x258] sm:$0xff] }
 0x18b   : > { %9484 = vmatmul.msk.bf16.gmra.mxu0 %vm9483_vm4, %v15514_v8  ;;  %vm3349_vm4 = vcmp.eq.s32.totalorder %v10504_v1, %v10795_v23  ;;  %vm9489_vm6 = vmpackc.low %vm1447_vm2, %vm1446_vm3  ;;  %vm3355_vm3 = vcmp.eq.s32.totalorder %v10504_v1, %v10899_v6 }
 0x18c   : > { %vm9759_vm5 = vmpackc.low %vm3349_vm4, %vm3348_vm1  ;;  %vm3354_vm4 = vcmp.eq.s32.totalorder %v10504_v1, %v10903_v22  ;;  %v474_v22 = vld [vmem:[%s10422_s30 + $0x2c0] sm:$0xff] }
 0x18d   : > { %2749 = vperm.xlu2 %10156, %v2368_v60   ;;  %2746 = vperm.xlu1 %10155, %v2367_v61   ;;  %vm9763_vm1 = vmpackc.low %vm3353_vm13, %vm3352_vm14 }
 0x18e   : > { %2743 = vperm.xlu0 %10154, %v2366_v2   ;;  %6111 = vmatpush.bf16.msra.mxu2 %v10097_v35  ;;  %v2375_v35 = vld [vmem:[%s10540_s11 + $0x228] sm:$0xff]  ;;  %vm9765_vm7 = vmpackc.low %vm3355_vm3, %vm3354_vm4 }
 0x18f   : > { %v10941_v52 = vpop.permute.xlu2 %2674  ;;  %v10943_v49 = vpop.permute.xlu1 %844 }
 0x190   : > { %15518 = vst [vmem:[#allocation24_spill] sm:$0xff] %v10941_v52  ;;  %v10945_v21 = vpop.f32.mrf.mxu0  ;;  %v10947_v48 = vpop.permute.xlu0 %2650 }
 0x191   : > { %15519 = vst [vmem:[#allocation25_spill] sm:$0xff] %v10943_v49  ;;  %v2373_v49 = vld [vmem:[%s10540_s11 + $0x218] sm:$0xff] }
 0x195   : > { %2755 = vperm.xlu2 %10156, %v2370_v10   ;;  %877 = vperm.xlu1 %10155, %v464_v20   ;;  %v465_v20 = vld [vmem:[%s10422_s30 + $0x278] sm:$0xff]  ;;  %v2371_v10 = vld [vmem:[%s10540_s11 + $0x208] sm:$0xff] }
 0x196   : > { %2752 = vperm.xlu0 %10154, %v2369_v33  }
 0x197   : > { %v10959_v60 = vpop.permute.xlu2 %853  ;;  %v10961_v61 = vpop.permute.xlu1 %2659 }
 0x198   : > { %15520 = vst [vmem:[#allocation26_spill] sm:$0xff] %v10959_v60  ;;  %v10965_v2 = vpop.f32.mrf.mxu0  ;;  %v10967_v7 = vpop.permute.xlu0 %2656  ;;  %v2374_v60 = vld [vmem:[%s10540_s11 + $0x220] sm:$0xff] }
 0x19a   : > { %9756 = vmatmul.msk.bf16.gmra.mxu1 %vm9755_vm9, %v15514_v8  ;;  %vm1449_vm9 = vcmp.eq.s32.totalorder %v10504_v1, %v10657_v25  ;;  %v2385_v25 = vld [vmem:[%s10540_s11 + $0x278] sm:$0xff] }
 0x19b   : > { %9486 = vmatmul.msk.bf16.gmra.mxu0 %vm9485_vm10, %v15514_v8  ;;  %vm1448_vm10 = vcmp.eq.s32.totalorder %v10504_v1, %v10593_v51 }
 0x19c   : > { %vm9491_vm12 = vmpackc.low %vm1449_vm9, %vm1448_vm10  ;;  %vm3357_vm9 = vcmp.eq.s32.totalorder %v10504_v1, %v10928_v19  ;;  %vm1455_vm10 = vcmp.eq.s32.totalorder %v10504_v1, %v10690_v55  ;;  %v2396_v55 = vld [vmem:[%s10540_s11 + $0x2d0] sm:$0xff] }
 0x19d   : > { %2761 = vperm.xlu2 %10156, %v2372_v4   ;;  %880 = vperm.xlu1 %10155, %v465_v20  }
 0x19e   : > { %2758 = vperm.xlu0 %10154, %v2371_v10  }
 0x19f   : > { %v10976_v9 = vpop.permute.xlu2 %856  ;;  %v10978_v28 = vpop.permute.xlu1 %2665 }
 0x1a0   : > { %15521 = vst [vmem:[#allocation27_spill] sm:$0xff] %v10976_v9  ;;  %v10980_v33 = vpop.f32.mrf.mxu0  ;;  %v10982_v39 = vpop.permute.xlu0 %847 }
 0x1a1   : > { %15522 = vst [vmem:[#allocation28_spill] sm:$0xff] %v10978_v28  ;;  %v2378_v28 = vld [vmem:[%s10540_s11 + $0x240] sm:$0xff] }
 0x1a2   : > { %15523 = vst [vmem:[#allocation29_spill] sm:$0xff] %v10980_v33  ;;  %v467_v33 = vld [vmem:[%s10422_s30 + $0x288] sm:$0xff] }
 0x1a3   : > { %15524 = vst [vmem:[#allocation30_spill] sm:$0xff] %v10982_v39 }
 0x1a5   : > { %2770 = vperm.xlu2 %10156, %v2375_v35   ;;  %2767 = vperm.xlu1 %10155, %v2374_v60  }
 0x1a6   : > { %2764 = vperm.xlu0 %10154, %v2373_v49  }
 0x1a7   : > { %v10991_v4 = vpop.permute.xlu2 %2695  ;;  %v5012_v20 = vpop.f32.mrf.mxu1 }
 0x1a8   : > { %15525 = vst [vmem:[#allocation31_spill] sm:$0xff] %v10991_v4  ;;  %v10995_v10 = vpop.permute.xlu1 %2671  ;;  %v10997_v9 = vpop.f32.mrf.mxu0  ;;  %v5652_v35 = vmul.f32 %v5012_v20, %v10711_v58 }
 0x1a9   : > { %15526 = vst [vmem:[#allocation32_spill] sm:$0xff] %v10995_v10  ;;  %v11001_v60 = vpop.permute.xlu0 %850 }
 0x1aa   : > { %15527 = vst [vmem:[#allocation33_spill] sm:$0xff] %v10997_v9  ;;  %9758 = vmatmul.msk.bf16.gmra.mxu1 %vm9757_vm15, %v15514_v8  ;;  %v2379_v9 = vld [vmem:[%s10540_s11 + $0x248] sm:$0xff]  ;;  %vm1450_vm15 = vcmp.eq.s32.totalorder %v10504_v1, %v10655_v24 }
 0x1ab   : > { %15528 = vst [vmem:[#allocation34_spill] sm:$0xff] %v11001_v60  ;;  %9488 = vmatmul.msk.bf16.gmra.mxu0 %vm9487_vm0, %v15514_v8  ;;  %vm1451_vm0 = vcmp.eq.s32.totalorder %v10504_v1, %v10605_v59  ;;  %v471_v24 = vld [vmem:[%s10422_s30 + $0x2a8] sm:$0xff] }
 0x1ac   : > { %vm9493_vm2 = vmpackc.low %vm1451_vm0, %vm1450_vm15  ;;  %vm3359_vm15 = vcmp.eq.s32.totalorder %v10504_v1, %v10947_v48  ;;  %vm1456_vm0 = vcmp.eq.s32.totalorder %v10504_v1, %v10688_v50  ;;  %v480_v50 = vld [vmem:[%s10422_s30 + $0x2f0] sm:$0xff] }
 0x1ad   : > { %2776 = vperm.xlu2 %10156, %v2377_v3   ;;  %2773 = vperm.xlu1 %10155, %v2376_v44  }
 0x1ae   : > { %883 = vperm.xlu0 %10154, %v466_v62  }
 0x1af   : > { %v11008_v49 = vpop.permute.xlu2 %2701  ;;  %v5014_v45 = vpop.f32.mrf.mxu1 }
 0x1b0   : > { %15529 = vst [vmem:[#allocation35_spill] sm:$0xff] %v11008_v49  ;;  %v5653_v39 = vmul.f32 %v5014_v45, %v10725_v26  ;;  %v11012_v60 = vpop.permute.xlu1 %2680  ;;  %v11014_v4 = vpop.f32.mrf.mxu0  ;;  %v2382_v49 = vld [vmem:[%s10540_s11 + $0x260] sm:$0xff] }
 0x1b1   : > { %v11016_v52 = vpop.permute.xlu0 %2677 }
 0x1b2   : > { %v5925_v10 = vpack.c.bf16 %v5653_v39, %v5652_v35  ;;  %v469_v35 = vld [vmem:[%s10422_s30 + $0x298] sm:$0xff] }
 0x1b4   : > { %6112 = vmatmul.bf16.vlgmr.msra.gmra.mxu2 %v5925_v10 }
 0x1b5   : > { %2782 = vperm.xlu2 %10156, %v2379_v9   ;;  %2779 = vperm.xlu1 %10155, %v2378_v28  }
 0x1b6   : > { %886 = vperm.xlu0 %10154, %v467_v33  }
 0x1b7   : > { %v11027_v58 = vpop.permute.xlu2 %2707  ;;  %v5017_v26 = vpop.f32.mrf.mxu1 }
 0x1b8   : > { %15530 = vst [vmem:[#allocation36_spill] sm:$0xff] %v11027_v58  ;;  %v11031_v9 = vpop.permute.xlu1 %2686  ;;  %v11033_v28 = vpop.f32.mrf.mxu0  ;;  %v5654_v20 = vmul.f32 %v5017_v26, %v10740_v42  ;;  %v2383_v58 = vld [vmem:[%s10540_s11 + $0x268] sm:$0xff] }
 0x1b9   : > { %v11035_v39 = vpop.permute.xlu0 %2683 }
 0x1ba   : > { %9760 = vmatmul.msk.bf16.gmra.mxu1 %vm9759_vm5, %v15514_v8  ;;  %vm1453_vm5 = vcmp.eq.s32.totalorder %v10504_v1, %v10671_v36  ;;  %v2393_v36 = vld [vmem:[%s10540_s11 + $0x2b8] sm:$0xff] }
 0x1bb   : > { %9490 = vmatmul.msk.bf16.gmra.mxu0 %vm9489_vm6, %v15514_v8  ;;  %vm1452_vm6 = vcmp.eq.s32.totalorder %v10504_v1, %v10673_v37  ;;  %v2392_v37 = vld [vmem:[%s10540_s11 + $0x2b0] sm:$0xff] }
 0x1bc   : > { %vm9495_vm8 = vmpackc.low %vm1453_vm5, %vm1452_vm6  ;;  %vm3361_vm5 = vcmp.eq.s32.totalorder %v10504_v1, %v10967_v7  ;;  %vm1459_vm6 = vcmp.eq.s32.totalorder %v10504_v1, %v10698_v54  ;;  %v2402_v54 = vld [vmem:[%s10540_s11 + $0x300] sm:$0xff] }
 0x1bd   : > { %889 = vperm.xlu2 %10156, %v468_v12   ;;  %2788 = vperm.xlu1 %10155, %v2381_v13  }
 0x1be   : > { %2785 = vperm.xlu0 %10154, %v2380_v46  }
 0x1bf   : > { %v11042_v23 = vpop.permute.xlu2 %2716  ;;  %v5019_v33 = vpop.f32.mrf.mxu1 }
 0x1c0   : > { %v11045_v10 = vpop.permute.xlu1 %2692  ;;  %v11047_v3 = vpop.f32.mrf.mxu0  ;;  %v5655_v44 = vmul.f32 %v5019_v33, %v10751_v57 }
 0x1c1   : > { %v11050_v62 = vpop.permute.xlu0 %2689 }
 0x1c2   : > { %v5926_v45 = vpack.c.bf16 %v5655_v44, %v5654_v20 }
 0x1c4   : > { %6117 = vmatmul.bf16.gmra.mxu2 %v5926_v45 }
 0x1c5   : > { %892 = vperm.xlu2 %10156, %v469_v35   ;;  %2794 = vperm.xlu1 %10155, %v2383_v58   ;;  %v2388_v35 = vld [vmem:[%s10540_s11 + $0x290] sm:$0xff] }
 0x1c6   : > { %2791 = vperm.xlu0 %10154, %v2382_v49  }
 0x1c7   : > { %v11061_v42 = vpop.permute.xlu2 %2722  ;;  %v5022_v57 = vpop.f32.mrf.mxu1 }
 0x1c8   : > { %15531 = vst [vmem:[#allocation37_spill] sm:$0xff] %v11061_v42  ;;  %v11063_v26 = vpop.permute.xlu1 %859  ;;  %v11065_v12 = vpop.f32.mrf.mxu0  ;;  %v5656_v13 = vmul.f32 %v5022_v57, %v10762_v17  ;;  %v2387_v42 = vld [vmem:[%s10540_s11 + $0x288] sm:$0xff] }
 0x1c9   : > { %15532 = vst [vmem:[#allocation38_spill] sm:$0xff] %v11063_v26  ;;  %v11069_v58 = vpop.permute.xlu0 %2698  ;;  %v470_v26 = vld [vmem:[%s10422_s30 + $0x2a0] sm:$0xff] }
 0x1ca   : > { %9762 = vmatmul.msk.bf16.gmra.mxu1 %vm9761_vm11, %v15514_v8  ;;  %vm3356_vm11 = vcmp.eq.s32.totalorder %v10504_v1, %v10839_v38  ;;  %v476_v38 = vld [vmem:[%s10422_s30 + $0x2d0] sm:$0xff] }
 0x1cb   : > { %9492 = vmatmul.msk.bf16.gmra.mxu0 %vm9491_vm12, %v15514_v8  ;;  %vm1454_vm12 = vcmp.eq.s32.totalorder %v10504_v1, %v10616_v0  ;;  %vm9767_vm13 = vmpackc.low %vm3357_vm9, %vm3356_vm11  ;;  %vm3362_vm11 = vcmp.eq.s32.totalorder %v10504_v1, %v10961_v61 }
 0x1cc   : > { %vm9497_vm14 = vmpackc.low %vm1455_vm10, %vm1454_vm12  ;;  %vm1461_vm12 = vcmp.eq.s32.totalorder %v10504_v1, %v10713_v14  ;;  %v486_v14 = vld [vmem:[%s10422_s30 + $0x320] sm:$0xff] }
 0x1cd   : > { %2803 = vperm.xlu2 %10156, %v2386_v30   ;;  %2800 = vperm.xlu1 %10155, %v2385_v25  }
 0x1ce   : > { %2797 = vperm.xlu0 %10154, %v2384_v27  }
 0x1cf   : > { %v11076_v49 = vpop.permute.xlu2 %2728  ;;  %v5024_v51 = vpop.f32.mrf.mxu1 }
 0x1d0   : > { %15533 = vst [vmem:[#allocation39_spill] sm:$0xff] %v11076_v49  ;;  %v11079_v46 = vpop.permute.xlu1 %862  ;;  %v11081_v33 = vpop.f32.mrf.mxu0  ;;  %v5657_v20 = vmul.f32 %v5024_v51, %v10773_v34  ;;  %v2391_v49 = vld [vmem:[%s10540_s11 + $0x2a8] sm:$0xff] }
 0x1d1   : > { %v11084_v44 = vpop.permute.xlu0 %2704 }
 0x1d2   : > { %v5927_v45 = vpack.c.bf16 %v5657_v20, %v5656_v13 }
 0x1d4   : > { %6122 = vmatmul.bf16.gmra.mxu2 %v5927_v45 }
 0x1d5   : > { %2809 = vperm.xlu2 %10156, %v2388_v35   ;;  %895 = vperm.xlu1 %10155, %v470_v26   ;;  %v473_v35 = vld [vmem:[%s10422_s30 + $0x2b8] sm:$0xff] }
 0x1d6   : > { %2806 = vperm.xlu0 %10154, %v2387_v42  }
 0x1d7   : > { %v11095_v17 = vpop.permute.xlu2 %871  ;;  %v5027_v34 = vpop.f32.mrf.mxu1 }
 0x1d8   : > { %15534 = vst [vmem:[#allocation40_spill] sm:$0xff] %v11095_v17  ;;  %v11097_v57 = vpop.permute.xlu1 %2713  ;;  %v11099_v30 = vpop.f32.mrf.mxu0  ;;  %v5658_v25 = vmul.f32 %v5027_v34, %v10786_v5  ;;  %v472_v17 = vld [vmem:[%s10422_s30 + $0x2b0] sm:$0xff] }
 0x1d9   : > { %v11103_v26 = vpop.permute.xlu0 %2710 }
 0x1da   : > { %9764 = vmatmul.msk.bf16.gmra.mxu1 %vm9763_vm1, %v15514_v8  ;;  %vm3358_vm1 = vcmp.eq.s32.totalorder %v10504_v1, %v10856_v31  ;;  %v2398_v31 = vld [vmem:[%s10540_s11 + $0x2e0] sm:$0xff] }
 0x1db   : > { %9494 = vmatmul.msk.bf16.gmra.mxu0 %vm9493_vm2, %v15514_v8  ;;  %vm1457_vm2 = vcmp.eq.s32.totalorder %v10504_v1, %v10634_v11  ;;  %vm9769_vm3 = vmpackc.low %vm3359_vm15, %vm3358_vm1  ;;  %v10110_v11 = vld [vmem:[%s15439_s6 + $0x28] sm:$0xff] }
 0x1dc   : > { %vm9499_vm4 = vmpackc.low %vm1457_vm2, %vm1456_vm0 }
 0x1dd   : > { %2815 = vperm.xlu2 %10156, %v2390_v29   ;;  %898 = vperm.xlu1 %10155, %v471_v24  }
 0x1de   : > { %2812 = vperm.xlu0 %10154, %v2389_v16  }
 0x1df   : > { %v11110_v42 = vpop.permute.xlu2 %874  ;;  %v5029_v59 = vpop.f32.mrf.mxu1 }
 0x1e0   : > { %15535 = vst [vmem:[#allocation41_spill] sm:$0xff] %v11110_v42  ;;  %v11113_v27 = vpop.permute.xlu1 %2719  ;;  %v11115_v51 = vpop.f32.mrf.mxu0  ;;  %v5659_v13 = vmul.f32 %v5029_v59, %v10799_v41  ;;  %v475_v42 = vld [vmem:[%s10422_s30 + $0x2c8] sm:$0xff] }
 0x1e1   : > { %v11118_v20 = vpop.permute.xlu0 %865 }
 0x1e2   : > { %v5928_v45 = vpack.c.bf16 %v5659_v13, %v5658_v25 }
 0x1e4   : > { %6127 = vmatmul.bf16.gmra.mxu2 %v5928_v45 }
 0x1e5   : > { %904 = vperm.xlu2 %10156, %v473_v35   ;;  %901 = vperm.xlu1 %10155, %v472_v17   ;;  %v2395_v35 = vld [vmem:[%s10540_s11 + $0x2c8] sm:$0xff] }
 0x1e6   : > { %2818 = vperm.xlu0 %10154, %v2391_v49  }
 0x1e7   : > { %v11131_v5 = vpop.permute.xlu2 %2749  ;;  %v5032_v41 = vpop.f32.mrf.mxu1 }
 0x1e8   : > { %15536 = vst [vmem:[#allocation42_spill] sm:$0xff] %v11131_v5  ;;  %v11133_v34 = vpop.permute.xlu1 %2725  ;;  %v11135_v17 = vpop.f32.mrf.mxu0  ;;  %v5660_v24 = vmul.f32 %v5032_v41, %v10816_v40  ;;  %v2394_v5 = vld [vmem:[%s10540_s11 + $0x2c0] sm:$0xff] }
 0x1e9   : > { %v11137_v6 = vpop.permute.xlu0 %868 }
 0x1ea   : > { %9766 = vmatmul.msk.bf16.gmra.mxu1 %vm9765_vm7, %v15514_v8  ;;  %vm1458_vm7 = vcmp.eq.s32.totalorder %v10504_v1, %v10700_v63  ;;  %v482_v63 = vld [vmem:[%s10422_s30 + $0x300] sm:$0xff] }
 0x1eb   : > { %9496 = vmatmul.msk.bf16.gmra.mxu0 %vm9495_vm8, %v15514_v8  ;;  %vm3360_vm8 = vcmp.eq.s32.totalorder %v10504_v1, %v10874_v53  ;;  %vm9501_vm10 = vmpackc.low %vm1459_vm6, %vm1458_vm7  ;;  %v10107_v53 = vld [vmem:[%s15439_s6 + $0x10] sm:$0xff] }
 0x1ec   : > { %vm9771_vm9 = vmpackc.low %vm3361_vm5, %vm3360_vm8 }
 0x1ed   : > { %907 = vperm.xlu2 %10156, %v474_v22   ;;  %2824 = vperm.xlu1 %10155, %v2393_v36  }
 0x1ee   : > { %2821 = vperm.xlu0 %10154, %v2392_v37  }
 0x1ef   : > { %v11144_v49 = vpop.permute.xlu2 %2755  ;;  %v5034_v29 = vpop.f32.mrf.mxu1 }
 0x1f0   : > { %15537 = vst [vmem:[#allocation43_spill] sm:$0xff] %v11144_v49  ;;  %v11147_v16 = vpop.permute.xlu1 %2734  ;;  %v11149_v59 = vpop.f32.mrf.mxu0  ;;  %v5661_v25 = vmul.f32 %v5034_v29, %v10829_v56  ;;  %v2397_v49 = vld [vmem:[%s10540_s11 + $0x2d8] sm:$0xff] }
 0x1f1   : > { %v11152_v13 = vpop.permute.xlu0 %2731 }
 0x1f2   : > { %v5929_v45 = vpack.c.bf16 %v5661_v25, %v5660_v24 }
 0x1f4   : > { %6132 = vmatmul.bf16.gmra.mxu2 %v5929_v45 }
 0x1f5   : > { %2830 = vperm.xlu2 %10156, %v2395_v35   ;;  %2827 = vperm.xlu1 %10155, %v2394_v5   ;;  %v479_v35 = vld [vmem:[%s10422_s30 + $0x2e8] sm:$0xff] }
 0x1f6   : > { %910 = vperm.xlu0 %10154, %v475_v42   ;;  %v477_v42 = vld [vmem:[%s10422_s30 + $0x2d8] sm:$0xff] }
 0x1f7   : > { %v11161_v40 = vpop.permute.xlu2 %2761  ;;  %v5037_v56 = vpop.f32.mrf.mxu1 }
 0x1f8   : > { %15538 = vst [vmem:[#allocation44_spill] sm:$0xff] %v11161_v40  ;;  %v11165_v41 = vpop.permute.xlu1 %2740  ;;  %v11167_v22 = vpop.f32.mrf.mxu0  ;;  %v5662_v36 = vmul.f32 %v5037_v56, %v10845_v47  ;;  %v478_v40 = vld [vmem:[%s10422_s30 + $0x2e0] sm:$0xff]  ;;  %v10112_v47 = vld [vmem:[%s15439_s6 + $0x38] sm:$0xff] }
 0x1f9   : > { %v11171_v19 = vpop.permute.xlu0 %2737  ;;  %7205 = vmatpush.bf16.msra.mxu3 %v10112_v47 }
 0x1fa   : > { %9768 = vmatmul.msk.bf16.gmra.mxu1 %vm9767_vm13, %v15514_v8 }
 0x1fb   : > { %9498 = vmatmul.msk.bf16.gmra.mxu0 %vm9497_vm14, %v15514_v8 }
 0x1fd   : > { %2833 = vperm.xlu2 %10156, %v2396_v55   ;;  %916 = vperm.xlu1 %10155, %v477_v42   ;;  %v10111_v42 = vld [vmem:[%s15439_s6 + $0x30] sm:$0xff] }
 0x1fe   : > { %913 = vperm.xlu0 %10154, %v476_v38   ;;  %7206 = vmatpush.bf16.msra.mxu3 %v10111_v42  ;;  %v481_v42 = vld [vmem:[%s10422_s30 + $0x2f8] sm:$0xff] }
 0x1ff   : > { %v11178_v5 = vpop.permute.xlu2 %2770  ;;  %v5039_v0 = vpop.f32.mrf.mxu1 }
 0x200   : > { %15539 = vst [vmem:[#allocation45_spill] sm:$0xff] %v11178_v5  ;;  %v11181_v37 = vpop.permute.xlu1 %2746  ;;  %v11183_v29 = vpop.f32.mrf.mxu0  ;;  %v5663_v24 = vmul.f32 %v5039_v0, %v10860_v15  ;;  %v10105_v5 = vld [vmem:[%s15439_s6] sm:$0xff] }
 0x201   : > { %v11186_v25 = vpop.permute.xlu0 %2743 }
 0x202   : > { %v5930_v45 = vpack.c.bf16 %v5663_v24, %v5662_v36  ;;  %7207 = vmatpush.bf16.msra.mxu3 %v10110_v11 }
 0x204   : > { %6137 = vmatmul.bf16.gmra.mxu2 %v5930_v45 }
 0x205   : > { %922 = vperm.xlu2 %10156, %v479_v35   ;;  %919 = vperm.xlu1 %10155, %v478_v40  }
 0x206   : > { %2836 = vperm.xlu0 %10154, %v2397_v49   ;;  %v2399_v49 = vld [vmem:[%s10540_s11 + $0x2e8] sm:$0xff] }
 0x207   : > { %v11198_v15 = vpop.permute.xlu2 %2776  ;;  %v5042_v56 = vpop.f32.mrf.mxu1 }
 0x208   : > { %15540 = vst [vmem:[#allocation46_spill] sm:$0xff] %v11198_v15  ;;  %v11202_v40 = vpop.permute.xlu1 %877  ;;  %v11204_v55 = vpop.f32.mrf.mxu0  ;;  %v5664_v36 = vmul.f32 %v5042_v56, %v10880_v18  ;;  %v2403_v15 = vld [vmem:[%s10540_s11 + $0x308] sm:$0xff] }
 0x209   : > { %v11208_v48 = vpop.permute.xlu0 %2752 }
 0x20a   : > { %9770 = vmatmul.msk.bf16.gmra.mxu1 %vm9769_vm3, %v15514_v8 }
 0x20b   : > { %9500 = vmatmul.msk.bf16.gmra.mxu0 %vm9499_vm4, %v15514_v8 }
 0x20d   : > { %925 = vperm.xlu2 %10156, %v480_v50   ;;  %2842 = vperm.xlu1 %10155, %v2399_v49   ;;  %v2401_v49 = vld [vmem:[%s10540_s11 + $0x2f8] sm:$0xff] }
 0x20e   : > { %2839 = vperm.xlu0 %10154, %v2398_v31   ;;  %v2400_v31 = vld [vmem:[%s10540_s11 + $0x2f0] sm:$0xff] }
 0x20f   : > { %v11221_v38 = vpop.permute.xlu2 %2782  ;;  %v5044_v0 = vpop.f32.mrf.mxu1 }
 0x210   : > { %15541 = vst [vmem:[#allocation47_spill] sm:$0xff] %v11221_v38  ;;  %v11224_v24 = vpop.permute.xlu1 %880  ;;  %v11226_v45 = vpop.f32.mrf.mxu0  ;;  %v5665_v35 = vmul.f32 %v5044_v0, %v10901_v43  ;;  %v10109_v38 = vld [vmem:[%s15439_s6 + $0x20] sm:$0xff]  ;;  %v10108_v43 = vld [vmem:[%s15439_s6 + $0x18] sm:$0xff]  ;;  %v483_v0 = vld [vmem:[%s10422_s30 + $0x308] sm:$0xff] }
 0x211   : > { %v11229_v47 = vpop.permute.xlu0 %2758  ;;  %7208 = vmatpush.bf16.msra.mxu3 %v10109_v38 }
 0x212   : > { %15542 = vst [vmem:[#allocation48_spill] sm:$0xff] %v11229_v47  ;;  %v5931_v50 = vpack.c.bf16 %v5665_v35, %v5664_v36  ;;  %v10106_v36 = vld [vmem:[%s15439_s6 + $0x8] sm:$0xff]  ;;  %v490_v47 = vld [vmem:[%s10422_s30 + $0x340] sm:$0xff] }
 0x214   : > { %6142 = vmatmul.bf16.gmra.mxu2 %v5931_v50 }
 0x215   : > { %2848 = vperm.xlu2 %10156, %v2401_v49   ;;  %2845 = vperm.xlu1 %10155, %v2400_v31  }
 0x216   : > { %928 = vperm.xlu0 %10154, %v481_v42   ;;  %7209 = vmatpush.bf16.msra.mxu3 %v10108_v43 }
 0x217   : > { %v11246_v18 = vpop.permute.xlu2 %889  ;;  %v5047_v56 = vpop.f32.mrf.mxu1 }
 0x218   : > { %15543 = vst [vmem:[#allocation49_spill] sm:$0xff] %v11246_v18  ;;  %v11250_v7 = vpop.permute.xlu1 %2767  ;;  %v11252_v11 = vpop.f32.mrf.mxu0  ;;  %v5666_v49 = vmul.f32 %v5047_v56, %v10926_v32  ;;  %v15550_v56 = vld [vmem:[#allocation21_spill] sm:$0xff]  ;;  %v487_v18 = vld [vmem:[%s10422_s30 + $0x328] sm:$0xff] }
 0x219   : > { %15544 = vst [vmem:[#allocation50_spill] sm:$0xff] %v11250_v7  ;;  %v11254_v38 = vpop.permute.xlu0 %2764  ;;  %vm3363_vm13 = vcmp.eq.s32.totalorder %v10504_v1, %v15550_v56  ;;  %v2407_v7 = vld [vmem:[%s10540_s11 + $0x328] sm:$0xff] }
 0x21a   : > { %15545 = vst [vmem:[#allocation51_spill] sm:$0xff] %v11254_v38  ;;  %9772 = vmatmul.msk.bf16.gmra.mxu1 %vm9771_vm9, %v15514_v8  ;;  %7210 = vmatpush.bf16.msra.mxu3 %v10107_v53  ;;  %v484_v53 = vld [vmem:[%s10422_s30 + $0x310] sm:$0xff]  ;;  %vm9773_vm15 = vmpackc.low %vm3363_vm13, %vm3362_vm11  ;;  %v2406_v38 = vld [vmem:[%s10540_s11 + $0x320] sm:$0xff]  ;;  %vm3369_vm13 = vcmp.eq.s32.totalorder %v10504_v1, %v11012_v60 }
 0x21b   : > { %9502 = vmatmul.msk.bf16.gmra.mxu0 %vm9501_vm10, %v15514_v8  ;;  %v15580_v60 = vld [vmem:[#allocation8_spill] sm:$0xff] }
 0x21d   : > { %2851 = vperm.xlu2 %10156, %v2402_v54   ;;  %934 = vperm.xlu1 %10155, %v483_v0  }
 0x21e   : > { %931 = vperm.xlu0 %10154, %v482_v63   ;;  %v485_v63 = vld [vmem:[%s10422_s30 + $0x318] sm:$0xff]  ;;  %7211 = vmatpush.bf16.msra.mxu3 %v10106_v36 }
 0x21f   : > { %v11267_v35 = vpop.permute.xlu2 %892  ;;  %v5049_v50 = vpop.f32.mrf.mxu1 }
 0x220   : > { %15546 = vst [vmem:[#allocation52_spill] sm:$0xff] %v11267_v35  ;;  %v11270_v31 = vpop.permute.xlu1 %2773  ;;  %v11272_v42 = vpop.f32.mrf.mxu0  ;;  %v5667_v43 = vmul.f32 %v5049_v50, %v10945_v21 }
 0x221   : > { %15547 = vst [vmem:[#allocation53_spill] sm:$0xff] %v11270_v31  ;;  %v11275_v54 = vpop.permute.xlu0 %883 }
 0x222   : > { %15548 = vst [vmem:[#allocation54_spill] sm:$0xff] %v11275_v54  ;;  %v5932_v0 = vpack.c.bf16 %v5667_v43, %v5666_v49  ;;  %7212 = vmatpush.bf16.msra.mxu3 %v10105_v5  ;;  %v15552_v49 = vld [vmem:[#allocation6_spill] sm:$0xff]  ;;  %v2405_v5 = vld [vmem:[%s10540_s11 + $0x318] sm:$0xff] }
 0x223   : > { %vm1460_vm14 = vcmp.eq.s32.totalorder %v10504_v1, %v15552_v49  ;;  %v15556_v49 = vld [vmem:[#allocation29_spill] sm:$0xff] }
 0x224   : > { %6147 = vmatmul.bf16.gmra.mxu2 %v5932_v0  ;;  %vm9503_vm0 = vmpackc.low %vm1461_vm12, %vm1460_vm14  ;;  %vm3368_vm14 = vcmp.eq.s32.totalorder %v10504_v1, %v11016_v52 }
 0x225   : > { %940 = vperm.xlu2 %10156, %v485_v63   ;;  %937 = vperm.xlu1 %10155, %v484_v53  }
 0x226   : > { %2854 = vperm.xlu0 %10154, %v2403_v15   ;;  %v2404_v15 = vld [vmem:[%s10540_s11 + $0x310] sm:$0xff] }
 0x227   : > { %v11287_v21 = vpop.permute.xlu2 %2803  ;;  %v5052_v32 = vpop.f32.mrf.mxu1 }
 0x228   : > { %15549 = vst [vmem:[#allocation55_spill] sm:$0xff] %v11287_v21  ;;  %v11291_v36 = vpop.permute.xlu1 %2779  ;;  %v11293_v50 = vpop.f32.mrf.mxu0  ;;  %v5668_v63 = vmul.f32 %v5052_v32, %v10965_v2  ;;  %v15559_v2 = vld [vmem:[#allocation10_spill] sm:$0xff] }
 0x229   : > { %15551 = vst [vmem:[#allocation21_spill] sm:$0xff] %v11291_v36  ;;  %v11297_v61 = vpop.permute.xlu0 %886  ;;  %vm1462_vm2 = vcmp.eq.s32.totalorder %v10504_v1, %v15559_v2 }
 0x22a   : > { %15553 = vst [vmem:[#allocation6_spill] sm:$0xff] %v11297_v61  ;;  %9774 = vmatmul.msk.bf16.gmra.mxu1 %vm9773_vm15, %v15514_v8 }
 0x22b   : > { %9504 = vmatmul.msk.bf16.gmra.mxu0 %vm9503_vm0, %v15514_v8  ;;  %vm1466_vm0 = vcmp.eq.s32.totalorder %v10504_v1, %v15580_v60 }
 0x22d   : > { %943 = vperm.xlu2 %10156, %v486_v14   ;;  %2860 = vperm.xlu1 %10155, %v2405_v5   ;;  %v15558_v14 = vld [vmem:[#allocation28_spill] sm:$0xff] }
 0x22e   : > { %2857 = vperm.xlu0 %10154, %v2404_v15   ;;  %vm3364_vm1 = vcmp.eq.s32.totalorder %v10504_v1, %v15558_v14  ;;  %v11341_v14 = vld [vmem:[%s15438_s5] ss:$0 sm:$0xff] }
 0x22f   : > { %v11304_v43 = vpop.permute.xlu2 %2809  ;;  %v5054_v0 = vpop.f32.mrf.mxu1 }
 0x230   : > { %15554 = vst [vmem:[#allocation56_spill] sm:$0xff] %v11304_v43  ;;  %v11307_v53 = vpop.permute.xlu1 %2788  ;;  %v11309_v56 = vpop.f32.mrf.mxu0  ;;  %v5669_v21 = vmul.f32 %v5054_v0, %v15556_v49  ;;  %v2408_v0 = vld [vmem:[%s10540_s11 + $0x330] sm:$0xff] }
 0x231   : > { %15555 = vst [vmem:[#allocation57_spill] sm:$0xff] %v11307_v53  ;;  %v11312_v36 = vpop.permute.xlu0 %2785  ;;  %v488_v49 = vld [vmem:[%s10422_s30 + $0x330] sm:$0xff] }
 0x232   : > { %15557 = vst [vmem:[#allocation29_spill] sm:$0xff] %v11312_v36  ;;  %v5933_v31 = vpack.c.bf16 %v5669_v21, %v5668_v63  ;;  %v15561_v21 = vld [vmem:[#allocation22_spill] sm:$0xff]  ;;  %v489_v63 = vld [vmem:[%s10422_s30 + $0x338] sm:$0xff] }
 0x233   : > { %vm3365_vm3 = vcmp.eq.s32.totalorder %v10504_v1, %v15561_v21 }
 0x234   : > { %6152 = vmatmul.bf16.gmra.mxu2 %v5933_v31  ;;  %vm9775_vm5 = vmpackc.low %vm3365_vm3, %vm3364_vm1  ;;  %vm3371_vm3 = vcmp.eq.s32.totalorder %v10504_v1, %v11031_v9  ;;  %v15588_v9 = vld [vmem:[#allocation9_spill] sm:$0xff] }
 0x235   : > { %2866 = vperm.xlu2 %10156, %v2407_v7   ;;  %2863 = vperm.xlu1 %10155, %v2406_v38   ;;  %v15563_v38 = vld [vmem:[#allocation7_spill] sm:$0xff]  ;;  %vm9779_vm1 = vmpackc.low %vm3369_vm13, %vm3368_vm14 }
 0x236   : > { %946 = vperm.xlu0 %10154, %v487_v18   ;;  %vm1463_vm4 = vcmp.eq.s32.totalorder %v10504_v1, %v15563_v38  ;;  %v15566_v38 = vld [vmem:[#allocation33_spill] sm:$0xff] }
 0x237   : > { %v11321_v32 = vpop.permute.xlu2 %2815  ;;  %v5057_v5 = vpop.f32.mrf.mxu1  ;;  %vm9505_vm6 = vmpackc.low %vm1463_vm4, %vm1462_vm2  ;;  %vm3370_vm4 = vcmp.eq.s32.totalorder %v10504_v1, %v11035_v39 }
 0x238   : > { %15560 = vst [vmem:[#allocation28_spill] sm:$0xff] %v11321_v32  ;;  %v11325_v15 = vpop.permute.xlu1 %2794  ;;  %v11327_v7 = vpop.f32.mrf.mxu0  ;;  %v5670_v32 = vmul.f32 %v5057_v5, %v15566_v38  ;;  %v15569_v5 = vld [vmem:[#allocation32_spill] sm:$0xff]  ;;  %v2411_v38 = vld [vmem:[%s10540_s11 + $0x348] sm:$0xff] }
 0x239   : > { %15562 = vst [vmem:[#allocation10_spill] sm:$0xff] %v11325_v15  ;;  %v6113_v31 = vpop.f32.mrf.mxu2  ;;  %v11331_v18 = vpop.permute.xlu0 %2791  ;;  %vm3366_vm7 = vcmp.eq.s32.totalorder %v10504_v1, %v15569_v5 }
 0x23a   : > { %15564 = vst [vmem:[#allocation22_spill] sm:$0xff] %v11331_v18  ;;  %9776 = vmatmul.msk.bf16.gmra.mxu1 %vm9775_vm5, %v15514_v8  ;;  %v6114_v43 = vadd.f32 %v11341_v14, %v6113_v31  ;;  %v15570_v31 = vld [vmem:[#allocation12_spill] sm:$0xff] }
 0x23b   : > { %9506 = vmatmul.msk.bf16.gmra.mxu0 %vm9505_vm6, %v15514_v8  ;;  %vm1465_vm8 = vcmp.eq.s32.totalorder %v10504_v1, %v15570_v31  ;;  %vm1468_vm6 = vcmp.eq.s32.totalorder %v10504_v1, %v15588_v9 }
 0x23c   : > { %v6753_v54 = vmax.f32 %v6114_v43, 0.0 }
 0x23d   : > { %2869 = vperm.xlu2 %10156, %v2408_v0   ;;  %952 = vperm.xlu1 %10155, %v489_v63  }
 0x23e   : > { %949 = vperm.xlu0 %10154, %v488_v49   ;;  %v491_v49 = vld [vmem:[%s10422_s30 + $0x348] sm:$0xff] }
 0x23f   : > { %v11343_v2 = vpop.permute.xlu2 %904  ;;  %v5059_v21 = vpop.f32.mrf.mxu1 }
 0x240   : > { %15565 = vst [vmem:[#allocation7_spill] sm:$0xff] %v11343_v2  ;;  %v11347_v18 = vpop.permute.xlu1 %2800  ;;  %v11349_v15 = vpop.f32.mrf.mxu0  ;;  %v5671_v36 = vmul.f32 %v5059_v21, %v11014_v4  ;;  %v2409_v2 = vld [vmem:[%s10540_s11 + $0x338] sm:$0xff] }
 0x241   : > { %15567 = vst [vmem:[#allocation33_spill] sm:$0xff] %v11347_v18  ;;  %v6115_v53 = vpop.f32.mrf.mxu2  ;;  %v11352_v35 = vpop.permute.xlu0 %2797  ;;  %v2412_v18 = vld [vmem:[%s10540_s11 + $0x350] sm:$0xff] }
 0x242   : > { %15568 = vst [vmem:[#allocation58_spill] sm:$0xff] %v11352_v35  ;;  %v6116_v0 = vadd.f32 %v11341_v14, %v6115_v53  ;;  %v5934_v63 = vpack.c.bf16 %v5671_v36, %v5670_v32  ;;  %v15571_v53 = vld [vmem:[#allocation13_spill] sm:$0xff]  ;;  %v15573_v32 = vld [vmem:[#allocation24_spill] sm:$0xff] }
 0x243   : > { %vm1464_vm9 = vcmp.eq.s32.totalorder %v10504_v1, %v15571_v53  ;;  %vm3367_vm10 = vcmp.eq.s32.totalorder %v10504_v1, %v15573_v32 }
 0x244   : > { %v6754_v61 = vmax.f32 %v6116_v0, 0.0  ;;  %6157 = vmatmul.bf16.gmra.mxu2 %v5934_v63  ;;  %vm9777_vm11 = vmpackc.low %vm3367_vm10, %vm3366_vm7  ;;  %v2410_v0 = vld [vmem:[%s10540_s11 + $0x340] sm:$0xff]  ;;  %vm3372_vm10 = vcmp.eq.s32.totalorder %v10504_v1, %v11050_v62 }
 0x245   : > { %958 = vperm.xlu2 %10156, %v491_v49   ;;  %955 = vperm.xlu1 %10155, %v490_v47   ;;  %vm9507_vm12 = vmpackc.low %vm1465_vm8, %vm1464_vm9  ;;  %vm3373_vm9 = vcmp.eq.s32.totalorder %v10504_v1, %v11045_v10  ;;  %v15592_v10 = vld [vmem:[#allocation15_spill] sm:$0xff] }
 0x246   : > { %2872 = vperm.xlu0 %10154, %v2409_v2   ;;  %v7026_v4 = vpack.c.bf16 %v6754_v61, %v6753_v54  ;;  %v492_v2 = vld [vmem:[%s10422_s30 + $0x350] sm:$0xff]  ;;  %vm9781_vm7 = vmpackc.low %vm3371_vm3, %vm3370_vm4 }
 0x247   : > { %v11364_v36 = vpop.permute.xlu2 %907  ;;  %v5062_v43 = vpop.f32.mrf.mxu1  ;;  %vm9783_vm13 = vmpackc.low %vm3373_vm9, %vm3372_vm10 }
 0x248   : > { %15572 = vst [vmem:[#allocation32_spill] sm:$0xff] %v11364_v36  ;;  %7213 = vmatmul.bf16.vlgmr.msra.gmra.mxu3 %v7026_v4  ;;  %v11368_v47 = vpop.permute.xlu1 %895  ;;  %v11370_v21 = vpop.f32.mrf.mxu0  ;;  %v5672_v5 = vmul.f32 %v5062_v43, %v11033_v28 }
 0x249   : > { %15574 = vst [vmem:[#allocation12_spill] sm:$0xff] %v11368_v47  ;;  %v6118_v54 = vpop.f32.mrf.mxu2  ;;  %v11372_v61 = vpop.permute.xlu0 %2806 }
 0x24a   : > { %15575 = vst [vmem:[#allocation13_spill] sm:$0xff] %v11372_v61  ;;  %9778 = vmatmul.msk.bf16.gmra.mxu1 %vm9777_vm11, %v15514_v8  ;;  %v6119_v4 = vadd.f32 %v11341_v14, %v6118_v54 }
 0x24b   : > { %9508 = vmatmul.msk.bf16.gmra.mxu0 %vm9507_vm12, %v15514_v8  ;;  %vm1470_vm12 = vcmp.eq.s32.totalorder %v10504_v1, %v15592_v10 }
 0x24c   : > { %v6755_v36 = vmax.f32 %v6119_v4, 0.0 }
 0x24d   : > { %961 = vperm.xlu2 %10156, %v492_v2   ;;  %2878 = vperm.xlu1 %10155, %v2411_v38  }
 0x24e   : > { %2875 = vperm.xlu0 %10154, %v2410_v0   ;;  %v2413_v0 = vld [vmem:[%s10540_s11 + $0x358] sm:$0xff] }
 0x24f   : > { %v11379_v63 = vpop.permute.xlu2 %2830  ;;  %v5064_v49 = vpop.f32.mrf.mxu1 }
 0x250   : > { %15576 = vst [vmem:[#allocation24_spill] sm:$0xff] %v11379_v63  ;;  %v11383_v31 = vpop.permute.xlu1 %898  ;;  %v11385_v53 = vpop.f32.mrf.mxu0  ;;  %v5673_v32 = vmul.f32 %v5064_v49, %v11047_v3  ;;  %v493_v63 = vld [vmem:[%s10422_s30 + $0x358] sm:$0xff]  ;;  %v15578_v3 = vld [vmem:[#allocation14_spill] sm:$0xff] }
 0x251   : > { %v6120_v61 = vpop.f32.mrf.mxu2  ;;  %v11388_v35 = vpop.permute.xlu0 %2812  ;;  %vm1467_vm15 = vcmp.eq.s32.totalorder %v10504_v1, %v15578_v3 }
 0x252   : > { %15577 = vst [vmem:[#allocation59_spill] sm:$0xff] %v11388_v35  ;;  %v6121_v2 = vadd.f32 %v11341_v14, %v6120_v61  ;;  %v5935_v38 = vpack.c.bf16 %v5673_v32, %v5672_v5  ;;  %vm9509_vm2 = vmpackc.low %vm1467_vm15, %vm1466_vm0  ;;  %vm3375_vm15 = vcmp.eq.s32.totalorder %v10504_v1, %v11069_v58  ;;  %v15601_v58 = vld [vmem:[#allocation19_spill] sm:$0xff] }
 0x254   : > { %v6756_v47 = vmax.f32 %v6121_v2, 0.0  ;;  %6162 = vmatmul.bf16.gmra.mxu2 %v5935_v38 }
 0x255   : > { %2884 = vperm.xlu2 %10156, %v2413_v0   ;;  %2881 = vperm.xlu1 %10155, %v2412_v18  }
 0x256   : > { %964 = vperm.xlu0 %10154, %v493_v63   ;;  %v7027_v28 = vpack.c.bf16 %v6756_v47, %v6755_v36  ;;  %v2414_v36 = vld [vmem:[%s10540_s11 + $0x360] sm:$0xff]  ;;  %v495_v47 = vld [vmem:[%s10422_s30 + $0x368] sm:$0xff] }
 0x257   : > { %v11400_v43 = vpop.permute.xlu2 %2833  ;;  %v5067_v54 = vpop.f32.mrf.mxu1  ;;  %v494_v63 = vld [vmem:[%s10422_s30 + $0x360] sm:$0xff] }
 0x258   : > { %15579 = vst [vmem:[#allocation14_spill] sm:$0xff] %v11400_v43  ;;  %7218 = vmatmul.bf16.gmra.mxu3 %v7027_v28  ;;  %v11402_v61 = vpop.permute.xlu1 %901  ;;  %v11404_v18 = vpop.f32.mrf.mxu0  ;;  %v5674_v32 = vmul.f32 %v5067_v54, %v11065_v12  ;;  %v496_v43 = vld [vmem:[%s10422_s30 + $0x370] sm:$0xff] }
 0x259   : > { %v6123_v52 = vpop.f32.mrf.mxu2  ;;  %v11408_v49 = vpop.permute.xlu0 %2818 }
 0x25a   : > { %15581 = vst [vmem:[#allocation8_spill] sm:$0xff] %v11408_v49  ;;  %9780 = vmatmul.msk.bf16.gmra.mxu1 %vm9779_vm1, %v15514_v8  ;;  %v6124_v2 = vadd.f32 %v11341_v14, %v6123_v52  ;;  %v2415_v49 = vld [vmem:[%s10540_s11 + $0x368] sm:$0xff] }
 0x25b   : > { %9510 = vmatmul.msk.bf16.gmra.mxu0 %vm9509_vm2, %v15514_v8  ;;  %vm1472_vm2 = vcmp.eq.s32.totalorder %v10504_v1, %v15601_v58 }
 0x25c   : > { %v6757_v35 = vmax.f32 %v6124_v2, 0.0 }
 0x25d   : > { %2887 = vperm.xlu2 %10156, %v2414_v36   ;;  %970 = vperm.xlu1 %10155, %v495_v47  }
 0x25e   : > { %967 = vperm.xlu0 %10154, %v494_v63   ;;  %v497_v63 = vld [vmem:[%s10422_s30 + $0x378] sm:$0xff] }
 0x25f   : > { %v11415_v5 = vpop.permute.xlu2 %922  ;;  %v5069_v4 = vpop.f32.mrf.mxu1 }
 0x260   : > { %15582 = vst [vmem:[#allocation60_spill] sm:$0xff] %v11415_v5  ;;  %v11419_v38 = vpop.permute.xlu1 %2824  ;;  %v11421_v0 = vpop.f32.mrf.mxu0  ;;  %v5675_v28 = vmul.f32 %v5069_v4, %v11081_v33  ;;  %v15585_v33 = vld [vmem:[#allocation11_spill] sm:$0xff] }
 0x261   : > { %15583 = vst [vmem:[#allocation61_spill] sm:$0xff] %v11419_v38  ;;  %v6125_v3 = vpop.f32.mrf.mxu2  ;;  %v11424_v60 = vpop.permute.xlu0 %2821  ;;  %vm1469_vm5 = vcmp.eq.s32.totalorder %v10504_v1, %v15585_v33 }
 0x262   : > { %15584 = vst [vmem:[#allocation62_spill] sm:$0xff] %v11424_v60  ;;  %v6126_v36 = vadd.f32 %v11341_v14, %v6125_v3  ;;  %v5936_v47 = vpack.c.bf16 %v5675_v28, %v5674_v32  ;;  %vm9511_vm8 = vmpackc.low %vm1469_vm5, %vm1468_vm6  ;;  %vm3377_vm5 = vcmp.eq.s32.totalorder %v10504_v1, %v11084_v44  ;;  %v15608_v44 = vld [vmem:[#allocation17_spill] sm:$0xff] }
 0x264   : > { %v6758_v5 = vmax.f32 %v6126_v36, 0.0  ;;  %6167 = vmatmul.bf16.gmra.mxu2 %v5936_v47 }
 0x265   : > { %976 = vperm.xlu2 %10156, %v497_v63   ;;  %973 = vperm.xlu1 %10155, %v496_v43  }
 0x266   : > { %2890 = vperm.xlu0 %10154, %v2415_v49   ;;  %v7028_v12 = vpack.c.bf16 %v6758_v5, %v6757_v35  ;;  %v498_v35 = vld [vmem:[%s10422_s30 + $0x380] sm:$0xff]  ;;  %v2417_v49 = vld [vmem:[%s10540_s11 + $0x378] sm:$0xff]  ;;  %v2416_v5 = vld [vmem:[%s10540_s11 + $0x370] sm:$0xff] }
 0x267   : > { %v11436_v54 = vpop.permute.xlu2 %925  ;;  %v5072_v52 = vpop.f32.mrf.mxu1 }
 0x268   : > { %15586 = vst [vmem:[#allocation11_spill] sm:$0xff] %v11436_v54  ;;  %7223 = vmatmul.bf16.gmra.mxu3 %v7028_v12  ;;  %v11438_v4 = vpop.permute.xlu1 %2827  ;;  %v11440_v43 = vpop.f32.mrf.mxu0  ;;  %v5676_v3 = vmul.f32 %v5072_v52, %v11099_v30 }
 0x269   : > { %15587 = vst [vmem:[#allocation63_spill] sm:$0xff] %v11438_v4  ;;  %v6128_v39 = vpop.f32.mrf.mxu2  ;;  %v11444_v32 = vpop.permute.xlu0 %910  ;;  %v2418_v4 = vld [vmem:[%s10540_s11 + $0x380] sm:$0xff] }
 0x26a   : > { %9782 = vmatmul.msk.bf16.gmra.mxu1 %vm9781_vm7, %v15514_v8  ;;  %v6129_v36 = vadd.f32 %v11341_v14, %v6128_v39 }
 0x26b   : > { %9512 = vmatmul.msk.bf16.gmra.mxu0 %vm9511_vm8, %v15514_v8  ;;  %vm1474_vm8 = vcmp.eq.s32.totalorder %v10504_v1, %v15608_v44 }
 0x26c   : > { %v6759_v60 = vmax.f32 %v6129_v36, 0.0 }
 0x26d   : > { %979 = vperm.xlu2 %10156, %v498_v35   ;;  %2896 = vperm.xlu1 %10155, %v2417_v49  }
 0x26e   : > { %2893 = vperm.xlu0 %10154, %v2416_v5   ;;  %v2419_v5 = vld [vmem:[%s10540_s11 + $0x388] sm:$0xff] }
 0x26f   : > { %v11451_v2 = vpop.permute.xlu2 %2848  ;;  %v5074_v28 = vpop.f32.mrf.mxu1 }
 0x270   : > { %15589 = vst [vmem:[#allocation9_spill] sm:$0xff] %v11451_v2  ;;  %v11455_v47 = vpop.permute.xlu1 %916  ;;  %v11457_v63 = vpop.f32.mrf.mxu0  ;;  %v5677_v12 = vmul.f32 %v5074_v28, %v11115_v51  ;;  %v499_v2 = vld [vmem:[%s10422_s30 + $0x388] sm:$0xff]  ;;  %v15590_v51 = vld [vmem:[#allocation16_spill] sm:$0xff] }
 0x271   : > { %v6130_v33 = vpop.f32.mrf.mxu2  ;;  %v11460_v9 = vpop.permute.xlu0 %913  ;;  %vm1471_vm11 = vcmp.eq.s32.totalorder %v10504_v1, %v15590_v51 }
 0x272   : > { %v5937_v35 = vpack.c.bf16 %v5677_v12, %v5676_v3  ;;  %v6131_v49 = vadd.f32 %v11341_v14, %v6130_v33  ;;  %vm9513_vm14 = vmpackc.low %vm1471_vm11, %vm1470_vm12  ;;  %vm3379_vm11 = vcmp.eq.s32.totalorder %v10504_v1, %v11103_v26  ;;  %v15617_v26 = vld [vmem:[#allocation23_spill] sm:$0xff] }
 0x274   : > { %v6760_v38 = vmax.f32 %v6131_v49, 0.0  ;;  %6172 = vmatmul.bf16.gmra.mxu2 %v5937_v35 }
 0x275   : > { %2902 = vperm.xlu2 %10156, %v2419_v5   ;;  %2899 = vperm.xlu1 %10155, %v2418_v4  }
 0x276   : > { %982 = vperm.xlu0 %10154, %v499_v2   ;;  %v7029_v30 = vpack.c.bf16 %v6760_v38, %v6759_v60  ;;  %v2420_v38 = vld [vmem:[%s10540_s11 + $0x390] sm:$0xff]  ;;  %v501_v60 = vld [vmem:[%s10422_s30 + $0x398] sm:$0xff] }
 0x277   : > { %v11472_v52 = vpop.permute.xlu2 %2851  ;;  %v5077_v39 = vpop.f32.mrf.mxu1  ;;  %v500_v2 = vld [vmem:[%s10422_s30 + $0x390] sm:$0xff] }
 0x278   : > { %15591 = vst [vmem:[#allocation16_spill] sm:$0xff] %v11472_v52  ;;  %7228 = vmatmul.bf16.gmra.mxu3 %v7029_v30  ;;  %v11474_v28 = vpop.permute.xlu1 %919  ;;  %v11476_v4 = vpop.f32.mrf.mxu0  ;;  %v5678_v33 = vmul.f32 %v5077_v39, %v11135_v17  ;;  %v502_v52 = vld [vmem:[%s10422_s30 + $0x3a0] sm:$0xff] }
 0x279   : > { %v6133_v62 = vpop.f32.mrf.mxu2  ;;  %v11480_v3 = vpop.permute.xlu0 %2836 }
 0x27a   : > { %15593 = vst [vmem:[#allocation15_spill] sm:$0xff] %v11480_v3  ;;  %9784 = vmatmul.msk.bf16.gmra.mxu1 %vm9783_vm13, %v15514_v8  ;;  %v6134_v35 = vadd.f32 %v11341_v14, %v6133_v62  ;;  %v2421_v3 = vld [vmem:[%s10540_s11 + $0x398] sm:$0xff] }
 0x27b   : > { %9514 = vmatmul.msk.bf16.gmra.mxu0 %vm9513_vm14, %v15514_v8  ;;  %vm1476_vm14 = vcmp.eq.s32.totalorder %v10504_v1, %v15617_v26 }
 0x27d   : > { %2905 = vperm.xlu2 %10156, %v2420_v38   ;;  %988 = vperm.xlu1 %10155, %v501_v60  }
 0x27e   : > { %985 = vperm.xlu0 %10154, %v500_v2   ;;  %v503_v2 = vld [vmem:[%s10422_s30 + $0x3a8] sm:$0xff] }
 0x27f   : > { %v11487_v36 = vpop.permute.xlu2 %940  ;;  %v5079_v12 = vpop.f32.mrf.mxu1 }
 0x280   : > { %15594 = vst [vmem:[#allocation64_spill] sm:$0xff] %v11487_v36  ;;  %v11491_v49 = vpop.permute.xlu1 %2842  ;;  %v11493_v5 = vpop.f32.mrf.mxu0  ;;  %v5679_v30 = vmul.f32 %v5079_v12, %v11149_v59  ;;  %v6761_v36 = vmax.f32 %v6134_v35, 0.0  ;;  %v15597_v59 = vld [vmem:[#allocation20_spill] sm:$0xff]  ;;  %v15599_v12 = vld [vmem:[#allocation31_spill] sm:$0xff] }
 0x281   : > { %15595 = vst [vmem:[#allocation65_spill] sm:$0xff] %v11491_v49  ;;  %v6135_v51 = vpop.f32.mrf.mxu2  ;;  %v11496_v10 = vpop.permute.xlu0 %2839  ;;  %vm1473_vm0 = vcmp.eq.s32.totalorder %v10504_v1, %v15597_v59  ;;  %vm3374_vm1 = vcmp.eq.s32.totalorder %v10504_v1, %v15599_v12  ;;  %v2423_v35 = vld [vmem:[%s10540_s11 + $0x3a8] sm:$0xff] }
 0x282   : > { %15596 = vst [vmem:[#allocation66_spill] sm:$0xff] %v11496_v10  ;;  %v5938_v38 = vpack.c.bf16 %v5679_v30, %v5678_v33  ;;  %v6136_v60 = vadd.f32 %v11341_v14, %v6135_v51  ;;  %vm9785_vm3 = vmpackc.low %vm3375_vm15, %vm3374_vm1  ;;  %v2422_v30 = vld [vmem:[%s10540_s11 + $0x3a0] sm:$0xff]  ;;  %v2424_v10 = vld [vmem:[%s10540_s11 + $0x3b0] sm:$0xff]  ;;  %vm3380_vm1 = vcmp.eq.s32.totalorder %v10504_v1, %v11097_v57 }
 0x283   : > { %vm9515_vm4 = vmpackc.low %vm1473_vm0, %vm1472_vm2  ;;  %v15622_v57 = vld [vmem:[#allocation30_spill] sm:$0xff] }
 0x284   : > { %v6762_v54 = vmax.f32 %v6136_v60, 0.0  ;;  %6177 = vmatmul.bf16.gmra.mxu2 %v5938_v38 }
 0x285   : > { %994 = vperm.xlu2 %10156, %v503_v2   ;;  %991 = vperm.xlu1 %10155, %v502_v52  }
 0x286   : > { %2908 = vperm.xlu0 %10154, %v2421_v3   ;;  %v7030_v17 = vpack.c.bf16 %v6762_v54, %v6761_v36  ;;  %v504_v36 = vld [vmem:[%s10422_s30 + $0x3b0] sm:$0xff] }
 0x287   : > { %v11506_v39 = vpop.permute.xlu2 %943  ;;  %v5082_v62 = vpop.f32.mrf.mxu1 }
 0x288   : > { %15598 = vst [vmem:[#allocation20_spill] sm:$0xff] %v11506_v39  ;;  %7233 = vmatmul.bf16.gmra.mxu3 %v7030_v17  ;;  %v11510_v33 = vpop.permute.xlu1 %2845  ;;  %v11512_v52 = vpop.f32.mrf.mxu0  ;;  %v5680_v60 = vmul.f32 %v5082_v62, %v11167_v22 }
 0x289   : > { %15600 = vst [vmem:[#allocation31_spill] sm:$0xff] %v11510_v33  ;;  %v6138_v54 = vpop.f32.mrf.mxu2  ;;  %v11516_v3 = vpop.permute.xlu0 %928 }
 0x28a   : > { %9786 = vmatmul.msk.bf16.gmra.mxu1 %vm9785_vm3, %v15514_v8  ;;  %v6139_v2 = vadd.f32 %v11341_v14, %v6138_v54  ;;  %vm3381_vm3 = vcmp.eq.s32.totalorder %v10504_v1, %v11042_v23  ;;  %v512_v23 = vld [vmem:[%s10422_s30 + $0x3f0] sm:$0xff] }
 0x28b   : > { %9516 = vmatmul.msk.bf16.gmra.mxu0 %vm9515_vm4, %v15514_v8  ;;  %vm1478_vm4 = vcmp.eq.s32.totalorder %v10504_v1, %v15622_v57 }
 0x28c   : > { %v6763_v49 = vmax.f32 %v6139_v2, 0.0  ;;  %v507_v2 = vld [vmem:[%s10422_s30 + $0x3c8] sm:$0xff] }
 0x28d   : > { %997 = vperm.xlu2 %10156, %v504_v36   ;;  %2914 = vperm.xlu1 %10155, %v2423_v35  }
 0x28e   : > { %2911 = vperm.xlu0 %10154, %v2422_v30   ;;  %v2425_v30 = vld [vmem:[%s10540_s11 + $0x3b8] sm:$0xff] }
 0x28f   : > { %v11523_v51 = vpop.permute.xlu2 %2866  ;;  %v5084_v38 = vpop.f32.mrf.mxu1 }
 0x290   : > { %15602 = vst [vmem:[#allocation19_spill] sm:$0xff] %v11523_v51  ;;  %v11527_v17 = vpop.permute.xlu1 %934  ;;  %v11529_v59 = vpop.f32.mrf.mxu0  ;;  %v5681_v12 = vmul.f32 %v5084_v38, %v11183_v29  ;;  %v505_v51 = vld [vmem:[%s10422_s30 + $0x3b8] sm:$0xff]  ;;  %v15604_v29 = vld [vmem:[#allocation18_spill] sm:$0xff]  ;;  %v15606_v38 = vld [vmem:[#allocation35_spill] sm:$0xff] }
 0x291   : > { %v6140_v58 = vpop.f32.mrf.mxu2  ;;  %v11532_v33 = vpop.permute.xlu0 %931  ;;  %vm1475_vm6 = vcmp.eq.s32.totalorder %v10504_v1, %v15604_v29  ;;  %vm3376_vm7 = vcmp.eq.s32.totalorder %v10504_v1, %v15606_v38 }
 0x292   : > { %15603 = vst [vmem:[#allocation67_spill] sm:$0xff] %v11532_v33  ;;  %v5939_v36 = vpack.c.bf16 %v5681_v12, %v5680_v60  ;;  %v6141_v35 = vadd.f32 %v11341_v14, %v6140_v58  ;;  %vm9787_vm9 = vmpackc.low %vm3377_vm5, %vm3376_vm7  ;;  %v506_v12 = vld [vmem:[%s10422_s30 + $0x3c0] sm:$0xff]  ;;  %vm3382_vm7 = vcmp.eq.s32.totalorder %v10504_v1, %v11113_v27 }
 0x293   : > { %vm9517_vm10 = vmpackc.low %vm1475_vm6, %vm1474_vm8  ;;  %v15631_v27 = vld [vmem:[#allocation26_spill] sm:$0xff] }
 0x294   : > { %v6764_v39 = vmax.f32 %v6141_v35, 0.0  ;;  %6182 = vmatmul.bf16.gmra.mxu2 %v5939_v36  ;;  %vm9791_vm5 = vmpackc.low %vm3381_vm3, %vm3380_vm1  ;;  %vm3387_vm3 = vcmp.eq.s32.totalorder %v10504_v1, %v11147_v16 }
 0x295   : > { %2920 = vperm.xlu2 %10156, %v2425_v30   ;;  %2917 = vperm.xlu1 %10155, %v2424_v10  }
 0x296   : > { %1000 = vperm.xlu0 %10154, %v505_v51   ;;  %v7031_v22 = vpack.c.bf16 %v6764_v39, %v6763_v49  ;;  %v2426_v51 = vld [vmem:[%s10540_s11 + $0x3c0] sm:$0xff] }
 0x297   : > { %v11542_v62 = vpop.permute.xlu2 %2869  ;;  %v5087_v54 = vpop.f32.mrf.mxu1 }
 0x298   : > { %15605 = vst [vmem:[#allocation18_spill] sm:$0xff] %v11542_v62  ;;  %7238 = vmatmul.bf16.gmra.mxu3 %v7031_v22  ;;  %v11546_v60 = vpop.permute.xlu1 %937  ;;  %v11548_v10 = vpop.f32.mrf.mxu0  ;;  %v5682_v35 = vmul.f32 %v5087_v54, %v11204_v55 }
 0x299   : > { %15607 = vst [vmem:[#allocation35_spill] sm:$0xff] %v11546_v60  ;;  %v6143_v49 = vpop.f32.mrf.mxu2  ;;  %v11552_v39 = vpop.permute.xlu0 %2854 }
 0x29a   : > { %15609 = vst [vmem:[#allocation17_spill] sm:$0xff] %v11552_v39  ;;  %9788 = vmatmul.msk.bf16.gmra.mxu1 %vm9787_vm9, %v15514_v8  ;;  %v6144_v30 = vadd.f32 %v11341_v14, %v6143_v49  ;;  %v508_v39 = vld [vmem:[%s10422_s30 + $0x3d0] sm:$0xff] }
 0x29b   : > { %9518 = vmatmul.msk.bf16.gmra.mxu0 %vm9517_vm10, %v15514_v8  ;;  %vm1480_vm10 = vcmp.eq.s32.totalorder %v10504_v1, %v15631_v27 }
 0x29c   : > { %v6765_v60 = vmax.f32 %v6144_v30, 0.0  ;;  %v2429_v30 = vld [vmem:[%s10540_s11 + $0x3d8] sm:$0xff] }
 0x29d   : > { %2923 = vperm.xlu2 %10156, %v2426_v51   ;;  %1006 = vperm.xlu1 %10155, %v507_v2  }
 0x29e   : > { %1003 = vperm.xlu0 %10154, %v506_v12   ;;  %v509_v12 = vld [vmem:[%s10422_s30 + $0x3d8] sm:$0xff] }
 0x29f   : > { %v11559_v58 = vpop.permute.xlu2 %958  ;;  %v5089_v36 = vpop.f32.mrf.mxu1 }
 0x2a0   : > { %15610 = vst [vmem:[#allocation68_spill] sm:$0xff] %v11559_v58  ;;  %v11563_v22 = vpop.permute.xlu1 %2860  ;;  %v11565_v29 = vpop.f32.mrf.mxu0  ;;  %v5683_v38 = vmul.f32 %v5089_v36, %v11226_v45  ;;  %v2427_v58 = vld [vmem:[%s10540_s11 + $0x3c8] sm:$0xff]  ;;  %v15613_v45 = vld [vmem:[#allocation25_spill] sm:$0xff]  ;;  %v15615_v36 = vld [vmem:[#allocation36_spill] sm:$0xff] }
 0x2a1   : > { %15611 = vst [vmem:[#allocation69_spill] sm:$0xff] %v11563_v22  ;;  %v6145_v44 = vpop.f32.mrf.mxu2  ;;  %v11568_v62 = vpop.permute.xlu0 %2857  ;;  %vm1477_vm12 = vcmp.eq.s32.totalorder %v10504_v1, %v15613_v45  ;;  %vm3378_vm13 = vcmp.eq.s32.totalorder %v10504_v1, %v15615_v36 }
 0x2a2   : > { %15612 = vst [vmem:[#allocation70_spill] sm:$0xff] %v11568_v62  ;;  %v5940_v51 = vpack.c.bf16 %v5683_v38, %v5682_v35  ;;  %v6146_v2 = vadd.f32 %v11341_v14, %v6145_v44  ;;  %vm9789_vm15 = vmpackc.low %vm3379_vm11, %vm3378_vm13  ;;  %v2428_v38 = vld [vmem:[%s10540_s11 + $0x3d0] sm:$0xff]  ;;  %v2430_v62 = vld [vmem:[%s10540_s11 + $0x3e0] sm:$0xff]  ;;  %vm3384_vm13 = vcmp.eq.s32.totalorder %v10504_v1, %v11133_v34 }
 0x2a3   : > { %vm9519_vm0 = vmpackc.low %vm1477_vm12, %vm1476_vm14  ;;  %vm1483_vm14 = vcmp.eq.s32.totalorder %v10504_v1, %v11079_v46 }
 0x2a4   : > { %v6766_v33 = vmax.f32 %v6146_v2, 0.0  ;;  %6187 = vmatmul.bf16.gmra.mxu2 %v5940_v51 }
 0x2a5   : > { %1012 = vperm.xlu2 %10156, %v509_v12   ;;  %1009 = vperm.xlu1 %10155, %v508_v39  }
 0x2a6   : > { %2926 = vperm.xlu0 %10154, %v2427_v58   ;;  %v7032_v55 = vpack.c.bf16 %v6766_v33, %v6765_v60  ;;  %v510_v58 = vld [vmem:[%s10422_s30 + $0x3e0] sm:$0xff] }
 0x2a7   : > { %v11578_v54 = vpop.permute.xlu2 %961  ;;  %v5092_v49 = vpop.f32.mrf.mxu1 }
 0x2a8   : > { %15614 = vst [vmem:[#allocation25_spill] sm:$0xff] %v11578_v54  ;;  %7243 = vmatmul.bf16.gmra.mxu3 %v7032_v55  ;;  %v11582_v35 = vpop.permute.xlu1 %2863  ;;  %v11584_v39 = vpop.f32.mrf.mxu0  ;;  %v5684_v2 = vmul.f32 %v5092_v49, %v11252_v11 }
 0x2a9   : > { %15616 = vst [vmem:[#allocation36_spill] sm:$0xff] %v11582_v35  ;;  %v6148_v33 = vpop.f32.mrf.mxu2  ;;  %v11588_v60 = vpop.permute.xlu0 %946 }
 0x2aa   : > { %9790 = vmatmul.msk.bf16.gmra.mxu1 %vm9789_vm15, %v15514_v8  ;;  %v6149_v12 = vadd.f32 %v11341_v14, %v6148_v33 }
 0x2ab   : > { %9520 = vmatmul.msk.bf16.gmra.mxu0 %vm9519_vm0, %v15514_v8 }
 0x2ac   : > { %v6767_v22 = vmax.f32 %v6149_v12, 0.0 }
 0x2ad   : > { %1015 = vperm.xlu2 %10156, %v510_v58   ;;  %2932 = vperm.xlu1 %10155, %v2429_v30  }
 0x2ae   : > { %2929 = vperm.xlu0 %10154, %v2428_v38   ;;  %v2431_v38 = vld [vmem:[%s10540_s11 + $0x3e8] sm:$0xff] }
 0x2af   : > { %v11595_v44 = vpop.permute.xlu2 %2884  ;;  %v5094_v51 = vpop.f32.mrf.mxu1 }
 0x2b0   : > { %15618 = vst [vmem:[#allocation23_spill] sm:$0xff] %v11595_v44  ;;  %v11599_v55 = vpop.permute.xlu1 %952  ;;  %v11601_v45 = vpop.f32.mrf.mxu0  ;;  %v5685_v36 = vmul.f32 %v5094_v51, %v11272_v42  ;;  %v511_v44 = vld [vmem:[%s10422_s30 + $0x3e8] sm:$0xff] }
 0x2b1   : > { %v6150_v26 = vpop.f32.mrf.mxu2  ;;  %v11604_v35 = vpop.permute.xlu0 %949  ;;  %v15619_v42 = vld [vmem:[#allocation34_spill] sm:$0xff] }
 0x2b2   : > { %v5941_v58 = vpack.c.bf16 %v5685_v36, %v5684_v2  ;;  %v6151_v30 = vadd.f32 %v11341_v14, %v6150_v26  ;;  %vm1479_vm2 = vcmp.eq.s32.totalorder %v10504_v1, %v15619_v42  ;;  %v513_v2 = vld [vmem:[%s10422_s30 + $0x3f8] sm:$0xff] }
 0x2b3   : > { %vm9521_vm6 = vmpackc.low %vm1479_vm2, %vm1478_vm4  ;;  %vm3386_vm4 = vcmp.eq.s32.totalorder %v10504_v1, %v11152_v13 }
 0x2b4   : > { %v6768_v54 = vmax.f32 %v6151_v30, 0.0  ;;  %6192 = vmatmul.bf16.gmra.mxu2 %v5941_v58 }
 0x2b5   : > { %2938 = vperm.xlu2 %10156, %v2431_v38   ;;  %2935 = vperm.xlu1 %10155, %v2430_v62  }
 0x2b6   : > { %1018 = vperm.xlu0 %10154, %v511_v44   ;;  %v7033_v11 = vpack.c.bf16 %v6768_v54, %v6767_v22  ;;  %v2432_v44 = vld [vmem:[%s10540_s11 + $0x3f0] sm:$0xff] }
 0x2b7   : > { %v11614_v49 = vpop.permute.xlu2 %2887  ;;  %v5097_v33 = vpop.f32.mrf.mxu1 }
 0x2b8   : > { %15620 = vst [vmem:[#allocation34_spill] sm:$0xff] %v11614_v49  ;;  %7248 = vmatmul.bf16.gmra.mxu3 %v7033_v11  ;;  %v11618_v51 = vpop.permute.xlu1 %955  ;;  %v11620_v62 = vpop.f32.mrf.mxu0  ;;  %v5686_v26 = vmul.f32 %v5097_v33, %v11293_v50  ;;  %v514_v49 = vld [vmem:[%s10422_s30 + $0x400] sm:$0xff] }
 0x2b9   : > { %15621 = vst [vmem:[#allocation71_spill] sm:$0xff] %v11618_v51  ;;  %v6153_v22 = vpop.f32.mrf.mxu2  ;;  %v11624_v54 = vpop.permute.xlu0 %2872 }
 0x2ba   : > { %15623 = vst [vmem:[#allocation30_spill] sm:$0xff] %v11624_v54  ;;  %9792 = vmatmul.msk.bf16.gmra.mxu1 %vm9791_vm5, %v15514_v8  ;;  %v6154_v58 = vadd.f32 %v11341_v14, %v6153_v22  ;;  %v2433_v54 = vld [vmem:[%s10540_s11 + $0x3f8] sm:$0xff]  ;;  %vm1485_vm5 = vcmp.eq.s32.totalorder %v10504_v1, %v11137_v6 }
 0x2bb   : > { %9522 = vmatmul.msk.bf16.gmra.mxu0 %vm9521_vm6, %v15514_v8  ;;  %vm1484_vm6 = vcmp.eq.s32.totalorder %v10504_v1, %v11118_v20 }
 0x2bd   : > { %2941 = vperm.xlu2 %10156, %v2432_v44   ;;  %1024 = vperm.xlu1 %10155, %v513_v2  }
 0x2be   : > { %1021 = vperm.xlu0 %10154, %v512_v23   ;;  %v515_v23 = vld [vmem:[%s10422_s30 + $0x408] sm:$0xff] }
 0x2bf   : > { %v11631_v12 = vpop.permute.xlu2 %976  ;;  %v5099_v36 = vpop.f32.mrf.mxu1 }
 0x2c0   : > { %15624 = vst [vmem:[#allocation72_spill] sm:$0xff] %v11631_v12  ;;  %v11635_v30 = vpop.permute.xlu1 %2878  ;;  %v11637_v38 = vpop.f32.mrf.mxu0  ;;  %v5687_v11 = vmul.f32 %v5099_v36, %v11309_v56  ;;  %v6769_v12 = vmax.f32 %v6154_v58, 0.0  ;;  %v15627_v56 = vld [vmem:[#allocation27_spill] sm:$0xff]  ;;  %v15629_v36 = vld [vmem:[#allocation37_spill] sm:$0xff] }
 0x2c1   : > { %15625 = vst [vmem:[#allocation73_spill] sm:$0xff] %v11635_v30  ;;  %v6155_v42 = vpop.f32.mrf.mxu2  ;;  %v11640_v57 = vpop.permute.xlu0 %2875  ;;  %vm1481_vm8 = vcmp.eq.s32.totalorder %v10504_v1, %v15627_v56  ;;  %vm3383_vm9 = vcmp.eq.s32.totalorder %v10504_v1, %v15629_v36  ;;  %v2435_v58 = vld [vmem:[%s10540_s11 + $0x408] sm:$0xff] }
 0x2c2   : > { %15626 = vst [vmem:[#allocation74_spill] sm:$0xff] %v11640_v57  ;;  %v5942_v44 = vpack.c.bf16 %v5687_v11, %v5686_v26  ;;  %v6156_v2 = vadd.f32 %v11341_v14, %v6155_v42  ;;  %vm9793_vm11 = vmpackc.low %vm3383_vm9, %vm3382_vm7  ;;  %v2434_v42 = vld [vmem:[%s10540_s11 + $0x400] sm:$0xff]  ;;  %vm3389_vm9 = vcmp.eq.s32.totalorder %v10504_v1, %v11165_v41 }
 0x2c3   : > { %vm9523_vm12 = vmpackc.low %vm1481_vm8, %vm1480_vm10  ;;  %vm3388_vm10 = vcmp.eq.s32.totalorder %v10504_v1, %v11171_v19  ;;  %v15648_v19 = vld [vmem:[#allocation40_spill] sm:$0xff] }
 0x2c4   : > { %v6770_v51 = vmax.f32 %v6156_v2, 0.0  ;;  %6197 = vmatmul.bf16.gmra.mxu2 %v5942_v44  ;;  %v11670_v44 = vld [vmem:[%s15440_s7] ss:$0 sm:$0xff]  ;;  %vm9797_vm7 = vmpackc.low %vm3387_vm3, %vm3386_vm4  ;;  %vm1488_vm3 = vcmp.eq.s32.totalorder %v10504_v1, %v11202_v40 }
 0x2c5   : > { %1030 = vperm.xlu2 %10156, %v515_v23   ;;  %1027 = vperm.xlu1 %10155, %v514_v49   ;;  %vm9527_vm8 = vmpackc.low %vm1485_vm5, %vm1484_vm6  ;;  %vm3393_vm5 = vcmp.eq.s32.totalorder %v10504_v1, %v11208_v48 }
 0x2c6   : > { %2944 = vperm.xlu0 %10154, %v2433_v54   ;;  %v7034_v50 = vpack.c.bf16 %v6770_v51, %v6769_v12  ;;  %v516_v12 = vld [vmem:[%s10422_s30 + $0x410] sm:$0xff] }
 0x2c7   : > { %v11650_v33 = vpop.permute.xlu2 %979  ;;  %v5102_v22 = vpop.f32.mrf.mxu1 }
 0x2c8   : > { %15628 = vst [vmem:[#allocation27_spill] sm:$0xff] %v11650_v33  ;;  %7253 = vmatmul.bf16.gmra.mxu3 %v7034_v50  ;;  %v11654_v26 = vpop.permute.xlu1 %2881  ;;  %v11656_v49 = vpop.f32.mrf.mxu0  ;;  %v5688_v50 = vmul.f32 %v5102_v22, %v11327_v7  ;;  %v2436_v33 = vld [vmem:[%s10540_s11 + $0x410] sm:$0xff]  ;;  %v517_v7 = vld [vmem:[%s10422_s30 + $0x418] sm:$0xff] }
 0x2c9   : > { %15630 = vst [vmem:[#allocation37_spill] sm:$0xff] %v11654_v26  ;;  %v6158_v51 = vpop.f32.mrf.mxu2  ;;  %v11660_v54 = vpop.permute.xlu0 %964 }
 0x2ca   : > { %15632 = vst [vmem:[#allocation26_spill] sm:$0xff] %v11660_v54  ;;  %9794 = vmatmul.msk.bf16.gmra.mxu1 %vm9793_vm11, %v15514_v8  ;;  %v6159_v56 = vadd.f32 %v11341_v14, %v6158_v51 }
 0x2cb   : > { %v7214_v11 = vpop.f32.mrf.mxu3  ;;  %9524 = vmatmul.msk.bf16.gmra.mxu0 %vm9523_vm12, %v15514_v8  ;;  %vm1486_vm12 = vcmp.eq.s32.totalorder %v10504_v1, %v15648_v19 }
 0x2cc   : > { %v7215_v57 = vadd.f32 %v11670_v44, %v7214_v11  ;;  %v6771_v22 = vmax.f32 %v6159_v56, 0.0  ;;  %v15636_v56 = vld [vmem:[#allocation39_spill] sm:$0xff] }
 0x2cd   : > { %1033 = vperm.xlu2 %10156, %v516_v12   ;;  %2950 = vperm.xlu1 %10155, %v2435_v58   ;;  %vm3385_vm15 = vcmp.eq.s32.totalorder %v10504_v1, %v15636_v56 }
 0x2ce   : > { %2947 = vperm.xlu0 %10154, %v2434_v42   ;;  %vm9795_vm1 = vmpackc.low %vm3385_vm15, %vm3384_vm13  ;;  %vm3391_vm15 = vcmp.eq.s32.totalorder %v10504_v1, %v11181_v37 }
 0x2cf   : > { %v11672_v2 = vpop.permute.xlu2 %2902  ;;  %v5104_v23 = vpop.f32.mrf.mxu1  ;;  %vm9799_vm13 = vmpackc.low %vm3389_vm9, %vm3388_vm10 }
 0x2d0   : > { %15633 = vst [vmem:[#allocation75_spill] sm:$0xff] %v11672_v2  ;;  %v11676_v36 = vpop.permute.xlu1 %970  ;;  %v11678_v27 = vpop.f32.mrf.mxu0  ;;  %v5689_v12 = vmul.f32 %v5104_v23, %v11349_v15  ;;  %v2437_v2 = vld [vmem:[%s10540_s11 + $0x418] sm:$0xff]  ;;  %v7854_v15 = vmax.f32 %v7215_v57, 0.0 }
 0x2d1   : > { %15634 = vst [vmem:[#allocation76_spill] sm:$0xff] %v11676_v36  ;;  %v6160_v58 = vpop.f32.mrf.mxu2  ;;  %v11681_v26 = vpop.permute.xlu0 %967 }
 0x2d2   : > { %v5943_v42 = vpack.c.bf16 %v5689_v12, %v5688_v50  ;;  %v6161_v30 = vadd.f32 %v11341_v14, %v6160_v58  ;;  %v519_v12 = vld [vmem:[%s10422_s30 + $0x428] sm:$0xff] }
 0x2d3   : > { %v7216_v54 = vpop.f32.mrf.mxu3 }
 0x2d4   : > { %v6772_v51 = vmax.f32 %v6161_v30, 0.0  ;;  %v7217_v36 = vadd.f32 %v11670_v44, %v7216_v54  ;;  %6202 = vmatmul.bf16.gmra.mxu2 %v5943_v42  ;;  %v15638_v54 = vld [vmem:[#allocation38_spill] sm:$0xff] }
 0x2d5   : > { %2956 = vperm.xlu2 %10156, %v2437_v2   ;;  %2953 = vperm.xlu1 %10155, %v2436_v33   ;;  %vm1482_vm0 = vcmp.eq.s32.totalorder %v10504_v1, %v15638_v54  ;;  %v518_v42 = vld [vmem:[%s10422_s30 + $0x420] sm:$0xff] }
 0x2d6   : > { %v7855_v23 = vmax.f32 %v7217_v36, 0.0  ;;  %1036 = vperm.xlu0 %10154, %v517_v7   ;;  %v7035_v11 = vpack.c.bf16 %v6772_v51, %v6771_v22  ;;  %vm9525_vm2 = vmpackc.low %vm1483_vm14, %vm1482_vm0  ;;  %v2438_v36 = vld [vmem:[%s10540_s11 + $0x420] sm:$0xff]  ;;  %vm3390_vm0 = vcmp.eq.s32.totalorder %v10504_v1, %v11186_v25 }
 0x2d7   : > { %v11693_v50 = vpop.permute.xlu2 %2905  ;;  %v5107_v30 = vpop.f32.mrf.mxu1 }
 0x2d8   : > { %15635 = vst [vmem:[#allocation77_spill] sm:$0xff] %v11693_v50  ;;  %7258 = vmatmul.bf16.gmra.mxu3 %v7035_v11  ;;  %v11697_v33 = vpop.permute.xlu1 %973  ;;  %v11699_v34 = vpop.f32.mrf.mxu0  ;;  %v11701_v57 = vpack.c.bf16 %v7855_v23, %v7854_v15  ;;  %v5690_v51 = vmul.f32 %v5107_v30, %v11370_v21  ;;  %v2439_v21 = vld [vmem:[%s10540_s11 + $0x428] sm:$0xff] }
 0x2d9   : > { %15637 = vst [vmem:[#allocation39_spill] sm:$0xff] %v11697_v33  ;;  %v6163_v2 = vpop.f32.mrf.mxu2  ;;  %v11705_v46 = vpop.permute.xlu0 %2890 }
 0x2da   : > { %15639 = vst [vmem:[#allocation38_spill] sm:$0xff] %v11705_v46  ;;  %9796 = vmatmul.msk.bf16.gmra.mxu1 %vm9795_vm1, %v15514_v8  ;;  %v6164_v15 = vadd.f32 %v11341_v14, %v6163_v2  ;;  %v521_v46 = vld [vmem:[%s10422_s30 + $0x438] sm:$0xff]  ;;  %vm1489_vm1 = vcmp.eq.s32.totalorder %v10504_v1, %v11224_v24 }
 0x2db   : > { %v7219_v58 = vpop.f32.mrf.mxu3  ;;  %9526 = vmatmul.msk.bf16.gmra.mxu0 %vm9525_vm2, %v15514_v8  ;;  %vm9801_vm2 = vmpackc.low %vm3391_vm15, %vm3390_vm0 }
 0x2dc   : > { %v6773_v30 = vmax.f32 %v6164_v15, 0.0  ;;  %vm9531_vm4 = vmpackc.low %vm1489_vm1, %vm1488_vm3 }
 0x2dd   : > { %2959 = vperm.xlu2 %10156, %v2438_v36   ;;  %1042 = vperm.xlu1 %10155, %v519_v12   ;;  %v7220_v36 = vadd.f32 %v11670_v44, %v7219_v58 }
 0x2de   : > { %1039 = vperm.xlu0 %10154, %v518_v42  }
 0x2df   : > { %v11712_v7 = vpop.permute.xlu2 %994  ;;  %v5109_v22 = vpop.f32.mrf.mxu1 }
 0x2e0   : > { %15640 = vst [vmem:[#allocation78_spill] sm:$0xff] %v11712_v7  ;;  %v11716_v23 = vpop.permute.xlu1 %2896  ;;  %v11718_v11 = vpop.f32.mrf.mxu0  ;;  %v5691_v56 = vmul.f32 %v5109_v22, %v11385_v53  ;;  %v520_v7 = vld [vmem:[%s10422_s30 + $0x430] sm:$0xff]  ;;  %v7856_v53 = vmax.f32 %v7220_v36, 0.0 }
 0x2e1   : > { %15641 = vst [vmem:[#allocation79_spill] sm:$0xff] %v11716_v23  ;;  %v6165_v54 = vpop.f32.mrf.mxu2  ;;  %v11721_v50 = vpop.permute.xlu0 %2893  ;;  %v2440_v36 = vld [vmem:[%s10540_s11 + $0x430] sm:$0xff] }
 0x2e2   : > { %15642 = vst [vmem:[#allocation80_spill] sm:$0xff] %v11721_v50  ;;  %v5944_v12 = vpack.c.bf16 %v5691_v56, %v5690_v51  ;;  %v6166_v42 = vadd.f32 %v11341_v14, %v6165_v54  ;;  %v2441_v56 = vld [vmem:[%s10540_s11 + $0x438] sm:$0xff] }
 0x2e3   : > { %v7221_v33 = vpop.f32.mrf.mxu3 }
 0x2e4   : > { %v6774_v2 = vmax.f32 %v6166_v42, 0.0  ;;  %v7222_v23 = vadd.f32 %v11670_v44, %v7221_v33  ;;  %6207 = vmatmul.bf16.gmra.mxu2 %v5944_v12 }
 0x2e5   : > { %1048 = vperm.xlu2 %10156, %v521_v46   ;;  %1045 = vperm.xlu1 %10155, %v520_v7  }
 0x2e6   : > { %v7857_v58 = vmax.f32 %v7222_v23, 0.0  ;;  %2962 = vperm.xlu0 %10154, %v2439_v21   ;;  %v7036_v22 = vpack.c.bf16 %v6774_v2, %v6773_v30  ;;  %v522_v23 = vld [vmem:[%s10422_s30 + $0x440] sm:$0xff] }
 0x2e7   : > { %v11735_v51 = vpop.permute.xlu2 %997  ;;  %v5112_v33 = vpop.f32.mrf.mxu1 }
 0x2e8   : > { %15643 = vst [vmem:[#allocation81_spill] sm:$0xff] %v11735_v51  ;;  %7263 = vmatmul.bf16.gmra.mxu3 %v7036_v22  ;;  %v11737_v15 = vpop.permute.xlu1 %2899  ;;  %v11739_v46 = vpop.f32.mrf.mxu0  ;;  %v11741_v7 = vpack.c.bf16 %v7857_v58, %v7856_v53  ;;  %v5692_v12 = vmul.f32 %v5112_v33, %v11404_v18  ;;  %v523_v18 = vld [vmem:[%s10422_s30 + $0x448] sm:$0xff] }
 0x2e9   : > { %15644 = vst [vmem:[#allocation82_spill] sm:$0xff] %v11737_v15  ;;  %v6168_v13 = vpop.f32.mrf.mxu2  ;;  %v11748_v6 = vpop.permute.xlu0 %982 }
 0x2ea   : > { %9798 = vmatmul.msk.bf16.gmra.mxu1 %vm9797_vm7, %v15514_v8  ;;  %v6169_v42 = vadd.f32 %v11341_v14, %v6168_v13 }
 0x2eb   : > { %v7224_v54 = vpop.f32.mrf.mxu3  ;;  %9528 = vmatmul.msk.bf16.gmra.mxu0 %vm9527_vm8, %v15514_v8 }
 0x2ec   : > { %v7225_v22 = vadd.f32 %v11670_v44, %v7224_v54  ;;  %v6775_v33 = vmax.f32 %v6169_v42, 0.0 }
 0x2ed   : > { %1051 = vperm.xlu2 %10156, %v522_v23   ;;  %2968 = vperm.xlu1 %10155, %v2441_v56  }
 0x2ee   : > { %2965 = vperm.xlu0 %10154, %v2440_v36   ;;  %v2443_v36 = vld [vmem:[%s10540_s11 + $0x448] sm:$0xff] }
 0x2ef   : > { %v11755_v20 = vpop.permute.xlu2 %2920  ;;  %v5114_v16 = vpop.f32.mrf.mxu1 }
 0x2f0   : > { %15645 = vst [vmem:[#allocation83_spill] sm:$0xff] %v11755_v20  ;;  %v11759_v21 = vpop.permute.xlu1 %988  ;;  %v11761_v30 = vpop.f32.mrf.mxu0  ;;  %v5693_v2 = vmul.f32 %v5114_v16, %v11421_v0  ;;  %v2442_v20 = vld [vmem:[%s10540_s11 + $0x440] sm:$0xff]  ;;  %v7858_v0 = vmax.f32 %v7225_v22, 0.0  ;;  %v2444_v22 = vld [vmem:[%s10540_s11 + $0x450] sm:$0xff] }
 0x2f1   : > { %v6170_v53 = vpop.f32.mrf.mxu2  ;;  %v11764_v58 = vpop.permute.xlu0 %985  ;;  %v15646_v16 = vld [vmem:[#allocation41_spill] sm:$0xff] }
 0x2f2   : > { %v5945_v23 = vpack.c.bf16 %v5693_v2, %v5692_v12  ;;  %v6171_v56 = vadd.f32 %v11341_v14, %v6170_v53  ;;  %vm1487_vm11 = vcmp.eq.s32.totalorder %v10504_v1, %v15646_v16 }
 0x2f3   : > { %v7226_v15 = vpop.f32.mrf.mxu3  ;;  %vm9529_vm14 = vmpackc.low %vm1487_vm11, %vm1486_vm12 }
 0x2f4   : > { %v6776_v13 = vmax.f32 %v6171_v56, 0.0  ;;  %v7227_v50 = vadd.f32 %v11670_v44, %v7226_v15  ;;  %6212 = vmatmul.bf16.gmra.mxu2 %v5945_v23  ;;  %v525_v23 = vld [vmem:[%s10422_s30 + $0x458] sm:$0xff] }
 0x2f5   : > { %2974 = vperm.xlu2 %10156, %v2443_v36   ;;  %2971 = vperm.xlu1 %10155, %v2442_v20   ;;  %v524_v36 = vld [vmem:[%s10422_s30 + $0x450] sm:$0xff] }
 0x2f6   : > { %v7859_v54 = vmax.f32 %v7227_v50, 0.0  ;;  %1054 = vperm.xlu0 %10154, %v523_v18   ;;  %v7037_v14 = vpack.c.bf16 %v6776_v13, %v6775_v33  ;;  %v11804_v13 = vld [vmem:[%s15438_s5] ss:$0 sm:$0xff] }
 0x2f7   : > { %v11778_v12 = vpop.permute.xlu2 %2923  ;;  %v5117_v15 = vpop.f32.mrf.mxu1 }
 0x2f8   : > { %15647 = vst [vmem:[#allocation41_spill] sm:$0xff] %v11778_v12  ;;  %7268 = vmatmul.bf16.gmra.mxu3 %v7037_v14  ;;  %v11780_v42 = vpop.permute.xlu1 %991  ;;  %v11782_v20 = vpop.f32.mrf.mxu0  ;;  %v11784_v2 = vpack.c.bf16 %v7859_v54, %v7858_v0  ;;  %v5694_v33 = vmul.f32 %v5117_v15, %v11440_v43  ;;  %v527_v15 = vld [vmem:[%s10422_s30 + $0x468] sm:$0xff]  ;;  %v526_v12 = vld [vmem:[%s10422_s30 + $0x460] sm:$0xff] }
 0x2f9   : > { %v6173_v50 = vpop.f32.mrf.mxu2  ;;  %v11791_v53 = vpop.permute.xlu0 %2908 }
 0x2fa   : > { %15649 = vst [vmem:[#allocation40_spill] sm:$0xff] %v11791_v53  ;;  %9800 = vmatmul.msk.bf16.gmra.mxu1 %vm9799_vm13, %v15514_v8  ;;  %v6174_v0 = vadd.f32 %v11804_v13, %v6173_v50 }
 0x2fb   : > { %v7229_v56 = vpop.f32.mrf.mxu3  ;;  %9530 = vmatmul.msk.bf16.gmra.mxu0 %vm9529_vm14, %v15514_v8 }
 0x2fc   : > { %v6777_v51 = vmax.f32 %v6174_v0, 0.0 }
 0x2fd   : > { %2977 = vperm.xlu2 %10156, %v2444_v22   ;;  %1060 = vperm.xlu1 %10155, %v525_v23   ;;  %v7230_v23 = vadd.f32 %v11670_v44, %v7229_v56 }
 0x2fe   : > { %1057 = vperm.xlu0 %10154, %v524_v36  }
 0x2ff   : > { %v11798_v18 = vpop.permute.xlu2 %1012  ;;  %v5119_v41 = vpop.f32.mrf.mxu1 }
 0x300   : > { %15650 = vst [vmem:[#allocation84_spill] sm:$0xff] %v11798_v18  ;;  %v11807_v54 = vpop.permute.xlu1 %2914  ;;  %v11809_v14 = vpop.f32.mrf.mxu0  ;;  %v5695_v16 = vmul.f32 %v5119_v41, %v11457_v63  ;;  %v2445_v18 = vld [vmem:[%s10540_s11 + $0x458] sm:$0xff]  ;;  %v7860_v63 = vmax.f32 %v7230_v23, 0.0 }
 0x301   : > { %15651 = vst [vmem:[#allocation85_spill] sm:$0xff] %v11807_v54  ;;  %v6175_v19 = vpop.f32.mrf.mxu2  ;;  %v11812_v22 = vpop.permute.xlu0 %2911 }
 0x302   : > { %15652 = vst [vmem:[#allocation86_spill] sm:$0xff] %v11812_v22  ;;  %v5946_v36 = vpack.c.bf16 %v5695_v16, %v5694_v33  ;;  %v6176_v43 = vadd.f32 %v11804_v13, %v6175_v19  ;;  %v2446_v19 = vld [vmem:[%s10540_s11 + $0x460] sm:$0xff] }
 0x303   : > { %v7231_v53 = vpop.f32.mrf.mxu3 }
 0x304   : > { %v6778_v50 = vmax.f32 %v6176_v43, 0.0  ;;  %v7232_v54 = vadd.f32 %v11670_v44, %v7231_v53  ;;  %6217 = vmatmul.bf16.gmra.mxu2 %v5946_v36 }
 0x305   : > { %1066 = vperm.xlu2 %10156, %v527_v15   ;;  %1063 = vperm.xlu1 %10155, %v526_v12  }
 0x306   : > { %v7861_v56 = vmax.f32 %v7232_v54, 0.0  ;;  %2980 = vperm.xlu0 %10154, %v2445_v18   ;;  %v7038_v41 = vpack.c.bf16 %v6778_v50, %v6777_v51  ;;  %v528_v51 = vld [vmem:[%s10422_s30 + $0x470] sm:$0xff]  ;;  %v2447_v18 = vld [vmem:[%s10540_s11 + $0x468] sm:$0xff] }
 0x307   : > { %v11826_v33 = vpop.permute.xlu2 %1015  ;;  %v5122_v53 = vpop.f32.mrf.mxu1 }
 0x308   : > { %15653 = vst [vmem:[#allocation87_spill] sm:$0xff] %v11826_v33  ;;  %7273 = vmatmul.bf16.gmra.mxu3 %v7038_v41  ;;  %v11828_v0 = vpop.permute.xlu1 %2917  ;;  %v11830_v12 = vpop.f32.mrf.mxu0  ;;  %v11832_v16 = vpack.c.bf16 %v7861_v56, %v7860_v63  ;;  %v5696_v23 = vmul.f32 %v5122_v53, %v11476_v4  ;;  %v529_v4 = vld [vmem:[%s10422_s30 + $0x478] sm:$0xff]  ;;  %v532_v33 = vld [vmem:[%s10422_s30 + $0x490] sm:$0xff] }
 0x309   : > { %15654 = vst [vmem:[#allocation88_spill] sm:$0xff] %v11828_v0  ;;  %v6178_v25 = vpop.f32.mrf.mxu2  ;;  %v11839_v24 = vpop.permute.xlu0 %1000 }
 0x30a   : > { %15655 = vst [vmem:[#allocation89_spill] sm:$0xff] %v11839_v24  ;;  %9802 = vmatmul.msk.bf16.gmra.mxu1 %vm9801_vm2, %v15514_v8  ;;  %v6179_v36 = vadd.f32 %v11804_v13, %v6178_v25  ;;  %vm1495_vm2 = vcmp.eq.s32.totalorder %v10504_v1, %v11383_v31  ;;  %v2456_v31 = vld [vmem:[%s10540_s11 + $0x4b0] sm:$0xff] }
 0x30b   : > { %v7234_v54 = vpop.f32.mrf.mxu3  ;;  %9532 = vmatmul.msk.bf16.gmra.mxu0 %vm9531_vm4, %v15514_v8 }
 0x30c   : > { %v7235_v41 = vadd.f32 %v11670_v44, %v7234_v54  ;;  %v6779_v53 = vmax.f32 %v6179_v36, 0.0 }
 0x30d   : > { %1069 = vperm.xlu2 %10156, %v528_v51   ;;  %2986 = vperm.xlu1 %10155, %v2447_v18  }
 0x30e   : > { %2983 = vperm.xlu0 %10154, %v2446_v19   ;;  %v2449_v19 = vld [vmem:[%s10540_s11 + $0x478] sm:$0xff] }
 0x30f   : > { %v11846_v37 = vpop.permute.xlu2 %2938  ;;  %v5124_v40 = vpop.f32.mrf.mxu1 }
 0x310   : > { %15656 = vst [vmem:[#allocation90_spill] sm:$0xff] %v11846_v37  ;;  %v11850_v43 = vpop.permute.xlu1 %1006  ;;  %v11852_v15 = vpop.f32.mrf.mxu0  ;;  %v5697_v50 = vmul.f32 %v5124_v40, %v11493_v5  ;;  %v2448_v37 = vld [vmem:[%s10540_s11 + $0x470] sm:$0xff]  ;;  %v7862_v5 = vmax.f32 %v7235_v41, 0.0 }
 0x311   : > { %15657 = vst [vmem:[#allocation91_spill] sm:$0xff] %v11850_v43  ;;  %v6180_v63 = vpop.f32.mrf.mxu2  ;;  %v11855_v56 = vpop.permute.xlu0 %1003  ;;  %v535_v43 = vld [vmem:[%s10422_s30 + $0x4a8] sm:$0xff] }
 0x312   : > { %15658 = vst [vmem:[#allocation92_spill] sm:$0xff] %v11855_v56  ;;  %v5947_v51 = vpack.c.bf16 %v5697_v50, %v5696_v23  ;;  %v6181_v18 = vadd.f32 %v11804_v13, %v6180_v63  ;;  %v15659_v23 = vld [vmem:[#allocation6_spill] sm:$0xff] }
 0x313   : > { %v7236_v0 = vpop.f32.mrf.mxu3  ;;  %vm1491_vm6 = vcmp.eq.s32.totalorder %v10504_v1, %v15659_v23  ;;  %v15661_v63 = vld [vmem:[#allocation42_spill] sm:$0xff] }
 0x314   : > { %v6780_v25 = vmax.f32 %v6181_v18, 0.0  ;;  %v7237_v22 = vadd.f32 %v11670_v44, %v7236_v0  ;;  %6222 = vmatmul.bf16.gmra.mxu2 %v5947_v51  ;;  %vm3392_vm7 = vcmp.eq.s32.totalorder %v10504_v1, %v15661_v63  ;;  %v2450_v18 = vld [vmem:[%s10540_s11 + $0x480] sm:$0xff] }
 0x315   : > { %2992 = vperm.xlu2 %10156, %v2449_v19   ;;  %2989 = vperm.xlu1 %10155, %v2448_v37   ;;  %vm9803_vm8 = vmpackc.low %vm3393_vm5, %vm3392_vm7  ;;  %v15663_v37 = vld [vmem:[#allocation54_spill] sm:$0xff] }
 0x316   : > { %v7863_v40 = vmax.f32 %v7237_v22, 0.0  ;;  %1072 = vperm.xlu0 %10154, %v529_v4   ;;  %v7039_v54 = vpack.c.bf16 %v6780_v25, %v6779_v53  ;;  %vm1490_vm9 = vcmp.eq.s32.totalorder %v10504_v1, %v15663_v37  ;;  %v531_v19 = vld [vmem:[%s10422_s30 + $0x488] sm:$0xff]  ;;  %v530_v53 = vld [vmem:[%s10422_s30 + $0x480] sm:$0xff] }
 0x317   : > { %v11867_v50 = vpop.permute.xlu2 %2941  ;;  %v5127_v36 = vpop.f32.mrf.mxu1  ;;  %vm9533_vm10 = vmpackc.low %vm1491_vm6, %vm1490_vm9  ;;  %v2454_v56 = vld [vmem:[%s10540_s11 + $0x4a0] sm:$0xff] }
 0x318   : > { %15660 = vst [vmem:[#allocation6_spill] sm:$0xff] %v11867_v50  ;;  %7278 = vmatmul.bf16.gmra.mxu3 %v7039_v54  ;;  %v11871_v0 = vpop.permute.xlu1 %1009  ;;  %v11873_v48 = vpop.f32.mrf.mxu0  ;;  %v11875_v22 = vpack.c.bf16 %v7863_v40, %v7862_v5  ;;  %v5698_v40 = vmul.f32 %v5127_v36, %v11512_v52 }
 0x319   : > { %15662 = vst [vmem:[#allocation42_spill] sm:$0xff] %v11871_v0  ;;  %v6183_v41 = vpop.f32.mrf.mxu2  ;;  %v11879_v51 = vpop.permute.xlu0 %2926  ;;  %v2451_v0 = vld [vmem:[%s10540_s11 + $0x488] sm:$0xff] }
 0x31a   : > { %15664 = vst [vmem:[#allocation54_spill] sm:$0xff] %v11879_v51  ;;  %9804 = vmatmul.msk.bf16.gmra.mxu1 %vm9803_vm8, %v15514_v8  ;;  %v6184_v54 = vadd.f32 %v11804_v13, %v6183_v41  ;;  %v15668_v41 = vld [vmem:[#allocation48_spill] sm:$0xff]  ;;  %vm1496_vm8 = vcmp.eq.s32.totalorder %v10504_v1, %v11402_v61 }
 0x31b   : > { %v11884_v4 = vpop.f32.mrf.mxu3  ;;  %9534 = vmatmul.msk.bf16.gmra.mxu0 %vm9533_vm10, %v15514_v8  ;;  %vm3395_vm11 = vcmp.eq.s32.totalorder %v10504_v1, %v15668_v41  ;;  %v2452_v41 = vld [vmem:[%s10540_s11 + $0x490] sm:$0xff] }
 0x31c   : > { %v6781_v52 = vmax.f32 %v6184_v54, 0.0 }
 0x31d   : > { %2995 = vperm.xlu2 %10156, %v2450_v18   ;;  %1078 = vperm.xlu1 %10155, %v531_v19  }
 0x31e   : > { %1075 = vperm.xlu0 %10154, %v530_v53   ;;  %v533_v53 = vld [vmem:[%s10422_s30 + $0x498] sm:$0xff] }
 0x31f   : > { %v11888_v25 = vpop.permute.xlu2 %1030  ;;  %v5129_v5 = vpop.f32.mrf.mxu1 }
 0x320   : > { %15665 = vst [vmem:[#allocation93_spill] sm:$0xff] %v11888_v25  ;;  %v11892_v23 = vpop.permute.xlu1 %2932  ;;  %v11894_v63 = vpop.f32.mrf.mxu0  ;;  %v5699_v37 = vmul.f32 %v5129_v5, %v11529_v59  ;;  %v15669_v5 = vld [vmem:[#allocation52_spill] sm:$0xff] }
 0x321   : > { %15666 = vst [vmem:[#allocation94_spill] sm:$0xff] %v11892_v23  ;;  %v6185_v50 = vpop.f32.mrf.mxu2  ;;  %v11897_v51 = vpop.permute.xlu0 %2929  ;;  %vm1493_vm12 = vcmp.eq.s32.totalorder %v10504_v1, %v15669_v5 }
 0x322   : > { %15667 = vst [vmem:[#allocation95_spill] sm:$0xff] %v11897_v51  ;;  %v5948_v18 = vpack.c.bf16 %v5699_v37, %v5698_v40  ;;  %v6186_v19 = vadd.f32 %v11804_v13, %v6185_v50  ;;  %v15671_v37 = vld [vmem:[#allocation43_spill] sm:$0xff] }
 0x323   : > { %v11902_v25 = vpop.f32.mrf.mxu3  ;;  %vm3394_vm13 = vcmp.eq.s32.totalorder %v10504_v1, %v15671_v37 }
 0x324   : > { %v6782_v36 = vmax.f32 %v6186_v19, 0.0  ;;  %6227 = vmatmul.bf16.gmra.mxu2 %v5948_v18  ;;  %vm9805_vm14 = vmpackc.low %vm3395_vm11, %vm3394_vm13  ;;  %v15673_v18 = vld [vmem:[#allocation49_spill] sm:$0xff] }
 0x325   : > { %1084 = vperm.xlu2 %10156, %v533_v53   ;;  %1081 = vperm.xlu1 %10155, %v532_v33   ;;  %vm1492_vm15 = vcmp.eq.s32.totalorder %v10504_v1, %v15673_v18  ;;  %v534_v53 = vld [vmem:[%s10422_s30 + $0x4a0] sm:$0xff] }
 0x326   : > { %2998 = vperm.xlu0 %10154, %v2451_v0   ;;  %v7040_v59 = vpack.c.bf16 %v6782_v36, %v6781_v52  ;;  %vm9535_vm0 = vmpackc.low %vm1493_vm12, %vm1492_vm15  ;;  %v2453_v52 = vld [vmem:[%s10540_s11 + $0x498] sm:$0xff] }
 0x327   : > { %v11909_v50 = vpop.permute.xlu2 %1033  ;;  %v5132_v40 = vpop.f32.mrf.mxu1 }
 0x328   : > { %15670 = vst [vmem:[#allocation48_spill] sm:$0xff] %v11909_v50  ;;  %7283 = vmatmul.bf16.gmra.mxu3 %v7040_v59  ;;  %v11913_v54 = vpop.permute.xlu1 %2935  ;;  %v11915_v33 = vpop.f32.mrf.mxu0  ;;  %v5700_v37 = vmul.f32 %v5132_v40, %v11548_v10  ;;  %v15678_v40 = vld [vmem:[#allocation51_spill] sm:$0xff] }
 0x329   : > { %15672 = vst [vmem:[#allocation52_spill] sm:$0xff] %v11913_v54  ;;  %v6188_v0 = vpop.f32.mrf.mxu2  ;;  %v11919_v19 = vpop.permute.xlu0 %1018  ;;  %vm3397_vm1 = vcmp.eq.s32.totalorder %v10504_v1, %v15678_v40 }
 0x32a   : > { %15674 = vst [vmem:[#allocation43_spill] sm:$0xff] %v11919_v19  ;;  %9806 = vmatmul.msk.bf16.gmra.mxu1 %vm9805_vm14, %v15514_v8  ;;  %v6189_v18 = vadd.f32 %v11804_v13, %v6188_v0  ;;  %v15680_v0 = vld [vmem:[#allocation44_spill] sm:$0xff]  ;;  %vm1499_vm14 = vcmp.eq.s32.totalorder %v10504_v1, %v11444_v32 }
 0x32b   : > { %v11924_v36 = vpop.f32.mrf.mxu3  ;;  %9536 = vmatmul.msk.bf16.gmra.mxu0 %vm9535_vm0, %v15514_v8  ;;  %vm3396_vm3 = vcmp.eq.s32.totalorder %v10504_v1, %v15680_v0  ;;  %v15698_v32 = vld [vmem:[#allocation32_spill] sm:$0xff] }
 0x32c   : > { %v6783_v24 = vmax.f32 %v6189_v18, 0.0  ;;  %vm9807_vm4 = vmpackc.low %vm3397_vm1, %vm3396_vm3  ;;  %v537_v18 = vld [vmem:[%s10422_s30 + $0x4b8] sm:$0xff]  ;;  %vm1498_vm1 = vcmp.eq.s32.totalorder %v10504_v1, %v15698_v32 }
 0x32d   : > { %1087 = vperm.xlu2 %10156, %v534_v53   ;;  %3004 = vperm.xlu1 %10155, %v2453_v52  }
 0x32e   : > { %3001 = vperm.xlu0 %10154, %v2452_v41   ;;  %v2455_v41 = vld [vmem:[%s10540_s11 + $0x4a8] sm:$0xff] }
 0x32f   : > { %v11928_v59 = vpop.permute.xlu2 %2956  ;;  %v5134_v5 = vpop.f32.mrf.mxu1 }
 0x330   : > { %15675 = vst [vmem:[#allocation49_spill] sm:$0xff] %v11928_v59  ;;  %v11932_v54 = vpop.permute.xlu1 %1024  ;;  %v11934_v51 = vpop.f32.mrf.mxu0  ;;  %v5701_v23 = vmul.f32 %v5134_v5, %v11565_v29 }
 0x331   : > { %15676 = vst [vmem:[#allocation96_spill] sm:$0xff] %v11932_v54  ;;  %v6190_v50 = vpop.f32.mrf.mxu2  ;;  %v11937_v19 = vpop.permute.xlu0 %1021 }
 0x332   : > { %15677 = vst [vmem:[#allocation97_spill] sm:$0xff] %v11937_v19  ;;  %v5949_v53 = vpack.c.bf16 %v5701_v23, %v5700_v37  ;;  %v6191_v52 = vadd.f32 %v11804_v13, %v6190_v50  ;;  %v15682_v37 = vld [vmem:[#allocation12_spill] sm:$0xff]  ;;  %v538_v19 = vld [vmem:[%s10422_s30 + $0x4c0] sm:$0xff] }
 0x333   : > { %v7246_v59 = vpop.f32.mrf.mxu3  ;;  %vm1494_vm5 = vcmp.eq.s32.totalorder %v10504_v1, %v15682_v37 }
 0x334   : > { %v6784_v10 = vmax.f32 %v6191_v52, 0.0  ;;  %6232 = vmatmul.bf16.gmra.mxu2 %v5949_v53  ;;  %vm9537_vm6 = vmpackc.low %vm1495_vm2, %vm1494_vm5  ;;  %v536_v52 = vld [vmem:[%s10422_s30 + $0x4b0] sm:$0xff]  ;;  %vm1500_vm5 = vcmp.eq.s32.totalorder %v10504_v1, %v11460_v9  ;;  %v546_v9 = vld [vmem:[%s10422_s30 + $0x500] sm:$0xff] }
 0x335   : > { %3010 = vperm.xlu2 %10156, %v2455_v41   ;;  %3007 = vperm.xlu1 %10155, %v2454_v56   ;;  %vm9541_vm2 = vmpackc.low %vm1499_vm14, %vm1498_vm1  ;;  %vm1505_vm1 = vcmp.eq.s32.totalorder %v10504_v1, %v11516_v3 }
 0x336   : > { %1090 = vperm.xlu0 %10154, %v535_v43   ;;  %v7041_v29 = vpack.c.bf16 %v6784_v10, %v6783_v24 }
 0x337   : > { %v11947_v23 = vpop.permute.xlu2 %2959  ;;  %v5137_v50 = vpop.f32.mrf.mxu1 }
 0x338   : > { %15679 = vst [vmem:[#allocation51_spill] sm:$0xff] %v11947_v23  ;;  %7288 = vmatmul.bf16.gmra.mxu3 %v7041_v29  ;;  %v11951_v5 = vpop.permute.xlu1 %1027  ;;  %v11953_v56 = vpop.f32.mrf.mxu0  ;;  %v5702_v40 = vmul.f32 %v5137_v50, %v11584_v39  ;;  %v2457_v39 = vld [vmem:[%s10540_s11 + $0x4b8] sm:$0xff] }
 0x339   : > { %15681 = vst [vmem:[#allocation44_spill] sm:$0xff] %v11951_v5  ;;  %v6193_v24 = vpop.f32.mrf.mxu2  ;;  %v11957_v43 = vpop.permute.xlu0 %2944 }
 0x33a   : > { %15683 = vst [vmem:[#allocation12_spill] sm:$0xff] %v11957_v43  ;;  %9808 = vmatmul.msk.bf16.gmra.mxu1 %vm9807_vm4, %v15514_v8  ;;  %v6194_v29 = vadd.f32 %v11804_v13, %v6193_v24  ;;  %vm1501_vm4 = vcmp.eq.s32.totalorder %v10504_v1, %v11455_v47 }
 0x33b   : > { %v7249_v53 = vpop.f32.mrf.mxu3  ;;  %9538 = vmatmul.msk.bf16.gmra.mxu0 %vm9537_vm6, %v15514_v8 }
 0x33c   : > { %v6785_v50 = vmax.f32 %v6194_v29, 0.0 }
 0x33d   : > { %3013 = vperm.xlu2 %10156, %v2456_v31   ;;  %1096 = vperm.xlu1 %10155, %v537_v18   ;;  %v7250_v31 = vadd.f32 %v11670_v44, %v7249_v53 }
 0x33e   : > { %1093 = vperm.xlu0 %10154, %v536_v52  }
 0x33f   : > { %v11964_v41 = vpop.permute.xlu2 %1048  ;;  %v5139_v10 = vpop.f32.mrf.mxu1 }
 0x340   : > { %15684 = vst [vmem:[#allocation98_spill] sm:$0xff] %v11964_v41  ;;  %v11968_v0 = vpop.permute.xlu1 %2950  ;;  %v11970_v37 = vpop.f32.mrf.mxu0  ;;  %v5703_v23 = vmul.f32 %v5139_v10, %v11601_v45  ;;  %v539_v41 = vld [vmem:[%s10422_s30 + $0x4c8] sm:$0xff]  ;;  %v7868_v10 = vmax.f32 %v7250_v31, 0.0 }
 0x341   : > { %15685 = vst [vmem:[#allocation99_spill] sm:$0xff] %v11968_v0  ;;  %v6195_v43 = vpop.f32.mrf.mxu2  ;;  %v11973_v5 = vpop.permute.xlu0 %2947  ;;  %v15687_v45 = vld [vmem:[#allocation50_spill] sm:$0xff] }
 0x342   : > { %15686 = vst [vmem:[#allocation100_spill] sm:$0xff] %v11973_v5  ;;  %v5950_v18 = vpack.c.bf16 %v5703_v23, %v5702_v40  ;;  %v6196_v52 = vadd.f32 %v11804_v13, %v6195_v43  ;;  %vm3398_vm7 = vcmp.eq.s32.totalorder %v10504_v1, %v15687_v45  ;;  %v15689_v40 = vld [vmem:[#allocation45_spill] sm:$0xff]  ;;  %v7242_v45 = vadd.f32 %v11670_v44, %v11902_v25 }
 0x343   : > { %v7251_v54 = vpop.f32.mrf.mxu3  ;;  %vm3399_vm9 = vcmp.eq.s32.totalorder %v10504_v1, %v15689_v40  ;;  %v7240_v25 = vadd.f32 %v11670_v44, %v11884_v4 }
 0x344   : > { %v6786_v24 = vmax.f32 %v6196_v52, 0.0  ;;  %v7252_v0 = vadd.f32 %v11670_v44, %v7251_v54  ;;  %6237 = vmatmul.bf16.gmra.mxu2 %v5950_v18  ;;  %v7247_v54 = vadd.f32 %v11670_v44, %v7246_v59  ;;  %vm9809_vm10 = vmpackc.low %vm3399_vm9, %vm3398_vm7  ;;  %v7245_v18 = vadd.f32 %v11670_v44, %v11924_v36  ;;  %v540_v59 = vld [vmem:[%s10422_s30 + $0x4d0] sm:$0xff]  ;;  %v2459_v52 = vld [vmem:[%s10540_s11 + $0x4c8] sm:$0xff] }
 0x345   : > { %1102 = vperm.xlu2 %10156, %v539_v41   ;;  %1099 = vperm.xlu1 %10155, %v538_v19   ;;  %v7864_v4 = vmax.f32 %v7240_v25, 0.0  ;;  %v2462_v25 = vld [vmem:[%s10540_s11 + $0x4e0] sm:$0xff] }
 0x346   : > { %v7869_v5 = vmax.f32 %v7252_v0, 0.0  ;;  %3016 = vperm.xlu0 %10154, %v2457_v39   ;;  %v7042_v23 = vpack.c.bf16 %v6786_v24, %v6785_v50  ;;  %v15691_v0 = vld [vmem:[#allocation7_spill] sm:$0xff]  ;;  %v7867_v50 = vmax.f32 %v7247_v54, 0.0  ;;  %v7866_v24 = vmax.f32 %v7245_v18, 0.0 }
 0x347   : > { %v11985_v43 = vpop.permute.xlu2 %1051  ;;  %v5142_v53 = vpop.f32.mrf.mxu1  ;;  %vm1497_vm11 = vcmp.eq.s32.totalorder %v10504_v1, %v15691_v0 }
 0x348   : > { %15688 = vst [vmem:[#allocation50_spill] sm:$0xff] %v11985_v43  ;;  %7293 = vmatmul.bf16.gmra.mxu3 %v7042_v23  ;;  %v11990_v19 = vpop.permute.xlu1 %2953  ;;  %v11992_v41 = vpop.f32.mrf.mxu0  ;;  %v8118_v29 = vpack.c.bf16 %v7869_v5, %v7868_v10  ;;  %vm9539_vm12 = vmpackc.low %vm1497_vm11, %vm1496_vm8  ;;  %v2458_v5 = vld [vmem:[%s10540_s11 + $0x4c0] sm:$0xff]  ;;  %v5704_v23 = vmul.f32 %v5142_v53, %v11620_v62  ;;  %v8117_v18 = vpack.c.bf16 %v7867_v50, %v7866_v24  ;;  %v2461_v53 = vld [vmem:[%s10540_s11 + $0x4d8] sm:$0xff] }
 0x349   : > { %15690 = vst [vmem:[#allocation45_spill] sm:$0xff] %v11990_v19  ;;  %v6198_v61 = vpop.f32.mrf.mxu2  ;;  %v11996_v31 = vpop.permute.xlu0 %1036  ;;  %v541_v43 = vld [vmem:[%s10422_s30 + $0x4d8] sm:$0xff]  ;;  %vm9543_vm8 = vmpackc.low %vm1501_vm4, %vm1500_vm5  ;;  %vm1502_vm11 = vcmp.eq.s32.totalorder %v10504_v1, %v11474_v28 }
 0x34a   : > { %15692 = vst [vmem:[#allocation7_spill] sm:$0xff] %v11996_v31  ;;  %8246 = vmatpush.bf16.xpose.msrb.mxu0 %v8118_v29  ;;  %9810 = vmatmul.msk.bf16.gmra.mxu1 %vm9809_vm10, %v15514_v8  ;;  %v6199_v40 = vadd.f32 %v11804_v13, %v6198_v61  ;;  %v2460_v61 = vld [vmem:[%s10540_s11 + $0x4d0] sm:$0xff]  ;;  %v15695_v24 = vld [vmem:[#allocation53_spill] sm:$0xff] }
 0x34b   : > { %v7254_v39 = vpop.f32.mrf.mxu3  ;;  %9540 = vmatmul.msk.bf16.gmra.mxu0 %vm9539_vm12, %v15514_v8  ;;  %vm3400_vm13 = vcmp.eq.s32.totalorder %v10504_v1, %v15695_v24 }
 0x34c   : > { %v6787_v31 = vmax.f32 %v6199_v40, 0.0 }
 0x34d   : > { %1105 = vperm.xlu2 %10156, %v540_v59   ;;  %3022 = vperm.xlu1 %10155, %v2459_v52  }
 0x34e   : > { %3019 = vperm.xlu0 %10154, %v2458_v5   ;;  %v7255_v5 = vadd.f32 %v11670_v44, %v7254_v39 }
 0x34f   : > { %v12007_v10 = vpop.permute.xlu2 %2974  ;;  %v5144_v36 = vpop.f32.mrf.mxu1 }
 0x350   : > { %15693 = vst [vmem:[#allocation101_spill] sm:$0xff] %v12007_v10  ;;  %v12011_v29 = vpop.permute.xlu1 %1042  ;;  %v12013_v54 = vpop.f32.mrf.mxu0  ;;  %v5705_v0 = vmul.f32 %v5144_v36, %v11637_v38  ;;  %v7870_v39 = vmax.f32 %v7255_v5, 0.0  ;;  %v543_v5 = vld [vmem:[%s10422_s30 + $0x4e8] sm:$0xff] }
 0x351   : > { %15694 = vst [vmem:[#allocation102_spill] sm:$0xff] %v12011_v29  ;;  %v6200_v59 = vpop.f32.mrf.mxu2  ;;  %v12016_v52 = vpop.permute.xlu0 %1039  ;;  %v7865_v29 = vmax.f32 %v7242_v45, 0.0 }
 0x352   : > { %v5951_v10 = vpack.c.bf16 %v5705_v0, %v5704_v23  ;;  %v6201_v62 = vadd.f32 %v11804_v13, %v6200_v59  ;;  %8247 = vmatpush.bf16.xpose.msrb.mxu0 %v8117_v18 }
 0x353   : > { %v7256_v19 = vpop.f32.mrf.mxu3  ;;  %v8116_v18 = vpack.c.bf16 %v7865_v29, %v7864_v4  ;;  %v542_v29 = vld [vmem:[%s10422_s30 + $0x4e0] sm:$0xff] }
 0x354   : > { %v6788_v38 = vmax.f32 %v6201_v62, 0.0  ;;  %v7257_v50 = vadd.f32 %v11670_v44, %v7256_v19  ;;  %6242 = vmatmul.bf16.gmra.mxu2 %v5951_v10  ;;  %v15697_v19 = vld [vmem:[#allocation46_spill] sm:$0xff] }
 0x355   : > { %3028 = vperm.xlu2 %10156, %v2461_v53   ;;  %3025 = vperm.xlu1 %10155, %v2460_v61   ;;  %vm3401_vm15 = vcmp.eq.s32.totalorder %v10504_v1, %v15697_v19 }
 0x356   : > { %v7871_v36 = vmax.f32 %v7257_v50, 0.0  ;;  %1108 = vperm.xlu0 %10154, %v541_v43   ;;  %v7043_v23 = vpack.c.bf16 %v6788_v38, %v6787_v31  ;;  %vm9811_vm0 = vmpackc.low %vm3401_vm15, %vm3400_vm13 }
 0x357   : > { %v12030_v45 = vpop.permute.xlu2 %2977  ;;  %v5147_v40 = vpop.f32.mrf.mxu1 }
 0x358   : > { %15696 = vst [vmem:[#allocation53_spill] sm:$0xff] %v12030_v45  ;;  %7298 = vmatmul.bf16.gmra.mxu3 %v7043_v23  ;;  %v12034_v10 = vpop.permute.xlu1 %1045  ;;  %v12036_v0 = vpop.f32.mrf.mxu0  ;;  %v12038_v43 = vpack.c.bf16 %v7871_v36, %v7870_v39  ;;  %v5706_v38 = vmul.f32 %v5147_v40, %v11656_v49  ;;  %v544_v49 = vld [vmem:[%s10422_s30 + $0x4f0] sm:$0xff] }
 0x359   : > { %v6203_v31 = vpop.f32.mrf.mxu2  ;;  %v12045_v59 = vpop.permute.xlu0 %2962 }
 0x35a   : > { %15699 = vst [vmem:[#allocation46_spill] sm:$0xff] %v12045_v59  ;;  %8248 = vmatpush.bf16.xpose.msrb.mxu0 %v8116_v18  ;;  %9812 = vmatmul.msk.bf16.gmra.mxu1 %vm9811_vm0, %v15514_v8  ;;  %v6204_v50 = vadd.f32 %v11804_v13, %v6203_v31  ;;  %v2463_v31 = vld [vmem:[%s10540_s11 + $0x4e8] sm:$0xff] }
 0x35b   : > { %v7259_v62 = vpop.f32.mrf.mxu3  ;;  %9542 = vmatmul.msk.bf16.gmra.mxu0 %vm9541_vm2, %v15514_v8 }
 0x35c   : > { %v7260_v19 = vadd.f32 %v11670_v44, %v7259_v62 }
 0x35d   : > { %3031 = vperm.xlu2 %10156, %v2462_v25   ;;  %1114 = vperm.xlu1 %10155, %v543_v5   ;;  %v545_v25 = vld [vmem:[%s10422_s30 + $0x4f8] sm:$0xff]  ;;  %v6789_v5 = vmax.f32 %v6204_v50, 0.0 }
 0x35e   : > { %1111 = vperm.xlu0 %10154, %v542_v29   ;;  %v7872_v62 = vmax.f32 %v7260_v19, 0.0 }
 0x35f   : > { %v12052_v53 = vpop.permute.xlu2 %1066  ;;  %v5149_v61 = vpop.f32.mrf.mxu1 }
 0x360   : > { %v12056_v24 = vpop.permute.xlu1 %2968  ;;  %v12058_v4 = vpop.f32.mrf.mxu0  ;;  %v5707_v39 = vmul.f32 %v5149_v61, %v11678_v27  ;;  %v15702_v27 = vld [vmem:[#allocation21_spill] sm:$0xff] }
 0x361   : > { %15700 = vst [vmem:[#allocation32_spill] sm:$0xff] %v12056_v24  ;;  %v6205_v36 = vpop.f32.mrf.mxu2  ;;  %v12061_v23 = vpop.permute.xlu0 %2965  ;;  %vm3402_vm3 = vcmp.eq.s32.totalorder %v10504_v1, %v15702_v27 }
 0x362   : > { %15701 = vst [vmem:[#allocation103_spill] sm:$0xff] %v12061_v23  ;;  %v5952_v18 = vpack.c.bf16 %v5707_v39, %v5706_v38  ;;  %v6206_v32 = vadd.f32 %v11804_v13, %v6205_v36  ;;  %8249 = vmatpush.bf16.xpose.msrb.mxu0 %v11875_v22  ;;  %v15704_v39 = vld [vmem:[#allocation47_spill] sm:$0xff] }
 0x363   : > { %v7261_v40 = vpop.f32.mrf.mxu3  ;;  %vm3403_vm6 = vcmp.eq.s32.totalorder %v10504_v1, %v15704_v39 }
 0x364   : > { %v6790_v29 = vmax.f32 %v6206_v32, 0.0  ;;  %v7262_v45 = vadd.f32 %v11670_v44, %v7261_v40  ;;  %6247 = vmatmul.bf16.gmra.mxu2 %v5952_v18  ;;  %vm9813_vm7 = vmpackc.low %vm3403_vm6, %vm3402_vm3  ;;  %v2465_v32 = vld [vmem:[%s10540_s11 + $0x4f8] sm:$0xff] }
 0x365   : > { %1120 = vperm.xlu2 %10156, %v545_v25   ;;  %1117 = vperm.xlu1 %10155, %v544_v49   ;;  %v2464_v49 = vld [vmem:[%s10540_s11 + $0x4f0] sm:$0xff] }
 0x366   : > { %v7873_v61 = vmax.f32 %v7262_v45, 0.0  ;;  %3034 = vperm.xlu0 %10154, %v2463_v31   ;;  %v7044_v38 = vpack.c.bf16 %v6790_v29, %v6789_v5 }
 0x367   : > { %v12076_v22 = vpop.permute.xlu2 %1069  ;;  %v5152_v50 = vpop.f32.mrf.mxu1 }
 0x368   : > { %15703 = vst [vmem:[#allocation21_spill] sm:$0xff] %v12076_v22  ;;  %7303 = vmatmul.bf16.gmra.mxu3 %v7044_v38  ;;  %v12080_v36 = vpop.permute.xlu1 %2971  ;;  %v12082_v45 = vpop.f32.mrf.mxu0  ;;  %v12084_v19 = vpack.c.bf16 %v7873_v61, %v7872_v62  ;;  %v5708_v5 = vmul.f32 %v5152_v50, %v11699_v34  ;;  %v2466_v34 = vld [vmem:[%s10540_s11 + $0x500] sm:$0xff] }
 0x369   : > { %15705 = vst [vmem:[#allocation47_spill] sm:$0xff] %v12080_v36  ;;  %v6208_v47 = vpop.f32.mrf.mxu2  ;;  %v12086_v18 = vpop.permute.xlu0 %1054 }
 0x36a   : > { %8250 = vmatpush.bf16.xpose.msrb.mxu0 %v11832_v16  ;;  %9814 = vmatmul.msk.bf16.gmra.mxu1 %vm9813_vm7, %v15514_v8  ;;  %v6209_v16 = vadd.f32 %v11804_v13, %v6208_v47  ;;  %v547_v47 = vld [vmem:[%s10422_s30 + $0x508] sm:$0xff]  ;;  %vm1507_vm7 = vcmp.eq.s32.totalorder %v10504_v1, %v11527_v17 }
 0x36b   : > { %v7264_v25 = vpop.f32.mrf.mxu3  ;;  %9544 = vmatmul.msk.bf16.gmra.mxu0 %vm9543_vm8, %v15514_v8 }
 0x36c   : > { %v7265_v39 = vadd.f32 %v11670_v44, %v7264_v25  ;;  %v15707_v44 = vld [vmem:[#allocation57_spill] sm:$0xff] }
 0x36d   : > { %1123 = vperm.xlu2 %10156, %v546_v9   ;;  %3040 = vperm.xlu1 %10155, %v2465_v32   ;;  %vm3405_vm9 = vcmp.eq.s32.totalorder %v10504_v1, %v15707_v44 }
 0x36e   : > { %3037 = vperm.xlu0 %10154, %v2464_v49   ;;  %v2467_v49 = vld [vmem:[%s10540_s11 + $0x508] sm:$0xff]  ;;  %v7874_v25 = vmax.f32 %v7265_v39, 0.0  ;;  %v2468_v39 = vld [vmem:[%s10540_s11 + $0x510] sm:$0xff] }
 0x36f   : > { %v12094_v40 = vpop.permute.xlu2 %2992  ;;  %v5154_v31 = vpop.f32.mrf.mxu1 }
 0x370   : > { %15706 = vst [vmem:[#allocation104_spill] sm:$0xff] %v12094_v40  ;;  %v12098_v29 = vpop.permute.xlu1 %1060  ;;  %v12100_v27 = vpop.f32.mrf.mxu0  ;;  %v5709_v62 = vmul.f32 %v5154_v31, %v11718_v11  ;;  %v6791_v40 = vmax.f32 %v6209_v16, 0.0  ;;  %v12114_v11 = vld [vmem:[%s15440_s7] ss:$0 sm:$0xff] }
 0x371   : > { %v6210_v61 = vpop.f32.mrf.mxu2  ;;  %v12103_v38 = vpop.permute.xlu0 %1057 }
 0x372   : > { %v5953_v9 = vpack.c.bf16 %v5709_v62, %v5708_v5  ;;  %v6211_v32 = vadd.f32 %v11804_v13, %v6210_v61  ;;  %8251 = vmatpush.bf16.xpose.msrb.mxu0 %v11784_v2  ;;  %v15708_v2 = vld [vmem:[#allocation29_spill] sm:$0xff] }
 0x373   : > { %v7266_v50 = vpop.f32.mrf.mxu3  ;;  %vm3404_vm10 = vcmp.eq.s32.totalorder %v10504_v1, %v15708_v2 }
 0x374   : > { %v6792_v36 = vmax.f32 %v6211_v32, 0.0  ;;  %v7267_v31 = vadd.f32 %v12114_v11, %v7266_v50  ;;  %6252 = vmatmul.bf16.gmra.mxu2 %v5953_v9  ;;  %vm9815_vm12 = vmpackc.low %vm3405_vm9, %vm3404_vm10 }
 0x375   : > { %3046 = vperm.xlu2 %10156, %v2467_v49   ;;  %3043 = vperm.xlu1 %10155, %v2466_v34   ;;  %v549_v34 = vld [vmem:[%s10422_s30 + $0x518] sm:$0xff] }
 0x376   : > { %v7875_v5 = vmax.f32 %v7267_v31, 0.0  ;;  %1126 = vperm.xlu0 %10154, %v547_v47   ;;  %v7045_v16 = vpack.c.bf16 %v6792_v36, %v6791_v40  ;;  %v15710_v36 = vld [vmem:[#allocation60_spill] sm:$0xff] }
 0x377   : > { %v12123_v62 = vpop.permute.xlu2 %2995  ;;  %v5157_v61 = vpop.f32.mrf.mxu1  ;;  %vm1503_vm13 = vcmp.eq.s32.totalorder %v10504_v1, %v15710_v36  ;;  %v548_v47 = vld [vmem:[%s10422_s30 + $0x510] sm:$0xff] }
 0x378   : > { %15709 = vst [vmem:[#allocation57_spill] sm:$0xff] %v12123_v62  ;;  %7308 = vmatmul.bf16.gmra.mxu3 %v7045_v16  ;;  %v12125_v9 = vpop.permute.xlu1 %1063  ;;  %v12127_v32 = vpop.f32.mrf.mxu0  ;;  %v12129_v49 = vpack.c.bf16 %v7875_v5, %v7874_v25  ;;  %vm9545_vm14 = vmpackc.low %vm1503_vm13, %vm1502_vm11  ;;  %v5710_v2 = vmul.f32 %v5157_v61, %v11739_v46  ;;  %v550_v46 = vld [vmem:[%s10422_s30 + $0x520] sm:$0xff] }
 0x379   : > { %v6213_v40 = vpop.f32.mrf.mxu2  ;;  %v12136_v28 = vpop.permute.xlu0 %2980 }
 0x37a   : > { %15711 = vst [vmem:[#allocation29_spill] sm:$0xff] %v12136_v28  ;;  %8252 = vmatpush.bf16.xpose.msrb.mxu0 %v11741_v7  ;;  %9816 = vmatmul.msk.bf16.gmra.mxu1 %vm9815_vm12, %v15514_v8  ;;  %v6214_v7 = vadd.f32 %v11804_v13, %v6213_v40  ;;  %v551_v28 = vld [vmem:[%s10422_s30 + $0x528] sm:$0xff]  ;;  %v2469_v40 = vld [vmem:[%s10540_s11 + $0x518] sm:$0xff] }
 0x37b   : > { %v7269_v50 = vpop.f32.mrf.mxu3  ;;  %9546 = vmatmul.msk.bf16.gmra.mxu0 %vm9545_vm14, %v15514_v8 }
 0x37c   : > { %v6793_v23 = vmax.f32 %v6214_v7, 0.0 }
 0x37d   : > { %3049 = vperm.xlu2 %10156, %v2468_v39   ;;  %1132 = vperm.xlu1 %10155, %v549_v34   ;;  %v7270_v34 = vadd.f32 %v12114_v11, %v7269_v50  ;;  %v15716_v50 = vld [vmem:[#allocation22_spill] sm:$0xff] }
 0x37e   : > { %1129 = vperm.xlu0 %10154, %v548_v47   ;;  %vm3406_vm0 = vcmp.eq.s32.totalorder %v10504_v1, %v15716_v50 }
 0x37f   : > { %v12144_v31 = vpop.permute.xlu2 %1084  ;;  %v5159_v44 = vpop.f32.mrf.mxu1 }
 0x380   : > { %15712 = vst [vmem:[#allocation60_spill] sm:$0xff] %v12144_v31  ;;  %v12148_v25 = vpop.permute.xlu1 %2986  ;;  %v12150_v5 = vpop.f32.mrf.mxu0  ;;  %v5711_v16 = vmul.f32 %v5159_v44, %v11761_v30  ;;  %v15715_v30 = vld [vmem:[#allocation10_spill] sm:$0xff]  ;;  %v7876_v44 = vmax.f32 %v7270_v34, 0.0  ;;  %v15723_v31 = vld [vmem:[#allocation33_spill] sm:$0xff] }
 0x381   : > { %15713 = vst [vmem:[#allocation105_spill] sm:$0xff] %v12148_v25  ;;  %v6215_v36 = vpop.f32.mrf.mxu2  ;;  %v12153_v39 = vpop.permute.xlu0 %2983  ;;  %vm3407_vm15 = vcmp.eq.s32.totalorder %v10504_v1, %v15715_v30  ;;  %v2471_v34 = vld [vmem:[%s10540_s11 + $0x528] sm:$0xff]  ;;  %vm3409_vm5 = vcmp.eq.s32.totalorder %v10504_v1, %v15723_v31 }
 0x382   : > { %15714 = vst [vmem:[#allocation106_spill] sm:$0xff] %v12153_v39  ;;  %v5954_v47 = vpack.c.bf16 %v5711_v16, %v5710_v2  ;;  %v6216_v62 = vadd.f32 %v11804_v13, %v6215_v36  ;;  %8253 = vmatpush.bf16.xpose.msrb.mxu0 %v11701_v57  ;;  %vm9817_vm2 = vmpackc.low %vm3407_vm15, %vm3406_vm0  ;;  %v2472_v39 = vld [vmem:[%s10540_s11 + $0x530] sm:$0xff] }
 0x383   : > { %v7271_v61 = vpop.f32.mrf.mxu3 }
 0x384   : > { %v6794_v25 = vmax.f32 %v6216_v62, 0.0  ;;  %v7272_v24 = vadd.f32 %v12114_v11, %v7271_v61  ;;  %6257 = vmatmul.bf16.gmra.mxu2 %v5954_v47 }
 0x385   : > { %1138 = vperm.xlu2 %10156, %v551_v28   ;;  %1135 = vperm.xlu1 %10155, %v550_v46   ;;  %v2470_v46 = vld [vmem:[%s10540_s11 + $0x520] sm:$0xff] }
 0x386   : > { %v7877_v2 = vmax.f32 %v7272_v24, 0.0  ;;  %3052 = vperm.xlu0 %10154, %v2469_v40   ;;  %v7046_v57 = vpack.c.bf16 %v6794_v25, %v6793_v23  ;;  %v15719_v24 = vld [vmem:[#allocation11_spill] sm:$0xff] }
 0x387   : > { %v12168_v62 = vpop.permute.xlu2 %1087  ;;  %v5162_v7 = vpop.f32.mrf.mxu1  ;;  %vm1504_vm3 = vcmp.eq.s32.totalorder %v10504_v1, %v15719_v24  ;;  %v552_v25 = vld [vmem:[%s10422_s30 + $0x530] sm:$0xff] }
 0x388   : > { %15717 = vst [vmem:[#allocation10_spill] sm:$0xff] %v12168_v62  ;;  %7313 = vmatmul.bf16.gmra.mxu3 %v7046_v57  ;;  %v12170_v16 = vpop.permute.xlu1 %2989  ;;  %v12172_v28 = vpop.f32.mrf.mxu0  ;;  %v12174_v36 = vpack.c.bf16 %v7877_v2, %v7876_v44  ;;  %vm9547_vm4 = vmpackc.low %vm1505_vm1, %vm1504_vm3  ;;  %v5712_v30 = vmul.f32 %v5162_v7, %v11782_v20  ;;  %v553_v20 = vld [vmem:[%s10422_s30 + $0x538] sm:$0xff] }
 0x389   : > { %15718 = vst [vmem:[#allocation22_spill] sm:$0xff] %v12170_v16  ;;  %v6218_v23 = vpop.f32.mrf.mxu2  ;;  %v12181_v3 = vpop.permute.xlu0 %1072 }
 0x38a   : > { %9818 = vmatmul.msk.bf16.gmra.mxu1 %vm9817_vm2, %v15514_v8  ;;  %v6219_v50 = vadd.f32 %v11804_v13, %v6218_v23  ;;  %vm1511_vm2 = vcmp.eq.s32.totalorder %v10504_v1, %v11588_v60  ;;  %v2480_v60 = vld [vmem:[%s10540_s11 + $0x570] sm:$0xff] }
 0x38b   : > { %v7274_v47 = vpop.f32.mrf.mxu3  ;;  %9548 = vmatmul.msk.bf16.gmra.mxu0 %vm9547_vm4, %v15514_v8 }
 0x38c   : > { %v6795_v7 = vmax.f32 %v6219_v50, 0.0  ;;  %v15725_v50 = vld [vmem:[#allocation67_spill] sm:$0xff] }
 0x38d   : > { %1141 = vperm.xlu2 %10156, %v552_v25   ;;  %3058 = vperm.xlu1 %10155, %v2471_v34   ;;  %v7275_v25 = vadd.f32 %v12114_v11, %v7274_v47  ;;  %vm1506_vm8 = vcmp.eq.s32.totalorder %v10504_v1, %v15725_v50 }
 0x38e   : > { %3055 = vperm.xlu0 %10154, %v2470_v46   ;;  %vm9549_vm10 = vmpackc.low %vm1507_vm7, %vm1506_vm8  ;;  %vm1513_vm8 = vcmp.eq.s32.totalorder %v10504_v1, %v11599_v55 }
 0x38f   : > { %v12188_v61 = vpop.permute.xlu2 %3010  ;;  %v5164_v40 = vpop.f32.mrf.mxu1  ;;  %v7878_v47 = vmax.f32 %v7275_v25, 0.0  ;;  %v2474_v25 = vld [vmem:[%s10540_s11 + $0x540] sm:$0xff] }
 0x390   : > { %15720 = vst [vmem:[#allocation11_spill] sm:$0xff] %v12188_v61  ;;  %v12192_v44 = vpop.permute.xlu1 %1078  ;;  %v12194_v2 = vpop.f32.mrf.mxu0  ;;  %v5713_v57 = vmul.f32 %v5164_v40, %v11809_v14  ;;  %v2473_v61 = vld [vmem:[%s10540_s11 + $0x538] sm:$0xff]  ;;  %v15724_v14 = vld [vmem:[#allocation58_spill] sm:$0xff] }
 0x391   : > { %15721 = vst [vmem:[#allocation107_spill] sm:$0xff] %v12192_v44  ;;  %v6220_v24 = vpop.f32.mrf.mxu2  ;;  %v12197_v16 = vpop.permute.xlu0 %1075  ;;  %vm3408_vm6 = vcmp.eq.s32.totalorder %v10504_v1, %v15724_v14 }
 0x392   : > { %15722 = vst [vmem:[#allocation108_spill] sm:$0xff] %v12197_v16  ;;  %v5955_v34 = vpack.c.bf16 %v5713_v57, %v5712_v30  ;;  %v6221_v46 = vadd.f32 %v11804_v13, %v6220_v24  ;;  %vm9819_vm9 = vmpackc.low %vm3409_vm5, %vm3408_vm6 }
 0x393   : > { %v7276_v59 = vpop.f32.mrf.mxu3 }
 0x394   : > { %v6796_v23 = vmax.f32 %v6221_v46, 0.0  ;;  %v7277_v62 = vadd.f32 %v12114_v11, %v7276_v59  ;;  %6262 = vmatmul.bf16.gmra.mxu2 %v5955_v34  ;;  %v555_v34 = vld [vmem:[%s10422_s30 + $0x548] sm:$0xff] }
 0x395   : > { %3064 = vperm.xlu2 %10156, %v2473_v61   ;;  %3061 = vperm.xlu1 %10155, %v2472_v39  }
 0x396   : > { %v7879_v40 = vmax.f32 %v7277_v62, 0.0  ;;  %1144 = vperm.xlu0 %10154, %v553_v20   ;;  %v7047_v30 = vpack.c.bf16 %v6796_v23, %v6795_v7  ;;  %v554_v20 = vld [vmem:[%s10422_s30 + $0x540] sm:$0xff] }
 0x397   : > { %v12213_v59 = vpop.permute.xlu2 %3013  ;;  %v5167_v61 = vpop.f32.mrf.mxu1 }
 0x398   : > { %15726 = vst [vmem:[#allocation33_spill] sm:$0xff] %v12213_v59  ;;  %7318 = vmatmul.bf16.gmra.mxu3 %v7047_v30  ;;  %v12215_v39 = vpop.permute.xlu1 %1081  ;;  %v12217_v57 = vpop.f32.mrf.mxu0  ;;  %v12219_v62 = vpack.c.bf16 %v7879_v40, %v7878_v47  ;;  %v5714_v23 = vmul.f32 %v5167_v61, %v11830_v12 }
 0x399   : > { %15727 = vst [vmem:[#allocation58_spill] sm:$0xff] %v12215_v39  ;;  %v6223_v24 = vpop.f32.mrf.mxu2  ;;  %v12224_v17 = vpop.permute.xlu0 %2998  ;;  %v2475_v39 = vld [vmem:[%s10540_s11 + $0x548] sm:$0xff] }
 0x39a   : > { %15728 = vst [vmem:[#allocation67_spill] sm:$0xff] %v12224_v17  ;;  %9820 = vmatmul.msk.bf16.gmra.mxu1 %vm9819_vm9, %v15514_v8  ;;  %v6224_v14 = vadd.f32 %v11804_v13, %v6223_v24  ;;  %v556_v17 = vld [vmem:[%s10422_s30 + $0x550] sm:$0xff]  ;;  %v15732_v24 = vld [vmem:[#allocation13_spill] sm:$0xff]  ;;  %vm1512_vm9 = vcmp.eq.s32.totalorder %v10504_v1, %v11604_v35 }
 0x39b   : > { %v12229_v46 = vpop.f32.mrf.mxu3  ;;  %9550 = vmatmul.msk.bf16.gmra.mxu0 %vm9549_vm10, %v15514_v8  ;;  %vm3411_vm11 = vcmp.eq.s32.totalorder %v10504_v1, %v15732_v24 }
 0x39c   : > { %v6797_v12 = vmax.f32 %v6224_v14, 0.0 }
 0x39d   : > { %3067 = vperm.xlu2 %10156, %v2474_v25   ;;  %1150 = vperm.xlu1 %10155, %v555_v34  }
 0x39e   : > { %1147 = vperm.xlu0 %10154, %v554_v20   ;;  %v557_v20 = vld [vmem:[%s10422_s30 + $0x558] sm:$0xff] }
 0x39f   : > { %v12233_v31 = vpop.permute.xlu2 %1102  ;;  %v5169_v7 = vpop.f32.mrf.mxu1 }
 0x3a0   : > { %15729 = vst [vmem:[#allocation109_spill] sm:$0xff] %v12233_v31  ;;  %v12237_v47 = vpop.permute.xlu1 %3004  ;;  %v12239_v40 = vpop.f32.mrf.mxu0  ;;  %v5715_v30 = vmul.f32 %v5169_v7, %v11852_v15  ;;  %v15733_v7 = vld [vmem:[#allocation35_spill] sm:$0xff] }
 0x3a1   : > { %15730 = vst [vmem:[#allocation110_spill] sm:$0xff] %v12237_v47  ;;  %v6225_v50 = vpop.f32.mrf.mxu2  ;;  %v12242_v59 = vpop.permute.xlu0 %3001  ;;  %vm1508_vm12 = vcmp.eq.s32.totalorder %v10504_v1, %v15733_v7 }
 0x3a2   : > { %15731 = vst [vmem:[#allocation111_spill] sm:$0xff] %v12242_v59  ;;  %v5956_v25 = vpack.c.bf16 %v5715_v30, %v5714_v23  ;;  %v6226_v34 = vadd.f32 %v11804_v13, %v6225_v50  ;;  %v15735_v30 = vld [vmem:[#allocation55_spill] sm:$0xff]  ;;  %v15737_v50 = vld [vmem:[#allocation64_spill] sm:$0xff] }
 0x3a3   : > { %v12247_v31 = vpop.f32.mrf.mxu3  ;;  %vm3410_vm13 = vcmp.eq.s32.totalorder %v10504_v1, %v15735_v30  ;;  %vm1509_vm15 = vcmp.eq.s32.totalorder %v10504_v1, %v15737_v50  ;;  %v12279_v30 = vld [vmem:[%s15438_s5] ss:$0 sm:$0xff] }
 0x3a4   : > { %v6798_v61 = vmax.f32 %v6226_v34, 0.0  ;;  %6267 = vmatmul.bf16.gmra.mxu2 %v5956_v25  ;;  %vm9821_vm14 = vmpackc.low %vm3411_vm11, %vm3410_vm13  ;;  %v558_v34 = vld [vmem:[%s10422_s30 + $0x560] sm:$0xff] }
 0x3a5   : > { %1156 = vperm.xlu2 %10156, %v557_v20   ;;  %1153 = vperm.xlu1 %10155, %v556_v17   ;;  %vm9551_vm0 = vmpackc.low %vm1509_vm15, %vm1508_vm12  ;;  %v2477_v20 = vld [vmem:[%s10540_s11 + $0x558] sm:$0xff] }
 0x3a6   : > { %3070 = vperm.xlu0 %10154, %v2475_v39   ;;  %v7048_v15 = vpack.c.bf16 %v6798_v61, %v6797_v12  ;;  %v2476_v61 = vld [vmem:[%s10540_s11 + $0x550] sm:$0xff]  ;;  %vm9555_vm12 = vmpackc.low %vm1513_vm8, %vm1512_vm9 }
 0x3a7   : > { %v12254_v13 = vpop.permute.xlu2 %1105  ;;  %v5172_v23 = vpop.f32.mrf.mxu1 }
 0x3a8   : > { %15734 = vst [vmem:[#allocation13_spill] sm:$0xff] %v12254_v13  ;;  %7323 = vmatmul.bf16.gmra.mxu3 %v7048_v15  ;;  %v12258_v14 = vpop.permute.xlu1 %3007  ;;  %v12260_v17 = vpop.f32.mrf.mxu0  ;;  %v5716_v7 = vmul.f32 %v5172_v23, %v11873_v48  ;;  %v2479_v48 = vld [vmem:[%s10540_s11 + $0x568] sm:$0xff]  ;;  %v2478_v23 = vld [vmem:[%s10540_s11 + $0x560] sm:$0xff] }
 0x3a9   : > { %15736 = vst [vmem:[#allocation35_spill] sm:$0xff] %v12258_v14  ;;  %v6228_v39 = vpop.f32.mrf.mxu2  ;;  %v12264_v25 = vpop.permute.xlu0 %1090 }
 0x3aa   : > { %15738 = vst [vmem:[#allocation55_spill] sm:$0xff] %v12264_v25  ;;  %9822 = vmatmul.msk.bf16.gmra.mxu1 %vm9821_vm14, %v15514_v8  ;;  %v6229_v50 = vadd.f32 %v12279_v30, %v6228_v39  ;;  %v559_v25 = vld [vmem:[%s10422_s30 + $0x568] sm:$0xff] }
 0x3ab   : > { %v12269_v12 = vpop.f32.mrf.mxu3  ;;  %9552 = vmatmul.msk.bf16.gmra.mxu0 %vm9551_vm0, %v15514_v8  ;;  %v15742_v39 = vld [vmem:[#allocation59_spill] sm:$0xff] }
 0x3ac   : > { %v6799_v16 = vmax.f32 %v6229_v50, 0.0  ;;  %vm3413_vm1 = vcmp.eq.s32.totalorder %v10504_v1, %v15742_v39  ;;  %v15746_v50 = vld [vmem:[#allocation20_spill] sm:$0xff] }
 0x3ad   : > { %1159 = vperm.xlu2 %10156, %v558_v34   ;;  %3076 = vperm.xlu1 %10155, %v2477_v20   ;;  %vm1510_vm5 = vcmp.eq.s32.totalorder %v10504_v1, %v15746_v50 }
 0x3ae   : > { %3073 = vperm.xlu0 %10154, %v2476_v61   ;;  %vm9553_vm6 = vmpackc.low %vm1511_vm2, %vm1510_vm5 }
 0x3af   : > { %v12273_v24 = vpop.permute.xlu2 %3028  ;;  %v5174_v15 = vpop.f32.mrf.mxu1 }
 0x3b0   : > { %15739 = vst [vmem:[#allocation64_spill] sm:$0xff] %v12273_v24  ;;  %v12282_v14 = vpop.permute.xlu1 %1096  ;;  %v12284_v59 = vpop.f32.mrf.mxu0  ;;  %v5717_v34 = vmul.f32 %v5174_v15, %v11894_v63 }
 0x3b1   : > { %15740 = vst [vmem:[#allocation112_spill] sm:$0xff] %v12282_v14  ;;  %v6230_v20 = vpop.f32.mrf.mxu2  ;;  %v12287_v61 = vpop.permute.xlu0 %1093  ;;  %v562_v14 = vld [vmem:[%s10422_s30 + $0x580] sm:$0xff] }
 0x3b2   : > { %15741 = vst [vmem:[#allocation113_spill] sm:$0xff] %v12287_v61  ;;  %v5957_v24 = vpack.c.bf16 %v5717_v34, %v5716_v7  ;;  %v6231_v47 = vadd.f32 %v12279_v30, %v6230_v20  ;;  %v15744_v34 = vld [vmem:[#allocation56_spill] sm:$0xff] }
 0x3b3   : > { %v12292_v13 = vpop.f32.mrf.mxu3  ;;  %vm3412_vm3 = vcmp.eq.s32.totalorder %v10504_v1, %v15744_v34 }
 0x3b4   : > { %v6800_v44 = vmax.f32 %v6231_v47, 0.0  ;;  %6272 = vmatmul.bf16.gmra.mxu2 %v5957_v24  ;;  %vm9823_vm4 = vmpackc.low %vm3413_vm1, %vm3412_vm3 }
 0x3b5   : > { %3082 = vperm.xlu2 %10156, %v2479_v48   ;;  %3079 = vperm.xlu1 %10155, %v2478_v23   ;;  %v560_v48 = vld [vmem:[%s10422_s30 + $0x570] sm:$0xff] }
 0x3b6   : > { %1162 = vperm.xlu0 %10154, %v559_v25   ;;  %v7049_v63 = vpack.c.bf16 %v6800_v44, %v6799_v16  ;;  %v561_v25 = vld [vmem:[%s10422_s30 + $0x578] sm:$0xff] }
 0x3b7   : > { %v12299_v15 = vpop.permute.xlu2 %3031  ;;  %v5177_v7 = vpop.f32.mrf.mxu1 }
 0x3b8   : > { %15743 = vst [vmem:[#allocation59_spill] sm:$0xff] %v12299_v15  ;;  %7328 = vmatmul.bf16.gmra.mxu3 %v7049_v63  ;;  %v12303_v47 = vpop.permute.xlu1 %1099  ;;  %v12305_v24 = vpop.f32.mrf.mxu0  ;;  %v5718_v63 = vmul.f32 %v5177_v7, %v11915_v33  ;;  %v2481_v33 = vld [vmem:[%s10540_s11 + $0x578] sm:$0xff] }
 0x3b9   : > { %15745 = vst [vmem:[#allocation56_spill] sm:$0xff] %v12303_v47  ;;  %v6233_v16 = vpop.f32.mrf.mxu2  ;;  %v12309_v44 = vpop.permute.xlu0 %3016 }
 0x3ba   : > { %15747 = vst [vmem:[#allocation20_spill] sm:$0xff] %v12309_v44  ;;  %9824 = vmatmul.msk.bf16.gmra.mxu1 %vm9823_vm4, %v15514_v8  ;;  %v6234_v34 = vadd.f32 %v12279_v30, %v6233_v16 }
 0x3bb   : > { %v7289_v20 = vpop.f32.mrf.mxu3  ;;  %9554 = vmatmul.msk.bf16.gmra.mxu0 %vm9553_vm6, %v15514_v8 }
 0x3bc   : > { %v6801_v7 = vmax.f32 %v6234_v34, 0.0 }
 0x3bd   : > { %3085 = vperm.xlu2 %10156, %v2480_v60   ;;  %1168 = vperm.xlu1 %10155, %v561_v25   ;;  %v7290_v60 = vadd.f32 %v12114_v11, %v7289_v20  ;;  %v15753_v20 = vld [vmem:[#allocation28_spill] sm:$0xff] }
 0x3be   : > { %1165 = vperm.xlu0 %10154, %v560_v48   ;;  %vm3414_vm10 = vcmp.eq.s32.totalorder %v10504_v1, %v15753_v20 }
 0x3bf   : > { %v12316_v23 = vpop.permute.xlu2 %1120  ;;  %v5179_v39 = vpop.f32.mrf.mxu1 }
 0x3c0   : > { %15748 = vst [vmem:[#allocation114_spill] sm:$0xff] %v12316_v23  ;;  %v12320_v50 = vpop.permute.xlu1 %3022  ;;  %v12322_v15 = vpop.f32.mrf.mxu0  ;;  %v5719_v44 = vmul.f32 %v5179_v39, %v11934_v51  ;;  %v563_v23 = vld [vmem:[%s10422_s30 + $0x588] sm:$0xff]  ;;  %v15751_v51 = vld [vmem:[#allocation8_spill] sm:$0xff]  ;;  %v7884_v39 = vmax.f32 %v7290_v60, 0.0 }
 0x3c1   : > { %15749 = vst [vmem:[#allocation115_spill] sm:$0xff] %v12320_v50  ;;  %v6235_v47 = vpop.f32.mrf.mxu2  ;;  %v12325_v61 = vpop.permute.xlu0 %3019  ;;  %vm3415_vm7 = vcmp.eq.s32.totalorder %v10504_v1, %v15751_v51  ;;  %v2483_v60 = vld [vmem:[%s10540_s11 + $0x588] sm:$0xff] }
 0x3c2   : > { %15750 = vst [vmem:[#allocation116_spill] sm:$0xff] %v12325_v61  ;;  %v5958_v25 = vpack.c.bf16 %v5719_v44, %v5718_v63  ;;  %v6236_v48 = vadd.f32 %v12279_v30, %v6235_v47  ;;  %vm9825_vm11 = vmpackc.low %vm3415_vm7, %vm3414_vm10 }
 0x3c3   : > { %v7291_v22 = vpop.f32.mrf.mxu3 }
 0x3c4   : > { %v6802_v16 = vmax.f32 %v6236_v48, 0.0  ;;  %v7292_v50 = vadd.f32 %v12114_v11, %v7291_v22  ;;  %6277 = vmatmul.bf16.gmra.mxu2 %v5958_v25 }
 0x3c5   : > { %1174 = vperm.xlu2 %10156, %v563_v23   ;;  %1171 = vperm.xlu1 %10155, %v562_v14   ;;  %v7287_v14 = vadd.f32 %v12114_v11, %v12292_v13  ;;  %v564_v13 = vld [vmem:[%s10422_s30 + $0x590] sm:$0xff] }
 0x3c6   : > { %v7885_v61 = vmax.f32 %v7292_v50, 0.0  ;;  %3088 = vperm.xlu0 %10154, %v2481_v33   ;;  %v7050_v44 = vpack.c.bf16 %v6802_v16, %v6801_v7  ;;  %v7285_v50 = vadd.f32 %v12114_v11, %v12269_v12  ;;  %v7282_v7 = vadd.f32 %v12114_v11, %v12247_v31 }
 0x3c7   : > { %v12339_v47 = vpop.permute.xlu2 %1123  ;;  %v5182_v22 = vpop.f32.mrf.mxu1  ;;  %v7883_v48 = vmax.f32 %v7287_v14, 0.0  ;;  %v7280_v31 = vadd.f32 %v12114_v11, %v12229_v46  ;;  %v15758_v46 = vld [vmem:[#allocation62_spill] sm:$0xff] }
 0x3c8   : > { %15752 = vst [vmem:[#allocation8_spill] sm:$0xff] %v12339_v47  ;;  %7333 = vmatmul.bf16.gmra.mxu3 %v7050_v44  ;;  %v12345_v23 = vpop.permute.xlu1 %3025  ;;  %v12347_v63 = vpop.f32.mrf.mxu0  ;;  %v8126_v55 = vpack.c.bf16 %v7885_v61, %v7884_v39  ;;  %v2482_v61 = vld [vmem:[%s10540_s11 + $0x580] sm:$0xff]  ;;  %v7882_v33 = vmax.f32 %v7285_v50, 0.0  ;;  %v5720_v51 = vmul.f32 %v5182_v22, %v11953_v56  ;;  %v2485_v22 = vld [vmem:[%s10540_s11 + $0x598] sm:$0xff]  ;;  %v7881_v47 = vmax.f32 %v7282_v7, 0.0  ;;  %v15759_v7 = vld [vmem:[#allocation71_spill] sm:$0xff] }
 0x3c9   : > { %15754 = vst [vmem:[#allocation28_spill] sm:$0xff] %v12345_v23  ;;  %v6238_v35 = vpop.f32.mrf.mxu2  ;;  %v12352_v34 = vpop.permute.xlu0 %1108  ;;  %v565_v23 = vld [vmem:[%s10422_s30 + $0x598] sm:$0xff]  ;;  %vm3416_vm14 = vcmp.eq.s32.totalorder %v10504_v1, %v15758_v46  ;;  %vm1514_vm15 = vcmp.eq.s32.totalorder %v10504_v1, %v15759_v7 }
 0x3ca   : > { %8259 = vmatpush.bf16.xpose.msrb.mxu1 %v8126_v55  ;;  %v6239_v39 = vadd.f32 %v12279_v30, %v6238_v35  ;;  %v8125_v55 = vpack.c.bf16 %v7883_v48, %v7882_v33  ;;  %v2484_v35 = vld [vmem:[%s10540_s11 + $0x590] sm:$0xff]  ;;  %v15757_v33 = vld [vmem:[#allocation61_spill] sm:$0xff] }
 0x3cb   : > { %v7294_v25 = vpop.f32.mrf.mxu3  ;;  %9556 = vmatmul.msk.bf16.gmra.mxu0 %vm9555_vm12, %v15514_v8  ;;  %9826 = vmatmul.msk.bf16.gmra.mxu1 %vm9825_vm11, %v15514_v8  ;;  %vm3417_vm13 = vcmp.eq.s32.totalorder %v10504_v1, %v15757_v33  ;;  %vm1518_vm11 = vcmp.eq.s32.totalorder %v10504_v1, %v11681_v26  ;;  %v2492_v26 = vld [vmem:[%s10540_s11 + $0x5d0] sm:$0xff] }
 0x3cc   : > { %vm9827_vm0 = vmpackc.low %vm3417_vm13, %vm3416_vm14 }
 0x3cd   : > { %1177 = vperm.xlu2 %10156, %v564_v13   ;;  %3094 = vperm.xlu1 %10155, %v2483_v60   ;;  %v7295_v60 = vadd.f32 %v12114_v11, %v7294_v25  ;;  %v7880_v25 = vmax.f32 %v7280_v31, 0.0 }
 0x3ce   : > { %3091 = vperm.xlu0 %10154, %v2482_v61  }
 0x3cf   : > { %v12363_v16 = vpop.permute.xlu2 %3046  ;;  %v5184_v12 = vpop.f32.mrf.mxu1 }
 0x3d0   : > { %15755 = vst [vmem:[#allocation117_spill] sm:$0xff] %v12363_v16  ;;  %v12367_v44 = vpop.permute.xlu1 %1114  ;;  %v12369_v20 = vpop.f32.mrf.mxu0  ;;  %v5721_v14 = vmul.f32 %v5184_v12, %v11970_v37  ;;  %v7886_v12 = vmax.f32 %v7295_v60, 0.0 }
 0x3d1   : > { %15756 = vst [vmem:[#allocation118_spill] sm:$0xff] %v12367_v44  ;;  %v6240_v50 = vpop.f32.mrf.mxu2  ;;  %v12372_v13 = vpop.permute.xlu0 %1111  ;;  %v6803_v44 = vmax.f32 %v6239_v39, 0.0 }
 0x3d2   : > { %v5959_v61 = vpack.c.bf16 %v5721_v14, %v5720_v51  ;;  %v6241_v56 = vadd.f32 %v12279_v30, %v6240_v50  ;;  %8260 = vmatpush.bf16.xpose.msrb.mxu1 %v8125_v55 }
 0x3d3   : > { %v7296_v16 = vpop.f32.mrf.mxu3 }
 0x3d4   : > { %v6804_v37 = vmax.f32 %v6241_v56, 0.0  ;;  %v7297_v48 = vadd.f32 %v12114_v11, %v7296_v16  ;;  %6282 = vmatmul.bf16.gmra.mxu2 %v5959_v61  ;;  %v8124_v61 = vpack.c.bf16 %v7881_v47, %v7880_v25  ;;  %v2486_v56 = vld [vmem:[%s10540_s11 + $0x5a0] sm:$0xff] }
 0x3d5   : > { %3100 = vperm.xlu2 %10156, %v2485_v22   ;;  %3097 = vperm.xlu1 %10155, %v2484_v35   ;;  %v567_v22 = vld [vmem:[%s10422_s30 + $0x5a8] sm:$0xff]  ;;  %v566_v35 = vld [vmem:[%s10422_s30 + $0x5a0] sm:$0xff] }
 0x3d6   : > { %v7887_v51 = vmax.f32 %v7297_v48, 0.0  ;;  %1180 = vperm.xlu0 %10154, %v565_v23   ;;  %v7051_v14 = vpack.c.bf16 %v6804_v37, %v6803_v44  ;;  %v15761_v23 = vld [vmem:[#allocation68_spill] sm:$0xff] }
 0x3d7   : > { %v12388_v16 = vpop.permute.xlu2 %3049  ;;  %v5187_v39 = vpop.f32.mrf.mxu1  ;;  %vm1515_vm1 = vcmp.eq.s32.totalorder %v10504_v1, %v15761_v23 }
 0x3d8   : > { %15760 = vst [vmem:[#allocation61_spill] sm:$0xff] %v12388_v16  ;;  %7338 = vmatmul.bf16.gmra.mxu3 %v7051_v14  ;;  %v12390_v55 = vpop.permute.xlu1 %1117  ;;  %v12392_v50 = vpop.f32.mrf.mxu0  ;;  %v12394_v31 = vpack.c.bf16 %v7887_v51, %v7886_v12  ;;  %vm9557_vm2 = vmpackc.low %vm1515_vm1, %vm1514_vm15  ;;  %v5722_v33 = vmul.f32 %v5187_v39, %v11992_v41  ;;  %v568_v41 = vld [vmem:[%s10422_s30 + $0x5b0] sm:$0xff] }
 0x3d9   : > { %v6243_v44 = vpop.f32.mrf.mxu2  ;;  %v12404_v60 = vpop.permute.xlu0 %3034 }
 0x3da   : > { %15762 = vst [vmem:[#allocation62_spill] sm:$0xff] %v12404_v60  ;;  %8261 = vmatpush.bf16.xpose.msrb.mxu1 %v8124_v61  ;;  %v6244_v46 = vadd.f32 %v12279_v30, %v6243_v44  ;;  %v2487_v44 = vld [vmem:[%s10540_s11 + $0x5a8] sm:$0xff] }
 0x3db   : > { %v7299_v47 = vpop.f32.mrf.mxu3  ;;  %9558 = vmatmul.msk.bf16.gmra.mxu0 %vm9557_vm2, %v15514_v8  ;;  %9828 = vmatmul.msk.bf16.gmra.mxu1 %vm9827_vm0, %v15514_v8 }
 0x3dc   : > { %v7300_v61 = vadd.f32 %v12114_v11, %v7299_v47 }
 0x3dd   : > { %3103 = vperm.xlu2 %10156, %v2486_v56   ;;  %1186 = vperm.xlu1 %10155, %v567_v22   ;;  %v569_v22 = vld [vmem:[%s10422_s30 + $0x5b8] sm:$0xff] }
 0x3de   : > { %1183 = vperm.xlu0 %10154, %v566_v35   ;;  %v6805_v35 = vmax.f32 %v6244_v46, 0.0  ;;  %v7888_v47 = vmax.f32 %v7300_v61, 0.0 }
 0x3df   : > { %v12411_v37 = vpop.permute.xlu2 %1138  ;;  %v5189_v48 = vpop.f32.mrf.mxu1 }
 0x3e0   : > { %15763 = vst [vmem:[#allocation71_spill] sm:$0xff] %v12411_v37  ;;  %v12415_v25 = vpop.permute.xlu1 %3040  ;;  %v12417_v12 = vpop.f32.mrf.mxu0  ;;  %v5723_v51 = vmul.f32 %v5189_v48, %v12013_v54  ;;  %v15766_v54 = vld [vmem:[#allocation63_spill] sm:$0xff] }
 0x3e1   : > { %15764 = vst [vmem:[#allocation68_spill] sm:$0xff] %v12415_v25  ;;  %v6245_v14 = vpop.f32.mrf.mxu2  ;;  %v12420_v7 = vpop.permute.xlu0 %3037  ;;  %vm3418_vm3 = vcmp.eq.s32.totalorder %v10504_v1, %v15766_v54 }
 0x3e2   : > { %15765 = vst [vmem:[#allocation119_spill] sm:$0xff] %v12420_v7  ;;  %v5960_v23 = vpack.c.bf16 %v5723_v51, %v5722_v33  ;;  %v6246_v56 = vadd.f32 %v12279_v30, %v6245_v14  ;;  %8262 = vmatpush.bf16.xpose.msrb.mxu1 %v12219_v62  ;;  %v15767_v62 = vld [vmem:[#allocation26_spill] sm:$0xff]  ;;  %v15769_v14 = vld [vmem:[#allocation24_spill] sm:$0xff] }
 0x3e3   : > { %v7301_v39 = vpop.f32.mrf.mxu3  ;;  %vm1517_vm4 = vcmp.eq.s32.totalorder %v10504_v1, %v15767_v62  ;;  %vm3419_vm5 = vcmp.eq.s32.totalorder %v10504_v1, %v15769_v14 }
 0x3e4   : > { %v6806_v16 = vmax.f32 %v6246_v56, 0.0  ;;  %v7302_v25 = vadd.f32 %v12114_v11, %v7301_v39  ;;  %6287 = vmatmul.bf16.gmra.mxu2 %v5960_v23  ;;  %vm9829_vm6 = vmpackc.low %vm3419_vm5, %vm3418_vm3  ;;  %v2489_v39 = vld [vmem:[%s10540_s11 + $0x5b8] sm:$0xff] }
 0x3e5   : > { %1192 = vperm.xlu2 %10156, %v569_v22   ;;  %1189 = vperm.xlu1 %10155, %v568_v41   ;;  %v570_v41 = vld [vmem:[%s10422_s30 + $0x5c0] sm:$0xff] }
 0x3e6   : > { %v7889_v48 = vmax.f32 %v7302_v25, 0.0  ;;  %3106 = vperm.xlu0 %10154, %v2487_v44   ;;  %v7052_v33 = vpack.c.bf16 %v6806_v16, %v6805_v35  ;;  %v15771_v16 = vld [vmem:[#allocation25_spill] sm:$0xff]  ;;  %v2488_v35 = vld [vmem:[%s10540_s11 + $0x5b0] sm:$0xff] }
 0x3e7   : > { %v12433_v51 = vpop.permute.xlu2 %1141  ;;  %v5192_v46 = vpop.f32.mrf.mxu1  ;;  %vm1516_vm7 = vcmp.eq.s32.totalorder %v10504_v1, %v15771_v16 }
 0x3e8   : > { %15768 = vst [vmem:[#allocation63_spill] sm:$0xff] %v12433_v51  ;;  %7343 = vmatmul.bf16.gmra.mxu3 %v7052_v33  ;;  %v12437_v23 = vpop.permute.xlu1 %3043  ;;  %v12439_v56 = vpop.f32.mrf.mxu0  ;;  %v12441_v25 = vpack.c.bf16 %v7889_v48, %v7888_v47  ;;  %vm9559_vm8 = vmpackc.low %vm1517_vm4, %vm1516_vm7  ;;  %v5724_v48 = vmul.f32 %v5192_v46, %v12036_v0  ;;  %v2490_v0 = vld [vmem:[%s10540_s11 + $0x5c0] sm:$0xff] }
 0x3e9   : > { %15770 = vst [vmem:[#allocation26_spill] sm:$0xff] %v12437_v23  ;;  %v6248_v61 = vpop.f32.mrf.mxu2  ;;  %v12445_v22 = vpop.permute.xlu0 %1126  ;;  %v2491_v23 = vld [vmem:[%s10540_s11 + $0x5c8] sm:$0xff] }
 0x3ea   : > { %8263 = vmatpush.bf16.xpose.msrb.mxu1 %v12174_v36  ;;  %v6249_v36 = vadd.f32 %v12279_v30, %v6248_v61  ;;  %v571_v61 = vld [vmem:[%s10422_s30 + $0x5c8] sm:$0xff] }
 0x3eb   : > { %v7304_v44 = vpop.f32.mrf.mxu3  ;;  %9560 = vmatmul.msk.bf16.gmra.mxu0 %vm9559_vm8, %v15514_v8  ;;  %9830 = vmatmul.msk.bf16.gmra.mxu1 %vm9829_vm6, %v15514_v8  ;;  %vm1523_vm6 = vcmp.eq.s32.totalorder %v10504_v1, %v11748_v6 }
 0x3ec   : > { %v6807_v7 = vmax.f32 %v6249_v36, 0.0 }
 0x3ed   : > { %1195 = vperm.xlu2 %10156, %v570_v41   ;;  %3112 = vperm.xlu1 %10155, %v2489_v39   ;;  %v7305_v39 = vadd.f32 %v12114_v11, %v7304_v44 }
 0x3ee   : > { %3109 = vperm.xlu0 %10154, %v2488_v35  }
 0x3ef   : > { %v12453_v54 = vpop.permute.xlu2 %3064  ;;  %v5194_v47 = vpop.f32.mrf.mxu1  ;;  %v7890_v44 = vmax.f32 %v7305_v39, 0.0  ;;  %v573_v39 = vld [vmem:[%s10422_s30 + $0x5d8] sm:$0xff] }
 0x3f0   : > { %15772 = vst [vmem:[#allocation24_spill] sm:$0xff] %v12453_v54  ;;  %v12457_v33 = vpop.permute.xlu1 %1132  ;;  %v12459_v62 = vpop.f32.mrf.mxu0  ;;  %v5725_v14 = vmul.f32 %v5194_v47, %v12058_v4  ;;  %v15775_v4 = vld [vmem:[#allocation15_spill] sm:$0xff] }
 0x3f1   : > { %15773 = vst [vmem:[#allocation25_spill] sm:$0xff] %v12457_v33  ;;  %v6250_v16 = vpop.f32.mrf.mxu2  ;;  %v12462_v41 = vpop.permute.xlu0 %1129  ;;  %vm3421_vm9 = vcmp.eq.s32.totalorder %v10504_v1, %v15775_v4 }
 0x3f2   : > { %15774 = vst [vmem:[#allocation120_spill] sm:$0xff] %v12462_v41  ;;  %v5961_v35 = vpack.c.bf16 %v5725_v14, %v5724_v48  ;;  %v6251_v54 = vadd.f32 %v12279_v30, %v6250_v16  ;;  %8264 = vmatpush.bf16.xpose.msrb.mxu1 %v12129_v49  ;;  %v15776_v49 = vld [vmem:[#allocation76_spill] sm:$0xff] }
 0x3f3   : > { %v7306_v46 = vpop.f32.mrf.mxu3  ;;  %vm1519_vm10 = vcmp.eq.s32.totalorder %v10504_v1, %v15776_v49 }
 0x3f4   : > { %v6808_v60 = vmax.f32 %v6251_v54, 0.0  ;;  %v7307_v51 = vadd.f32 %v12114_v11, %v7306_v46  ;;  %6292 = vmatmul.bf16.gmra.mxu2 %v5961_v35  ;;  %vm9561_vm14 = vmpackc.low %vm1519_vm10, %vm1518_vm11 }
 0x3f5   : > { %3118 = vperm.xlu2 %10156, %v2491_v23   ;;  %3115 = vperm.xlu1 %10155, %v2490_v0   ;;  %v15778_v23 = vld [vmem:[#allocation14_spill] sm:$0xff]  ;;  %v572_v0 = vld [vmem:[%s10422_s30 + $0x5d0] sm:$0xff] }
 0x3f6   : > { %v7891_v47 = vmax.f32 %v7307_v51, 0.0  ;;  %1198 = vperm.xlu0 %10154, %v571_v61   ;;  %v7053_v48 = vpack.c.bf16 %v6808_v60, %v6807_v7  ;;  %vm3420_vm12 = vcmp.eq.s32.totalorder %v10504_v1, %v15778_v23 }
 0x3f7   : > { %v12477_v54 = vpop.permute.xlu2 %3067  ;;  %v5197_v36 = vpop.f32.mrf.mxu1  ;;  %vm9831_vm13 = vmpackc.low %vm3421_vm9, %vm3420_vm12  ;;  %vm1525_vm12 = vcmp.eq.s32.totalorder %v10504_v1, %v11759_v21  ;;  %v582_v21 = vld [vmem:[%s10422_s30 + $0x620] sm:$0xff] }
 0x3f8   : > { %15777 = vst [vmem:[#allocation15_spill] sm:$0xff] %v12477_v54  ;;  %7348 = vmatmul.bf16.gmra.mxu3 %v7053_v48  ;;  %v12481_v14 = vpop.permute.xlu1 %1135  ;;  %v12483_v51 = vpop.f32.mrf.mxu0  ;;  %v12485_v60 = vpack.c.bf16 %v7891_v47, %v7890_v44  ;;  %v5726_v4 = vmul.f32 %v5197_v36, %v12082_v45  ;;  %v575_v54 = vld [vmem:[%s10422_s30 + $0x5e8] sm:$0xff]  ;;  %v574_v45 = vld [vmem:[%s10422_s30 + $0x5e0] sm:$0xff] }
 0x3f9   : > { %15779 = vst [vmem:[#allocation76_spill] sm:$0xff] %v12481_v14  ;;  %v6253_v7 = vpop.f32.mrf.mxu2  ;;  %v12487_v16 = vpop.permute.xlu0 %3052 }
 0x3fa   : > { %15780 = vst [vmem:[#allocation14_spill] sm:$0xff] %v12487_v16  ;;  %8265 = vmatpush.bf16.xpose.msrb.mxu1 %v12084_v19  ;;  %v6254_v19 = vadd.f32 %v12279_v30, %v6253_v7  ;;  %v2493_v7 = vld [vmem:[%s10540_s11 + $0x5d8] sm:$0xff] }
 0x3fb   : > { %v7309_v35 = vpop.f32.mrf.mxu3  ;;  %9562 = vmatmul.msk.bf16.gmra.mxu0 %vm9561_vm14, %v15514_v8  ;;  %9832 = vmatmul.msk.bf16.gmra.mxu1 %vm9831_vm13, %v15514_v8  ;;  %vm1524_vm13 = vcmp.eq.s32.totalorder %v10504_v1, %v11764_v58 }
 0x3fc   : > { %v6809_v16 = vmax.f32 %v6254_v19, 0.0 }
 0x3fd   : > { %3121 = vperm.xlu2 %10156, %v2492_v26   ;;  %1204 = vperm.xlu1 %10155, %v573_v39   ;;  %v7310_v26 = vadd.f32 %v12114_v11, %v7309_v35  ;;  %v15785_v35 = vld [vmem:[#allocation66_spill] sm:$0xff] }
 0x3fe   : > { %1201 = vperm.xlu0 %10154, %v572_v0   ;;  %vm3422_vm0 = vcmp.eq.s32.totalorder %v10504_v1, %v15785_v35 }
 0x3ff   : > { %v12495_v46 = vpop.permute.xlu2 %1156  ;;  %v5199_v61 = vpop.f32.mrf.mxu1 }
 0x400   : > { %15781 = vst [vmem:[#allocation121_spill] sm:$0xff] %v12495_v46  ;;  %v12499_v44 = vpop.permute.xlu1 %3058  ;;  %v12501_v47 = vpop.f32.mrf.mxu0  ;;  %v5727_v48 = vmul.f32 %v5199_v61, %v12100_v27  ;;  %v15784_v27 = vld [vmem:[#allocation65_spill] sm:$0xff]  ;;  %v7892_v61 = vmax.f32 %v7310_v26, 0.0  ;;  %v576_v26 = vld [vmem:[%s10422_s30 + $0x5f0] sm:$0xff] }
 0x401   : > { %15782 = vst [vmem:[#allocation122_spill] sm:$0xff] %v12499_v44  ;;  %v6255_v49 = vpop.f32.mrf.mxu2  ;;  %v12504_v23 = vpop.permute.xlu0 %3055  ;;  %vm3423_vm15 = vcmp.eq.s32.totalorder %v10504_v1, %v15784_v27 }
 0x402   : > { %15783 = vst [vmem:[#allocation123_spill] sm:$0xff] %v12504_v23  ;;  %v5962_v39 = vpack.c.bf16 %v5727_v48, %v5726_v4  ;;  %v6256_v0 = vadd.f32 %v12279_v30, %v6255_v49  ;;  %8266 = vmatpush.bf16.xpose.msrb.mxu1 %v12038_v43  ;;  %v15786_v48 = vld [vmem:[#allocation39_spill] sm:$0xff]  ;;  %vm9833_vm2 = vmpackc.low %vm3423_vm15, %vm3422_vm0 }
 0x403   : > { %v7311_v36 = vpop.f32.mrf.mxu3  ;;  %vm1520_vm1 = vcmp.eq.s32.totalorder %v10504_v1, %v15786_v48  ;;  %vm9567_vm0 = vmpackc.low %vm1525_vm12, %vm1524_vm13 }
 0x404   : > { %v6810_v44 = vmax.f32 %v6256_v0, 0.0  ;;  %v7312_v46 = vadd.f32 %v12114_v11, %v7311_v36  ;;  %6297 = vmatmul.bf16.gmra.mxu2 %v5962_v39 }
 0x405   : > { %1210 = vperm.xlu2 %10156, %v575_v54   ;;  %1207 = vperm.xlu1 %10155, %v574_v45   ;;  %v2495_v45 = vld [vmem:[%s10540_s11 + $0x5e8] sm:$0xff] }
 0x406   : > { %v7893_v43 = vmax.f32 %v7312_v46, 0.0  ;;  %3124 = vperm.xlu0 %10154, %v2493_v7   ;;  %v7054_v4 = vpack.c.bf16 %v6810_v44, %v6809_v16  ;;  %v15789_v46 = vld [vmem:[#allocation72_spill] sm:$0xff]  ;;  %v2494_v7 = vld [vmem:[%s10540_s11 + $0x5e0] sm:$0xff] }
 0x407   : > { %v12519_v19 = vpop.permute.xlu2 %1159  ;;  %v5202_v49 = vpop.f32.mrf.mxu1  ;;  %vm1521_vm3 = vcmp.eq.s32.totalorder %v10504_v1, %v15789_v46 }
 0x408   : > { %15787 = vst [vmem:[#allocation65_spill] sm:$0xff] %v12519_v19  ;;  %7353 = vmatmul.bf16.gmra.mxu3 %v7054_v4  ;;  %v12521_v39 = vpop.permute.xlu1 %3061  ;;  %v12523_v54 = vpop.f32.mrf.mxu0  ;;  %v12525_v0 = vpack.c.bf16 %v7893_v43, %v7892_v61  ;;  %vm9563_vm4 = vmpackc.low %vm1521_vm3, %vm1520_vm1  ;;  %v5728_v61 = vmul.f32 %v5202_v49, %v12127_v32  ;;  %v2496_v19 = vld [vmem:[%s10540_s11 + $0x5f0] sm:$0xff]  ;;  %v577_v32 = vld [vmem:[%s10422_s30 + $0x5f8] sm:$0xff]  ;;  %vm1526_vm3 = vcmp.eq.s32.totalorder %v10504_v1, %v11780_v42 }
 0x409   : > { %15788 = vst [vmem:[#allocation66_spill] sm:$0xff] %v12521_v39  ;;  %v6258_v16 = vpop.f32.mrf.mxu2  ;;  %v12532_v44 = vpop.permute.xlu0 %1144 }
 0x40a   : > { %15790 = vst [vmem:[#allocation39_spill] sm:$0xff] %v12532_v44  ;;  %v6259_v43 = vadd.f32 %v12279_v30, %v6258_v16 }
 0x40b   : > { %v7314_v36 = vpop.f32.mrf.mxu3  ;;  %9564 = vmatmul.msk.bf16.gmra.mxu0 %vm9563_vm4, %v15514_v8  ;;  %9834 = vmatmul.msk.bf16.gmra.mxu1 %vm9833_vm2, %v15514_v8 }
 0x40c   : > { %v6811_v49 = vmax.f32 %v6259_v43, 0.0  ;;  %v15796_v43 = vld [vmem:[#allocation9_spill] sm:$0xff] }
 0x40d   : > { %1213 = vperm.xlu2 %10156, %v576_v26   ;;  %3130 = vperm.xlu1 %10155, %v2495_v45   ;;  %v7315_v26 = vadd.f32 %v12114_v11, %v7314_v36  ;;  %vm3425_vm7 = vcmp.eq.s32.totalorder %v10504_v1, %v15796_v43 }
 0x40e   : > { %3127 = vperm.xlu0 %10154, %v2494_v7  }
 0x40f   : > { %v12539_v27 = vpop.permute.xlu2 %3082  ;;  %v5204_v35 = vpop.f32.mrf.mxu1 }
 0x410   : > { %15791 = vst [vmem:[#allocation72_spill] sm:$0xff] %v12539_v27  ;;  %v12543_v4 = vpop.permute.xlu1 %1150  ;;  %v12545_v48 = vpop.f32.mrf.mxu0  ;;  %v5729_v46 = vmul.f32 %v5204_v35, %v12150_v5  ;;  %v2497_v27 = vld [vmem:[%s10540_s11 + $0x5f8] sm:$0xff]  ;;  %v15794_v5 = vld [vmem:[#allocation31_spill] sm:$0xff]  ;;  %v7894_v35 = vmax.f32 %v7315_v26, 0.0 }
 0x411   : > { %15792 = vst [vmem:[#allocation124_spill] sm:$0xff] %v12543_v4  ;;  %v6260_v39 = vpop.f32.mrf.mxu2  ;;  %v12548_v23 = vpop.permute.xlu0 %1147  ;;  %vm3424_vm5 = vcmp.eq.s32.totalorder %v10504_v1, %v15794_v5  ;;  %v579_v26 = vld [vmem:[%s10422_s30 + $0x608] sm:$0xff] }
 0x412   : > { %15793 = vst [vmem:[#allocation125_spill] sm:$0xff] %v12548_v23  ;;  %v5963_v45 = vpack.c.bf16 %v5729_v46, %v5728_v61  ;;  %v6261_v7 = vadd.f32 %v12279_v30, %v6260_v39  ;;  %vm9835_vm8 = vmpackc.low %vm3425_vm7, %vm3424_vm5  ;;  %v2498_v46 = vld [vmem:[%s10540_s11 + $0x600] sm:$0xff] }
 0x413   : > { %v7316_v44 = vpop.f32.mrf.mxu3 }
 0x414   : > { %v6812_v16 = vmax.f32 %v6261_v7, 0.0  ;;  %v7317_v4 = vadd.f32 %v12114_v11, %v7316_v44  ;;  %6302 = vmatmul.bf16.gmra.mxu2 %v5963_v45  ;;  %v578_v7 = vld [vmem:[%s10422_s30 + $0x600] sm:$0xff] }
 0x415   : > { %3136 = vperm.xlu2 %10156, %v2497_v27   ;;  %3133 = vperm.xlu1 %10155, %v2496_v19   ;;  %v15798_v27 = vld [vmem:[#allocation27_spill] sm:$0xff] }
 0x416   : > { %v7895_v23 = vmax.f32 %v7317_v4, 0.0  ;;  %1216 = vperm.xlu0 %10154, %v577_v32   ;;  %v7055_v39 = vpack.c.bf16 %v6812_v16, %v6811_v49  ;;  %vm1522_vm9 = vcmp.eq.s32.totalorder %v10504_v1, %v15798_v27 }
 0x417   : > { %v12560_v36 = vpop.permute.xlu2 %3085  ;;  %v5207_v61 = vpop.f32.mrf.mxu1  ;;  %vm9565_vm10 = vmpackc.low %vm1523_vm6, %vm1522_vm9 }
 0x418   : > { %15795 = vst [vmem:[#allocation31_spill] sm:$0xff] %v12560_v36  ;;  %7358 = vmatmul.bf16.gmra.mxu3 %v7055_v39  ;;  %v12564_v11 = vpop.permute.xlu1 %1153  ;;  %v12566_v19 = vpop.f32.mrf.mxu0  ;;  %v12568_v44 = vpack.c.bf16 %v7895_v23, %v7894_v35  ;;  %v5730_v49 = vmul.f32 %v5207_v61, %v12172_v28  ;;  %v580_v36 = vld [vmem:[%s10422_s30 + $0x610] sm:$0xff] }
 0x419   : > { %15797 = vst [vmem:[#allocation9_spill] sm:$0xff] %v12564_v11  ;;  %v6263_v4 = vpop.f32.mrf.mxu2  ;;  %v12572_v6 = vpop.permute.xlu0 %3070 }
 0x41a   : > { %15799 = vst [vmem:[#allocation27_spill] sm:$0xff] %v12572_v6  ;;  %v6264_v16 = vadd.f32 %v12279_v30, %v6263_v4  ;;  %v15803_v4 = vld [vmem:[#allocation17_spill] sm:$0xff] }
 0x41b   : > { %v12576_v45 = vpop.f32.mrf.mxu3  ;;  %9566 = vmatmul.msk.bf16.gmra.mxu0 %vm9565_vm10, %v15514_v8  ;;  %9836 = vmatmul.msk.bf16.gmra.mxu1 %vm9835_vm8, %v15514_v8  ;;  %vm3427_vm11 = vcmp.eq.s32.totalorder %v10504_v1, %v15803_v4 }
 0x41c   : > { %v6813_v28 = vmax.f32 %v6264_v16, 0.0  ;;  %v15805_v16 = vld [vmem:[#allocation16_spill] sm:$0xff] }
 0x41d   : > { %3139 = vperm.xlu2 %10156, %v2498_v46   ;;  %1222 = vperm.xlu1 %10155, %v579_v26   ;;  %vm3426_vm14 = vcmp.eq.s32.totalorder %v10504_v1, %v15805_v16 }
 0x41e   : > { %1219 = vperm.xlu0 %10154, %v578_v7   ;;  %v581_v7 = vld [vmem:[%s10422_s30 + $0x618] sm:$0xff]  ;;  %vm9837_vm15 = vmpackc.low %vm3427_vm11, %vm3426_vm14 }
 0x41f   : > { %v12581_v23 = vpop.permute.xlu2 %1174  ;;  %v5209_v32 = vpop.f32.mrf.mxu1 }
 0x420   : > { %15800 = vst [vmem:[#allocation126_spill] sm:$0xff] %v12581_v23  ;;  %v12585_v5 = vpop.permute.xlu1 %3076  ;;  %v12587_v35 = vpop.f32.mrf.mxu0  ;;  %v5731_v39 = vmul.f32 %v5209_v32, %v12194_v2  ;;  %v2499_v23 = vld [vmem:[%s10540_s11 + $0x608] sm:$0xff] }
 0x421   : > { %15801 = vst [vmem:[#allocation127_spill] sm:$0xff] %v12585_v5  ;;  %v6265_v43 = vpop.f32.mrf.mxu2  ;;  %v12590_v27 = vpop.permute.xlu0 %3073 }
 0x422   : > { %15802 = vst [vmem:[#allocation128_spill] sm:$0xff] %v12590_v27  ;;  %v5964_v46 = vpack.c.bf16 %v5731_v39, %v5730_v49  ;;  %v6266_v26 = vadd.f32 %v12279_v30, %v6265_v43 }
 0x423   : > { %v12595_v6 = vpop.f32.mrf.mxu3 }
 0x424   : > { %v6814_v61 = vmax.f32 %v6266_v26, 0.0  ;;  %6307 = vmatmul.bf16.gmra.mxu2 %v5964_v46  ;;  %v2501_v46 = vld [vmem:[%s10540_s11 + $0x618] sm:$0xff]  ;;  %v2500_v26 = vld [vmem:[%s10540_s11 + $0x610] sm:$0xff] }
 0x425   : > { %1228 = vperm.xlu2 %10156, %v581_v7   ;;  %1225 = vperm.xlu1 %10155, %v580_v36  }
 0x426   : > { %3142 = vperm.xlu0 %10154, %v2499_v23   ;;  %v7056_v2 = vpack.c.bf16 %v6814_v61, %v6813_v28 }
 0x427   : > { %v12604_v32 = vpop.permute.xlu2 %1177  ;;  %v5212_v49 = vpop.f32.mrf.mxu1 }
 0x428   : > { %15804 = vst [vmem:[#allocation17_spill] sm:$0xff] %v12604_v32  ;;  %7363 = vmatmul.bf16.gmra.mxu3 %v7056_v2  ;;  %v12608_v36 = vpop.permute.xlu1 %3079  ;;  %v12610_v39 = vpop.f32.mrf.mxu0  ;;  %v5732_v61 = vmul.f32 %v5212_v49, %v12217_v57  ;;  %v2502_v32 = vld [vmem:[%s10540_s11 + $0x620] sm:$0xff] }
 0x429   : > { %15806 = vst [vmem:[#allocation16_spill] sm:$0xff] %v12608_v36  ;;  %v6268_v23 = vpop.f32.mrf.mxu2  ;;  %v12612_v43 = vpop.permute.xlu0 %1162  ;;  %v15811_v49 = vld [vmem:[#allocation69_spill] sm:$0xff] }
 0x42a   : > { %15807 = vst [vmem:[#allocation129_spill] sm:$0xff] %v12612_v43  ;;  %v6269_v4 = vadd.f32 %v12279_v30, %v6268_v23  ;;  %v583_v43 = vld [vmem:[%s10422_s30 + $0x628] sm:$0xff]  ;;  %vm3429_vm1 = vcmp.eq.s32.totalorder %v10504_v1, %v15811_v49 }
 0x42b   : > { %v12616_v58 = vpop.f32.mrf.mxu3  ;;  %9568 = vmatmul.msk.bf16.gmra.mxu0 %vm9567_vm0, %v15514_v8  ;;  %9838 = vmatmul.msk.bf16.gmra.mxu1 %vm9837_vm15, %v15514_v8 }
 0x42c   : > { %v6815_v11 = vmax.f32 %v6269_v4, 0.0 }
 0x42d   : > { %1231 = vperm.xlu2 %10156, %v582_v21   ;;  %3148 = vperm.xlu1 %10155, %v2501_v46  }
 0x42e   : > { %3145 = vperm.xlu0 %10154, %v2500_v26   ;;  %v2503_v26 = vld [vmem:[%s10540_s11 + $0x628] sm:$0xff] }
 0x42f   : > { %v12621_v7 = vpop.permute.xlu2 %3100  ;;  %v5214_v28 = vpop.f32.mrf.mxu1 }
 0x430   : > { %15808 = vst [vmem:[#allocation130_spill] sm:$0xff] %v12621_v7  ;;  %v12625_v2 = vpop.permute.xlu1 %1168  ;;  %v12627_v16 = vpop.f32.mrf.mxu0  ;;  %v5733_v36 = vmul.f32 %v5214_v28, %v12239_v40  ;;  %v15812_v40 = vld [vmem:[#allocation70_spill] sm:$0xff] }
 0x431   : > { %15809 = vst [vmem:[#allocation131_spill] sm:$0xff] %v12625_v2  ;;  %v6270_v27 = vpop.f32.mrf.mxu2  ;;  %v12630_v5 = vpop.permute.xlu0 %1165  ;;  %vm3428_vm2 = vcmp.eq.s32.totalorder %v10504_v1, %v15812_v40 }
 0x432   : > { %15810 = vst [vmem:[#allocation132_spill] sm:$0xff] %v12630_v5  ;;  %v5965_v21 = vpack.c.bf16 %v5733_v36, %v5732_v61  ;;  %v6271_v46 = vadd.f32 %v12279_v30, %v6270_v27  ;;  %vm9839_vm4 = vmpackc.low %vm3429_vm1, %vm3428_vm2  ;;  %v15815_v61 = vld [vmem:[#allocation78_spill] sm:$0xff] }
 0x433   : > { %v7326_v7 = vpop.f32.mrf.mxu3  ;;  %vm1527_vm5 = vcmp.eq.s32.totalorder %v10504_v1, %v15815_v61 }
 0x434   : > { %v6816_v57 = vmax.f32 %v6271_v46, 0.0  ;;  %6312 = vmatmul.bf16.gmra.mxu2 %v5965_v21  ;;  %vm9569_vm6 = vmpackc.low %vm1527_vm5, %vm1526_vm3  ;;  %v584_v46 = vld [vmem:[%s10422_s30 + $0x630] sm:$0xff] }
 0x435   : > { %3154 = vperm.xlu2 %10156, %v2503_v26   ;;  %3151 = vperm.xlu1 %10155, %v2502_v32  }
 0x436   : > { %1234 = vperm.xlu0 %10154, %v583_v43   ;;  %v7057_v36 = vpack.c.bf16 %v6816_v57, %v6815_v11  ;;  %v2504_v11 = vld [vmem:[%s10540_s11 + $0x630] sm:$0xff]  ;;  %v585_v43 = vld [vmem:[%s10422_s30 + $0x638] sm:$0xff] }
 0x437   : > { %v12642_v27 = vpop.permute.xlu2 %3103  ;;  %v5217_v23 = vpop.f32.mrf.mxu1 }
 0x438   : > { %15813 = vst [vmem:[#allocation69_spill] sm:$0xff] %v12642_v27  ;;  %7368 = vmatmul.bf16.gmra.mxu3 %v7057_v36  ;;  %v12644_v28 = vpop.permute.xlu1 %1171  ;;  %v12646_v32 = vpop.f32.mrf.mxu0  ;;  %v5734_v49 = vmul.f32 %v5217_v23, %v12260_v17  ;;  %v587_v23 = vld [vmem:[%s10422_s30 + $0x648] sm:$0xff] }
 0x439   : > { %15814 = vst [vmem:[#allocation70_spill] sm:$0xff] %v12644_v28  ;;  %v6273_v4 = vpop.f32.mrf.mxu2  ;;  %v12650_v21 = vpop.permute.xlu0 %3088  ;;  %v2505_v28 = vld [vmem:[%s10540_s11 + $0x638] sm:$0xff] }
 0x43a   : > { %15816 = vst [vmem:[#allocation78_spill] sm:$0xff] %v12650_v21  ;;  %v6274_v40 = vadd.f32 %v12279_v30, %v6273_v4  ;;  %v586_v4 = vld [vmem:[%s10422_s30 + $0x640] sm:$0xff] }
 0x43b   : > { %v7329_v42 = vpop.f32.mrf.mxu3  ;;  %9570 = vmatmul.msk.bf16.gmra.mxu0 %vm9569_vm6, %v15514_v8  ;;  %9840 = vmatmul.msk.bf16.gmra.mxu1 %vm9839_vm4, %v15514_v8 }
 0x43c   : > { %v6817_v5 = vmax.f32 %v6274_v40, 0.0 }
 0x43d   : > { %3157 = vperm.xlu2 %10156, %v2504_v11   ;;  %1240 = vperm.xlu1 %10155, %v585_v43   ;;  %v12671_v43 = vld [vmem:[%s15440_s7] ss:$0 sm:$0xff] }
 0x43e   : > { %1237 = vperm.xlu0 %10154, %v584_v46   ;;  %v7330_v46 = vadd.f32 %v12671_v43, %v7329_v42  ;;  %v15821_v42 = vld [vmem:[#allocation89_spill] sm:$0xff] }
 0x43f   : > { %v12657_v26 = vpop.permute.xlu2 %1192  ;;  %v5219_v57 = vpop.f32.mrf.mxu1  ;;  %vm1529_vm8 = vcmp.eq.s32.totalorder %v10504_v1, %v15821_v42 }
 0x440   : > { %15817 = vst [vmem:[#allocation133_spill] sm:$0xff] %v12657_v26  ;;  %v12661_v36 = vpop.permute.xlu1 %3094  ;;  %v12663_v61 = vpop.f32.mrf.mxu0  ;;  %v5735_v27 = vmul.f32 %v5219_v57, %v12284_v59  ;;  %v15820_v57 = vld [vmem:[#allocation36_spill] sm:$0xff] }
 0x441   : > { %15818 = vst [vmem:[#allocation134_spill] sm:$0xff] %v12661_v36  ;;  %v6275_v21 = vpop.f32.mrf.mxu2  ;;  %v12666_v11 = vpop.permute.xlu0 %3091  ;;  %vm3430_vm7 = vcmp.eq.s32.totalorder %v10504_v1, %v15820_v57 }
 0x442   : > { %15819 = vst [vmem:[#allocation135_spill] sm:$0xff] %v12666_v11  ;;  %v5966_v26 = vpack.c.bf16 %v5735_v27, %v5734_v49  ;;  %v6276_v17 = vadd.f32 %v12279_v30, %v6275_v21  ;;  %v7900_v11 = vmax.f32 %v7330_v46, 0.0  ;;  %v15823_v49 = vld [vmem:[#allocation19_spill] sm:$0xff] }
 0x443   : > { %v7331_v36 = vpop.f32.mrf.mxu3  ;;  %vm3431_vm9 = vcmp.eq.s32.totalorder %v10504_v1, %v15823_v49 }
 0x444   : > { %v6818_v2 = vmax.f32 %v6276_v17, 0.0  ;;  %v7332_v59 = vadd.f32 %v12671_v43, %v7331_v36  ;;  %6317 = vmatmul.bf16.gmra.mxu2 %v5966_v26  ;;  %v7327_v26 = vadd.f32 %v12671_v43, %v7326_v7  ;;  %vm9841_vm10 = vmpackc.low %vm3431_vm9, %vm3430_vm7  ;;  %v7325_v17 = vadd.f32 %v12671_v43, %v12616_v58  ;;  %v588_v7 = vld [vmem:[%s10422_s30 + $0x650] sm:$0xff] }
 0x445   : > { %1246 = vperm.xlu2 %10156, %v587_v23   ;;  %1243 = vperm.xlu1 %10155, %v586_v4   ;;  %v2507_v4 = vld [vmem:[%s10540_s11 + $0x648] sm:$0xff]  ;;  %v7322_v58 = vadd.f32 %v12671_v43, %v12595_v6 }
 0x446   : > { %v7901_v37 = vmax.f32 %v7332_v59, 0.0  ;;  %3160 = vperm.xlu0 %10154, %v2505_v28   ;;  %v7058_v27 = vpack.c.bf16 %v6818_v2, %v6817_v5  ;;  %v15825_v5 = vld [vmem:[#allocation81_spill] sm:$0xff]  ;;  %v7898_v57 = vmax.f32 %v7325_v17, 0.0 }
 0x447   : > { %v12683_v21 = vpop.permute.xlu2 %1195  ;;  %vm1528_vm11 = vcmp.eq.s32.totalorder %v10504_v1, %v15825_v5 }
 0x448   : > { %15822 = vst [vmem:[#allocation36_spill] sm:$0xff] %v12683_v21  ;;  %7373 = vmatmul.bf16.gmra.mxu3 %v7058_v27  ;;  %v12688_v40 = vpop.permute.xlu1 %3097  ;;  %v12690_v36 = vpop.f32.mrf.mxu0  ;;  %v8134_v28 = vpack.c.bf16 %v7901_v37, %v7900_v11  ;;  %vm9571_vm12 = vmpackc.low %vm1529_vm8, %vm1528_vm11  ;;  %v2506_v37 = vld [vmem:[%s10540_s11 + $0x640] sm:$0xff]  ;;  %v7899_v11 = vmax.f32 %v7327_v26, 0.0  ;;  %v7320_v26 = vadd.f32 %v12671_v43, %v12576_v45  ;;  %v2509_v21 = vld [vmem:[%s10540_s11 + $0x658] sm:$0xff] }
 0x449   : > { %15824 = vst [vmem:[#allocation89_spill] sm:$0xff] %v12688_v40  ;;  %v5222_v2 = vpop.f32.mrf.mxu1  ;;  %v6278_v46 = vpop.f32.mrf.mxu2 }
 0x44a   : > { %v12696_v23 = vpop.permute.xlu0 %1180  ;;  %8272 = vmatpush.bf16.xpose.msrb.mxu2 %v8134_v28  ;;  %v6279_v42 = vadd.f32 %v12279_v30, %v6278_v46  ;;  %v8133_v5 = vpack.c.bf16 %v7899_v11, %v7898_v57  ;;  %v589_v57 = vld [vmem:[%s10422_s30 + $0x658] sm:$0xff] }
 0x44b   : > { %15826 = vst [vmem:[#allocation19_spill] sm:$0xff] %v12696_v23  ;;  %v7334_v59 = vpop.f32.mrf.mxu3  ;;  %9572 = vmatmul.msk.bf16.gmra.mxu0 %vm9571_vm12, %v15514_v8  ;;  %9842 = vmatmul.msk.bf16.gmra.mxu1 %vm9841_vm10, %v15514_v8  ;;  %v7897_v23 = vmax.f32 %v7322_v58, 0.0  ;;  %v15831_v58 = vld [vmem:[#allocation92_spill] sm:$0xff] }
 0x44c   : > { %v7335_v6 = vadd.f32 %v12671_v43, %v7334_v59  ;;  %v6819_v14 = vmax.f32 %v6279_v42, 0.0  ;;  %vm1530_vm15 = vcmp.eq.s32.totalorder %v10504_v1, %v15831_v58  ;;  %v15832_v42 = vld [vmem:[#allocation18_spill] sm:$0xff] }
 0x44d   : > { %1249 = vperm.xlu2 %10156, %v588_v7   ;;  %3166 = vperm.xlu1 %10155, %v2507_v4   ;;  %v5736_v4 = vmul.f32 %v5222_v2, %v12305_v24  ;;  %v15829_v24 = vld [vmem:[#allocation30_spill] sm:$0xff]  ;;  %vm3432_vm0 = vcmp.eq.s32.totalorder %v10504_v1, %v15832_v42 }
 0x44e   : > { %3163 = vperm.xlu0 %10154, %v2506_v37   ;;  %vm3433_vm13 = vcmp.eq.s32.totalorder %v10504_v1, %v15829_v24 }
 0x44f   : > { %v12705_v27 = vpop.permute.xlu2 %3118  ;;  %vm9843_vm1 = vmpackc.low %vm3433_vm13, %vm3432_vm0 }
 0x450   : > { %v12708_v49 = vpop.permute.xlu1 %1186  ;;  %v12710_v28 = vpop.f32.mrf.mxu0  ;;  %vm3515_vm12 = vcmp.eq.s32.totalorder %v10504_v1, %v12705_v27  ;;  %v2512_v27 = vld [vmem:[%s10540_s11 + $0x670] sm:$0xff] }
 0x451   : > { %15827 = vst [vmem:[#allocation81_spill] sm:$0xff] %v12708_v49  ;;  %v5224_v17 = vpop.f32.mrf.mxu1  ;;  %v6280_v7 = vpop.f32.mrf.mxu2  ;;  %v2508_v49 = vld [vmem:[%s10540_s11 + $0x650] sm:$0xff] }
 0x452   : > { %v5737_v37 = vmul.f32 %v5224_v17, %v12322_v15  ;;  %v6281_v40 = vadd.f32 %v12279_v30, %v6280_v7  ;;  %v12718_v46 = vpop.permute.xlu0 %1183  ;;  %8273 = vmatpush.bf16.xpose.msrb.mxu2 %v8133_v5  ;;  %v7896_v15 = vmax.f32 %v7320_v26, 0.0  ;;  %v7902_v30 = vmax.f32 %v7335_v6, 0.0  ;;  %v15830_v5 = vld [vmem:[#allocation91_spill] sm:$0xff]  ;;  %v2510_v7 = vld [vmem:[%s10540_s11 + $0x660] sm:$0xff] }
 0x453   : > { %15828 = vst [vmem:[#allocation136_spill] sm:$0xff] %v12718_v46  ;;  %v7336_v11 = vpop.f32.mrf.mxu3  ;;  %vm1531_vm14 = vcmp.eq.s32.totalorder %v10504_v1, %v15830_v5 }
 0x454   : > { %v5967_v45 = vpack.c.bf16 %v5737_v37, %v5736_v4  ;;  %v6820_v41 = vmax.f32 %v6281_v40, 0.0  ;;  %v7337_v33 = vadd.f32 %v12671_v43, %v7336_v11  ;;  %vm9573_vm2 = vmpackc.low %vm1531_vm14, %vm1530_vm15  ;;  %v591_v4 = vld [vmem:[%s10422_s30 + $0x668] sm:$0xff]  ;;  %v12755_v11 = vld [vmem:[%s15438_s5] ss:$0 sm:$0xff] }
 0x455   : > { %3172 = vperm.xlu2 %10156, %v2509_v21   ;;  %3169 = vperm.xlu1 %10155, %v2508_v49  }
 0x456   : > { %v7903_v2 = vmax.f32 %v7337_v33, 0.0  ;;  %6322 = vmatmul.bf16.gmra.mxu2 %v5967_v45  ;;  %1252 = vperm.xlu0 %10154, %v589_v57   ;;  %v7059_v59 = vpack.c.bf16 %v6820_v41, %v6819_v14  ;;  %v8132_v41 = vpack.c.bf16 %v7897_v23, %v7896_v15  ;;  %v590_v23 = vld [vmem:[%s10422_s30 + $0x660] sm:$0xff] }
 0x457   : > { %v12730_v40 = vpop.permute.xlu2 %3121 }
 0x458   : > { %7378 = vmatmul.bf16.gmra.mxu3 %v7059_v59  ;;  %v12734_v21 = vpop.permute.xlu1 %1189  ;;  %v12736_v33 = vpop.f32.mrf.mxu0  ;;  %v12738_v14 = vpack.c.bf16 %v7903_v2, %v7902_v30 }
 0x459   : > { %15833 = vst [vmem:[#allocation30_spill] sm:$0xff] %v12734_v21  ;;  %v5227_v49 = vpop.f32.mrf.mxu1  ;;  %v6283_v26 = vpop.f32.mrf.mxu2 }
 0x45a   : > { %v12743_v17 = vpop.permute.xlu0 %3106  ;;  %8274 = vmatpush.bf16.xpose.msrb.mxu2 %v8132_v41  ;;  %v6284_v57 = vadd.f32 %v12755_v11, %v6283_v26  ;;  %v5738_v2 = vmul.f32 %v5227_v49, %v12347_v63  ;;  %v593_v41 = vld [vmem:[%s10422_s30 + $0x678] sm:$0xff]  ;;  %v592_v26 = vld [vmem:[%s10422_s30 + $0x670] sm:$0xff]  ;;  %v15836_v63 = vmov 0 }
 0x45b   : > { %15834 = vst [vmem:[#allocation91_spill] sm:$0xff] %v12743_v17  ;;  %v7339_v6 = vpop.f32.mrf.mxu3  ;;  %9574 = vmatmul.msk.bf16.gmra.mxu0 %vm9573_vm2, %v15514_v8  ;;  %9844 = vmatmul.msk.bf16.gmra.mxu1 %vm9843_vm1, %v15514_v8  ;;  %v15839_v49 = vld [vmem:[#allocation73_spill] sm:$0xff] }
 0x45c   : > { %v7340_v59 = vadd.f32 %v12671_v43, %v7339_v6  ;;  %vm3435_vm6 = vcmp.eq.s32.totalorder %v10504_v1, %v15839_v49  ;;  %v15841_v6 = vld [vmem:[#allocation42_spill] sm:$0xff] }
 0x45d   : > { %3175 = vperm.xlu2 %10156, %v2510_v7   ;;  %1258 = vperm.xlu1 %10155, %v591_v4   ;;  %v2511_v4 = vld [vmem:[%s10540_s11 + $0x668] sm:$0xff]  ;;  %vm1532_vm8 = vcmp.eq.s32.totalorder %v10504_v1, %v15841_v6 }
 0x45e   : > { %1255 = vperm.xlu0 %10154, %v590_v23   ;;  %v6821_v23 = vmax.f32 %v6284_v57, 0.0  ;;  %v7904_v57 = vmax.f32 %v7340_v59, 0.0 }
 0x45f   : > { %v12750_v37 = vpop.permute.xlu2 %1210 }
 0x460   : > { %15835 = vst [vmem:[#allocation92_spill] sm:$0xff] %v12750_v37  ;;  %v3113_v45 = vpop.permute.xlu1 %3112  ;;  %v12758_v24 = vpop.f32.mrf.mxu0 }
 0x461   : > { %vm3513_vm3 = vcmp.eq.s32.totalorder %v10504_v1, %v3113_v45  ;;  %v5229_v15 = vpop.f32.mrf.mxu1  ;;  %v6285_v30 = vpop.f32.mrf.mxu2 }
 0x462   : > { %v5739_v5 = vmul.f32 %v5229_v15, %v12369_v20  ;;  %v6286_v58 = vadd.f32 %v12755_v11, %v6285_v30  ;;  %v3110_v42 = vpop.permute.xlu0 %3109  ;;  %8275 = vmatpush.bf16.xpose.msrb.mxu2 %v12568_v44  ;;  %v15840_v44 = vld [vmem:[#allocation74_spill] sm:$0xff] }
 0x463   : > { %vm3512_vm4 = vcmp.eq.s32.totalorder %v10504_v1, %v3110_v42  ;;  %v7341_v7 = vpop.f32.mrf.mxu3  ;;  %vm3434_vm7 = vcmp.eq.s32.totalorder %v10504_v1, %v15840_v44 }
 0x464   : > { %v5968_v17 = vpack.c.bf16 %v5739_v5, %v5738_v2  ;;  %v6822_v37 = vmax.f32 %v6286_v58, 0.0  ;;  %vm12772_vm5 = vmpackc.low %vm3513_vm3, %vm3512_vm4  ;;  %v7342_v20 = vadd.f32 %v12671_v43, %v7341_v7  ;;  %v15845_v5 = vld [vmem:[#allocation84_spill] sm:$0xff]  ;;  %v594_v7 = vld [vmem:[%s10422_s30 + $0x680] sm:$0xff] }
 0x465   : > { %v15837_v63 = vsel %vm12772_vm5, 4294967295, %v15836_v63  ;;  %1264 = vperm.xlu2 %10156, %v593_v41   ;;  %1261 = vperm.xlu1 %10155, %v592_v26   ;;  %vm12785_vm9 = vmpackc.low %vm3435_vm6, %vm3434_vm7  ;;  %vm1533_vm10 = vcmp.eq.s32.totalorder %v10504_v1, %v15845_v5  ;;  %v15846_v41 = vmov 0  ;;  %vm3516_vm6 = vcmp.eq.s32.totalorder %v10504_v1, %v12730_v40 }
 0x466   : > { %15838 = vst [vmem:[#allocation18_spill] sm:$0xff] %v15837_v63  ;;  %v7905_v15 = vmax.f32 %v7342_v20, 0.0  ;;  %6327 = vmatmul.bf16.gmra.mxu2 %v5968_v17  ;;  %3178 = vperm.xlu0 %10154, %v2511_v4   ;;  %v7060_v45 = vpack.c.bf16 %v6822_v37, %v6821_v23  ;;  %vm9575_vm11 = vmpackc.low %vm1533_vm10, %vm1532_vm8  ;;  %v2513_v4 = vld [vmem:[%s10540_s11 + $0x678] sm:$0xff] }
 0x467   : > { %v12783_v30 = vpop.permute.xlu2 %1213 }
 0x468   : > { %15842 = vst [vmem:[#allocation73_spill] sm:$0xff] %v12783_v30  ;;  %7383 = vmatmul.bf16.gmra.mxu3 %v7060_v45  ;;  %v3116_v58 = vpop.permute.xlu1 %3115  ;;  %v12791_v42 = vpop.f32.mrf.mxu0  ;;  %v12793_v59 = vpack.c.bf16 %v7905_v15, %v7904_v57 }
 0x469   : > { %vm3514_vm13 = vcmp.eq.s32.totalorder %v10504_v1, %v3116_v58  ;;  %v5232_v17 = vpop.f32.mrf.mxu1  ;;  %v6288_v37 = vpop.f32.mrf.mxu2 }
 0x46a   : > { %vm12798_vm14 = vmpackc.low %vm3515_vm12, %vm3514_vm13  ;;  %v12802_v26 = vpop.permute.xlu0 %1198  ;;  %8276 = vmatpush.bf16.xpose.msrb.mxu2 %v12525_v0  ;;  %v6289_v0 = vadd.f32 %v12755_v11, %v6288_v37  ;;  %v5740_v15 = vmul.f32 %v5232_v17, %v12392_v50  ;;  %v2514_v37 = vld [vmem:[%s10540_s11 + $0x680] sm:$0xff] }
 0x46b   : > { %v15847_v41 = vsel %vm12798_vm14, 4294967295, %v15846_v41  ;;  %15849 = vst [vmem:[#allocation42_spill] sm:$0xff] %v12802_v26  ;;  %v7344_v23 = vpop.f32.mrf.mxu3  ;;  %9576 = vmatmul.msk.bf16.gmra.mxu0 %vm9575_vm11, %v15514_v8  ;;  %9846 = vmatmul.msk.bf16.gmra.mxu1 %vm12785_vm9, %v15514_v8  ;;  %v15852_v50 = vld [vmem:[#allocation37_spill] sm:$0xff]  ;;  %v15902_v26 = vld [vmem:[#allocation40_spill] sm:$0xff] }
 0x46c   : > { %15848 = vst [vmem:[#allocation74_spill] sm:$0xff] %v15847_v41  ;;  %v7345_v45 = vadd.f32 %v12671_v43, %v7344_v23  ;;  %v6823_v41 = vmax.f32 %v6289_v0, 0.0  ;;  %vm3436_vm15 = vcmp.eq.s32.totalorder %v10504_v1, %v15852_v50  ;;  %v15853_v23 = vld [vmem:[#allocation43_spill] sm:$0xff] }
 0x46d   : > { %1267 = vperm.xlu2 %10156, %v594_v7   ;;  %3184 = vperm.xlu1 %10155, %v2513_v4   ;;  %v2515_v7 = vld [vmem:[%s10540_s11 + $0x688] sm:$0xff]  ;;  %vm1535_vm0 = vcmp.eq.s32.totalorder %v10504_v1, %v15853_v23 }
 0x46e   : > { %3181 = vperm.xlu0 %10154, %v2512_v27   ;;  %v595_v27 = vld [vmem:[%s10422_s30 + $0x688] sm:$0xff] }
 0x46f   : > { %v12812_v20 = vpop.permute.xlu2 %3136 }
 0x470   : > { %v12815_v49 = vpop.permute.xlu1 %1204  ;;  %v12817_v44 = vpop.f32.mrf.mxu0 }
 0x471   : > { %15850 = vst [vmem:[#allocation84_spill] sm:$0xff] %v12815_v49  ;;  %v5234_v6 = vpop.f32.mrf.mxu1  ;;  %v6290_v57 = vpop.f32.mrf.mxu2 }
 0x472   : > { %v5741_v2 = vmul.f32 %v5234_v6, %v12417_v12  ;;  %v6291_v5 = vadd.f32 %v12755_v11, %v6290_v57  ;;  %v12823_v58 = vpop.permute.xlu0 %1201  ;;  %8277 = vmatpush.bf16.xpose.msrb.mxu2 %v12485_v60  ;;  %v7906_v12 = vmax.f32 %v7345_v45, 0.0  ;;  %v15854_v6 = vld [vmem:[#allocation23_spill] sm:$0xff] }
 0x473   : > { %15851 = vst [vmem:[#allocation137_spill] sm:$0xff] %v12823_v58  ;;  %v7346_v4 = vpop.f32.mrf.mxu3  ;;  %vm3437_vm1 = vcmp.eq.s32.totalorder %v10504_v1, %v15854_v6  ;;  %v15877_v58 = vld [vmem:[#allocation79_spill] sm:$0xff] }
 0x474   : > { %v5969_v63 = vpack.c.bf16 %v5741_v2, %v5740_v15  ;;  %v6824_v30 = vmax.f32 %v6291_v5, 0.0  ;;  %v7347_v49 = vadd.f32 %v12671_v43, %v7346_v4  ;;  %vm9847_vm2 = vmpackc.low %vm3437_vm1, %vm3436_vm15  ;;  %v2516_v2 = vld [vmem:[%s10540_s11 + $0x690] sm:$0xff]  ;;  %v597_v5 = vld [vmem:[%s10422_s30 + $0x698] sm:$0xff]  ;;  %v15857_v4 = vmov 0 }
 0x475   : > { %3190 = vperm.xlu2 %10156, %v2515_v7   ;;  %3187 = vperm.xlu1 %10155, %v2514_v37   ;;  %v596_v37 = vld [vmem:[%s10422_s30 + $0x690] sm:$0xff] }
 0x476   : > { %v7907_v17 = vmax.f32 %v7347_v49, 0.0  ;;  %6332 = vmatmul.bf16.gmra.mxu2 %v5969_v63  ;;  %1270 = vperm.xlu0 %10154, %v595_v27   ;;  %v7061_v60 = vpack.c.bf16 %v6824_v30, %v6823_v41  ;;  %v15856_v63 = vld [vmem:[#allocation87_spill] sm:$0xff] }
 0x477   : > { %v12834_v0 = vpop.permute.xlu2 %3139  ;;  %vm1534_vm3 = vcmp.eq.s32.totalorder %v10504_v1, %v15856_v63 }
 0x478   : > { %7388 = vmatmul.bf16.gmra.mxu3 %v7061_v60  ;;  %v12838_v57 = vpop.permute.xlu1 %1207  ;;  %v12840_v15 = vpop.f32.mrf.mxu0  ;;  %v12842_v49 = vpack.c.bf16 %v7907_v17, %v7906_v12  ;;  %vm9577_vm4 = vmpackc.low %vm1535_vm0, %vm1534_vm3  ;;  %vm3521_vm3 = vcmp.eq.s32.totalorder %v10504_v1, %v12812_v20  ;;  %v2518_v20 = vld [vmem:[%s10540_s11 + $0x6a0] sm:$0xff] }
 0x479   : > { %15855 = vst [vmem:[#allocation37_spill] sm:$0xff] %v12838_v57  ;;  %v5237_v30 = vpop.f32.mrf.mxu1  ;;  %v6293_v41 = vpop.f32.mrf.mxu2 }
 0x47a   : > { %v3125_v45 = vpop.permute.xlu0 %3124  ;;  %8278 = vmatpush.bf16.xpose.msrb.mxu2 %v12441_v25  ;;  %v6294_v40 = vadd.f32 %v12755_v11, %v6293_v41  ;;  %v5742_v60 = vmul.f32 %v5237_v30, %v12439_v56  ;;  %v599_v41 = vld [vmem:[%s10422_s30 + $0x6a8] sm:$0xff]  ;;  %v15861_v56 = vmov 0 }
 0x47b   : > { %vm3517_vm7 = vcmp.eq.s32.totalorder %v10504_v1, %v3125_v45  ;;  %v7349_v7 = vpop.f32.mrf.mxu3  ;;  %9578 = vmatmul.msk.bf16.gmra.mxu0 %vm9577_vm4, %v15514_v8  ;;  %9848 = vmatmul.msk.bf16.gmra.mxu1 %vm9847_vm2, %v15514_v8  ;;  %v15864_v30 = vld [vmem:[#allocation38_spill] sm:$0xff] }
 0x47c   : > { %vm12855_vm8 = vmpackc.low %vm3517_vm7, %vm3516_vm6  ;;  %v7350_v23 = vadd.f32 %v12671_v43, %v7349_v7  ;;  %vm3439_vm12 = vcmp.eq.s32.totalorder %v10504_v1, %v15864_v30  ;;  %v15866_v7 = vld [vmem:[#allocation97_spill] sm:$0xff]  ;;  %vm3441_vm7 = vcmp.eq.s32.totalorder %v10504_v1, %v15877_v58 }
 0x47d   : > { %v15858_v4 = vsel %vm12855_vm8, 4294967295, %v15857_v4  ;;  %3193 = vperm.xlu2 %10156, %v2516_v2   ;;  %1276 = vperm.xlu1 %10155, %v597_v5   ;;  %v598_v2 = vld [vmem:[%s10422_s30 + $0x6a0] sm:$0xff]  ;;  %vm1536_vm15 = vcmp.eq.s32.totalorder %v10504_v1, %v15866_v7 }
 0x47e   : > { %15859 = vst [vmem:[#allocation43_spill] sm:$0xff] %v15858_v4  ;;  %1273 = vperm.xlu0 %10154, %v596_v37   ;;  %v2517_v37 = vld [vmem:[%s10540_s11 + $0x698] sm:$0xff]  ;;  %v6825_v4 = vmax.f32 %v6294_v40, 0.0  ;;  %v7908_v40 = vmax.f32 %v7350_v23, 0.0  ;;  %v602_v58 = vld [vmem:[%s10422_s30 + $0x6c0] sm:$0xff] }
 0x47f   : > { %v12859_v25 = vpop.permute.xlu2 %1228 }
 0x480   : > { %15860 = vst [vmem:[#allocation23_spill] sm:$0xff] %v12859_v25  ;;  %v3131_v27 = vpop.permute.xlu1 %3130  ;;  %v12862_v50 = vpop.f32.mrf.mxu0 }
 0x481   : > { %vm3519_vm9 = vcmp.eq.s32.totalorder %v10504_v1, %v3131_v27  ;;  %v5239_v12 = vpop.f32.mrf.mxu1  ;;  %v6295_v17 = vpop.f32.mrf.mxu2 }
 0x482   : > { %v5743_v6 = vmul.f32 %v5239_v12, %v12459_v62  ;;  %v6296_v63 = vadd.f32 %v12755_v11, %v6295_v17  ;;  %v3128_v45 = vpop.permute.xlu0 %3127  ;;  %8279 = vmatpush.bf16.xpose.msrb.mxu2 %v12394_v31  ;;  %v15865_v31 = vld [vmem:[#allocation96_spill] sm:$0xff]  ;;  %v15867_v17 = vld [vmem:[#allocation34_spill] sm:$0xff] }
 0x483   : > { %vm3518_vm10 = vcmp.eq.s32.totalorder %v10504_v1, %v3128_v45  ;;  %v7351_v5 = vpop.f32.mrf.mxu3  ;;  %vm1537_vm13 = vcmp.eq.s32.totalorder %v10504_v1, %v15865_v31  ;;  %vm3438_vm0 = vcmp.eq.s32.totalorder %v10504_v1, %v15867_v17 }
 0x484   : > { %v5970_v25 = vpack.c.bf16 %v5743_v6, %v5742_v60  ;;  %v6826_v57 = vmax.f32 %v6296_v63, 0.0  ;;  %vm12876_vm11 = vmpackc.low %vm3519_vm9, %vm3518_vm10  ;;  %v7352_v62 = vadd.f32 %v12671_v43, %v7351_v5  ;;  %v2519_v5 = vld [vmem:[%s10540_s11 + $0x6a8] sm:$0xff] }
 0x485   : > { %v15862_v56 = vsel %vm12876_vm11, 4294967295, %v15861_v56  ;;  %1282 = vperm.xlu2 %10156, %v599_v41   ;;  %1279 = vperm.xlu1 %10155, %v598_v2   ;;  %vm12891_vm1 = vmpackc.low %vm3439_vm12, %vm3438_vm0  ;;  %v600_v2 = vld [vmem:[%s10422_s30 + $0x6b0] sm:$0xff]  ;;  %vm3522_vm0 = vcmp.eq.s32.totalorder %v10504_v1, %v12834_v0 }
 0x486   : > { %15863 = vst [vmem:[#allocation87_spill] sm:$0xff] %v15862_v56  ;;  %v7909_v12 = vmax.f32 %v7352_v62, 0.0  ;;  %6337 = vmatmul.bf16.gmra.mxu2 %v5970_v25  ;;  %3196 = vperm.xlu0 %10154, %v2517_v37   ;;  %v7062_v27 = vpack.c.bf16 %v6826_v57, %v6825_v4  ;;  %vm9579_vm2 = vmpackc.low %vm1537_vm13, %vm1536_vm15  ;;  %v15871_v25 = vmov 0 }
 0x487   : > { %v12889_v60 = vpop.permute.xlu2 %1231 }
 0x488   : > { %15868 = vst [vmem:[#allocation38_spill] sm:$0xff] %v12889_v60  ;;  %7393 = vmatmul.bf16.gmra.mxu3 %v7062_v27  ;;  %v3134_v63 = vpop.permute.xlu1 %3133  ;;  %v12895_v45 = vpop.f32.mrf.mxu0  ;;  %v12897_v23 = vpack.c.bf16 %v7909_v12, %v7908_v40 }
 0x489   : > { %vm3520_vm4 = vcmp.eq.s32.totalorder %v10504_v1, %v3134_v63  ;;  %v5242_v57 = vpop.f32.mrf.mxu1  ;;  %v6298_v4 = vpop.f32.mrf.mxu2 }
 0x48a   : > { %vm12905_vm6 = vmpackc.low %vm3521_vm3, %vm3520_vm4  ;;  %v12909_v41 = vpop.permute.xlu0 %1216  ;;  %v6299_v30 = vadd.f32 %v12755_v11, %v6298_v4  ;;  %v5744_v27 = vmul.f32 %v5242_v57, %v12483_v51  ;;  %v601_v4 = vld [vmem:[%s10422_s30 + $0x6b8] sm:$0xff] }
 0x48b   : > { %v15872_v25 = vsel %vm12905_vm6, 4294967295, %v15871_v25  ;;  %15874 = vst [vmem:[#allocation97_spill] sm:$0xff] %v12909_v41  ;;  %v7354_v37 = vpop.f32.mrf.mxu3  ;;  %9580 = vmatmul.msk.bf16.gmra.mxu0 %vm9579_vm2, %v15514_v8  ;;  %9850 = vmatmul.msk.bf16.gmra.mxu1 %vm12891_vm1, %v15514_v8  ;;  %v15878_v51 = vld [vmem:[#allocation80_spill] sm:$0xff] }
 0x48c   : > { %15873 = vst [vmem:[#allocation96_spill] sm:$0xff] %v15872_v25  ;;  %v7355_v17 = vadd.f32 %v12671_v43, %v7354_v37  ;;  %v6827_v56 = vmax.f32 %v6299_v30, 0.0  ;;  %vm3440_vm9 = vcmp.eq.s32.totalorder %v10504_v1, %v15878_v51  ;;  %v15879_v30 = vld [vmem:[#allocation44_spill] sm:$0xff] }
 0x48d   : > { %1285 = vperm.xlu2 %10156, %v600_v2   ;;  %3202 = vperm.xlu1 %10155, %v2519_v5   ;;  %v2521_v5 = vld [vmem:[%s10540_s11 + $0x6b8] sm:$0xff]  ;;  %vm1538_vm10 = vcmp.eq.s32.totalorder %v10504_v1, %v15879_v30  ;;  %vm9851_vm12 = vmpackc.low %vm3441_vm7, %vm3440_vm9 }
 0x48e   : > { %3199 = vperm.xlu0 %10154, %v2518_v20   ;;  %v2520_v20 = vld [vmem:[%s10540_s11 + $0x6b0] sm:$0xff] }
 0x48f   : > { %v12918_v62 = vpop.permute.xlu2 %3154 }
 0x490   : > { %v12921_v31 = vpop.permute.xlu1 %1222  ;;  %v12923_v7 = vpop.f32.mrf.mxu0 }
 0x491   : > { %15875 = vst [vmem:[#allocation34_spill] sm:$0xff] %v12921_v31  ;;  %v5244_v40 = vpop.f32.mrf.mxu1  ;;  %v6300_v12 = vpop.f32.mrf.mxu2 }
 0x492   : > { %v5745_v6 = vmul.f32 %v5244_v40, %v12501_v47  ;;  %v6301_v63 = vadd.f32 %v12755_v11, %v6300_v12  ;;  %v12929_v2 = vpop.permute.xlu0 %1219  ;;  %v7910_v47 = vmax.f32 %v7355_v17, 0.0  ;;  %v2522_v17 = vld [vmem:[%s10540_s11 + $0x6c0] sm:$0xff] }
 0x493   : > { %15876 = vst [vmem:[#allocation138_spill] sm:$0xff] %v12929_v2  ;;  %v7356_v25 = vpop.f32.mrf.mxu3  ;;  %v15886_v2 = vmov 0 }
 0x494   : > { %v5971_v60 = vpack.c.bf16 %v5745_v6, %v5744_v27  ;;  %v6828_v31 = vmax.f32 %v6301_v63, 0.0  ;;  %v7357_v41 = vadd.f32 %v12671_v43, %v7356_v25  ;;  %v603_v6 = vld [vmem:[%s10422_s30 + $0x6c8] sm:$0xff] }
 0x495   : > { %3208 = vperm.xlu2 %10156, %v2521_v5   ;;  %3205 = vperm.xlu1 %10155, %v2520_v20   ;;  %v15882_v5 = vmov 0 }
 0x496   : > { %v7911_v57 = vmax.f32 %v7357_v41, 0.0  ;;  %6342 = vmatmul.bf16.gmra.mxu2 %v5971_v60  ;;  %1288 = vperm.xlu0 %10154, %v601_v4   ;;  %v7063_v37 = vpack.c.bf16 %v6828_v31, %v6827_v56  ;;  %v15881_v60 = vld [vmem:[#allocation93_spill] sm:$0xff] }
 0x497   : > { %v12941_v40 = vpop.permute.xlu2 %3157  ;;  %vm1539_vm13 = vcmp.eq.s32.totalorder %v10504_v1, %v15881_v60 }
 0x498   : > { %7398 = vmatmul.bf16.gmra.mxu3 %v7063_v37  ;;  %v12943_v25 = vpop.permute.xlu1 %1225  ;;  %v12945_v12 = vpop.f32.mrf.mxu0  ;;  %v12947_v27 = vpack.c.bf16 %v7911_v57, %v7910_v47  ;;  %vm9581_vm15 = vmpackc.low %vm1539_vm13, %vm1538_vm10 }
 0x499   : > { %15880 = vst [vmem:[#allocation79_spill] sm:$0xff] %v12943_v25  ;;  %v5247_v56 = vpop.f32.mrf.mxu1  ;;  %v6303_v41 = vpop.f32.mrf.mxu2 }
 0x49a   : > { %v3143_v31 = vpop.permute.xlu0 %3142  ;;  %v6304_v20 = vadd.f32 %v12755_v11, %v6303_v41  ;;  %v5746_v37 = vmul.f32 %v5247_v56, %v12523_v54  ;;  %v2523_v41 = vld [vmem:[%s10540_s11 + $0x6c8] sm:$0xff] }
 0x49b   : > { %vm3523_vm1 = vcmp.eq.s32.totalorder %v10504_v1, %v3143_v31  ;;  %v12959_v63 = vpop.f32.mrf.mxu3  ;;  %9582 = vmatmul.msk.bf16.gmra.mxu0 %vm9581_vm15, %v15514_v8  ;;  %9852 = vmatmul.msk.bf16.gmra.mxu1 %vm9851_vm12, %v15514_v8  ;;  %v15889_v54 = vld [vmem:[#allocation82_spill] sm:$0xff] }
 0x49c   : > { %vm12964_vm2 = vmpackc.low %vm3523_vm1, %vm3522_vm0  ;;  %vm3442_vm9 = vcmp.eq.s32.totalorder %v10504_v1, %v15889_v54  ;;  %vm3527_vm1 = vcmp.eq.s32.totalorder %v10504_v1, %v12918_v62  ;;  %v2524_v62 = vld [vmem:[%s10540_s11 + $0x6d0] sm:$0xff] }
 0x49d   : > { %v15883_v5 = vsel %vm12964_vm2, 4294967295, %v15882_v5  ;;  %3211 = vperm.xlu2 %10156, %v2522_v17   ;;  %1294 = vperm.xlu1 %10155, %v603_v6   ;;  %v605_v17 = vld [vmem:[%s10422_s30 + $0x6d8] sm:$0xff]  ;;  %v604_v6 = vld [vmem:[%s10422_s30 + $0x6d0] sm:$0xff] }
 0x49e   : > { %15884 = vst [vmem:[#allocation80_spill] sm:$0xff] %v15883_v5  ;;  %1291 = vperm.xlu0 %10154, %v602_v58   ;;  %v6829_v5 = vmax.f32 %v6304_v20, 0.0  ;;  %v15891_v20 = vld [vmem:[#allocation75_spill] sm:$0xff] }
 0x49f   : > { %v12968_v0 = vpop.permute.xlu2 %1246  ;;  %vm3443_vm12 = vcmp.eq.s32.totalorder %v10504_v1, %v15891_v20 }
 0x4a0   : > { %15885 = vst [vmem:[#allocation44_spill] sm:$0xff] %v12968_v0  ;;  %v3149_v4 = vpop.permute.xlu1 %3148  ;;  %v12971_v51 = vpop.f32.mrf.mxu0  ;;  %vm12997_vm13 = vmpackc.low %vm3443_vm12, %vm3442_vm9  ;;  %vm3445_vm9 = vcmp.eq.s32.totalorder %v10504_v1, %v15902_v26  ;;  %vm1542_vm12 = vcmp.eq.s32.totalorder %v10504_v1, %v12016_v52 }
 0x4a1   : > { %vm3525_vm3 = vcmp.eq.s32.totalorder %v10504_v1, %v3149_v4  ;;  %v5249_v47 = vpop.f32.mrf.mxu1  ;;  %v6305_v57 = vpop.f32.mrf.mxu2 }
 0x4a2   : > { %v5747_v30 = vmul.f32 %v5249_v47, %v12545_v48  ;;  %v6306_v60 = vadd.f32 %v12755_v11, %v6305_v57  ;;  %v3146_v31 = vpop.permute.xlu0 %3145  ;;  %v15890_v48 = vld [vmem:[#allocation7_spill] sm:$0xff]  ;;  %v15895_v57 = vld [vmem:[#allocation48_spill] sm:$0xff] }
 0x4a3   : > { %vm3524_vm4 = vcmp.eq.s32.totalorder %v10504_v1, %v3146_v31  ;;  %v12980_v58 = vpop.f32.mrf.mxu3  ;;  %vm1541_vm10 = vcmp.eq.s32.totalorder %v10504_v1, %v15890_v48  ;;  %vm1540_vm15 = vcmp.eq.s32.totalorder %v10504_v1, %v15895_v57  ;;  %v606_v31 = vld [vmem:[%s10422_s30 + $0x6e0] sm:$0xff] }
 0x4a4   : > { %v5972_v0 = vpack.c.bf16 %v5747_v30, %v5746_v37  ;;  %v6830_v25 = vmax.f32 %v6306_v60, 0.0  ;;  %vm12985_vm7 = vmpackc.low %vm3525_vm3, %vm3524_vm4  ;;  %v15896_v30 = vmov 0 }
 0x4a5   : > { %v15887_v2 = vsel %vm12985_vm7, 4294967295, %v15886_v2  ;;  %1300 = vperm.xlu2 %10156, %v605_v17   ;;  %1297 = vperm.xlu1 %10155, %v604_v6   ;;  %vm9583_vm0 = vmpackc.low %vm1541_vm10, %vm1540_vm15  ;;  %v2525_v17 = vld [vmem:[%s10540_s11 + $0x6d8] sm:$0xff] }
 0x4a6   : > { %15888 = vst [vmem:[#allocation93_spill] sm:$0xff] %v15887_v2  ;;  %6347 = vmatmul.bf16.gmra.mxu2 %v5972_v0  ;;  %3214 = vperm.xlu0 %10154, %v2523_v41   ;;  %v7064_v56 = vpack.c.bf16 %v6830_v25, %v6829_v5 }
 0x4a7   : > { %v12995_v4 = vpop.permute.xlu2 %1249 }
 0x4a8   : > { %15892 = vst [vmem:[#allocation82_spill] sm:$0xff] %v12995_v4  ;;  %7403 = vmatmul.bf16.gmra.mxu3 %v7064_v56  ;;  %v3152_v37 = vpop.permute.xlu1 %3151  ;;  %v13003_v0 = vpop.f32.mrf.mxu0  ;;  %v607_v4 = vld [vmem:[%s10422_s30 + $0x6e8] sm:$0xff] }
 0x4a9   : > { %vm3526_vm3 = vcmp.eq.s32.totalorder %v10504_v1, %v3152_v37  ;;  %v5252_v25 = vpop.f32.mrf.mxu1  ;;  %v6308_v5 = vpop.f32.mrf.mxu2 }
 0x4aa   : > { %vm13008_vm4 = vmpackc.low %vm3527_vm1, %vm3526_vm3  ;;  %v13012_v60 = vpop.permute.xlu0 %1234  ;;  %v6309_v54 = vadd.f32 %v12755_v11, %v6308_v5  ;;  %v5748_v47 = vmul.f32 %v5252_v25, %v12566_v19  ;;  %vm3528_vm1 = vcmp.eq.s32.totalorder %v10504_v1, %v12941_v40 }
 0x4ab   : > { %v15897_v30 = vsel %vm13008_vm4, 4294967295, %v15896_v30  ;;  %15899 = vst [vmem:[#allocation75_spill] sm:$0xff] %v13012_v60  ;;  %v13016_v6 = vpop.f32.mrf.mxu3  ;;  %9584 = vmatmul.msk.bf16.gmra.mxu0 %vm9583_vm0, %v15514_v8  ;;  %9854 = vmatmul.msk.bf16.gmra.mxu1 %vm12997_vm13, %v15514_v8 }
 0x4ac   : > { %15898 = vst [vmem:[#allocation7_spill] sm:$0xff] %v15897_v30  ;;  %v6831_v5 = vmax.f32 %v6309_v54, 0.0  ;;  %v15904_v54 = vld [vmem:[#allocation77_spill] sm:$0xff] }
 0x4ad   : > { %1303 = vperm.xlu2 %10156, %v606_v31   ;;  %3220 = vperm.xlu1 %10155, %v2525_v17   ;;  %v2527_v17 = vld [vmem:[%s10540_s11 + $0x6e8] sm:$0xff]  ;;  %vm3444_vm13 = vcmp.eq.s32.totalorder %v10504_v1, %v15904_v54 }
 0x4ae   : > { %3217 = vperm.xlu0 %10154, %v2524_v62   ;;  %v2526_v62 = vld [vmem:[%s10540_s11 + $0x6e0] sm:$0xff]  ;;  %vm9855_vm15 = vmpackc.low %vm3445_vm9, %vm3444_vm13 }
 0x4af   : > { %v13023_v41 = vpop.permute.xlu2 %3172 }
 0x4b0   : > { %v13026_v48 = vpop.permute.xlu1 %1240  ;;  %v13028_v56 = vpop.f32.mrf.mxu0 }
 0x4b1   : > { %15900 = vst [vmem:[#allocation48_spill] sm:$0xff] %v13026_v48  ;;  %v5254_v20 = vpop.f32.mrf.mxu1  ;;  %v6310_v57 = vpop.f32.mrf.mxu2 }
 0x4b2   : > { %v5749_v37 = vmul.f32 %v5254_v20, %v12587_v35  ;;  %v6311_v30 = vadd.f32 %v12755_v11, %v6310_v57  ;;  %v13033_v31 = vpop.permute.xlu0 %1237  ;;  %v15903_v35 = vld [vmem:[#allocation102_spill] sm:$0xff]  ;;  %v2528_v20 = vld [vmem:[%s10540_s11 + $0x6f0] sm:$0xff]  ;;  %v609_v57 = vld [vmem:[%s10422_s30 + $0x6f8] sm:$0xff] }
 0x4b3   : > { %15901 = vst [vmem:[#allocation139_spill] sm:$0xff] %v13033_v31  ;;  %v13037_v2 = vpop.f32.mrf.mxu3  ;;  %vm1543_vm10 = vcmp.eq.s32.totalorder %v10504_v1, %v15903_v35 }
 0x4b4   : > { %v5973_v60 = vpack.c.bf16 %v5749_v37, %v5748_v47  ;;  %v6832_v48 = vmax.f32 %v6311_v30, 0.0  ;;  %vm9585_vm0 = vmpackc.low %vm1543_vm10, %vm1542_vm12  ;;  %v608_v47 = vld [vmem:[%s10422_s30 + $0x6f0] sm:$0xff]  ;;  %v15906_v37 = vmov 0 }
 0x4b5   : > { %3226 = vperm.xlu2 %10156, %v2527_v17   ;;  %3223 = vperm.xlu1 %10155, %v2526_v62  }
 0x4b6   : > { %6352 = vmatmul.bf16.gmra.mxu2 %v5973_v60  ;;  %1306 = vperm.xlu0 %10154, %v607_v4   ;;  %v7065_v19 = vpack.c.bf16 %v6832_v48, %v6831_v5 }
 0x4b7   : > { %v13046_v25 = vpop.permute.xlu2 %3175 }
 0x4b8   : > { %7408 = vmatmul.bf16.gmra.mxu3 %v7065_v19  ;;  %v13050_v30 = vpop.permute.xlu1 %1243  ;;  %v13052_v26 = vpop.f32.mrf.mxu0 }
 0x4b9   : > { %15905 = vst [vmem:[#allocation40_spill] sm:$0xff] %v13050_v30  ;;  %v5257_v4 = vpop.f32.mrf.mxu1  ;;  %v6313_v60 = vpop.f32.mrf.mxu2  ;;  %v2529_v30 = vld [vmem:[%s10540_s11 + $0x6f8] sm:$0xff] }
 0x4ba   : > { %v3161_v48 = vpop.permute.xlu0 %3160  ;;  %v6314_v40 = vadd.f32 %v12755_v11, %v6313_v60  ;;  %v5750_v54 = vmul.f32 %v5257_v4, %v12610_v39  ;;  %v15910_v39 = vmov 0  ;;  %v15913_v4 = vld [vmem:[#allocation85_spill] sm:$0xff] }
 0x4bb   : > { %vm3529_vm3 = vcmp.eq.s32.totalorder %v10504_v1, %v3161_v48  ;;  %v7369_v52 = vpop.f32.mrf.mxu3  ;;  %9586 = vmatmul.msk.bf16.gmra.mxu0 %vm9585_vm0, %v15514_v8  ;;  %9856 = vmatmul.msk.bf16.gmra.mxu1 %vm9855_vm15, %v15514_v8  ;;  %vm3447_vm13 = vcmp.eq.s32.totalorder %v10504_v1, %v15913_v4  ;;  %vm1544_vm0 = vcmp.eq.s32.totalorder %v10504_v1, %v12034_v10 }
 0x4bc   : > { %vm13062_vm4 = vmpackc.low %vm3529_vm3, %vm3528_vm1  ;;  %v7370_v48 = vadd.f32 %v12671_v43, %v7369_v52  ;;  %v6833_v31 = vmax.f32 %v6314_v40, 0.0  ;;  %v15914_v52 = vld [vmem:[#allocation86_spill] sm:$0xff]  ;;  %v7362_v4 = vadd.f32 %v12671_v43, %v12980_v58 }
 0x4bd   : > { %v15907_v37 = vsel %vm13062_vm4, 4294967295, %v15906_v37  ;;  %3229 = vperm.xlu2 %10156, %v2528_v20   ;;  %1312 = vperm.xlu1 %10155, %v609_v57   ;;  %vm3446_vm15 = vcmp.eq.s32.totalorder %v10504_v1, %v15914_v52 }
 0x4be   : > { %15908 = vst [vmem:[#allocation102_spill] sm:$0xff] %v15907_v37  ;;  %1309 = vperm.xlu0 %10154, %v608_v47   ;;  %v611_v37 = vld [vmem:[%s10422_s30 + $0x708] sm:$0xff]  ;;  %v7916_v40 = vmax.f32 %v7370_v48, 0.0  ;;  %vm13095_vm1 = vmpackc.low %vm3447_vm13, %vm3446_vm15  ;;  %v15919_v48 = vmov 0 }
 0x4bf   : > { %v13066_v17 = vpop.permute.xlu2 %1264 }
 0x4c0   : > { %15909 = vst [vmem:[#allocation77_spill] sm:$0xff] %v13066_v17  ;;  %v3167_v62 = vpop.permute.xlu1 %3166  ;;  %v13069_v5 = vpop.f32.mrf.mxu0  ;;  %v610_v17 = vld [vmem:[%s10422_s30 + $0x700] sm:$0xff] }
 0x4c1   : > { %vm3531_vm9 = vcmp.eq.s32.totalorder %v10504_v1, %v3167_v62  ;;  %v5259_v19 = vpop.f32.mrf.mxu1  ;;  %v6315_v35 = vpop.f32.mrf.mxu2 }
 0x4c2   : > { %v5751_v20 = vmul.f32 %v5259_v19, %v12627_v16  ;;  %v6316_v57 = vadd.f32 %v12755_v11, %v6315_v35  ;;  %v3164_v47 = vpop.permute.xlu0 %3163 }
 0x4c3   : > { %vm3530_vm10 = vcmp.eq.s32.totalorder %v10504_v1, %v3164_v47  ;;  %v7371_v60 = vpop.f32.mrf.mxu3  ;;  %v2531_v47 = vld [vmem:[%s10540_s11 + $0x708] sm:$0xff] }
 0x4c4   : > { %v5974_v21 = vpack.c.bf16 %v5751_v20, %v5750_v54  ;;  %v6834_v46 = vmax.f32 %v6316_v57, 0.0  ;;  %vm13082_vm12 = vmpackc.low %vm3531_vm9, %vm3530_vm10  ;;  %v7372_v16 = vadd.f32 %v12671_v43, %v7371_v60  ;;  %v15918_v20 = vld [vmem:[#allocation98_spill] sm:$0xff]  ;;  %vm3533_vm10 = vcmp.eq.s32.totalorder %v10504_v1, %v13023_v41  ;;  %v612_v57 = vld [vmem:[%s10422_s30 + $0x710] sm:$0xff] }
 0x4c5   : > { %v15911_v39 = vsel %vm13082_vm12, 4294967295, %v15910_v39  ;;  %1318 = vperm.xlu2 %10156, %v611_v37   ;;  %1315 = vperm.xlu1 %10155, %v610_v17   ;;  %vm1545_vm3 = vcmp.eq.s32.totalorder %v10504_v1, %v15918_v20  ;;  %v7367_v37 = vadd.f32 %v12671_v43, %v13037_v2  ;;  %v2530_v41 = vld [vmem:[%s10540_s11 + $0x700] sm:$0xff]  ;;  %v7360_v20 = vadd.f32 %v12671_v43, %v12959_v63 }
 0x4c6   : > { %15912 = vst [vmem:[#allocation140_spill] sm:$0xff] %v15911_v39  ;;  %v7917_v19 = vmax.f32 %v7372_v16, 0.0  ;;  %6357 = vmatmul.bf16.gmra.mxu2 %v5974_v21  ;;  %3232 = vperm.xlu0 %10154, %v2529_v30   ;;  %v7066_v62 = vpack.c.bf16 %v6834_v46, %v6833_v31  ;;  %vm9587_vm9 = vmpackc.low %vm1545_vm3, %vm1544_vm0  ;;  %v7365_v30 = vadd.f32 %v12671_v43, %v13016_v6 }
 0x4c7   : > { %v13093_v35 = vpop.permute.xlu2 %1267  ;;  %v7915_v16 = vmax.f32 %v7367_v37, 0.0 }
 0x4c8   : > { %15915 = vst [vmem:[#allocation85_spill] sm:$0xff] %v13093_v35  ;;  %7413 = vmatmul.bf16.gmra.mxu3 %v7066_v62  ;;  %v3170_v10 = vpop.permute.xlu1 %3169  ;;  %v13103_v17 = vpop.f32.mrf.mxu0  ;;  %v8142_v46 = vpack.c.bf16 %v7917_v19, %v7916_v40  ;;  %v7914_v6 = vmax.f32 %v7365_v30, 0.0 }
 0x4c9   : > { %vm3532_vm13 = vcmp.eq.s32.totalorder %v10504_v1, %v3170_v10  ;;  %v5262_v21 = vpop.f32.mrf.mxu1  ;;  %v6318_v31 = vpop.f32.mrf.mxu2 }
 0x4ca   : > { %vm13110_vm15 = vmpackc.low %vm3533_vm10, %vm3532_vm13  ;;  %v13114_v2 = vpop.permute.xlu0 %1252  ;;  %8285 = vmatpush.bf16.xpose.msrb.mxu3 %v8142_v46  ;;  %v6319_v40 = vadd.f32 %v12755_v11, %v6318_v31  ;;  %v8141_v54 = vpack.c.bf16 %v7915_v16, %v7914_v6  ;;  %v5752_v46 = vmul.f32 %v5262_v21, %v12646_v32  ;;  %v613_v6 = vld [vmem:[%s10422_s30 + $0x718] sm:$0xff] }
 0x4cb   : > { %v15920_v48 = vsel %vm13110_vm15, 4294967295, %v15919_v48  ;;  %v7374_v60 = vpop.f32.mrf.mxu3  ;;  %9588 = vmatmul.msk.bf16.gmra.mxu0 %vm9587_vm9, %v15514_v8  ;;  %9858 = vmatmul.msk.bf16.gmra.mxu1 %vm13095_vm1, %v15514_v8  ;;  %v15923_v32 = vld [vmem:[#allocation88_spill] sm:$0xff]  ;;  %vm1547_vm1 = vcmp.eq.s32.totalorder %v10504_v1, %v12086_v18  ;;  %v15925_v18 = vld [vmem:[#allocation50_spill] sm:$0xff]  ;;  %vm3534_vm15 = vcmp.eq.s32.totalorder %v10504_v1, %v13046_v25 }
 0x4cc   : > { %15921 = vst [vmem:[#allocation86_spill] sm:$0xff] %v15920_v48  ;;  %v7375_v58 = vadd.f32 %v12671_v43, %v7374_v60  ;;  %v7913_v48 = vmax.f32 %v7362_v4, 0.0  ;;  %v6835_v39 = vmax.f32 %v6319_v40, 0.0  ;;  %vm3448_vm0 = vcmp.eq.s32.totalorder %v10504_v1, %v15923_v32  ;;  %v15924_v40 = vld [vmem:[#allocation83_spill] sm:$0xff] }
 0x4cd   : > { %1321 = vperm.xlu2 %10156, %v612_v57   ;;  %3238 = vperm.xlu1 %10155, %v2531_v47   ;;  %v2533_v47 = vld [vmem:[%s10540_s11 + $0x718] sm:$0xff]  ;;  %vm3449_vm3 = vcmp.eq.s32.totalorder %v10504_v1, %v15924_v40  ;;  %vm1546_vm10 = vcmp.eq.s32.totalorder %v10504_v1, %v15925_v18  ;;  %v616_v18 = vld [vmem:[%s10422_s30 + $0x730] sm:$0xff] }
 0x4ce   : > { %3235 = vperm.xlu0 %10154, %v2530_v41   ;;  %v2532_v41 = vld [vmem:[%s10540_s11 + $0x710] sm:$0xff]  ;;  %v7918_v21 = vmax.f32 %v7375_v58, 0.0  ;;  %vm9859_vm9 = vmpackc.low %vm3449_vm3, %vm3448_vm0  ;;  %v615_v58 = vld [vmem:[%s10422_s30 + $0x728] sm:$0xff] }
 0x4cf   : > { %v13125_v52 = vpop.permute.xlu2 %3190  ;;  %vm9589_vm13 = vmpackc.low %vm1547_vm1, %vm1546_vm10  ;;  %vm1548_vm10 = vcmp.eq.s32.totalorder %v10504_v1, %v12103_v38 }
 0x4d0   : > { %v13128_v19 = vpop.permute.xlu1 %1258  ;;  %v13130_v62 = vpop.f32.mrf.mxu0 }
 0x4d1   : > { %15922 = vst [vmem:[#allocation98_spill] sm:$0xff] %v13128_v19  ;;  %v5264_v37 = vpop.f32.mrf.mxu1  ;;  %v6320_v10 = vpop.f32.mrf.mxu2 }
 0x4d2   : > { %v5753_v30 = vmul.f32 %v5264_v37, %v12663_v61  ;;  %v6321_v57 = vadd.f32 %v12755_v11, %v6320_v10  ;;  %v13138_v31 = vpop.permute.xlu0 %1255  ;;  %8286 = vmatpush.bf16.xpose.msrb.mxu3 %v8141_v54  ;;  %v7912_v61 = vmax.f32 %v7360_v20, 0.0 }
 0x4d3   : > { %v7376_v16 = vpop.f32.mrf.mxu3 }
 0x4d4   : > { %v5975_v63 = vpack.c.bf16 %v5753_v30, %v5752_v46  ;;  %v6836_v35 = vmax.f32 %v6321_v57, 0.0  ;;  %v7377_v19 = vadd.f32 %v12671_v43, %v7376_v16  ;;  %v8140_v20 = vpack.c.bf16 %v7913_v48, %v7912_v61  ;;  %v2534_v46 = vld [vmem:[%s10540_s11 + $0x720] sm:$0xff] }
 0x4d5   : > { %3244 = vperm.xlu2 %10156, %v2533_v47   ;;  %3241 = vperm.xlu1 %10155, %v2532_v41   ;;  %v614_v30 = vld [vmem:[%s10422_s30 + $0x720] sm:$0xff]  ;;  %v15926_v57 = vmov 0 }
 0x4d6   : > { %v7919_v60 = vmax.f32 %v7377_v19, 0.0  ;;  %6362 = vmatmul.bf16.gmra.mxu2 %v5975_v63  ;;  %1324 = vperm.xlu0 %10154, %v613_v6   ;;  %v7067_v54 = vpack.c.bf16 %v6836_v35, %v6835_v39  ;;  %v13185_v61 = vld [vmem:[%s15440_s7] ss:$0 sm:$0xff] }
 0x4d7   : > { %v13148_v4 = vpop.permute.xlu2 %3193 }
 0x4d8   : > { %7418 = vmatmul.bf16.gmra.mxu3 %v7067_v54  ;;  %v13152_v43 = vpop.permute.xlu1 %1261  ;;  %v13154_v37 = vpop.f32.mrf.mxu0  ;;  %v13156_v19 = vpack.c.bf16 %v7919_v60, %v7918_v21 }
 0x4d9   : > { %v5267_v39 = vpop.f32.mrf.mxu1  ;;  %v6323_v35 = vpop.f32.mrf.mxu2 }
 0x4da   : > { %v3179_v10 = vpop.permute.xlu0 %3178  ;;  %8287 = vmatpush.bf16.xpose.msrb.mxu3 %v8140_v20  ;;  %v6324_v25 = vadd.f32 %v12755_v11, %v6323_v35  ;;  %v5754_v32 = vmul.f32 %v5267_v39, %v12690_v36  ;;  %v617_v20 = vld [vmem:[%s10422_s30 + $0x738] sm:$0xff]  ;;  %v2535_v36 = vld [vmem:[%s10540_s11 + $0x728] sm:$0xff] }
 0x4db   : > { %vm3535_vm12 = vcmp.eq.s32.totalorder %v10504_v1, %v3179_v10  ;;  %v7379_v48 = vpop.f32.mrf.mxu3  ;;  %9590 = vmatmul.msk.bf16.gmra.mxu0 %vm9589_vm13, %v15514_v8  ;;  %9860 = vmatmul.msk.bf16.gmra.mxu1 %vm9859_vm9, %v15514_v8  ;;  %vm1549_vm9 = vcmp.eq.s32.totalorder %v10504_v1, %v12098_v29  ;;  %v2536_v29 = vld [vmem:[%s10540_s11 + $0x730] sm:$0xff] }
 0x4dc   : > { %vm13171_vm0 = vmpackc.low %vm3535_vm12, %vm3534_vm15  ;;  %v7380_v21 = vadd.f32 %v13185_v61, %v7379_v48  ;;  %v6837_v39 = vmax.f32 %v6324_v25, 0.0  ;;  %v15933_v48 = vld [vmem:[#allocation54_spill] sm:$0xff] }
 0x4dd   : > { %v15927_v57 = vsel %vm13171_vm0, 4294967295, %v15926_v57  ;;  %3247 = vperm.xlu2 %10156, %v2534_v46   ;;  %1330 = vperm.xlu1 %10155, %v615_v58   ;;  %v15930_v58 = vmov 0  ;;  %vm3451_vm3 = vcmp.eq.s32.totalorder %v10504_v1, %v15933_v48 }
 0x4de   : > { %15928 = vst [vmem:[#allocation88_spill] sm:$0xff] %v15927_v57  ;;  %1327 = vperm.xlu0 %10154, %v614_v30  }
 0x4df   : > { %v13175_v47 = vpop.permute.xlu2 %1282 }
 0x4e0   : > { %15929 = vst [vmem:[#allocation83_spill] sm:$0xff] %v13175_v47  ;;  %v3185_v41 = vpop.permute.xlu1 %3184  ;;  %v13178_v16 = vpop.f32.mrf.mxu0 }
 0x4e1   : > { %vm3537_vm1 = vcmp.eq.s32.totalorder %v10504_v1, %v3185_v41  ;;  %v5269_v6 = vpop.f32.mrf.mxu1  ;;  %v6325_v63 = vpop.f32.mrf.mxu2  ;;  %v15934_v41 = vld [vmem:[#allocation41_spill] sm:$0xff] }
 0x4e2   : > { %v5755_v60 = vmul.f32 %v5269_v6, %v12710_v28  ;;  %v6326_v54 = vadd.f32 %v12755_v11, %v6325_v63  ;;  %v3182_v40 = vpop.permute.xlu0 %3181  ;;  %8288 = vmatpush.bf16.xpose.msrb.mxu3 %v12947_v27  ;;  %v7920_v27 = vmax.f32 %v7380_v21, 0.0  ;;  %vm3450_vm13 = vcmp.eq.s32.totalorder %v10504_v1, %v15934_v41  ;;  %v2539_v63 = vld [vmem:[%s10540_s11 + $0x748] sm:$0xff] }
 0x4e3   : > { %vm3536_vm12 = vcmp.eq.s32.totalorder %v10504_v1, %v3182_v40  ;;  %v7381_v35 = vpop.f32.mrf.mxu3  ;;  %v15938_v40 = vmov 0 }
 0x4e4   : > { %v5976_v10 = vpack.c.bf16 %v5755_v60, %v5754_v32  ;;  %v6838_v46 = vmax.f32 %v6326_v54, 0.0  ;;  %vm13197_vm15 = vmpackc.low %vm3537_vm1, %vm3536_vm12  ;;  %v7382_v28 = vadd.f32 %v13185_v61, %v7381_v35  ;;  %v2537_v35 = vld [vmem:[%s10540_s11 + $0x738] sm:$0xff] }
 0x4e5   : > { %v15931_v58 = vsel %vm13197_vm15, 4294967295, %v15930_v58  ;;  %1336 = vperm.xlu2 %10156, %v617_v20   ;;  %1333 = vperm.xlu1 %10155, %v616_v18   ;;  %vm13212_vm1 = vmpackc.low %vm3451_vm3, %vm3450_vm13  ;;  %vm3539_vm15 = vcmp.eq.s32.totalorder %v10504_v1, %v13125_v52  ;;  %v618_v18 = vld [vmem:[%s10422_s30 + $0x740] sm:$0xff]  ;;  %vm1551_vm13 = vcmp.eq.s32.totalorder %v10504_v1, %v12052_v53  ;;  %v15943_v53 = vmov 0 }
 0x4e6   : > { %15932 = vst [vmem:[#allocation50_spill] sm:$0xff] %v15931_v58  ;;  %v7921_v30 = vmax.f32 %v7382_v28, 0.0  ;;  %6367 = vmatmul.bf16.gmra.mxu2 %v5976_v10  ;;  %3250 = vperm.xlu0 %10154, %v2535_v36   ;;  %v7068_v25 = vpack.c.bf16 %v6838_v46, %v6837_v39  ;;  %vm9591_vm12 = vmpackc.low %vm1549_vm9, %vm1548_vm10  ;;  %vm1550_vm9 = vcmp.eq.s32.totalorder %v10504_v1, %v12125_v9 }
 0x4e7   : > { %v13210_v6 = vpop.permute.xlu2 %1285 }
 0x4e8   : > { %15935 = vst [vmem:[#allocation54_spill] sm:$0xff] %v13210_v6  ;;  %7423 = vmatmul.bf16.gmra.mxu3 %v7068_v25  ;;  %v3188_v32 = vpop.permute.xlu1 %3187  ;;  %v13216_v38 = vpop.f32.mrf.mxu0  ;;  %v13218_v21 = vpack.c.bf16 %v7921_v30, %v7920_v27 }
 0x4e9   : > { %vm3538_vm0 = vcmp.eq.s32.totalorder %v10504_v1, %v3188_v32  ;;  %v5272_v60 = vpop.f32.mrf.mxu1  ;;  %v6328_v54 = vpop.f32.mrf.mxu2  ;;  %v2538_v32 = vld [vmem:[%s10540_s11 + $0x740] sm:$0xff] }
 0x4ea   : > { %vm13226_vm3 = vmpackc.low %vm3539_vm15, %vm3538_vm0  ;;  %v13230_v20 = vpop.permute.xlu0 %1270  ;;  %8289 = vmatpush.bf16.xpose.msrb.mxu3 %v12897_v23  ;;  %v6329_v23 = vadd.f32 %v12755_v11, %v6328_v54  ;;  %v5756_v48 = vmul.f32 %v5272_v60, %v12736_v33  ;;  %v15941_v33 = vld [vmem:[#allocation94_spill] sm:$0xff] }
 0x4eb   : > { %v15939_v40 = vsel %vm13226_vm3, 4294967295, %v15938_v40  ;;  %v7384_v36 = vpop.f32.mrf.mxu3  ;;  %9592 = vmatmul.msk.bf16.gmra.mxu0 %vm9591_vm12, %v15514_v8  ;;  %9862 = vmatmul.msk.bf16.gmra.mxu1 %vm13212_vm1, %v15514_v8  ;;  %vm3453_vm0 = vcmp.eq.s32.totalorder %v10504_v1, %v15941_v33  ;;  %vm9593_vm1 = vmpackc.low %vm1551_vm13, %vm1550_vm9  ;;  %vm3540_vm12 = vcmp.eq.s32.totalorder %v10504_v1, %v13148_v4  ;;  %v13295_v4 = vld [vmem:[%s15438_s5] ss:$0 sm:$0xff]  ;;  %vm1553_vm13 = vcmp.eq.s32.totalorder %v10504_v1, %v12181_v3 }
 0x4ec   : > { %15940 = vst [vmem:[#allocation41_spill] sm:$0xff] %v15939_v40  ;;  %v7385_v27 = vadd.f32 %v13185_v61, %v7384_v36 }
 0x4ed   : > { %1339 = vperm.xlu2 %10156, %v618_v18   ;;  %3256 = vperm.xlu1 %10155, %v2537_v35   ;;  %v619_v18 = vld [vmem:[%s10422_s30 + $0x748] sm:$0xff]  ;;  %v6839_v35 = vmax.f32 %v6329_v23, 0.0 }
 0x4ee   : > { %3253 = vperm.xlu0 %10154, %v2536_v29  }
 0x4ef   : > { %v13240_v52 = vpop.permute.xlu2 %3208 }
 0x4f0   : > { %v13243_v39 = vpop.permute.xlu1 %1276  ;;  %v13245_v10 = vpop.f32.mrf.mxu0 }
 0x4f1   : > { %v5274_v46 = vpop.f32.mrf.mxu1  ;;  %v6330_v28 = vpop.f32.mrf.mxu2 }
 0x4f2   : > { %v5757_v30 = vmul.f32 %v5274_v46, %v12758_v24  ;;  %v6331_v25 = vadd.f32 %v12755_v11, %v6330_v28  ;;  %v13251_v41 = vpop.permute.xlu0 %1273  ;;  %8290 = vmatpush.bf16.xpose.msrb.mxu3 %v12842_v49  ;;  %v15942_v24 = vld [vmem:[#allocation95_spill] sm:$0xff]  ;;  %v7922_v11 = vmax.f32 %v7385_v27, 0.0  ;;  %v621_v27 = vld [vmem:[%s10422_s30 + $0x758] sm:$0xff] }
 0x4f3   : > { %v7386_v54 = vpop.f32.mrf.mxu3  ;;  %vm3452_vm15 = vcmp.eq.s32.totalorder %v10504_v1, %v15942_v24 }
 0x4f4   : > { %v5977_v29 = vpack.c.bf16 %v5757_v30, %v5756_v48  ;;  %v6840_v40 = vmax.f32 %v6331_v25, 0.0  ;;  %v7387_v58 = vadd.f32 %v13185_v61, %v7386_v54  ;;  %vm9863_vm10 = vmpackc.low %vm3453_vm0, %vm3452_vm15  ;;  %v2540_v48 = vld [vmem:[%s10540_s11 + $0x750] sm:$0xff] }
 0x4f5   : > { %3262 = vperm.xlu2 %10156, %v2539_v63   ;;  %3259 = vperm.xlu1 %10155, %v2538_v32   ;;  %v620_v25 = vld [vmem:[%s10422_s30 + $0x750] sm:$0xff] }
 0x4f6   : > { %v7923_v60 = vmax.f32 %v7387_v58, 0.0  ;;  %6372 = vmatmul.bf16.gmra.mxu2 %v5977_v29  ;;  %1342 = vperm.xlu0 %10154, %v619_v18   ;;  %v7069_v49 = vpack.c.bf16 %v6840_v40, %v6839_v35 }
 0x4f7   : > { %v13264_v36 = vpop.permute.xlu2 %3211 }
 0x4f8   : > { %7428 = vmatmul.bf16.gmra.mxu3 %v7069_v49  ;;  %v13266_v23 = vpop.permute.xlu1 %1279  ;;  %v13268_v46 = vpop.f32.mrf.mxu0  ;;  %v13270_v28 = vpack.c.bf16 %v7923_v60, %v7922_v11  ;;  %v623_v49 = vld [vmem:[%s10422_s30 + $0x768] sm:$0xff] }
 0x4f9   : > { %v5277_v58 = vpop.f32.mrf.mxu1  ;;  %v6333_v40 = vpop.f32.mrf.mxu2 }
 0x4fa   : > { %v3197_v9 = vpop.permute.xlu0 %3196  ;;  %8291 = vmatpush.bf16.xpose.msrb.mxu3 %v12793_v59  ;;  %v6334_v63 = vadd.f32 %v13295_v4, %v6333_v40  ;;  %v5758_v29 = vmul.f32 %v5277_v58, %v12791_v42  ;;  %v622_v40 = vld [vmem:[%s10422_s30 + $0x760] sm:$0xff]  ;;  %v15947_v42 = vmov 0  ;;  %v15950_v58 = vld [vmem:[#allocation52_spill] sm:$0xff] }
 0x4fb   : > { %vm3541_vm3 = vcmp.eq.s32.totalorder %v10504_v1, %v3197_v9  ;;  %v7389_v30 = vpop.f32.mrf.mxu3  ;;  %9594 = vmatmul.msk.bf16.gmra.mxu0 %vm9593_vm1, %v15514_v8  ;;  %9864 = vmatmul.msk.bf16.gmra.mxu1 %vm9863_vm10, %v15514_v8  ;;  %vm3454_vm10 = vcmp.eq.s32.totalorder %v10504_v1, %v15950_v58 }
 0x4fc   : > { %vm13286_vm0 = vmpackc.low %vm3541_vm3, %vm3540_vm12  ;;  %v7390_v33 = vadd.f32 %v13185_v61, %v7389_v30 }
 0x4fd   : > { %v15944_v53 = vsel %vm13286_vm0, 4294967295, %v15943_v53  ;;  %3265 = vperm.xlu2 %10156, %v2540_v48   ;;  %1348 = vperm.xlu1 %10155, %v621_v27   ;;  %v2541_v48 = vld [vmem:[%s10540_s11 + $0x758] sm:$0xff]  ;;  %v6841_v27 = vmax.f32 %v6334_v63, 0.0 }
 0x4fe   : > { %15945 = vst [vmem:[#allocation94_spill] sm:$0xff] %v15944_v53  ;;  %1345 = vperm.xlu0 %10154, %v620_v25  }
 0x4ff   : > { %v13290_v59 = vpop.permute.xlu2 %1300 }
 0x500   : > { %15946 = vst [vmem:[#allocation95_spill] sm:$0xff] %v13290_v59  ;;  %v3203_v32 = vpop.permute.xlu1 %3202  ;;  %v13298_v54 = vpop.f32.mrf.mxu0 }
 0x501   : > { %vm3543_vm3 = vcmp.eq.s32.totalorder %v10504_v1, %v3203_v32  ;;  %v5279_v18 = vpop.f32.mrf.mxu1  ;;  %v6335_v35 = vpop.f32.mrf.mxu2  ;;  %v15951_v32 = vld [vmem:[#allocation90_spill] sm:$0xff] }
 0x502   : > { %v5759_v24 = vmul.f32 %v5279_v18, %v12817_v44  ;;  %v6336_v11 = vadd.f32 %v13295_v4, %v6335_v35  ;;  %v3200_v60 = vpop.permute.xlu0 %3199  ;;  %8292 = vmatpush.bf16.xpose.msrb.mxu3 %v12738_v14  ;;  %v7924_v14 = vmax.f32 %v7390_v33, 0.0  ;;  %vm3455_vm1 = vcmp.eq.s32.totalorder %v10504_v1, %v15951_v32 }
 0x503   : > { %vm3542_vm15 = vcmp.eq.s32.totalorder %v10504_v1, %v3200_v60  ;;  %v7391_v9 = vpop.f32.mrf.mxu3  ;;  %vm13325_vm12 = vmpackc.low %vm3455_vm1, %vm3454_vm10  ;;  %v15956_v60 = vmov 0 }
 0x504   : > { %v5978_v25 = vpack.c.bf16 %v5759_v24, %v5758_v29  ;;  %v6842_v53 = vmax.f32 %v6336_v11, 0.0  ;;  %vm13312_vm9 = vmpackc.low %vm3543_vm3, %vm3542_vm15  ;;  %v7392_v44 = vadd.f32 %v13185_v61, %v7391_v9  ;;  %v15955_v29 = vld [vmem:[#allocation21_spill] sm:$0xff]  ;;  %v2543_v9 = vld [vmem:[%s10540_s11 + $0x768] sm:$0xff] }
 0x505   : > { %v15948_v42 = vsel %vm13312_vm9, 4294967295, %v15947_v42  ;;  %1354 = vperm.xlu2 %10156, %v623_v49   ;;  %1351 = vperm.xlu1 %10155, %v622_v40   ;;  %vm1552_vm3 = vcmp.eq.s32.totalorder %v10504_v1, %v15955_v29  ;;  %vm3545_vm9 = vcmp.eq.s32.totalorder %v10504_v1, %v13240_v52  ;;  %v624_v40 = vld [vmem:[%s10422_s30 + $0x770] sm:$0xff]  ;;  %v2542_v52 = vld [vmem:[%s10540_s11 + $0x760] sm:$0xff] }
 0x506   : > { %15949 = vst [vmem:[#allocation141_spill] sm:$0xff] %v15948_v42  ;;  %v7925_v30 = vmax.f32 %v7392_v44, 0.0  ;;  %6377 = vmatmul.bf16.gmra.mxu2 %v5978_v25  ;;  %3268 = vperm.xlu0 %10154, %v2541_v48   ;;  %v7070_v63 = vpack.c.bf16 %v6842_v53, %v6841_v27  ;;  %vm9595_vm15 = vmpackc.low %vm1553_vm13, %vm1552_vm3 }
 0x507   : > { %v13323_v18 = vpop.permute.xlu2 %1303 }
 0x508   : > { %15952 = vst [vmem:[#allocation52_spill] sm:$0xff] %v13323_v18  ;;  %7433 = vmatmul.bf16.gmra.mxu3 %v7070_v63  ;;  %v3206_v3 = vpop.permute.xlu1 %3205  ;;  %v13331_v33 = vpop.f32.mrf.mxu0  ;;  %v13333_v53 = vpack.c.bf16 %v7925_v30, %v7924_v14 }
 0x509   : > { %vm3544_vm0 = vcmp.eq.s32.totalorder %v10504_v1, %v3206_v3  ;;  %v5282_v24 = vpop.f32.mrf.mxu1  ;;  %v6338_v11 = vpop.f32.mrf.mxu2 }
 0x50a   : > { %vm13338_vm10 = vmpackc.low %vm3545_vm9, %vm3544_vm0  ;;  %v13342_v49 = vpop.permute.xlu0 %1288  ;;  %v6339_v25 = vadd.f32 %v13295_v4, %v6338_v11  ;;  %v5760_v63 = vmul.f32 %v5282_v24, %v12840_v15  ;;  %v625_v11 = vld [vmem:[%s10422_s30 + $0x778] sm:$0xff] }
 0x50b   : > { %v15957_v60 = vsel %vm13338_vm10, 4294967295, %v15956_v60  ;;  %15959 = vst [vmem:[#allocation21_spill] sm:$0xff] %v13342_v49  ;;  %v7394_v48 = vpop.f32.mrf.mxu3  ;;  %9596 = vmatmul.msk.bf16.gmra.mxu0 %vm9595_vm15, %v15514_v8  ;;  %9866 = vmatmul.msk.bf16.gmra.mxu1 %vm13325_vm12, %v15514_v8  ;;  %v15962_v15 = vld [vmem:[#allocation12_spill] sm:$0xff]  ;;  %vm3546_vm15 = vcmp.eq.s32.totalorder %v10504_v1, %v13264_v36 }
 0x50c   : > { %15958 = vst [vmem:[#allocation90_spill] sm:$0xff] %v15957_v60  ;;  %v7395_v32 = vadd.f32 %v13185_v61, %v7394_v48  ;;  %v6843_v60 = vmax.f32 %v6339_v25, 0.0  ;;  %vm3457_vm0 = vcmp.eq.s32.totalorder %v10504_v1, %v15962_v15  ;;  %v15964_v25 = vld [vmem:[#allocation108_spill] sm:$0xff] }
 0x50d   : > { %1357 = vperm.xlu2 %10156, %v624_v40   ;;  %3274 = vperm.xlu1 %10155, %v2543_v9   ;;  %v2545_v40 = vld [vmem:[%s10540_s11 + $0x778] sm:$0xff]  ;;  %v2544_v9 = vld [vmem:[%s10540_s11 + $0x770] sm:$0xff]  ;;  %vm1554_vm13 = vcmp.eq.s32.totalorder %v10504_v1, %v15964_v25 }
 0x50e   : > { %3271 = vperm.xlu0 %10154, %v2542_v52   ;;  %v7926_v24 = vmax.f32 %v7395_v32, 0.0 }
 0x50f   : > { %v13351_v27 = vpop.permute.xlu2 %3226 }
 0x510   : > { %v13354_v44 = vpop.permute.xlu1 %1294  ;;  %v13356_v58 = vpop.f32.mrf.mxu0 }
 0x511   : > { %15960 = vst [vmem:[#allocation142_spill] sm:$0xff] %v13354_v44  ;;  %v5284_v14 = vpop.f32.mrf.mxu1  ;;  %v6340_v30 = vpop.f32.mrf.mxu2  ;;  %v15987_v44 = vld [vmem:[#allocation45_spill] sm:$0xff] }
 0x512   : > { %v5761_v35 = vmul.f32 %v5284_v14, %v12862_v50  ;;  %v6341_v29 = vadd.f32 %v13295_v4, %v6340_v30  ;;  %v13362_v3 = vpop.permute.xlu0 %1291  ;;  %v15963_v14 = vld [vmem:[#allocation107_spill] sm:$0xff] }
 0x513   : > { %15961 = vst [vmem:[#allocation143_spill] sm:$0xff] %v13362_v3  ;;  %v7396_v52 = vpop.f32.mrf.mxu3  ;;  %vm1555_vm9 = vcmp.eq.s32.totalorder %v10504_v1, %v15963_v14  ;;  %v15971_v3 = vmov 0 }
 0x514   : > { %v5979_v42 = vpack.c.bf16 %v5761_v35, %v5760_v63  ;;  %v6844_v57 = vmax.f32 %v6341_v29, 0.0  ;;  %v7397_v18 = vadd.f32 %v13185_v61, %v7396_v52  ;;  %v15965_v63 = vld [vmem:[#allocation6_spill] sm:$0xff]  ;;  %vm9597_vm3 = vmpackc.low %vm1555_vm9, %vm1554_vm13 }
 0x515   : > { %3280 = vperm.xlu2 %10156, %v2545_v40   ;;  %3277 = vperm.xlu1 %10155, %v2544_v9   ;;  %vm3456_vm1 = vcmp.eq.s32.totalorder %v10504_v1, %v15965_v63  ;;  %v2546_v29 = vld [vmem:[%s10540_s11 + $0x780] sm:$0xff]  ;;  %v627_v40 = vld [vmem:[%s10422_s30 + $0x788] sm:$0xff] }
 0x516   : > { %v7927_v50 = vmax.f32 %v7397_v18, 0.0  ;;  %6382 = vmatmul.bf16.gmra.mxu2 %v5979_v42  ;;  %1360 = vperm.xlu0 %10154, %v625_v11   ;;  %v7071_v48 = vpack.c.bf16 %v6844_v57, %v6843_v60  ;;  %vm9867_vm12 = vmpackc.low %vm3457_vm0, %vm3456_vm1  ;;  %v626_v52 = vld [vmem:[%s10422_s30 + $0x780] sm:$0xff]  ;;  %v15967_v11 = vmov 0 }
 0x517   : > { %v13374_v30 = vpop.permute.xlu2 %3229 }
 0x518   : > { %7438 = vmatmul.bf16.gmra.mxu3 %v7071_v48  ;;  %v13378_v32 = vpop.permute.xlu1 %1297  ;;  %v13380_v42 = vpop.f32.mrf.mxu0  ;;  %v13382_v18 = vpack.c.bf16 %v7927_v50, %v7926_v24 }
 0x519   : > { %15966 = vst [vmem:[#allocation12_spill] sm:$0xff] %v13378_v32  ;;  %v5287_v57 = vpop.f32.mrf.mxu1  ;;  %v6343_v60 = vpop.f32.mrf.mxu2 }
 0x51a   : > { %v3215_v35 = vpop.permute.xlu0 %3214  ;;  %v6344_v15 = vadd.f32 %v13295_v4, %v6343_v60  ;;  %v5762_v25 = vmul.f32 %v5287_v57, %v12895_v45  ;;  %v2547_v60 = vld [vmem:[%s10540_s11 + $0x788] sm:$0xff] }
 0x51b   : > { %vm3547_vm10 = vcmp.eq.s32.totalorder %v10504_v1, %v3215_v35  ;;  %v13389_v9 = vpop.f32.mrf.mxu3  ;;  %9598 = vmatmul.msk.bf16.gmra.mxu0 %vm9597_vm3, %v15514_v8  ;;  %9868 = vmatmul.msk.bf16.gmra.mxu1 %vm9867_vm12, %v15514_v8  ;;  %v15974_v45 = vld [vmem:[#allocation99_spill] sm:$0xff]  ;;  %v15976_v57 = vld [vmem:[#allocation58_spill] sm:$0xff] }
 0x51c   : > { %vm13394_vm0 = vmpackc.low %vm3547_vm10, %vm3546_vm15  ;;  %vm3459_vm1 = vcmp.eq.s32.totalorder %v10504_v1, %v15974_v45  ;;  %vm1556_vm3 = vcmp.eq.s32.totalorder %v10504_v1, %v15976_v57 }
 0x51d   : > { %v15968_v11 = vsel %vm13394_vm0, 4294967295, %v15967_v11  ;;  %3283 = vperm.xlu2 %10156, %v2546_v29   ;;  %1366 = vperm.xlu1 %10155, %v627_v40   ;;  %v629_v40 = vld [vmem:[%s10422_s30 + $0x798] sm:$0xff] }
 0x51e   : > { %15969 = vst [vmem:[#allocation107_spill] sm:$0xff] %v15968_v11  ;;  %1363 = vperm.xlu0 %10154, %v626_v52   ;;  %v628_v52 = vld [vmem:[%s10422_s30 + $0x790] sm:$0xff] }
 0x51f   : > { %v13398_v36 = vpop.permute.xlu2 %1318 }
 0x520   : > { %15970 = vst [vmem:[#allocation108_spill] sm:$0xff] %v13398_v36  ;;  %v3221_v24 = vpop.permute.xlu1 %3220  ;;  %v13401_v50 = vpop.f32.mrf.mxu0  ;;  %v6845_v36 = vmax.f32 %v6344_v15, 0.0 }
 0x521   : > { %vm3549_vm9 = vcmp.eq.s32.totalorder %v10504_v1, %v3221_v24  ;;  %v5289_v48 = vpop.f32.mrf.mxu1  ;;  %v6345_v14 = vpop.f32.mrf.mxu2 }
 0x522   : > { %v5763_v63 = vmul.f32 %v5289_v48, %v12923_v7  ;;  %v6346_v35 = vadd.f32 %v13295_v4, %v6345_v14  ;;  %v3218_v29 = vpop.permute.xlu0 %3217  ;;  %v15975_v7 = vld [vmem:[#allocation100_spill] sm:$0xff] }
 0x523   : > { %vm3548_vm10 = vcmp.eq.s32.totalorder %v10504_v1, %v3218_v29  ;;  %v13410_v11 = vpop.f32.mrf.mxu3  ;;  %vm3458_vm12 = vcmp.eq.s32.totalorder %v10504_v1, %v15975_v7  ;;  %v15980_v14 = vld [vmem:[#allocation60_spill] sm:$0xff]  ;;  %v630_v29 = vld [vmem:[%s10422_s30 + $0x7a0] sm:$0xff] }
 0x524   : > { %v5980_v59 = vpack.c.bf16 %v5763_v63, %v5762_v25  ;;  %v6846_v32 = vmax.f32 %v6346_v35, 0.0  ;;  %vm13415_vm13 = vmpackc.low %vm3549_vm9, %vm3548_vm10  ;;  %vm1557_vm9 = vcmp.eq.s32.totalorder %v10504_v1, %v15980_v14 }
 0x525   : > { %v15972_v3 = vsel %vm13415_vm13, 4294967295, %v15971_v3  ;;  %1372 = vperm.xlu2 %10156, %v629_v40   ;;  %1369 = vperm.xlu1 %10155, %v628_v52   ;;  %vm13427_vm15 = vmpackc.low %vm3459_vm1, %vm3458_vm12  ;;  %vm3551_vm13 = vcmp.eq.s32.totalorder %v10504_v1, %v13351_v27  ;;  %v2549_v40 = vld [vmem:[%s10540_s11 + $0x798] sm:$0xff]  ;;  %v2548_v27 = vld [vmem:[%s10540_s11 + $0x790] sm:$0xff] }
 0x526   : > { %15973 = vst [vmem:[#allocation6_spill] sm:$0xff] %v15972_v3  ;;  %6387 = vmatmul.bf16.gmra.mxu2 %v5980_v59  ;;  %3286 = vperm.xlu0 %10154, %v2547_v60   ;;  %v7072_v15 = vpack.c.bf16 %v6846_v32, %v6845_v36  ;;  %vm9599_vm10 = vmpackc.low %vm1557_vm9, %vm1556_vm3  ;;  %v15981_v36 = vmov 0 }
 0x527   : > { %v13425_v24 = vpop.permute.xlu2 %1321 }
 0x528   : > { %15977 = vst [vmem:[#allocation99_spill] sm:$0xff] %v13425_v24  ;;  %7443 = vmatmul.bf16.gmra.mxu3 %v7072_v15  ;;  %v3224_v25 = vpop.permute.xlu1 %3223  ;;  %v13433_v63 = vpop.f32.mrf.mxu0  ;;  %v631_v24 = vld [vmem:[%s10422_s30 + $0x7a8] sm:$0xff] }
 0x529   : > { %vm3550_vm0 = vcmp.eq.s32.totalorder %v10504_v1, %v3224_v25  ;;  %v5292_v59 = vpop.f32.mrf.mxu1  ;;  %v6348_v32 = vpop.f32.mrf.mxu2 }
 0x52a   : > { %vm13438_vm1 = vmpackc.low %vm3551_vm13, %vm3550_vm0  ;;  %v13442_v35 = vpop.permute.xlu0 %1306  ;;  %v6349_v45 = vadd.f32 %v13295_v4, %v6348_v32  ;;  %v5764_v48 = vmul.f32 %v5292_v59, %v12945_v12  ;;  %vm3460_vm0 = vcmp.eq.s32.totalorder %v10504_v1, %v15987_v44  ;;  %v15991_v44 = vld [vmem:[#allocation10_spill] sm:$0xff] }
 0x52b   : > { %v15982_v36 = vsel %vm13438_vm1, 4294967295, %v15981_v36  ;;  %15984 = vst [vmem:[#allocation58_spill] sm:$0xff] %v13442_v35  ;;  %v13446_v52 = vpop.f32.mrf.mxu3  ;;  %9600 = vmatmul.msk.bf16.gmra.mxu0 %vm9599_vm10, %v15514_v8  ;;  %9870 = vmatmul.msk.bf16.gmra.mxu1 %vm13427_vm15, %v15514_v8  ;;  %vm1558_vm15 = vcmp.eq.s32.totalorder %v10504_v1, %v15991_v44  ;;  %vm3552_vm10 = vcmp.eq.s32.totalorder %v10504_v1, %v13374_v30 }
 0x52c   : > { %15983 = vst [vmem:[#allocation100_spill] sm:$0xff] %v15982_v36  ;;  %v6847_v32 = vmax.f32 %v6349_v45, 0.0 }
 0x52d   : > { %1375 = vperm.xlu2 %10156, %v630_v29   ;;  %3292 = vperm.xlu1 %10155, %v2549_v40   ;;  %v2551_v40 = vld [vmem:[%s10540_s11 + $0x7a8] sm:$0xff] }
 0x52e   : > { %3289 = vperm.xlu0 %10154, %v2548_v27   ;;  %v2550_v27 = vld [vmem:[%s10540_s11 + $0x7a0] sm:$0xff] }
 0x52f   : > { %v13453_v60 = vpop.permute.xlu2 %3244 }
 0x530   : > { %v13456_v7 = vpop.permute.xlu1 %1312  ;;  %v13458_v57 = vpop.f32.mrf.mxu0 }
 0x531   : > { %15985 = vst [vmem:[#allocation60_spill] sm:$0xff] %v13456_v7  ;;  %v5294_v15 = vpop.f32.mrf.mxu1  ;;  %v6350_v14 = vpop.f32.mrf.mxu2 }
 0x532   : > { %v5765_v25 = vmul.f32 %v5294_v15, %v12971_v51  ;;  %v6351_v36 = vadd.f32 %v13295_v4, %v6350_v14  ;;  %v13463_v29 = vpop.permute.xlu0 %1309  ;;  %v15988_v51 = vld [vmem:[#allocation55_spill] sm:$0xff]  ;;  %v15989_v15 = vld [vmem:[#allocation49_spill] sm:$0xff] }
 0x533   : > { %15986 = vst [vmem:[#allocation144_spill] sm:$0xff] %v13463_v29  ;;  %v13467_v3 = vpop.f32.mrf.mxu3  ;;  %vm1559_vm13 = vcmp.eq.s32.totalorder %v10504_v1, %v15988_v51  ;;  %vm3461_vm12 = vcmp.eq.s32.totalorder %v10504_v1, %v15989_v15  ;;  %v2552_v14 = vld [vmem:[%s10540_s11 + $0x7b0] sm:$0xff]  ;;  %v2553_v29 = vld [vmem:[%s10540_s11 + $0x7b8] sm:$0xff] }
 0x534   : > { %v5981_v35 = vpack.c.bf16 %v5765_v25, %v5764_v48  ;;  %v6848_v7 = vmax.f32 %v6351_v36, 0.0  ;;  %vm9871_vm3 = vmpackc.low %vm3461_vm12, %vm3460_vm0  ;;  %v633_v48 = vld [vmem:[%s10422_s30 + $0x7b8] sm:$0xff] }
 0x535   : > { %3298 = vperm.xlu2 %10156, %v2551_v40   ;;  %3295 = vperm.xlu1 %10155, %v2550_v27   ;;  %vm9601_vm9 = vmpackc.low %vm1559_vm13, %vm1558_vm15  ;;  %v632_v40 = vld [vmem:[%s10422_s30 + $0x7b0] sm:$0xff]  ;;  %v15992_v27 = vmov 0 }
 0x536   : > { %6392 = vmatmul.bf16.gmra.mxu2 %v5981_v35  ;;  %1378 = vperm.xlu0 %10154, %v631_v24   ;;  %v7073_v12 = vpack.c.bf16 %v6848_v7, %v6847_v32 }
 0x537   : > { %v13474_v59 = vpop.permute.xlu2 %3247 }
 0x538   : > { %7448 = vmatmul.bf16.gmra.mxu3 %v7073_v12  ;;  %v13478_v36 = vpop.permute.xlu1 %1315  ;;  %v13480_v45 = vpop.f32.mrf.mxu0 }
 0x539   : > { %15990 = vst [vmem:[#allocation45_spill] sm:$0xff] %v13478_v36  ;;  %v5297_v24 = vpop.f32.mrf.mxu1  ;;  %v6353_v35 = vpop.f32.mrf.mxu2  ;;  %v634_v36 = vld [vmem:[%s10422_s30 + $0x7c0] sm:$0xff] }
 0x53a   : > { %v3233_v7 = vpop.permute.xlu0 %3232  ;;  %v6354_v30 = vadd.f32 %v13295_v4, %v6353_v35 }
 0x53b   : > { %vm3553_vm1 = vcmp.eq.s32.totalorder %v10504_v1, %v3233_v7  ;;  %v7409_v25 = vpop.f32.mrf.mxu3  ;;  %9602 = vmatmul.msk.bf16.gmra.mxu0 %vm9601_vm9, %v15514_v8  ;;  %9872 = vmatmul.msk.bf16.gmra.mxu1 %vm9871_vm3, %v15514_v8  ;;  %v5766_v7 = vmul.f32 %v5297_v24, %v13003_v0  ;;  %v15996_v0 = vmov 0  ;;  %v15999_v24 = vld [vmem:[#allocation46_spill] sm:$0xff] }
 0x53c   : > { %vm13492_vm0 = vmpackc.low %vm3553_vm1, %vm3552_vm10  ;;  %v6849_v6 = vmax.f32 %v6354_v30, 0.0  ;;  %vm3463_vm3 = vcmp.eq.s32.totalorder %v10504_v1, %v15999_v24 }
 0x53d   : > { %v15993_v27 = vsel %vm13492_vm0, 4294967295, %v15992_v27  ;;  %3301 = vperm.xlu2 %10156, %v2552_v14   ;;  %1384 = vperm.xlu1 %10155, %v633_v48  }
 0x53e   : > { %15994 = vst [vmem:[#allocation55_spill] sm:$0xff] %v15993_v27  ;;  %1381 = vperm.xlu0 %10154, %v632_v40   ;;  %v7410_v27 = vadd.f32 %v13185_v61, %v7409_v25  ;;  %v16000_v25 = vld [vmem:[#allocation112_spill] sm:$0xff] }
 0x53f   : > { %v13496_v32 = vpop.permute.xlu2 %1336  ;;  %vm1561_vm15 = vcmp.eq.s32.totalorder %v10504_v1, %v16000_v25 }
 0x540   : > { %15995 = vst [vmem:[#allocation49_spill] sm:$0xff] %v13496_v32  ;;  %v3239_v12 = vpop.permute.xlu1 %3238  ;;  %v13499_v51 = vpop.f32.mrf.mxu0  ;;  %v635_v32 = vld [vmem:[%s10422_s30 + $0x7c8] sm:$0xff]  ;;  %v7932_v30 = vmax.f32 %v7410_v27, 0.0 }
 0x541   : > { %vm3555_vm13 = vcmp.eq.s32.totalorder %v10504_v1, %v3239_v12  ;;  %v5299_v15 = vpop.f32.mrf.mxu1  ;;  %v6355_v44 = vpop.f32.mrf.mxu2 }
 0x542   : > { %v5767_v14 = vmul.f32 %v5299_v15, %v13028_v56  ;;  %v6356_v48 = vadd.f32 %v13295_v4, %v6355_v44  ;;  %v3236_v40 = vpop.permute.xlu0 %3235  ;;  %v16001_v15 = vld [vmem:[#allocation113_spill] sm:$0xff] }
 0x543   : > { %vm3554_vm1 = vcmp.eq.s32.totalorder %v10504_v1, %v3236_v40  ;;  %v7411_v35 = vpop.f32.mrf.mxu3  ;;  %vm1560_vm9 = vcmp.eq.s32.totalorder %v10504_v1, %v16001_v15  ;;  %v7402_v15 = vadd.f32 %v13185_v61, %v13410_v11 }
 0x544   : > { %v5982_v49 = vpack.c.bf16 %v5767_v14, %v5766_v7  ;;  %v6850_v47 = vmax.f32 %v6356_v48, 0.0  ;;  %vm13512_vm12 = vmpackc.low %vm3555_vm13, %vm3554_vm1  ;;  %v7412_v56 = vadd.f32 %v13185_v61, %v7411_v35  ;;  %v16002_v7 = vld [vmem:[#allocation51_spill] sm:$0xff] }
 0x545   : > { %v15997_v0 = vsel %vm13512_vm12, 4294967295, %v15996_v0  ;;  %1390 = vperm.xlu2 %10156, %v635_v32   ;;  %1387 = vperm.xlu1 %10155, %v634_v36   ;;  %vm3462_vm10 = vcmp.eq.s32.totalorder %v10504_v1, %v16002_v7  ;;  %v7407_v36 = vadd.f32 %v13185_v61, %v13467_v3  ;;  %vm9603_vm1 = vmpackc.low %vm1561_vm15, %vm1560_vm9  ;;  %v7405_v3 = vadd.f32 %v13185_v61, %v13446_v52  ;;  %v636_v35 = vld [vmem:[%s10422_s30 + $0x7d0] sm:$0xff] }
 0x546   : > { %15998 = vst [vmem:[#allocation10_spill] sm:$0xff] %v15997_v0  ;;  %v7933_v44 = vmax.f32 %v7412_v56, 0.0  ;;  %6397 = vmatmul.bf16.gmra.mxu2 %v5982_v49  ;;  %3304 = vperm.xlu0 %10154, %v2553_v29   ;;  %v7074_v12 = vpack.c.bf16 %v6850_v47, %v6849_v6  ;;  %vm13527_vm13 = vmpackc.low %vm3463_vm3, %vm3462_vm10  ;;  %vm3557_vm3 = vcmp.eq.s32.totalorder %v10504_v1, %v13453_v60  ;;  %v16006_v29 = vmov 0  ;;  %v2555_v56 = vld [vmem:[%s10540_s11 + $0x7c8] sm:$0xff]  ;;  %v2554_v60 = vld [vmem:[%s10540_s11 + $0x7c0] sm:$0xff] }
 0x547   : > { %v13525_v14 = vpop.permute.xlu2 %1339  ;;  %v7931_v25 = vmax.f32 %v7407_v36, 0.0  ;;  %v7930_v52 = vmax.f32 %v7405_v3, 0.0  ;;  %v7400_v36 = vadd.f32 %v13185_v61, %v13389_v9  ;;  %v7929_v0 = vmax.f32 %v7402_v15, 0.0 }
 0x548   : > { %16003 = vst [vmem:[#allocation46_spill] sm:$0xff] %v13525_v14  ;;  %v8150_v32 = vpack.c.bf16 %v7933_v44, %v7932_v30  ;;  %7453 = vmatmul.bf16.gmra.mxu3 %v7074_v12  ;;  %v3242_v27 = vpop.permute.xlu1 %3241  ;;  %v13533_v49 = vpop.f32.mrf.mxu0 }
 0x549   : > { %vm3556_vm10 = vcmp.eq.s32.totalorder %v10504_v1, %v3242_v27  ;;  %v5302_v47 = vpop.f32.mrf.mxu1  ;;  %v6358_v6 = vpop.f32.mrf.mxu2  ;;  %v8149_v48 = vpack.c.bf16 %v7931_v25, %v7930_v52  ;;  %v637_v52 = vld [vmem:[%s10422_s30 + $0x7d8] sm:$0xff] }
 0x54a   : > { %vm13543_vm12 = vmpackc.low %vm3557_vm3, %vm3556_vm10  ;;  %v13547_v40 = vpop.permute.xlu0 %1324  ;;  %8298 = vmatpush.bf16.xpose.msra.mxu0 %v8150_v32  ;;  %v6359_v44 = vadd.f32 %v13295_v4, %v6358_v6  ;;  %v5768_v3 = vmul.f32 %v5302_v47, %v13052_v26  ;;  %v16011_v26 = vld [vmem:[#allocation32_spill] sm:$0xff]  ;;  %v16012_v47 = vld [vmem:[#allocation103_spill] sm:$0xff] }
 0x54b   : > { %v16007_v29 = vsel %vm13543_vm12, 4294967295, %v16006_v29  ;;  %16009 = vst [vmem:[#allocation113_spill] sm:$0xff] %v13547_v40  ;;  %v7414_v24 = vpop.f32.mrf.mxu3  ;;  %9604 = vmatmul.msk.bf16.gmra.mxu0 %vm9603_vm1, %v15514_v8  ;;  %9874 = vmatmul.msk.bf16.gmra.mxu1 %vm13527_vm13, %v15514_v8  ;;  %vm3465_vm15 = vcmp.eq.s32.totalorder %v10504_v1, %v16011_v26  ;;  %vm3464_vm9 = vcmp.eq.s32.totalorder %v10504_v1, %v16012_v47 }
 0x54c   : > { %16008 = vst [vmem:[#allocation112_spill] sm:$0xff] %v16007_v29  ;;  %v7415_v11 = vadd.f32 %v13185_v61, %v7414_v24  ;;  %v2556_v29 = vld [vmem:[%s10540_s11 + $0x7d0] sm:$0xff]  ;;  %v6851_v14 = vmax.f32 %v6359_v44, 0.0  ;;  %vm9875_vm1 = vmpackc.low %vm3465_vm15, %vm3464_vm9  ;;  %vm3558_vm12 = vcmp.eq.s32.totalorder %v10504_v1, %v13474_v59 }
 0x54d   : > { %1393 = vperm.xlu2 %10156, %v636_v35   ;;  %3310 = vperm.xlu1 %10155, %v2555_v56   ;;  %v16013_v44 = vld [vmem:[#allocation56_spill] sm:$0xff] }
 0x54e   : > { %3307 = vperm.xlu0 %10154, %v2554_v60   ;;  %v2557_v60 = vld [vmem:[%s10540_s11 + $0x7d8] sm:$0xff]  ;;  %v7934_v24 = vmax.f32 %v7415_v11, 0.0  ;;  %vm1562_vm13 = vcmp.eq.s32.totalorder %v10504_v1, %v16013_v44  ;;  %v2558_v11 = vld [vmem:[%s10540_s11 + $0x7e0] sm:$0xff] }
 0x54f   : > { %v13558_v30 = vpop.permute.xlu2 %3262 }
 0x550   : > { %v13561_v12 = vpop.permute.xlu1 %1330  ;;  %v13563_v7 = vpop.f32.mrf.mxu0 }
 0x551   : > { %16010 = vst [vmem:[#allocation51_spill] sm:$0xff] %v13561_v12  ;;  %v5304_v32 = vpop.f32.mrf.mxu1  ;;  %v6360_v27 = vpop.f32.mrf.mxu2 }
 0x552   : > { %v5769_v35 = vmul.f32 %v5304_v32, %v13069_v5  ;;  %v6361_v56 = vadd.f32 %v13295_v4, %v6360_v27  ;;  %v13571_v6 = vpop.permute.xlu0 %1327  ;;  %8299 = vmatpush.bf16.xpose.msra.mxu0 %v8149_v48  ;;  %v7928_v5 = vmax.f32 %v7400_v36, 0.0 }
 0x553   : > { %v7416_v25 = vpop.f32.mrf.mxu3 }
 0x554   : > { %v5983_v9 = vpack.c.bf16 %v5769_v35, %v5768_v3  ;;  %v6852_v12 = vmax.f32 %v6361_v56, 0.0  ;;  %v7417_v40 = vadd.f32 %v13185_v61, %v7416_v25  ;;  %v8148_v35 = vpack.c.bf16 %v7929_v0, %v7928_v5  ;;  %v639_v0 = vld [vmem:[%s10422_s30 + $0x7e8] sm:$0xff] }
 0x555   : > { %3316 = vperm.xlu2 %10156, %v2557_v60   ;;  %3313 = vperm.xlu1 %10155, %v2556_v29   ;;  %v638_v60 = vld [vmem:[%s10422_s30 + $0x7e0] sm:$0xff]  ;;  %v16015_v25 = vmov 0 }
 0x556   : > { %v7935_v48 = vmax.f32 %v7417_v40, 0.0  ;;  %6402 = vmatmul.bf16.gmra.mxu2 %v5983_v9  ;;  %1396 = vperm.xlu0 %10154, %v637_v52   ;;  %v7075_v15 = vpack.c.bf16 %v6852_v12, %v6851_v14  ;;  %v16014_v14 = vld [vmem:[#allocation109_spill] sm:$0xff] }
 0x557   : > { %v13583_v32 = vpop.permute.xlu2 %3265  ;;  %vm1563_vm3 = vcmp.eq.s32.totalorder %v10504_v1, %v16014_v14  ;;  %v641_v14 = vld [vmem:[%s10422_s30 + $0x7f8] sm:$0xff] }
 0x558   : > { %7458 = vmatmul.bf16.gmra.mxu3 %v7075_v15  ;;  %v13585_v27 = vpop.permute.xlu1 %1333  ;;  %v13587_v3 = vpop.f32.mrf.mxu0  ;;  %v13589_v29 = vpack.c.bf16 %v7935_v48, %v7934_v24  ;;  %vm9605_vm10 = vmpackc.low %vm1563_vm3, %vm1562_vm13 }
 0x559   : > { %v5307_v40 = vpop.f32.mrf.mxu1  ;;  %v6363_v12 = vpop.f32.mrf.mxu2 }
 0x55a   : > { %v3251_v36 = vpop.permute.xlu0 %3250  ;;  %8300 = vmatpush.bf16.xpose.msra.mxu0 %v8148_v35  ;;  %v6364_v59 = vadd.f32 %v13295_v4, %v6363_v12  ;;  %v5770_v24 = vmul.f32 %v5307_v40, %v13103_v17  ;;  %v640_v12 = vld [vmem:[%s10422_s30 + $0x7f0] sm:$0xff]  ;;  %v16019_v17 = vmov 0  ;;  %s369_s30 = sand.u32 1, %s10295_s16  }
 0x55b   : > { %vm3559_vm0 = vcmp.eq.s32.totalorder %v10504_v1, %v3251_v36  ;;  %v7419_v56 = vpop.f32.mrf.mxu3  ;;  %9606 = vmatmul.msk.bf16.gmra.mxu0 %vm9605_vm10, %v15514_v8  ;;  %9876 = vmatmul.msk.bf16.gmra.mxu1 %vm9875_vm1, %v15514_v8  ;;  %v16022_v40 = vld [vmem:[#allocation47_spill] sm:$0xff]  ;;  %vm1565_vm1 = vcmp.eq.s32.totalorder %v10504_v1, %v12352_v34  ;;  %s8814_s12 = scalar_lea.sflag [#allocation4], %s369_s30 }
 0x55c   : > { %vm13607_vm15 = vmpackc.low %vm3559_vm0, %vm3558_vm12  ;;  %v7420_v48 = vadd.f32 %v13185_v61, %v7419_v56  ;;  %vm3466_vm13 = vcmp.eq.s32.totalorder %v10504_v1, %v16022_v40 }
 0x55d   : > { %v16016_v25 = vsel %vm13607_vm15, 4294967295, %v16015_v25  ;;  %3319 = vperm.xlu2 %10156, %v2558_v11   ;;  %1402 = vperm.xlu1 %10155, %v639_v0   ;;  %v2559_v11 = vld [vmem:[%s10540_s11 + $0x7e8] sm:$0xff]  ;;  %v6853_v0 = vmax.f32 %v6364_v59, 0.0 }
 0x55e   : > { %16017 = vst [vmem:[#allocation32_spill] sm:$0xff] %v16016_v25  ;;  %1399 = vperm.xlu0 %10154, %v638_v60  }
 0x55f   : > { %v13611_v52 = vpop.permute.xlu2 %1354 }
 0x560   : > { %16018 = vst [vmem:[#allocation103_spill] sm:$0xff] %v13611_v52  ;;  %v3257_v9 = vpop.permute.xlu1 %3256  ;;  %v13614_v26 = vpop.f32.mrf.mxu0 }
 0x561   : > { %vm3561_vm9 = vcmp.eq.s32.totalorder %v10504_v1, %v3257_v9  ;;  %v5309_v47 = vpop.f32.mrf.mxu1  ;;  %v6365_v5 = vpop.f32.mrf.mxu2  ;;  %v16023_v9 = vld [vmem:[#allocation101_spill] sm:$0xff] }
 0x562   : > { %v5771_v15 = vmul.f32 %v5309_v47, %v13130_v62  ;;  %v6366_v44 = vadd.f32 %v13295_v4, %v6365_v5  ;;  %v3254_v35 = vpop.permute.xlu0 %3253  ;;  %8301 = vmatpush.bf16.xpose.msra.mxu0 %v13382_v18  ;;  %v7936_v18 = vmax.f32 %v7420_v48, 0.0  ;;  %vm3467_vm3 = vcmp.eq.s32.totalorder %v10504_v1, %v16023_v9 }
 0x563   : > { %vm3560_vm0 = vcmp.eq.s32.totalorder %v10504_v1, %v3254_v35  ;;  %v7421_v36 = vpop.f32.mrf.mxu3  ;;  %vm13641_vm10 = vmpackc.low %vm3467_vm3, %vm3466_vm13  ;;  %v16028_v35 = vmov 0 }
 0x564   : > { %v5984_v60 = vpack.c.bf16 %v5771_v15, %v5770_v24  ;;  %v6854_v25 = vmax.f32 %v6366_v44, 0.0  ;;  %vm13628_vm12 = vmpackc.low %vm3561_vm9, %vm3560_vm0  ;;  %v7422_v62 = vadd.f32 %v13185_v61, %v7421_v36  ;;  %v16027_v24 = vld [vmem:[#allocation13_spill] sm:$0xff] }
 0x565   : > { %v16020_v17 = vsel %vm13628_vm12, 4294967295, %v16019_v17  ;;  %1408 = vperm.xlu2 %10156, %v641_v14   ;;  %1405 = vperm.xlu1 %10155, %v640_v12   ;;  %vm1564_vm9 = vcmp.eq.s32.totalorder %v10504_v1, %v16027_v24  ;;  %vm3563_vm12 = vcmp.eq.s32.totalorder %v10504_v1, %v13558_v30  ;;  %v8239_v12 = vld [vmem:[#allocation2] sm:$0x1]  ;;  %v2561_v36 = vld [vmem:[%s10540_s11 + $0x7f8] sm:$0xff]  ;;  %v2560_v30 = vld [vmem:[%s10540_s11 + $0x7f0] sm:$0xff]  ;;  %s8904_s11 = sshll.u32 %s369_s30, 4 }
 0x566   : > { %16021 = vst [vmem:[#allocation56_spill] sm:$0xff] %v16020_v17  ;;  %v7937_v56 = vmax.f32 %v7422_v62, 0.0  ;;  %6407 = vmatmul.bf16.gmra.mxu2 %v5984_v60  ;;  %3322 = vperm.xlu0 %10154, %v2559_v11   ;;  %v7076_v59 = vpack.c.bf16 %v6854_v25, %v6853_v0  ;;  %vm9607_vm0 = vmpackc.low %vm1565_vm1, %vm1564_vm9  ;;  %vm1566_vm1 = vcmp.eq.s32.totalorder %v10504_v1, %v12372_v13  ;;  %s15383_s21 = scalar_lea.vmem [#allocation3], %s8904_s11 }
 0x567   : > { %v13639_v47 = vpop.permute.xlu2 %1357  ;;  %s8826_s9 = sshll.u32 %s15383_s21, 4  ;;  %s8827_s9 = int_to_ptr.vmem [resolvable:$true] %s8826_s9 }
 0x568   : > { %16024 = vst [vmem:[#allocation109_spill] sm:$0xff] %v13639_v47  ;;  %7463 = vmatmul.bf16.gmra.mxu3 %v7076_v59  ;;  %v3260_v34 = vpop.permute.xlu1 %3259  ;;  %v13647_v48 = vpop.f32.mrf.mxu0  ;;  %v13649_v15 = vpack.c.bf16 %v7937_v56, %v7936_v18  ;;  %v16074_v47 = vld [vmem:[#allocation76_spill] sm:$0xff] }
 0x569   : > { %vm3562_vm15 = vcmp.eq.s32.totalorder %v10504_v1, %v3260_v34  ;;  %v5312_v25 = vpop.f32.mrf.mxu1  ;;  %v6368_v44 = vpop.f32.mrf.mxu2 }
 0x56a   : > { %vm13654_vm13 = vmpackc.low %vm3563_vm12, %vm3562_vm15  ;;  %v13658_v14 = vpop.permute.xlu0 %1342  ;;  %8302 = vmatpush.bf16.xpose.msra.mxu0 %v13333_v53  ;;  %v6369_v0 = vadd.f32 %v13295_v4, %v6368_v44  ;;  %v5772_v18 = vmul.f32 %v5312_v25, %v13154_v37 }
 0x56b   : > { %v16029_v35 = vsel %vm13654_vm13, 4294967295, %v16028_v35  ;;  %v7424_v11 = vpop.f32.mrf.mxu3  ;;  %9608 = vmatmul.msk.bf16.gmra.mxu0 %vm9607_vm0, %v15514_v8  ;;  %9878 = vmatmul.msk.bf16.gmra.mxu1 %vm13641_vm10, %v15514_v8  ;;  %vm3564_vm0 = vcmp.eq.s32.totalorder %v10504_v1, %v13583_v32 }
 0x56c   : > { %16030 = vst [vmem:[#allocation47_spill] sm:$0xff] %v16029_v35  ;;  %v7425_v56 = vadd.f32 %v13185_v61, %v7424_v11  ;;  %v6855_v44 = vmax.f32 %v6369_v0, 0.0  ;;  %v16031_v35 = vld [vmem:[#allocation29_spill] sm:$0xff]  ;;  %v16032_v11 = vld [vmem:[#allocation118_spill] sm:$0xff] }
 0x56d   : > { %8242 = vperm.xlu2 %10156, %v8239_v12   ;;  %3328 = vperm.xlu1 %10155, %v2561_v36   ;;  %vm3469_vm15 = vcmp.eq.s32.totalorder %v10504_v1, %v16031_v35  ;;  %vm1567_vm12 = vcmp.eq.s32.totalorder %v10504_v1, %v16032_v11 }
 0x56e   : > { %3325 = vperm.xlu0 %10154, %v2560_v30   ;;  %v7938_v37 = vmax.f32 %v7425_v56, 0.0  ;;  %vm9609_vm9 = vmpackc.low %vm1567_vm12, %vm1566_vm1  ;;  %v16034_v56 = vmov 0 }
 0x56f   : > { %v13679_v24 = vpop.permute.xlu2 %3280 }
 0x570   : > { %v13668_v60 = vpop.permute.xlu1 %1348  ;;  %v13670_v62 = vpop.f32.mrf.mxu0 }
 0x571   : > { %v5314_v53 = vpop.f32.mrf.mxu1  ;;  %v6370_v40 = vpop.f32.mrf.mxu2 }
 0x572   : > { %v5773_v59 = vmul.f32 %v5314_v53, %v13178_v16  ;;  %v6371_v9 = vadd.f32 %v13295_v4, %v6370_v40  ;;  %v13676_v5 = vpop.permute.xlu0 %1345  ;;  %8303 = vmatpush.bf16.xpose.msra.mxu0 %v13270_v28  ;;  %v16033_v28 = vld [vmem:[#allocation53_spill] sm:$0xff] }
 0x573   : > { %v7426_v34 = vpop.f32.mrf.mxu3  ;;  %vm3468_vm3 = vcmp.eq.s32.totalorder %v10504_v1, %v16033_v28 }
 0x574   : > { %v5985_v12 = vpack.c.bf16 %v5773_v59, %v5772_v18  ;;  %v6856_v36 = vmax.f32 %v6371_v9, 0.0  ;;  %v7427_v30 = vadd.f32 %v13185_v61, %v7426_v34  ;;  %vm9879_vm10 = vmpackc.low %vm3469_vm15, %vm3468_vm3 }
 0x576   : > { %v7939_v25 = vmax.f32 %v7427_v30, 0.0  ;;  %6412 = vmatmul.bf16.gmra.mxu2 %v5985_v12  ;;  %v7077_v16 = vpack.c.bf16 %v6856_v36, %v6855_v44  ;;  %v13716_v36 = vld [vmem:[%s15440_s7] ss:$0 sm:$0xff] }
 0x577   : > { %v13706_v59 = vpop.permute.xlu2 %3283 }
 0x578   : > { %7468 = vmatmul.bf16.gmra.mxu3 %v7077_v16  ;;  %v13690_v0 = vpop.permute.xlu1 %1351  ;;  %v13692_v61 = vpop.f32.mrf.mxu0  ;;  %v13694_v53 = vpack.c.bf16 %v7939_v25, %v7938_v37 }
 0x579   : > { %v5317_v35 = vpop.f32.mrf.mxu1  ;;  %v6373_v40 = vpop.f32.mrf.mxu2 }
 0x57a   : > { %v3269_v18 = vpop.permute.xlu0 %3268  ;;  %8304 = vmatpush.bf16.xpose.msra.mxu0 %v13218_v21  ;;  %v6374_v9 = vadd.f32 %v13295_v4, %v6373_v40  ;;  %v5774_v12 = vmul.f32 %v5317_v35, %v13216_v38  ;;  %v16037_v35 = vmov 0 }
 0x57b   : > { %vm3565_vm13 = vcmp.eq.s32.totalorder %v10504_v1, %v3269_v18  ;;  %v7429_v13 = vpop.f32.mrf.mxu3  ;;  %9610 = vmatmul.msk.bf16.gmra.mxu0 %vm9609_vm9, %v15514_v8  ;;  %9880 = vmatmul.msk.bf16.gmra.mxu1 %vm9879_vm10, %v15514_v8  ;;  %vm1568_vm10 = vcmp.eq.s32.totalorder %v10504_v1, %v12390_v55 }
 0x57c   : > { %vm13702_vm4 = vmpackc.low %vm3565_vm13, %vm3564_vm0  ;;  %v7430_v30 = vadd.f32 %v13716_v36, %v7429_v13  ;;  %v6857_v28 = vmax.f32 %v6374_v9, 0.0  ;;  %v16041_v13 = vld [vmem:[#allocation106_spill] sm:$0xff] }
 0x57d   : > { %v16035_v56 = vsel %vm13702_vm4, 4294967295, %v16034_v56  ;;  %vm3470_vm3 = vcmp.eq.s32.totalorder %v10504_v1, %v16041_v13 }
 0x57e   : > { %16036 = vst [vmem:[#allocation101_spill] sm:$0xff] %v16035_v56 }
 0x580   : > { %v3275_v34 = vpop.permute.xlu1 %3274  ;;  %v13709_v21 = vpop.f32.mrf.mxu0 }
 0x581   : > { %vm3567_vm15 = vcmp.eq.s32.totalorder %v10504_v1, %v3275_v34  ;;  %v5319_v32 = vpop.f32.mrf.mxu1  ;;  %v6375_v44 = vpop.f32.mrf.mxu2 }
 0x582   : > { %v5775_v37 = vmul.f32 %v5319_v32, %v13245_v10  ;;  %v6376_v25 = vadd.f32 %v13295_v4, %v6375_v44  ;;  %v3272_v16 = vpop.permute.xlu0 %3271  ;;  %8305 = vmatpush.bf16.xpose.msra.mxu0 %v13156_v19  ;;  %v16040_v10 = vld [vmem:[#allocation105_spill] sm:$0xff]  ;;  %v7940_v19 = vmax.f32 %v7430_v30, 0.0  ;;  %v13736_v34 = vpop.permute.xlu2 %1372  ;;  %v16043_v44 = vld [vmem:[#allocation114_spill] sm:$0xff] }
 0x583   : > { %vm3566_vm13 = vcmp.eq.s32.totalorder %v10504_v1, %v3272_v16  ;;  %v7431_v11 = vpop.f32.mrf.mxu3  ;;  %vm3471_vm1 = vcmp.eq.s32.totalorder %v10504_v1, %v16040_v10  ;;  %16042 = vst [vmem:[#allocation29_spill] sm:$0xff] %v13736_v34  ;;  %vm1569_vm0 = vcmp.eq.s32.totalorder %v10504_v1, %v16043_v44  ;;  %v16044_v16 = vmov 0  ;;  %v16051_v34 = vld [vmem:[#allocation22_spill] sm:$0xff] }
 0x584   : > { %v5986_v40 = vpack.c.bf16 %v5775_v37, %v5774_v12  ;;  %v6858_v38 = vmax.f32 %v6376_v25, 0.0  ;;  %vm13725_vm12 = vmpackc.low %vm3567_vm15, %vm3566_vm13  ;;  %v7432_v18 = vadd.f32 %v13716_v36, %v7431_v11  ;;  %vm3569_vm13 = vcmp.eq.s32.totalorder %v10504_v1, %v13679_v24 }
 0x585   : > { %v16038_v35 = vsel %vm13725_vm12, 4294967295, %v16037_v35  ;;  %vm9881_vm9 = vmpackc.low %vm3471_vm1, %vm3470_vm3  ;;  %vm1571_vm1 = vcmp.eq.s32.totalorder %v10504_v1, %v12445_v22 }
 0x586   : > { %16039 = vst [vmem:[#allocation13_spill] sm:$0xff] %v16038_v35  ;;  %v7941_v9 = vmax.f32 %v7432_v18, 0.0  ;;  %6417 = vmatmul.bf16.gmra.mxu2 %v5986_v40  ;;  %v7078_v32 = vpack.c.bf16 %v6858_v38, %v6857_v28  ;;  %vm9611_vm15 = vmpackc.low %vm1569_vm0, %vm1568_vm10 }
 0x588   : > { %7473 = vmatmul.bf16.gmra.mxu3 %v7078_v32  ;;  %v3278_v12 = vpop.permute.xlu1 %3277  ;;  %v13740_v37 = vpop.f32.mrf.mxu0  ;;  %v13742_v25 = vpack.c.bf16 %v7941_v9, %v7940_v19 }
 0x589   : > { %vm3568_vm12 = vcmp.eq.s32.totalorder %v10504_v1, %v3278_v12  ;;  %v5322_v55 = vpop.f32.mrf.mxu1  ;;  %v6378_v30 = vpop.f32.mrf.mxu2 }
 0x58a   : > { %vm13747_vm4 = vmpackc.low %vm3569_vm13, %vm3568_vm12  ;;  %v13751_v11 = vpop.permute.xlu0 %1360  ;;  %v6379_v40 = vadd.f32 %v13295_v4, %v6378_v30  ;;  %v5776_v13 = vmul.f32 %v5322_v55, %v13268_v46  ;;  %v13766_v12 = vpop.permute.xlu2 %1375  ;;  %vm3472_vm12 = vcmp.eq.s32.totalorder %v10504_v1, %v16051_v34  ;;  %v16055_v34 = vmov 0 }
 0x58b   : > { %v16045_v16 = vsel %vm13747_vm4, 4294967295, %v16044_v16  ;;  %16047 = vst [vmem:[#allocation53_spill] sm:$0xff] %v13751_v11  ;;  %v7434_v28 = vpop.f32.mrf.mxu3  ;;  %9612 = vmatmul.msk.bf16.gmra.mxu0 %vm9611_vm15, %v15514_v8  ;;  %9882 = vmatmul.msk.bf16.gmra.mxu1 %vm9881_vm9, %v15514_v8  ;;  %vm3570_vm15 = vcmp.eq.s32.totalorder %v10504_v1, %v13706_v59 }
 0x58c   : > { %16046 = vst [vmem:[#allocation118_spill] sm:$0xff] %v16045_v16  ;;  %v7435_v19 = vadd.f32 %v13716_v36, %v7434_v28  ;;  %v6859_v30 = vmax.f32 %v6379_v40, 0.0 }
 0x58d   : > { %16050 = vst [vmem:[#allocation114_spill] sm:$0xff] %v13766_v12 }
 0x58e   : > { %v7942_v46 = vmax.f32 %v7435_v19, 0.0 }
 0x590   : > { %v13756_v38 = vpop.permute.xlu1 %1366  ;;  %v13758_v24 = vpop.f32.mrf.mxu0 }
 0x591   : > { %16048 = vst [vmem:[#allocation105_spill] sm:$0xff] %v13756_v38  ;;  %v5324_v18 = vpop.f32.mrf.mxu1  ;;  %v6380_v10 = vpop.f32.mrf.mxu2  ;;  %v16072_v38 = vld [vmem:[#allocation110_spill] sm:$0xff] }
 0x592   : > { %v5777_v9 = vmul.f32 %v5324_v18, %v13298_v54  ;;  %v6381_v32 = vadd.f32 %v13295_v4, %v6380_v10  ;;  %v13764_v44 = vpop.permute.xlu0 %1363  ;;  %v16052_v54 = vld [vmem:[#allocation104_spill] sm:$0xff] }
 0x593   : > { %16049 = vst [vmem:[#allocation106_spill] sm:$0xff] %v13764_v44  ;;  %v7436_v16 = vpop.f32.mrf.mxu3  ;;  %vm3473_vm3 = vcmp.eq.s32.totalorder %v10504_v1, %v16052_v54 }
 0x594   : > { %v5987_v35 = vpack.c.bf16 %v5777_v9, %v5776_v13  ;;  %v6860_v56 = vmax.f32 %v6381_v32, 0.0  ;;  %v7437_v17 = vadd.f32 %v13716_v36, %v7436_v16  ;;  %vm9883_vm10 = vmpackc.low %vm3473_vm3, %vm3472_vm12  ;;  %v16054_v16 = vld [vmem:[#allocation8_spill] sm:$0xff]  ;;  %v3299_v13 = vpop.permute.xlu2 %3298 }
 0x595   : > { %vm1570_vm9 = vcmp.eq.s32.totalorder %v10504_v1, %v16054_v16 }
 0x596   : > { %v7943_v55 = vmax.f32 %v7437_v17, 0.0  ;;  %6422 = vmatmul.bf16.gmra.mxu2 %v5987_v35  ;;  %v7079_v28 = vpack.c.bf16 %v6860_v56, %v6859_v30  ;;  %vm9613_vm0 = vmpackc.low %vm1571_vm1, %vm1570_vm9 }
 0x598   : > { %7478 = vmatmul.bf16.gmra.mxu3 %v7079_v28  ;;  %v13775_v18 = vpop.permute.xlu1 %1369  ;;  %v13777_v40 = vpop.f32.mrf.mxu0  ;;  %v13779_v10 = vpack.c.bf16 %v7943_v55, %v7942_v46  ;;  %v13803_v28 = vld [vmem:[%s15438_s5] ss:$0 sm:$0xff] }
 0x599   : > { %16053 = vst [vmem:[#allocation22_spill] sm:$0xff] %v13775_v18  ;;  %v5327_v17 = vpop.f32.mrf.mxu1  ;;  %v6383_v35 = vpop.f32.mrf.mxu2 }
 0x59a   : > { %v3287_v56 = vpop.permute.xlu0 %3286  ;;  %v6384_v19 = vadd.f32 %v13295_v4, %v6383_v35  ;;  %v5778_v46 = vmul.f32 %v5327_v17, %v13331_v33  ;;  %v16061_v33 = vld [vmem:[#allocation67_spill] sm:$0xff]  ;;  %v16063_v17 = vld [vmem:[#allocation120_spill] sm:$0xff] }
 0x59b   : > { %vm3571_vm13 = vcmp.eq.s32.totalorder %v10504_v1, %v3287_v56  ;;  %v13786_v22 = vpop.f32.mrf.mxu3  ;;  %9614 = vmatmul.msk.bf16.gmra.mxu0 %vm9613_vm0, %v15514_v8  ;;  %9884 = vmatmul.msk.bf16.gmra.mxu1 %vm9883_vm10, %v15514_v8  ;;  %vm3475_vm10 = vcmp.eq.s32.totalorder %v10504_v1, %v16061_v33  ;;  %vm1572_vm0 = vcmp.eq.s32.totalorder %v10504_v1, %v16063_v17  ;;  %v16065_v33 = vmov 0 }
 0x59c   : > { %vm13790_vm4 = vmpackc.low %vm3571_vm13, %vm3570_vm15  ;;  %v6861_v35 = vmax.f32 %v6384_v19, 0.0  ;;  %v3302_v19 = vpop.permute.xlu2 %3301 }
 0x59d   : > { %v16056_v34 = vsel %vm13790_vm4, 4294967295, %v16055_v34 }
 0x59e   : > { %16057 = vst [vmem:[#allocation104_spill] sm:$0xff] %v16056_v34  ;;  %v16058_v34 = vmov 0 }
 0x5a0   : > { %v3293_v9 = vpop.permute.xlu1 %3292  ;;  %v13795_v32 = vpop.f32.mrf.mxu0 }
 0x5a1   : > { %vm3573_vm12 = vcmp.eq.s32.totalorder %v10504_v1, %v3293_v9  ;;  %v5329_v59 = vpop.f32.mrf.mxu1  ;;  %v6385_v30 = vpop.f32.mrf.mxu2 }
 0x5a2   : > { %v5779_v55 = vmul.f32 %v5329_v59, %v13356_v58  ;;  %v6386_v54 = vadd.f32 %v13803_v28, %v6385_v30  ;;  %v3290_v16 = vpop.permute.xlu0 %3289  ;;  %v16062_v58 = vld [vmem:[#allocation25_spill] sm:$0xff] }
 0x5a3   : > { %vm3572_vm1 = vcmp.eq.s32.totalorder %v10504_v1, %v3290_v16  ;;  %v13807_v4 = vpop.f32.mrf.mxu3  ;;  %vm1573_vm9 = vcmp.eq.s32.totalorder %v10504_v1, %v16062_v58  ;;  %v16064_v30 = vld [vmem:[#allocation57_spill] sm:$0xff] }
 0x5a4   : > { %v5988_v56 = vpack.c.bf16 %v5779_v55, %v5778_v46  ;;  %v6862_v9 = vmax.f32 %v6386_v54, 0.0  ;;  %vm13809_vm3 = vmpackc.low %vm3573_vm12, %vm3572_vm1  ;;  %vm3474_vm15 = vcmp.eq.s32.totalorder %v10504_v1, %v16064_v30  ;;  %vm3575_vm1 = vcmp.eq.s32.totalorder %v10504_v1, %v3299_v13  ;;  %v13840_v30 = vpop.permute.xlu2 %1390 }
 0x5a5   : > { %v16059_v34 = vsel %vm13809_vm3, 4294967295, %v16058_v34  ;;  %vm9885_vm13 = vmpackc.low %vm3475_vm10, %vm3474_vm15  ;;  %16070 = vst [vmem:[#allocation57_spill] sm:$0xff] %v13840_v30 }
 0x5a6   : > { %16060 = vst [vmem:[#allocation8_spill] sm:$0xff] %v16059_v34  ;;  %6427 = vmatmul.bf16.gmra.mxu2 %v5988_v56  ;;  %v7080_v59 = vpack.c.bf16 %v6862_v9, %v6861_v35  ;;  %vm9615_vm12 = vmpackc.low %vm1573_vm9, %vm1572_vm0  ;;  %vm1574_vm9 = vcmp.eq.s32.totalorder %v10504_v1, %v16074_v47 }
 0x5a8   : > { %7483 = vmatmul.bf16.gmra.mxu3 %v7080_v59  ;;  %v3296_v46 = vpop.permute.xlu1 %3295  ;;  %v13821_v55 = vpop.f32.mrf.mxu0 }
 0x5a9   : > { %vm3574_vm3 = vcmp.eq.s32.totalorder %v10504_v1, %v3296_v46  ;;  %v5332_v54 = vpop.f32.mrf.mxu1  ;;  %v6388_v16 = vpop.f32.mrf.mxu2 }
 0x5aa   : > { %vm13825_vm4 = vmpackc.low %vm3575_vm1, %vm3574_vm3  ;;  %v13829_v35 = vpop.permute.xlu0 %1378  ;;  %v6389_v9 = vadd.f32 %v13803_v28, %v6388_v16  ;;  %v5780_v46 = vmul.f32 %v5332_v54, %v13380_v42  ;;  %vm3477_vm3 = vcmp.eq.s32.totalorder %v10504_v1, %v16072_v38  ;;  %v16076_v54 = vld [vmem:[#allocation71_spill] sm:$0xff] }
 0x5ab   : > { %v16066_v33 = vsel %vm13825_vm4, 4294967295, %v16065_v33  ;;  %16068 = vst [vmem:[#allocation25_spill] sm:$0xff] %v13829_v35  ;;  %v13831_v56 = vpop.f32.mrf.mxu3  ;;  %9616 = vmatmul.msk.bf16.gmra.mxu0 %vm9615_vm12, %v15514_v8  ;;  %9886 = vmatmul.msk.bf16.gmra.mxu1 %vm9885_vm13, %v15514_v8  ;;  %vm1575_vm15 = vcmp.eq.s32.totalorder %v10504_v1, %v16076_v54  ;;  %vm3576_vm12 = vcmp.eq.s32.totalorder %v10504_v1, %v3302_v19 }
 0x5ac   : > { %16067 = vst [vmem:[#allocation67_spill] sm:$0xff] %v16066_v33  ;;  %v6863_v18 = vmax.f32 %v6389_v9, 0.0  ;;  %vm9617_vm13 = vmpackc.low %vm1575_vm15, %vm1574_vm9  ;;  %v13863_v47 = vpop.permute.xlu2 %1393 }
 0x5b0   : > { %v13836_v58 = vpop.permute.xlu1 %1384  ;;  %v13838_v13 = vpop.f32.mrf.mxu0 }
 0x5b1   : > { %16069 = vst [vmem:[#allocation120_spill] sm:$0xff] %v13836_v58  ;;  %v5334_v17 = vpop.f32.mrf.mxu1  ;;  %v6390_v59 = vpop.f32.mrf.mxu2  ;;  %v16073_v58 = vld [vmem:[#allocation111_spill] sm:$0xff] }
 0x5b2   : > { %v5781_v33 = vmul.f32 %v5334_v17, %v13401_v50  ;;  %v6391_v34 = vadd.f32 %v13803_v28, %v6390_v59  ;;  %v13845_v12 = vpop.permute.xlu0 %1381  ;;  %vm3476_vm10 = vcmp.eq.s32.totalorder %v10504_v1, %v16073_v58  ;;  %16077 = vst [vmem:[#allocation111_spill] sm:$0xff] %v13863_v47 }
 0x5b3   : > { %16071 = vst [vmem:[#allocation145_spill] sm:$0xff] %v13845_v12  ;;  %v7446_v35 = vpop.f32.mrf.mxu3  ;;  %vm9887_vm0 = vmpackc.low %vm3477_vm3, %vm3476_vm10  ;;  %v16081_v12 = vmov 0 }
 0x5b4   : > { %v5989_v44 = vpack.c.bf16 %v5781_v33, %v5780_v46  ;;  %v6864_v16 = vmax.f32 %v6391_v34, 0.0 }
 0x5b6   : > { %6432 = vmatmul.bf16.gmra.mxu2 %v5989_v44  ;;  %v7081_v30 = vpack.c.bf16 %v6864_v16, %v6863_v18  ;;  %v16078_v18 = vmov 0 }
 0x5b8   : > { %7488 = vmatmul.bf16.gmra.mxu3 %v7081_v30  ;;  %v13853_v42 = vpop.permute.xlu1 %1387  ;;  %v13855_v50 = vpop.f32.mrf.mxu0 }
 0x5b9   : > { %16075 = vst [vmem:[#allocation110_spill] sm:$0xff] %v13853_v42  ;;  %v5337_v34 = vpop.f32.mrf.mxu1  ;;  %v6393_v33 = vpop.f32.mrf.mxu2 }
 0x5ba   : > { %v3305_v38 = vpop.permute.xlu0 %3304  ;;  %v6394_v9 = vadd.f32 %v13803_v28, %v6393_v33  ;;  %v5782_v30 = vmul.f32 %v5337_v34, %v13433_v63  ;;  %v16084_v63 = vld [vmem:[#allocation35_spill] sm:$0xff] }
 0x5bb   : > { %vm3577_vm1 = vcmp.eq.s32.totalorder %v10504_v1, %v3305_v38  ;;  %v7449_v44 = vpop.f32.mrf.mxu3  ;;  %9618 = vmatmul.msk.bf16.gmra.mxu0 %vm9617_vm13, %v15514_v8  ;;  %9888 = vmatmul.msk.bf16.gmra.mxu1 %vm9887_vm0, %v15514_v8  ;;  %vm3478_vm0 = vcmp.eq.s32.totalorder %v10504_v1, %v16084_v63  ;;  %v16085_v34 = vld [vmem:[#allocation39_spill] sm:$0xff] }
 0x5bc   : > { %vm13865_vm4 = vmpackc.low %vm3577_vm1, %vm3576_vm12  ;;  %v7450_v46 = vadd.f32 %v13716_v36, %v7449_v44  ;;  %v6865_v33 = vmax.f32 %v6394_v9, 0.0  ;;  %vm1577_vm15 = vcmp.eq.s32.totalorder %v10504_v1, %v16085_v34  ;;  %v16086_v9 = vld [vmem:[#allocation11_spill] sm:$0xff] }
 0x5bd   : > { %v16079_v18 = vsel %vm13865_vm4, 4294967295, %v16078_v18  ;;  %vm3479_vm13 = vcmp.eq.s32.totalorder %v10504_v1, %v16086_v9 }
 0x5be   : > { %16080 = vst [vmem:[#allocation76_spill] sm:$0xff] %v16079_v18  ;;  %v7948_v44 = vmax.f32 %v7450_v46, 0.0  ;;  %vm13889_vm12 = vmpackc.low %vm3479_vm13, %vm3478_vm0  ;;  %v7445_v46 = vadd.f32 %v13716_v36, %v13831_v56 }
 0x5c0   : > { %v3311_v58 = vpop.permute.xlu1 %3310  ;;  %v13870_v17 = vpop.f32.mrf.mxu0  ;;  %v7946_v34 = vmax.f32 %v7445_v46, 0.0 }
 0x5c1   : > { %vm3579_vm3 = vcmp.eq.s32.totalorder %v10504_v1, %v3311_v58  ;;  %v5339_v19 = vpop.f32.mrf.mxu1  ;;  %v6395_v59 = vpop.f32.mrf.mxu2 }
 0x5c2   : > { %v5783_v16 = vmul.f32 %v5339_v19, %v13458_v57  ;;  %v6396_v54 = vadd.f32 %v13803_v28, %v6395_v59  ;;  %v3308_v38 = vpop.permute.xlu0 %3307  ;;  %v3317_v57 = vpop.permute.xlu2 %3316 }
 0x5c3   : > { %vm3578_vm10 = vcmp.eq.s32.totalorder %v10504_v1, %v3308_v38  ;;  %v7451_v18 = vpop.f32.mrf.mxu3 }
 0x5c4   : > { %v5990_v47 = vpack.c.bf16 %v5783_v16, %v5782_v30  ;;  %v6866_v42 = vmax.f32 %v6396_v54, 0.0  ;;  %vm13878_vm9 = vmpackc.low %vm3579_vm3, %vm3578_vm10  ;;  %v7452_v58 = vadd.f32 %v13716_v36, %v7451_v18  ;;  %v16089_v16 = vld [vmem:[#allocation63_spill] sm:$0xff]  ;;  %v7447_v18 = vadd.f32 %v13716_v36, %v7446_v35 }
 0x5c5   : > { %v16082_v12 = vsel %vm13878_vm9, 4294967295, %v16081_v12  ;;  %vm1576_vm1 = vcmp.eq.s32.totalorder %v10504_v1, %v16089_v16  ;;  %vm3581_vm10 = vcmp.eq.s32.totalorder %v10504_v1, %v3317_v57  ;;  %v7442_v57 = vadd.f32 %v13716_v36, %v13807_v4 }
 0x5c6   : > { %16083 = vst [vmem:[#allocation71_spill] sm:$0xff] %v16082_v12  ;;  %v7949_v19 = vmax.f32 %v7452_v58, 0.0  ;;  %6437 = vmatmul.bf16.gmra.mxu2 %v5990_v47  ;;  %v7082_v59 = vpack.c.bf16 %v6866_v42, %v6865_v33  ;;  %vm9619_vm3 = vmpackc.low %vm1577_vm15, %vm1576_vm1  ;;  %v16090_v33 = vmov 0  ;;  %v7947_v58 = vmax.f32 %v7447_v18, 0.0 }
 0x5c7   : > { %v7945_v4 = vmax.f32 %v7442_v57, 0.0  ;;  %v16096_v57 = vld [vmem:[#allocation33_spill] sm:$0xff] }
 0x5c8   : > { %v8158_v54 = vpack.c.bf16 %v7949_v19, %v7948_v44  ;;  %7493 = vmatmul.bf16.gmra.mxu3 %v7082_v59  ;;  %v3314_v38 = vpop.permute.xlu1 %3313  ;;  %v13896_v63 = vpop.f32.mrf.mxu0  ;;  %v8157_v19 = vpack.c.bf16 %v7947_v58, %v7946_v34  ;;  %v7440_v59 = vadd.f32 %v13716_v36, %v13786_v22  ;;  %v16093_v34 = vld [vmem:[#allocation20_spill] sm:$0xff] }
 0x5c9   : > { %vm3580_vm9 = vcmp.eq.s32.totalorder %v10504_v1, %v3314_v38  ;;  %v5342_v42 = vpop.f32.mrf.mxu1  ;;  %v6398_v47 = vpop.f32.mrf.mxu2 }
 0x5ca   : > { %vm13902_vm0 = vmpackc.low %vm3581_vm10, %vm3580_vm9  ;;  %8311 = vmatpush.bf16.xpose.msra.mxu1 %v8158_v54  ;;  %v6399_v44 = vadd.f32 %v13803_v28, %v6398_v47  ;;  %v5784_v54 = vmul.f32 %v5342_v42, %v13480_v45  ;;  %vm3481_vm9 = vcmp.eq.s32.totalorder %v10504_v1, %v16093_v34  ;;  %v7944_v22 = vmax.f32 %v7440_v59, 0.0 }
 0x5cb   : > { %v16091_v33 = vsel %vm13902_vm0, 4294967295, %v16090_v33  ;;  %v7454_v35 = vpop.f32.mrf.mxu3  ;;  %9620 = vmatmul.msk.bf16.gmra.mxu0 %vm9619_vm3, %v15514_v8  ;;  %9890 = vmatmul.msk.bf16.gmra.mxu1 %vm13889_vm12, %v15514_v8  ;;  %vm3480_vm12 = vcmp.eq.s32.totalorder %v10504_v1, %v16096_v57  ;;  %v16099_v57 = vld [vmem:[#allocation9_spill] sm:$0xff] }
 0x5cc   : > { %16092 = vst [vmem:[#allocation35_spill] sm:$0xff] %v16091_v33  ;;  %v7455_v30 = vadd.f32 %v13716_v36, %v7454_v35  ;;  %v6867_v47 = vmax.f32 %v6399_v44, 0.0  ;;  %v16094_v35 = vld [vmem:[#allocation124_spill] sm:$0xff]  ;;  %vm9891_vm1 = vmpackc.low %vm3481_vm9, %vm3480_vm12 }
 0x5cd   : > { %vm1579_vm15 = vcmp.eq.s32.totalorder %v10504_v1, %v16094_v35  ;;  %v16098_v35 = vld [vmem:[#allocation116_spill] sm:$0xff] }
 0x5ce   : > { %v7950_v11 = vmax.f32 %v7455_v30, 0.0  ;;  %vm3482_vm9 = vcmp.eq.s32.totalorder %v10504_v1, %v16098_v35  ;;  %v16101_v35 = vld [vmem:[#allocation28_spill] sm:$0xff] }
 0x5d0   : > { %v13913_v56 = vpop.f32.mrf.mxu0 }
 0x5d1   : > { %v5344_v9 = vpop.f32.mrf.mxu1  ;;  %v6400_v16 = vpop.f32.mrf.mxu2 }
 0x5d2   : > { %v5785_v18 = vmul.f32 %v5344_v9, %v13499_v51  ;;  %v6401_v38 = vadd.f32 %v13803_v28, %v6400_v16  ;;  %8312 = vmatpush.bf16.xpose.msra.mxu1 %v8157_v19  ;;  %v16095_v51 = vld [vmem:[#allocation125_spill] sm:$0xff]  ;;  %v8156_v19 = vpack.c.bf16 %v7945_v4, %v7944_v22 }
 0x5d3   : > { %v7456_v46 = vpop.f32.mrf.mxu3  ;;  %vm1578_vm13 = vcmp.eq.s32.totalorder %v10504_v1, %v16095_v51 }
 0x5d4   : > { %v5991_v33 = vpack.c.bf16 %v5785_v18, %v5784_v54  ;;  %v6868_v12 = vmax.f32 %v6401_v38, 0.0  ;;  %v7457_v58 = vadd.f32 %v13716_v36, %v7456_v46  ;;  %vm9621_vm3 = vmpackc.low %vm1579_vm15, %vm1578_vm13  ;;  %vm1580_vm15 = vcmp.eq.s32.totalorder %v10504_v1, %v16099_v57 }
 0x5d6   : > { %v7951_v45 = vmax.f32 %v7457_v58, 0.0  ;;  %6442 = vmatmul.bf16.gmra.mxu2 %v5991_v33  ;;  %v7083_v42 = vpack.c.bf16 %v6868_v12, %v6867_v47 }
 0x5d8   : > { %7498 = vmatmul.bf16.gmra.mxu3 %v7083_v42  ;;  %v13930_v44 = vpop.f32.mrf.mxu0  ;;  %v13932_v9 = vpack.c.bf16 %v7951_v45, %v7950_v11  ;;  %v16097_v42 = vld [vmem:[#allocation115_spill] sm:$0xff] }
 0x5d9   : > { %v5347_v59 = vpop.f32.mrf.mxu1  ;;  %v6403_v16 = vpop.f32.mrf.mxu2  ;;  %vm3483_vm10 = vcmp.eq.s32.totalorder %v10504_v1, %v16097_v42 }
 0x5da   : > { %8313 = vmatpush.bf16.xpose.msra.mxu1 %v8156_v19  ;;  %v6404_v33 = vadd.f32 %v13803_v28, %v6403_v16  ;;  %v5786_v38 = vmul.f32 %v5347_v59, %v13533_v49  ;;  %vm9893_vm13 = vmpackc.low %vm3483_vm10, %vm3482_vm9  ;;  %v16100_v59 = vld [vmem:[#allocation121_spill] sm:$0xff] }
 0x5db   : > { %v7459_v12 = vpop.f32.mrf.mxu3  ;;  %9622 = vmatmul.msk.bf16.gmra.mxu0 %vm9621_vm3, %v15514_v8  ;;  %9892 = vmatmul.msk.bf16.gmra.mxu1 %vm9891_vm1, %v15514_v8  ;;  %vm1581_vm12 = vcmp.eq.s32.totalorder %v10504_v1, %v16100_v59  ;;  %vm3484_vm3 = vcmp.eq.s32.totalorder %v10504_v1, %v16101_v35  ;;  %v16104_v59 = vld [vmem:[#allocation65_spill] sm:$0xff]  ;;  %v16105_v35 = vld [vmem:[#allocation62_spill] sm:$0xff] }
 0x5dc   : > { %v7460_v11 = vadd.f32 %v13716_v36, %v7459_v12  ;;  %v6869_v58 = vmax.f32 %v6404_v33, 0.0  ;;  %vm9623_vm1 = vmpackc.low %vm1581_vm12, %vm1580_vm15 }
 0x5de   : > { %v7952_v49 = vmax.f32 %v7460_v11, 0.0 }
 0x5e0   : > { %v13937_v54 = vpop.f32.mrf.mxu0 }
 0x5e1   : > { %v5349_v30 = vpop.f32.mrf.mxu1  ;;  %v6405_v18 = vpop.f32.mrf.mxu2 }
 0x5e2   : > { %v5787_v4 = vmul.f32 %v5349_v30, %v13563_v7  ;;  %v6406_v46 = vadd.f32 %v13803_v28, %v6405_v18  ;;  %8314 = vmatpush.bf16.xpose.msra.mxu1 %v13779_v10 }
 0x5e3   : > { %v7461_v47 = vpop.f32.mrf.mxu3 }
 0x5e4   : > { %v5992_v34 = vpack.c.bf16 %v5787_v4, %v5786_v38  ;;  %v6870_v22 = vmax.f32 %v6406_v46, 0.0  ;;  %v7462_v45 = vadd.f32 %v13716_v36, %v7461_v47 }
 0x5e6   : > { %v7953_v51 = vmax.f32 %v7462_v45, 0.0  ;;  %6447 = vmatmul.bf16.gmra.mxu2 %v5992_v34  ;;  %v7084_v7 = vpack.c.bf16 %v6870_v22, %v6869_v58 }
 0x5e8   : > { %7503 = vmatmul.bf16.gmra.mxu3 %v7084_v7  ;;  %v13951_v10 = vpop.f32.mrf.mxu0  ;;  %v13953_v19 = vpack.c.bf16 %v7953_v51, %v7952_v49  ;;  %v16102_v7 = vld [vmem:[#allocation129_spill] sm:$0xff] }
 0x5e9   : > { %v5352_v16 = vpop.f32.mrf.mxu1  ;;  %v6408_v12 = vpop.f32.mrf.mxu2  ;;  %vm1583_vm10 = vcmp.eq.s32.totalorder %v10504_v1, %v16102_v7 }
 0x5ea   : > { %8315 = vmatpush.bf16.xpose.msra.mxu1 %v13742_v25  ;;  %v6409_v30 = vadd.f32 %v13803_v28, %v6408_v12  ;;  %v5788_v4 = vmul.f32 %v5352_v16, %v13587_v3 }
 0x5eb   : > { %v7464_v33 = vpop.f32.mrf.mxu3  ;;  %9624 = vmatmul.msk.bf16.gmra.mxu0 %vm9623_vm1, %v15514_v8  ;;  %9894 = vmatmul.msk.bf16.gmra.mxu1 %vm9893_vm13, %v15514_v8  ;;  %vm1582_vm13 = vcmp.eq.s32.totalorder %v10504_v1, %v16104_v59  ;;  %vm3487_vm1 = vcmp.eq.s32.totalorder %v10504_v1, %v16105_v35  ;;  %v16109_v35 = vld [vmem:[#allocation68_spill] sm:$0xff] }
 0x5ec   : > { %v7465_v46 = vadd.f32 %v13716_v36, %v7464_v33  ;;  %v6871_v34 = vmax.f32 %v6409_v30, 0.0  ;;  %vm9625_vm12 = vmpackc.low %vm1583_vm10, %vm1582_vm13 }
 0x5ee   : > { %v7954_v49 = vmax.f32 %v7465_v46, 0.0 }
 0x5f0   : > { %v13961_v18 = vpop.f32.mrf.mxu0 }
 0x5f1   : > { %v5354_v38 = vpop.f32.mrf.mxu1  ;;  %v6410_v11 = vpop.f32.mrf.mxu2 }
 0x5f2   : > { %v5789_v47 = vmul.f32 %v5354_v38, %v13614_v26  ;;  %v6411_v58 = vadd.f32 %v13803_v28, %v6410_v11  ;;  %8316 = vmatpush.bf16.xpose.msra.mxu1 %v13694_v53  ;;  %v16103_v26 = vld [vmem:[#allocation64_spill] sm:$0xff] }
 0x5f3   : > { %v7466_v25 = vpop.f32.mrf.mxu3  ;;  %vm3485_vm9 = vcmp.eq.s32.totalorder %v10504_v1, %v16103_v26 }
 0x5f4   : > { %v5993_v22 = vpack.c.bf16 %v5789_v47, %v5788_v4  ;;  %v6872_v45 = vmax.f32 %v6411_v58, 0.0  ;;  %v7467_v42 = vadd.f32 %v13716_v36, %v7466_v25  ;;  %vm9895_vm15 = vmpackc.low %vm3485_vm9, %vm3484_vm3 }
 0x5f6   : > { %v7955_v51 = vmax.f32 %v7467_v42, 0.0  ;;  %6452 = vmatmul.bf16.gmra.mxu2 %v5993_v22  ;;  %v7085_v3 = vpack.c.bf16 %v6872_v45, %v6871_v34 }
 0x5f8   : > { %7508 = vmatmul.bf16.gmra.mxu3 %v7085_v3  ;;  %v13975_v53 = vpop.f32.mrf.mxu0  ;;  %v13977_v57 = vpack.c.bf16 %v7955_v51, %v7954_v49  ;;  %v16106_v3 = vld [vmem:[#allocation131_spill] sm:$0xff] }
 0x5f9   : > { %v5357_v16 = vpop.f32.mrf.mxu1  ;;  %v6413_v12 = vpop.f32.mrf.mxu2  ;;  %vm1585_vm3 = vcmp.eq.s32.totalorder %v10504_v1, %v16106_v3  ;;  %v16111_v3 = vld [vmem:[#allocation70_spill] sm:$0xff] }
 0x5fa   : > { %8317 = vmatpush.bf16.xpose.msra.mxu1 %v13649_v15  ;;  %v6414_v30 = vadd.f32 %v13803_v28, %v6413_v12  ;;  %v5790_v46 = vmul.f32 %v5357_v16, %v13647_v48 }
 0x5fb   : > { %v7469_v33 = vpop.f32.mrf.mxu3  ;;  %9626 = vmatmul.msk.bf16.gmra.mxu0 %vm9625_vm12, %v15514_v8  ;;  %9896 = vmatmul.msk.bf16.gmra.mxu1 %vm9895_vm15, %v15514_v8  ;;  %vm3489_vm12 = vcmp.eq.s32.totalorder %v10504_v1, %v16109_v35 }
 0x5fc   : > { %v7470_v47 = vadd.f32 %v13716_v36, %v7469_v33  ;;  %v6873_v34 = vmax.f32 %v6414_v30, 0.0 }
 0x5fe   : > { %v7956_v49 = vmax.f32 %v7470_v47, 0.0 }
 0x600   : > { %v13985_v38 = vpop.f32.mrf.mxu0 }
 0x601   : > { %v5359_v11 = vpop.f32.mrf.mxu1  ;;  %v6415_v4 = vpop.f32.mrf.mxu2 }
 0x602   : > { %v5791_v58 = vmul.f32 %v5359_v11, %v13670_v62  ;;  %v6416_v25 = vadd.f32 %v13803_v28, %v6415_v4  ;;  %8318 = vmatpush.bf16.xpose.msra.mxu1 %v13589_v29  ;;  %v16107_v62 = vld [vmem:[#allocation132_spill] sm:$0xff]  ;;  %v16108_v29 = vld [vmem:[#allocation59_spill] sm:$0xff] }
 0x603   : > { %v7471_v15 = vpop.f32.mrf.mxu3  ;;  %vm1584_vm10 = vcmp.eq.s32.totalorder %v10504_v1, %v16107_v62  ;;  %vm3486_vm9 = vcmp.eq.s32.totalorder %v10504_v1, %v16108_v29  ;;  %v16112_v29 = vld [vmem:[#allocation126_spill] sm:$0xff] }
 0x604   : > { %v5994_v22 = vpack.c.bf16 %v5791_v58, %v5790_v46  ;;  %v6874_v45 = vmax.f32 %v6416_v25, 0.0  ;;  %v7472_v42 = vadd.f32 %v13716_v36, %v7471_v15  ;;  %vm9897_vm15 = vmpackc.low %vm3487_vm1, %vm3486_vm9  ;;  %vm1587_vm9 = vcmp.eq.s32.totalorder %v10504_v1, %v16112_v29 }
 0x605   : > { %vm9627_vm13 = vmpackc.low %vm1585_vm3, %vm1584_vm10  ;;  %vm1586_vm3 = vcmp.eq.s32.totalorder %v10504_v1, %v16111_v3 }
 0x606   : > { %v7957_v51 = vmax.f32 %v7472_v42, 0.0  ;;  %6457 = vmatmul.bf16.gmra.mxu2 %v5994_v22  ;;  %v7086_v48 = vpack.c.bf16 %v6874_v45, %v6873_v34 }
 0x608   : > { %7513 = vmatmul.bf16.gmra.mxu3 %v7086_v48  ;;  %v14001_v7 = vpop.f32.mrf.mxu0  ;;  %v14003_v26 = vpack.c.bf16 %v7957_v51, %v7956_v49  ;;  %v16110_v49 = vld [vmem:[#allocation119_spill] sm:$0xff] }
 0x609   : > { %v5362_v59 = vpop.f32.mrf.mxu1  ;;  %v6418_v16 = vpop.f32.mrf.mxu2  ;;  %vm3488_vm1 = vcmp.eq.s32.totalorder %v10504_v1, %v16110_v49  ;;  %v16114_v49 = vld [vmem:[#allocation19_spill] sm:$0xff] }
 0x60a   : > { %v6419_v33 = vadd.f32 %v13803_v28, %v6418_v16  ;;  %v5792_v46 = vmul.f32 %v5362_v59, %v13692_v61  ;;  %vm9899_vm10 = vmpackc.low %vm3489_vm12, %vm3488_vm1  ;;  %vm1589_vm12 = vcmp.eq.s32.totalorder %v10504_v1, %v16114_v49  ;;  %v16119_v49 = vld [vmem:[#allocation136_spill] sm:$0xff] }
 0x60b   : > { %v7474_v12 = vpop.f32.mrf.mxu3  ;;  %9628 = vmatmul.msk.bf16.gmra.mxu0 %vm9627_vm13, %v15514_v8  ;;  %9898 = vmatmul.msk.bf16.gmra.mxu1 %vm9897_vm15, %v15514_v8  ;;  %vm9629_vm15 = vmpackc.low %vm1587_vm9, %vm1586_vm3 }
 0x60c   : > { %v7475_v47 = vadd.f32 %v13716_v36, %v7474_v12  ;;  %v6875_v34 = vmax.f32 %v6419_v33, 0.0 }
 0x60e   : > { %v7958_v51 = vmax.f32 %v7475_v47, 0.0 }
 0x610   : > { %v14008_v30 = vpop.f32.mrf.mxu0 }
 0x611   : > { %v5364_v11 = vpop.f32.mrf.mxu1  ;;  %v6420_v4 = vpop.f32.mrf.mxu2 }
 0x612   : > { %v5793_v58 = vmul.f32 %v5364_v11, %v13709_v21  ;;  %v6421_v25 = vadd.f32 %v13803_v28, %v6420_v4 }
 0x613   : > { %v7476_v15 = vpop.f32.mrf.mxu3 }
 0x614   : > { %v5995_v22 = vpack.c.bf16 %v5793_v58, %v5792_v46  ;;  %v6876_v45 = vmax.f32 %v6421_v25, 0.0  ;;  %v7477_v42 = vadd.f32 %v13716_v36, %v7476_v15 }
 0x616   : > { %v7959_v61 = vmax.f32 %v7477_v42, 0.0  ;;  %6462 = vmatmul.bf16.gmra.mxu2 %v5995_v22  ;;  %v7087_v48 = vpack.c.bf16 %v6876_v45, %v6875_v34  ;;  %v16113_v42 = vld [vmem:[#allocation26_spill] sm:$0xff] }
 0x617   : > { %vm3490_vm13 = vcmp.eq.s32.totalorder %v10504_v1, %v16113_v42 }
 0x618   : > { %7518 = vmatmul.bf16.gmra.mxu3 %v7087_v48  ;;  %v14021_v21 = vpop.f32.mrf.mxu0  ;;  %v14023_v62 = vpack.c.bf16 %v7959_v61, %v7958_v51  ;;  %v16115_v51 = vld [vmem:[#allocation117_spill] sm:$0xff] }
 0x619   : > { %v5367_v59 = vpop.f32.mrf.mxu1  ;;  %v6423_v16 = vpop.f32.mrf.mxu2  ;;  %vm3491_vm1 = vcmp.eq.s32.totalorder %v10504_v1, %v16115_v51 }
 0x61a   : > { %v6424_v33 = vadd.f32 %v13803_v28, %v6423_v16  ;;  %v5794_v47 = vmul.f32 %v5367_v59, %v13740_v37  ;;  %vm9901_vm3 = vmpackc.low %vm3491_vm1, %vm3490_vm13 }
 0x61b   : > { %v14027_v12 = vpop.f32.mrf.mxu3  ;;  %9630 = vmatmul.msk.bf16.gmra.mxu0 %vm9629_vm15, %v15514_v8  ;;  %9900 = vmatmul.msk.bf16.gmra.mxu1 %vm9899_vm10, %v15514_v8 }
 0x61c   : > { %v6877_v34 = vmax.f32 %v6424_v33, 0.0 }
 0x620   : > { %v14032_v11 = vpop.f32.mrf.mxu0 }
 0x621   : > { %v5369_v4 = vpop.f32.mrf.mxu1  ;;  %v6425_v46 = vpop.f32.mrf.mxu2 }
 0x622   : > { %v5795_v58 = vmul.f32 %v5369_v4, %v13758_v24  ;;  %v6426_v25 = vadd.f32 %v13803_v28, %v6425_v46  ;;  %v16116_v24 = vld [vmem:[#allocation17_spill] sm:$0xff] }
 0x623   : > { %v14037_v15 = vpop.f32.mrf.mxu3  ;;  %vm1588_vm10 = vcmp.eq.s32.totalorder %v10504_v1, %v16116_v24 }
 0x624   : > { %v5996_v22 = vpack.c.bf16 %v5795_v58, %v5794_v47  ;;  %v6878_v45 = vmax.f32 %v6426_v25, 0.0  ;;  %vm9631_vm9 = vmpackc.low %vm1589_vm12, %vm1588_vm10  ;;  %vm1590_vm12 = vcmp.eq.s32.totalorder %v10504_v1, %v16119_v49  ;;  %v16121_v49 = vld [vmem:[#allocation122_spill] sm:$0xff] }
 0x626   : > { %6467 = vmatmul.bf16.gmra.mxu2 %v5996_v22  ;;  %v7088_v35 = vpack.c.bf16 %v6878_v45, %v6877_v34  ;;  %v16117_v45 = vld [vmem:[#allocation14_spill] sm:$0xff] }
 0x627   : > { %vm3493_vm15 = vcmp.eq.s32.totalorder %v10504_v1, %v16117_v45 }
 0x628   : > { %7523 = vmatmul.bf16.gmra.mxu3 %v7088_v35  ;;  %v14045_v37 = vpop.f32.mrf.mxu0  ;;  %v16118_v35 = vld [vmem:[#allocation81_spill] sm:$0xff] }
 0x629   : > { %v5372_v61 = vpop.f32.mrf.mxu1  ;;  %v6428_v48 = vpop.f32.mrf.mxu2  ;;  %vm1591_vm13 = vcmp.eq.s32.totalorder %v10504_v1, %v16118_v35 }
 0x62a   : > { %v6429_v29 = vadd.f32 %v13803_v28, %v6428_v48  ;;  %v5796_v4 = vmul.f32 %v5372_v61, %v13777_v40  ;;  %v16120_v40 = vld [vmem:[#allocation61_spill] sm:$0xff]  ;;  %vm9633_vm10 = vmpackc.low %vm1591_vm13, %vm1590_vm12 }
 0x62b   : > { %v7484_v3 = vpop.f32.mrf.mxu3  ;;  %9632 = vmatmul.msk.bf16.gmra.mxu0 %vm9631_vm9, %v15514_v8  ;;  %9902 = vmatmul.msk.bf16.gmra.mxu1 %vm9901_vm3, %v15514_v8  ;;  %vm3492_vm1 = vcmp.eq.s32.totalorder %v10504_v1, %v16120_v40  ;;  %vm3495_vm9 = vcmp.eq.s32.totalorder %v10504_v1, %v16121_v49  ;;  %v16122_v40 = vld [vmem:[#allocation123_spill] sm:$0xff]  ;;  %v7480_v49 = vadd.f32 %v13716_v36, %v14027_v12 }
 0x62c   : > { %v6879_v25 = vmax.f32 %v6429_v29, 0.0  ;;  %vm9903_vm3 = vmpackc.low %vm3493_vm15, %vm3492_vm1  ;;  %vm3494_vm15 = vcmp.eq.s32.totalorder %v10504_v1, %v16122_v40 }
 0x62d   : > { %vm9905_vm12 = vmpackc.low %vm3495_vm9, %vm3494_vm15  ;;  %v7960_v12 = vmax.f32 %v7480_v49, 0.0 }
 0x630   : > { %v14052_v59 = vpop.f32.mrf.mxu0 }
 0x631   : > { %v5374_v16 = vpop.f32.mrf.mxu1  ;;  %v6430_v33 = vpop.f32.mrf.mxu2 }
 0x632   : > { %v5797_v46 = vmul.f32 %v5374_v16, %v13795_v32  ;;  %v6431_v47 = vadd.f32 %v13803_v28, %v6430_v33 }
 0x633   : > { %v7486_v58 = vpop.f32.mrf.mxu3 }
 0x634   : > { %v5997_v34 = vpack.c.bf16 %v5797_v46, %v5796_v4  ;;  %v6880_v22 = vmax.f32 %v6431_v47, 0.0 }
 0x636   : > { %6472 = vmatmul.bf16.gmra.mxu2 %v5997_v34  ;;  %v7089_v42 = vpack.c.bf16 %v6880_v22, %v6879_v25 }
 0x638   : > { %7528 = vmatmul.bf16.gmra.mxu3 %v7089_v42  ;;  %v14065_v32 = vpop.f32.mrf.mxu0 }
 0x639   : > { %v5377_v51 = vpop.f32.mrf.mxu1  ;;  %v6433_v24 = vpop.f32.mrf.mxu2 }
 0x63a   : > { %v6434_v48 = vadd.f32 %v13803_v28, %v6433_v24  ;;  %v5798_v4 = vmul.f32 %v5377_v51, %v13821_v55 }
 0x63b   : > { %v7489_v61 = vpop.f32.mrf.mxu3  ;;  %9634 = vmatmul.msk.bf16.gmra.mxu0 %vm9633_vm10, %v15514_v8  ;;  %9904 = vmatmul.msk.bf16.gmra.mxu1 %vm9903_vm3, %v15514_v8 }
 0x63c   : > { %v7490_v46 = vadd.f32 %v13716_v36, %v7489_v61  ;;  %v6881_v22 = vmax.f32 %v6434_v48, 0.0  ;;  %v16123_v61 = vld [vmem:[#allocation30_spill] sm:$0xff] }
 0x63d   : > { %vm1592_vm13 = vcmp.eq.s32.totalorder %v10504_v1, %v16123_v61 }
 0x63e   : > { %v7964_v24 = vmax.f32 %v7490_v46, 0.0  ;;  %v7485_v46 = vadd.f32 %v13716_v36, %v7484_v3 }
 0x640   : > { %v14070_v29 = vpop.f32.mrf.mxu0 }
 0x641   : > { %v5379_v16 = vpop.f32.mrf.mxu1  ;;  %v6435_v33 = vpop.f32.mrf.mxu2 }
 0x642   : > { %v5799_v47 = vmul.f32 %v5379_v16, %v13838_v13  ;;  %v6436_v25 = vadd.f32 %v13803_v28, %v6435_v33  ;;  %v7487_v13 = vadd.f32 %v13716_v36, %v7486_v58  ;;  %v16124_v33 = vld [vmem:[#allocation133_spill] sm:$0xff] }
 0x643   : > { %v7491_v34 = vpop.f32.mrf.mxu3  ;;  %vm1593_vm1 = vcmp.eq.s32.totalorder %v10504_v1, %v16124_v33 }
 0x644   : > { %v5998_v45 = vpack.c.bf16 %v5799_v47, %v5798_v4  ;;  %v6882_v42 = vmax.f32 %v6436_v25, 0.0  ;;  %v7492_v35 = vadd.f32 %v13716_v36, %v7491_v34  ;;  %vm9635_vm3 = vmpackc.low %vm1593_vm1, %vm1592_vm13  ;;  %v7963_v58 = vmax.f32 %v7487_v13, 0.0 }
 0x645   : > { %v7962_v34 = vmax.f32 %v7485_v46, 0.0 }
 0x646   : > { %v7965_v55 = vmax.f32 %v7492_v35, 0.0  ;;  %6477 = vmatmul.bf16.gmra.mxu2 %v5998_v45  ;;  %v7090_v51 = vpack.c.bf16 %v6882_v42, %v6881_v22  ;;  %v7482_v22 = vadd.f32 %v13716_v36, %v14037_v15 }
 0x647   : > { %v8165_v35 = vpack.c.bf16 %v7963_v58, %v7962_v34  ;;  %v16125_v58 = vld [vmem:[#allocation66_spill] sm:$0xff] }
 0x648   : > { %v8166_v48 = vpack.c.bf16 %v7965_v55, %v7964_v24  ;;  %7533 = vmatmul.bf16.gmra.mxu3 %v7090_v51  ;;  %v14084_v16 = vpop.f32.mrf.mxu0  ;;  %v7961_v15 = vmax.f32 %v7482_v22, 0.0  ;;  %vm3496_vm10 = vcmp.eq.s32.totalorder %v10504_v1, %v16125_v58 }
 0x649   : > { %v5382_v4 = vpop.f32.mrf.mxu1  ;;  %v6438_v47 = vpop.f32.mrf.mxu2 }
 0x64a   : > { %8324 = vmatpush.bf16.xpose.msra.mxu2 %v8166_v48  ;;  %v6439_v45 = vadd.f32 %v13803_v28, %v6438_v47  ;;  %v5800_v24 = vmul.f32 %v5382_v4, %v13855_v50 }
 0x64b   : > { %v7494_v25 = vpop.f32.mrf.mxu3  ;;  %9636 = vmatmul.msk.bf16.gmra.mxu0 %vm9635_vm3, %v15514_v8  ;;  %9906 = vmatmul.msk.bf16.gmra.mxu1 %vm9905_vm12, %v15514_v8 }
 0x64c   : > { %v7495_v55 = vadd.f32 %v13716_v36, %v7494_v25  ;;  %v6883_v48 = vmax.f32 %v6439_v45, 0.0  ;;  %v16126_v25 = vld [vmem:[#allocation42_spill] sm:$0xff]  ;;  %v8164_v45 = vpack.c.bf16 %v7961_v15, %v7960_v12 }
 0x64d   : > { %vm1595_vm9 = vcmp.eq.s32.totalorder %v10504_v1, %v16126_v25 }
 0x64e   : > { %v7966_v34 = vmax.f32 %v7495_v55, 0.0 }
 0x650   : > { %v14094_v42 = vpop.f32.mrf.mxu0 }
 0x651   : > { %v5384_v3 = vpop.f32.mrf.mxu1  ;;  %v6440_v40 = vpop.f32.mrf.mxu2 }
 0x652   : > { %v5801_v51 = vmul.f32 %v5384_v3, %v13870_v17  ;;  %v6441_v61 = vadd.f32 %v13803_v28, %v6440_v40  ;;  %8325 = vmatpush.bf16.xpose.msra.mxu2 %v8165_v35  ;;  %v16127_v17 = vld [vmem:[#allocation24_spill] sm:$0xff] }
 0x653   : > { %v7496_v13 = vpop.f32.mrf.mxu3  ;;  %vm3497_vm15 = vcmp.eq.s32.totalorder %v10504_v1, %v16127_v17  ;;  %v16128_v3 = vld [vmem:[#allocation36_spill] sm:$0xff] }
 0x654   : > { %v5999_v33 = vpack.c.bf16 %v5801_v51, %v5800_v24  ;;  %v6884_v47 = vmax.f32 %v6441_v61, 0.0  ;;  %v7497_v46 = vadd.f32 %v13716_v36, %v7496_v13  ;;  %vm9907_vm13 = vmpackc.low %vm3497_vm15, %vm3496_vm10  ;;  %vm1594_vm12 = vcmp.eq.s32.totalorder %v10504_v1, %v16128_v3 }
 0x655   : > { %vm9637_vm1 = vmpackc.low %vm1595_vm9, %vm1594_vm12 }
 0x656   : > { %v7967_v50 = vmax.f32 %v7497_v46, 0.0  ;;  %6482 = vmatmul.bf16.gmra.mxu2 %v5999_v33  ;;  %v7091_v4 = vpack.c.bf16 %v6884_v47, %v6883_v48 }
 0x658   : > { %7538 = vmatmul.bf16.gmra.mxu3 %v7091_v4  ;;  %v14109_v22 = vpop.f32.mrf.mxu0  ;;  %v14111_v35 = vpack.c.bf16 %v7967_v50, %v7966_v34  ;;  %v16129_v4 = vld [vmem:[#allocation27_spill] sm:$0xff] }
 0x659   : > { %v5387_v49 = vpop.f32.mrf.mxu1  ;;  %v6443_v40 = vpop.f32.mrf.mxu2  ;;  %vm3499_vm3 = vcmp.eq.s32.totalorder %v10504_v1, %v16129_v4 }
 0x65a   : > { %8326 = vmatpush.bf16.xpose.msra.mxu2 %v8164_v45  ;;  %v6444_v55 = vadd.f32 %v13803_v28, %v6443_v40  ;;  %v5802_v13 = vmul.f32 %v5387_v49, %v13896_v63  ;;  %v16130_v45 = vld [vmem:[#allocation84_spill] sm:$0xff] }
 0x65b   : > { %v7499_v24 = vpop.f32.mrf.mxu3  ;;  %9638 = vmatmul.msk.bf16.gmra.mxu0 %vm9637_vm1, %v15514_v8  ;;  %9908 = vmatmul.msk.bf16.gmra.mxu1 %vm9907_vm13, %v15514_v8  ;;  %vm1597_vm10 = vcmp.eq.s32.totalorder %v10504_v1, %v16130_v45  ;;  %v16135_v45 = vld [vmem:[#allocation37_spill] sm:$0xff] }
 0x65c   : > { %v7500_v48 = vadd.f32 %v13716_v36, %v7499_v24  ;;  %v6885_v58 = vmax.f32 %v6444_v55, 0.0 }
 0x65e   : > { %v7968_v25 = vmax.f32 %v7500_v48, 0.0 }
 0x660   : > { %v14118_v51 = vpop.f32.mrf.mxu0 }
 0x661   : > { %v5389_v61 = vpop.f32.mrf.mxu1  ;;  %v6445_v15 = vpop.f32.mrf.mxu2 }
 0x662   : > { %v5803_v33 = vmul.f32 %v5389_v61, %v13913_v56  ;;  %v6446_v47 = vadd.f32 %v13803_v28, %v6445_v15  ;;  %8327 = vmatpush.bf16.xpose.msra.mxu2 %v14023_v62  ;;  %v16131_v56 = vld [vmem:[#allocation137_spill] sm:$0xff]  ;;  %v16132_v62 = vld [vmem:[#allocation15_spill] sm:$0xff] }
 0x663   : > { %v7501_v46 = vpop.f32.mrf.mxu3  ;;  %vm1596_vm9 = vcmp.eq.s32.totalorder %v10504_v1, %v16131_v56  ;;  %vm3498_vm15 = vcmp.eq.s32.totalorder %v10504_v1, %v16132_v62  ;;  %v16136_v62 = vld [vmem:[#allocation92_spill] sm:$0xff] }
 0x664   : > { %v6000_v12 = vpack.c.bf16 %v5803_v33, %v5802_v13  ;;  %v6886_v34 = vmax.f32 %v6446_v47, 0.0  ;;  %v7502_v50 = vadd.f32 %v13716_v36, %v7501_v46  ;;  %vm9909_vm13 = vmpackc.low %vm3499_vm3, %vm3498_vm15  ;;  %v14148_v33 = vld [vmem:[%s15440_s7] ss:$0 sm:$0xff]  ;;  %vm1599_vm15 = vcmp.eq.s32.totalorder %v10504_v1, %v16136_v62 }
 0x665   : > { %vm9639_vm12 = vmpackc.low %vm1597_vm10, %vm1596_vm9  ;;  %vm1598_vm10 = vcmp.eq.s32.totalorder %v10504_v1, %v16135_v45  ;;  %v16140_v45 = vld [vmem:[#allocation73_spill] sm:$0xff] }
 0x666   : > { %v7969_v17 = vmax.f32 %v7502_v50, 0.0  ;;  %6487 = vmatmul.bf16.gmra.mxu2 %v6000_v12  ;;  %v7092_v63 = vpack.c.bf16 %v6886_v34, %v6885_v58 }
 0x668   : > { %7543 = vmatmul.bf16.gmra.mxu3 %v7092_v63  ;;  %v14134_v3 = vpop.f32.mrf.mxu0  ;;  %v14136_v36 = vpack.c.bf16 %v7969_v17, %v7968_v25  ;;  %v16134_v25 = vld [vmem:[#allocation128_spill] sm:$0xff] }
 0x669   : > { %v5392_v49 = vpop.f32.mrf.mxu1  ;;  %v6448_v40 = vpop.f32.mrf.mxu2  ;;  %vm3500_vm3 = vcmp.eq.s32.totalorder %v10504_v1, %v16134_v25 }
 0x66a   : > { %8328 = vmatpush.bf16.xpose.msra.mxu2 %v14003_v26  ;;  %v6449_v55 = vadd.f32 %v13803_v28, %v6448_v40  ;;  %v5804_v48 = vmul.f32 %v5392_v49, %v13930_v44  ;;  %v16133_v44 = vld [vmem:[#allocation127_spill] sm:$0xff] }
 0x66b   : > { %v7504_v24 = vpop.f32.mrf.mxu3  ;;  %9640 = vmatmul.msk.bf16.gmra.mxu0 %vm9639_vm12, %v15514_v8  ;;  %9910 = vmatmul.msk.bf16.gmra.mxu1 %vm9909_vm13, %v15514_v8  ;;  %vm3501_vm1 = vcmp.eq.s32.totalorder %v10504_v1, %v16133_v44  ;;  %vm9641_vm13 = vmpackc.low %vm1599_vm15, %vm1598_vm10  ;;  %v16137_v44 = vld [vmem:[#allocation16_spill] sm:$0xff] }
 0x66c   : > { %v7505_v26 = vadd.f32 %v14148_v33, %v7504_v24  ;;  %v6887_v12 = vmax.f32 %v6449_v55, 0.0  ;;  %vm9911_vm9 = vmpackc.low %vm3501_vm1, %vm3500_vm3  ;;  %vm3502_vm12 = vcmp.eq.s32.totalorder %v10504_v1, %v16137_v44  ;;  %v16141_v44 = vld [vmem:[#allocation78_spill] sm:$0xff] }
 0x66e   : > { %v7970_v17 = vmax.f32 %v7505_v26, 0.0 }
 0x670   : > { %v14142_v61 = vpop.f32.mrf.mxu0 }
 0x671   : > { %v5394_v15 = vpop.f32.mrf.mxu1  ;;  %v6450_v13 = vpop.f32.mrf.mxu2 }
 0x672   : > { %v5805_v47 = vmul.f32 %v5394_v15, %v13937_v54  ;;  %v6451_v46 = vadd.f32 %v13803_v28, %v6450_v13  ;;  %8329 = vmatpush.bf16.xpose.msra.mxu2 %v13977_v57 }
 0x673   : > { %v7506_v58 = vpop.f32.mrf.mxu3 }
 0x674   : > { %v6001_v34 = vpack.c.bf16 %v5805_v47, %v5804_v48  ;;  %v6888_v50 = vmax.f32 %v6451_v46, 0.0  ;;  %v7507_v4 = vadd.f32 %v14148_v33, %v7506_v58 }
 0x676   : > { %v7971_v63 = vmax.f32 %v7507_v4, 0.0  ;;  %6492 = vmatmul.bf16.gmra.mxu2 %v6001_v34  ;;  %v7093_v54 = vpack.c.bf16 %v6888_v50, %v6887_v12 }
 0x678   : > { %7548 = vmatmul.bf16.gmra.mxu3 %v7093_v54  ;;  %v14161_v57 = vpop.f32.mrf.mxu0  ;;  %v14163_v56 = vpack.c.bf16 %v7971_v63, %v7970_v17  ;;  %v16138_v63 = vld [vmem:[#allocation97_spill] sm:$0xff] }
 0x679   : > { %v5397_v49 = vpop.f32.mrf.mxu1  ;;  %v6453_v40 = vpop.f32.mrf.mxu2  ;;  %vm1601_vm1 = vcmp.eq.s32.totalorder %v10504_v1, %v16138_v63  ;;  %v16143_v63 = vld [vmem:[#allocation138_spill] sm:$0xff] }
 0x67a   : > { %8330 = vmatpush.bf16.xpose.msra.mxu2 %v13953_v19  ;;  %v6454_v55 = vadd.f32 %v13803_v28, %v6453_v40  ;;  %v5806_v26 = vmul.f32 %v5397_v49, %v13951_v10 }
 0x67b   : > { %v7509_v24 = vpop.f32.mrf.mxu3  ;;  %9642 = vmatmul.msk.bf16.gmra.mxu0 %vm9641_vm13, %v15514_v8  ;;  %9912 = vmatmul.msk.bf16.gmra.mxu1 %vm9911_vm9, %v15514_v8  ;;  %vm1600_vm9 = vcmp.eq.s32.totalorder %v10504_v1, %v16140_v45  ;;  %vm3505_vm13 = vcmp.eq.s32.totalorder %v10504_v1, %v16141_v44  ;;  %v16146_v44 = vld [vmem:[#allocation135_spill] sm:$0xff] }
 0x67c   : > { %v7510_v47 = vadd.f32 %v14148_v33, %v7509_v24  ;;  %v6889_v12 = vmax.f32 %v6454_v55, 0.0  ;;  %vm9643_vm15 = vmpackc.low %vm1601_vm1, %vm1600_vm9  ;;  %vm1602_vm1 = vcmp.eq.s32.totalorder %v10504_v1, %v16143_v63 }
 0x67e   : > { %v7972_v25 = vmax.f32 %v7510_v47, 0.0 }
 0x680   : > { %v14171_v15 = vpop.f32.mrf.mxu0 }
 0x681   : > { %v5399_v13 = vpop.f32.mrf.mxu1  ;;  %v6455_v48 = vpop.f32.mrf.mxu2 }
 0x682   : > { %v5807_v46 = vmul.f32 %v5399_v13, %v13961_v18  ;;  %v6456_v58 = vadd.f32 %v13803_v28, %v6455_v48  ;;  %8331 = vmatpush.bf16.xpose.msra.mxu2 %v13932_v9  ;;  %v16139_v18 = vld [vmem:[#allocation72_spill] sm:$0xff] }
 0x683   : > { %v7511_v19 = vpop.f32.mrf.mxu3  ;;  %vm3503_vm3 = vcmp.eq.s32.totalorder %v10504_v1, %v16139_v18 }
 0x684   : > { %v6002_v34 = vpack.c.bf16 %v5807_v46, %v5806_v26  ;;  %v6890_v50 = vmax.f32 %v6456_v58, 0.0  ;;  %v7512_v4 = vadd.f32 %v14148_v33, %v7511_v19  ;;  %vm9913_vm10 = vmpackc.low %vm3503_vm3, %vm3502_vm12 }
 0x686   : > { %v7973_v17 = vmax.f32 %v7512_v4, 0.0  ;;  %6497 = vmatmul.bf16.gmra.mxu2 %v6002_v34  ;;  %v7094_v10 = vpack.c.bf16 %v6890_v50, %v6889_v12 }
 0x688   : > { %7553 = vmatmul.bf16.gmra.mxu3 %v7094_v10  ;;  %v14185_v9 = vpop.f32.mrf.mxu0  ;;  %v14187_v54 = vpack.c.bf16 %v7973_v17, %v7972_v25 }
 0x689   : > { %v5402_v62 = vpop.f32.mrf.mxu1  ;;  %v6458_v49 = vpop.f32.mrf.mxu2 }
 0x68a   : > { %v6459_v24 = vadd.f32 %v13803_v28, %v6458_v49  ;;  %v5808_v26 = vmul.f32 %v5402_v62, %v13975_v53  ;;  %v16142_v53 = vld [vmem:[#allocation34_spill] sm:$0xff] }
 0x68b   : > { %v7514_v40 = vpop.f32.mrf.mxu3  ;;  %9644 = vmatmul.msk.bf16.gmra.mxu0 %vm9643_vm15, %v15514_v8  ;;  %9914 = vmatmul.msk.bf16.gmra.mxu1 %vm9913_vm10, %v15514_v8  ;;  %vm1603_vm12 = vcmp.eq.s32.totalorder %v10504_v1, %v16142_v53 }
 0x68c   : > { %v7515_v47 = vadd.f32 %v14148_v33, %v7514_v40  ;;  %v6891_v12 = vmax.f32 %v6459_v24, 0.0  ;;  %vm9645_vm9 = vmpackc.low %vm1603_vm12, %vm1602_vm1  ;;  %v14220_v40 = vld [vmem:[%s15438_s5] ss:$0 sm:$0xff] }
 0x68e   : > { %v7974_v25 = vmax.f32 %v7515_v47, 0.0 }
 0x690   : > { %v14194_v55 = vpop.f32.mrf.mxu0 }
 0x691   : > { %v5404_v13 = vpop.f32.mrf.mxu1  ;;  %v6460_v48 = vpop.f32.mrf.mxu2 }
 0x692   : > { %v5809_v46 = vmul.f32 %v5404_v13, %v13985_v38  ;;  %v6461_v58 = vadd.f32 %v13803_v28, %v6460_v48  ;;  %v16144_v28 = vld [vmem:[#allocation31_spill] sm:$0xff] }
 0x693   : > { %v7516_v19 = vpop.f32.mrf.mxu3  ;;  %vm3504_vm3 = vcmp.eq.s32.totalorder %v10504_v1, %v16144_v28 }
 0x694   : > { %v6003_v34 = vpack.c.bf16 %v5809_v46, %v5808_v26  ;;  %v6892_v50 = vmax.f32 %v6461_v58, 0.0  ;;  %v7517_v4 = vadd.f32 %v14148_v33, %v7516_v19  ;;  %vm9915_vm10 = vmpackc.low %vm3505_vm13, %vm3504_vm3  ;;  %vm3506_vm13 = vcmp.eq.s32.totalorder %v10504_v1, %v16146_v44  ;;  %v16150_v44 = vld [vmem:[#allocation75_spill] sm:$0xff] }
 0x696   : > { %v7975_v17 = vmax.f32 %v7517_v4, 0.0  ;;  %6502 = vmatmul.bf16.gmra.mxu2 %v6003_v34  ;;  %v7095_v10 = vpack.c.bf16 %v6892_v50, %v6891_v12  ;;  %v16145_v4 = vld [vmem:[#allocation134_spill] sm:$0xff] }
 0x697   : > { %vm3507_vm15 = vcmp.eq.s32.totalorder %v10504_v1, %v16145_v4 }
 0x698   : > { %7558 = vmatmul.bf16.gmra.mxu3 %v7095_v10  ;;  %v14209_v38 = vpop.f32.mrf.mxu0  ;;  %v14211_v18 = vpack.c.bf16 %v7975_v17, %v7974_v25  ;;  %v16147_v17 = vld [vmem:[#allocation79_spill] sm:$0xff]  ;;  %vm9917_vm1 = vmpackc.low %vm3507_vm15, %vm3506_vm13  ;;  %vm1607_vm15 = vcmp.eq.s32.totalorder %v10504_v1, %v16150_v44 }
 0x699   : > { %v5407_v45 = vpop.f32.mrf.mxu1  ;;  %v6463_v62 = vpop.f32.mrf.mxu2  ;;  %vm1604_vm12 = vcmp.eq.s32.totalorder %v10504_v1, %v16147_v17 }
 0x69a   : > { %v6464_v24 = vadd.f32 %v14220_v40, %v6463_v62  ;;  %v5810_v47 = vmul.f32 %v5407_v45, %v14001_v7 }
 0x69b   : > { %v14213_v49 = vpop.f32.mrf.mxu3  ;;  %9646 = vmatmul.msk.bf16.gmra.mxu0 %vm9645_vm9, %v15514_v8  ;;  %9916 = vmatmul.msk.bf16.gmra.mxu1 %vm9915_vm10, %v15514_v8 }
 0x69c   : > { %v6893_v12 = vmax.f32 %v6464_v24, 0.0 }
 0x6a0   : > { %v14223_v13 = vpop.f32.mrf.mxu0 }
 0x6a1   : > { %v5409_v48 = vpop.f32.mrf.mxu1  ;;  %v6465_v26 = vpop.f32.mrf.mxu2 }
 0x6a2   : > { %v5811_v46 = vmul.f32 %v5409_v48, %v14008_v30  ;;  %v6466_v58 = vadd.f32 %v14220_v40, %v6465_v26  ;;  %v16148_v30 = vld [vmem:[#allocation23_spill] sm:$0xff] }
 0x6a3   : > { %v14228_v19 = vpop.f32.mrf.mxu3  ;;  %vm1605_vm3 = vcmp.eq.s32.totalorder %v10504_v1, %v16148_v30 }
 0x6a4   : > { %v6004_v34 = vpack.c.bf16 %v5811_v46, %v5810_v47  ;;  %v6894_v50 = vmax.f32 %v6466_v58, 0.0  ;;  %vm9647_vm10 = vmpackc.low %vm1605_vm3, %vm1604_vm12 }
 0x6a6   : > { %6507 = vmatmul.bf16.gmra.mxu2 %v6004_v34  ;;  %v7096_v25 = vpack.c.bf16 %v6894_v50, %v6893_v12  ;;  %v16149_v50 = vld [vmem:[#allocation89_spill] sm:$0xff] }
 0x6a7   : > { %vm3508_vm9 = vcmp.eq.s32.totalorder %v10504_v1, %v16149_v50 }
 0x6a8   : > { %7563 = vmatmul.bf16.gmra.mxu3 %v7096_v25  ;;  %v14236_v7 = vpop.f32.mrf.mxu0  ;;  %v16151_v25 = vld [vmem:[#allocation130_spill] sm:$0xff] }
 0x6a9   : > { %v5412_v10 = vpop.f32.mrf.mxu1  ;;  %v6468_v53 = vpop.f32.mrf.mxu2  ;;  %vm3509_vm13 = vcmp.eq.s32.totalorder %v10504_v1, %v16151_v25  ;;  %v16153_v25 = vld [vmem:[#allocation91_spill] sm:$0xff] }
 0x6aa   : > { %v6469_v28 = vadd.f32 %v14220_v40, %v6468_v53  ;;  %v5812_v48 = vmul.f32 %v5412_v10, %v14021_v21  ;;  %vm9919_vm12 = vmpackc.low %vm3509_vm13, %vm3508_vm9 }
 0x6ab   : > { %v7524_v63 = vpop.f32.mrf.mxu3  ;;  %9648 = vmatmul.msk.bf16.gmra.mxu0 %vm9647_vm10, %v15514_v8  ;;  %9918 = vmatmul.msk.bf16.gmra.mxu1 %vm9917_vm1, %v15514_v8  ;;  %vm3511_vm10 = vcmp.eq.s32.totalorder %v10504_v1, %v16153_v25 }
 0x6ac   : > { %v6895_v58 = vmax.f32 %v6469_v28, 0.0 }
 0x6b0   : > { %v14243_v45 = vpop.f32.mrf.mxu0 }
 0x6b1   : > { %v5414_v62 = vpop.f32.mrf.mxu1  ;;  %v6470_v24 = vpop.f32.mrf.mxu2 }
 0x6b2   : > { %v5813_v26 = vmul.f32 %v5414_v62, %v14032_v11  ;;  %v6471_v47 = vadd.f32 %v14220_v40, %v6470_v24  ;;  %v16152_v11 = vld [vmem:[#allocation38_spill] sm:$0xff] }
 0x6b3   : > { %v7526_v46 = vpop.f32.mrf.mxu3  ;;  %vm1606_vm1 = vcmp.eq.s32.totalorder %v10504_v1, %v16152_v11 }
 0x6b4   : > { %v6005_v12 = vpack.c.bf16 %v5813_v26, %v5812_v48  ;;  %v6896_v34 = vmax.f32 %v6471_v47, 0.0  ;;  %vm9649_vm3 = vmpackc.low %vm1607_vm15, %vm1606_vm1 }
 0x6b6   : > { %6512 = vmatmul.bf16.gmra.mxu2 %v6005_v12  ;;  %v7097_v4 = vpack.c.bf16 %v6896_v34, %v6895_v58 }
 0x6b8   : > { %7568 = vmatmul.bf16.gmra.mxu3 %v7097_v4  ;;  %v14254_v21 = vpop.f32.mrf.mxu0 }
 0x6b9   : > { %v5417_v17 = vpop.f32.mrf.mxu1  ;;  %v6473_v30 = vpop.f32.mrf.mxu2 }
 0x6ba   : > { %v6474_v53 = vadd.f32 %v14220_v40, %v6473_v30  ;;  %v5814_v48 = vmul.f32 %v5417_v17, %v14045_v37  ;;  %v16154_v37 = vld [vmem:[#allocation48_spill] sm:$0xff]  ;;  %v16155_v17 = vld [vmem:[#allocation139_spill] sm:$0xff] }
 0x6bb   : > { %v7529_v10 = vpop.f32.mrf.mxu3  ;;  %9650 = vmatmul.msk.bf16.gmra.mxu0 %vm9649_vm3, %v15514_v8  ;;  %9920 = vmatmul.msk.bf16.gmra.mxu1 %vm9919_vm12, %v15514_v8  ;;  %vm1609_vm9 = vcmp.eq.s32.totalorder %v10504_v1, %v16154_v37  ;;  %vm1608_vm15 = vcmp.eq.s32.totalorder %v10504_v1, %v16155_v17 }
 0x6bc   : > { %v7530_v26 = vadd.f32 %v14148_v33, %v7529_v10  ;;  %v6897_v34 = vmax.f32 %v6474_v53, 0.0  ;;  %v7527_v10 = vadd.f32 %v14148_v33, %v7526_v46  ;;  %vm9651_vm1 = vmpackc.low %vm1609_vm9, %vm1608_vm15  ;;  %v7522_v46 = vadd.f32 %v14148_v33, %v14228_v19 }
 0x6be   : > { %v7980_v11 = vmax.f32 %v7530_v26, 0.0  ;;  %v7525_v26 = vadd.f32 %v14148_v33, %v7524_v63  ;;  %v7977_v19 = vmax.f32 %v7522_v46, 0.0  ;;  %v16158_v46 = vld [vmem:[#allocation44_spill] sm:$0xff] }
 0x6c0   : > { %v14261_v28 = vpop.f32.mrf.mxu0 }
 0x6c1   : > { %v5419_v62 = vpop.f32.mrf.mxu1  ;;  %v6475_v24 = vpop.f32.mrf.mxu2 }
 0x6c2   : > { %v5815_v47 = vmul.f32 %v5419_v62, %v14052_v59  ;;  %v6476_v58 = vadd.f32 %v14220_v40, %v6475_v24  ;;  %v16156_v59 = vld [vmem:[#allocation69_spill] sm:$0xff] }
 0x6c3   : > { %v7531_v12 = vpop.f32.mrf.mxu3  ;;  %vm3510_vm13 = vcmp.eq.s32.totalorder %v10504_v1, %v16156_v59 }
 0x6c4   : > { %v6006_v50 = vpack.c.bf16 %v5815_v47, %v5814_v48  ;;  %v6898_v4 = vmax.f32 %v6476_v58, 0.0  ;;  %v7532_v44 = vadd.f32 %v14148_v33, %v7531_v12  ;;  %vm9921_vm12 = vmpackc.low %vm3511_vm10, %vm3510_vm13  ;;  %v7979_v58 = vmax.f32 %v7527_v10, 0.0 }
 0x6c5   : > { %v7978_v12 = vmax.f32 %v7525_v26, 0.0  ;;  %vm1611_vm10 = vcmp.eq.s32.totalorder %v10504_v1, %v16158_v46 }
 0x6c6   : > { %v7981_v30 = vmax.f32 %v7532_v44, 0.0  ;;  %6517 = vmatmul.bf16.gmra.mxu2 %v6006_v50  ;;  %v7098_v52 = vpack.c.bf16 %v6898_v4, %v6897_v34  ;;  %v7520_v4 = vadd.f32 %v14148_v33, %v14213_v49 }
 0x6c7   : > { %v8173_v50 = vpack.c.bf16 %v7979_v58, %v7978_v12 }
 0x6c8   : > { %v8174_v53 = vpack.c.bf16 %v7981_v30, %v7980_v11  ;;  %7573 = vmatmul.bf16.gmra.mxu3 %v7098_v52  ;;  %v14277_v62 = vpop.f32.mrf.mxu0  ;;  %v7976_v26 = vmax.f32 %v7520_v4, 0.0 }
 0x6c9   : > { %v5422_v24 = vpop.f32.mrf.mxu1  ;;  %v6478_v48 = vpop.f32.mrf.mxu2 }
 0x6ca   : > { %8337 = vmatpush.bf16.xpose.msra.mxu3 %v8174_v53  ;;  %v6479_v52 = vadd.f32 %v14220_v40, %v6478_v48  ;;  %v5816_v25 = vmul.f32 %v5422_v24, %v14065_v32  ;;  %v16157_v32 = vld [vmem:[#allocation40_spill] sm:$0xff]  ;;  %v8172_v24 = vpack.c.bf16 %v7977_v19, %v7976_v26 }
 0x6cb   : > { %v7534_v47 = vpop.f32.mrf.mxu3  ;;  %9652 = vmatmul.msk.bf16.gmra.mxu0 %vm9651_vm1, %v15514_v8  ;;  %9922 = vmatmul.msk.bf16.gmra.mxu1 %vm9921_vm12, %v15514_v8  ;;  %vm1610_vm3 = vcmp.eq.s32.totalorder %v10504_v1, %v16157_v32  ;;  %vm1614_vm12 = vcmp.eq.s32.totalorder %v10504_v1, %v13138_v31 }
 0x6cc   : > { %v7535_v11 = vadd.f32 %v14148_v33, %v7534_v47  ;;  %v6899_v59 = vmax.f32 %v6479_v52, 0.0  ;;  %vm9653_vm9 = vmpackc.low %vm1611_vm10, %vm1610_vm3 }
 0x6ce   : > { %v7982_v49 = vmax.f32 %v7535_v11, 0.0 }
 0x6d0   : > { %v14285_v34 = vpop.f32.mrf.mxu0 }
 0x6d1   : > { %v5424_v63 = vpop.f32.mrf.mxu1  ;;  %v6480_v44 = vpop.f32.mrf.mxu2 }
 0x6d2   : > { %v5817_v30 = vmul.f32 %v5424_v63, %v14070_v29  ;;  %v6481_v37 = vadd.f32 %v14220_v40, %v6480_v44  ;;  %8338 = vmatpush.bf16.xpose.msra.mxu3 %v8173_v50 }
 0x6d3   : > { %v7536_v17 = vpop.f32.mrf.mxu3 }
 0x6d4   : > { %v6007_v10 = vpack.c.bf16 %v5817_v30, %v5816_v25  ;;  %v6900_v53 = vmax.f32 %v6481_v37, 0.0  ;;  %v7537_v48 = vadd.f32 %v14148_v33, %v7536_v17 }
 0x6d6   : > { %v7983_v58 = vmax.f32 %v7537_v48, 0.0  ;;  %6522 = vmatmul.bf16.gmra.mxu2 %v6007_v10  ;;  %v7099_v12 = vpack.c.bf16 %v6900_v53, %v6899_v59 }
 0x6d8   : > { %7578 = vmatmul.bf16.gmra.mxu3 %v7099_v12  ;;  %v14296_v29 = vpop.f32.mrf.mxu0  ;;  %v14298_v47 = vpack.c.bf16 %v7983_v58, %v7982_v49 }
 0x6d9   : > { %v5427_v52 = vpop.f32.mrf.mxu1  ;;  %v6483_v50 = vpop.f32.mrf.mxu2 }
 0x6da   : > { %8339 = vmatpush.bf16.xpose.msra.mxu3 %v8172_v24  ;;  %v6484_v44 = vadd.f32 %v14220_v40, %v6483_v50  ;;  %v5818_v37 = vmul.f32 %v5427_v52, %v14084_v16  ;;  %v16160_v24 = vld [vmem:[#allocation82_spill] sm:$0xff] }
 0x6db   : > { %v7539_v4 = vpop.f32.mrf.mxu3  ;;  %9654 = vmatmul.msk.bf16.gmra.mxu0 %vm9653_vm9, %v15514_v8  ;;  %9924 = vmatmul.msk.bf16.gmra.mxu1 %vm12772_vm5, %v15514_v8  ;;  %vm1613_vm5 = vcmp.eq.s32.totalorder %v10504_v1, %v13114_v2  ;;  %vm1612_vm15 = vcmp.eq.s32.totalorder %v10504_v1, %v16160_v24 }
 0x6dc   : > { %v7540_v19 = vadd.f32 %v14148_v33, %v7539_v4  ;;  %v6901_v53 = vmax.f32 %v6484_v44, 0.0  ;;  %vm9655_vm13 = vmpackc.low %vm1613_vm5, %vm1612_vm15  ;;  %vm1620_vm15 = vcmp.eq.s32.totalorder %v10504_v1, %v13251_v41 }
 0x6de   : > { %v7984_v58 = vmax.f32 %v7540_v19, 0.0 }
 0x6e0   : > { %v14307_v25 = vpop.f32.mrf.mxu0 }
 0x6e1   : > { %v5429_v11 = vpop.f32.mrf.mxu1  ;;  %v6485_v30 = vpop.f32.mrf.mxu2 }
 0x6e2   : > { %v5819_v17 = vmul.f32 %v5429_v11, %v14094_v42  ;;  %v6486_v59 = vadd.f32 %v14220_v40, %v6485_v30  ;;  %8340 = vmatpush.bf16.xpose.msra.mxu3 %v14211_v18 }
 0x6e3   : > { %v7541_v10 = vpop.f32.mrf.mxu3 }
 0x6e4   : > { %v6008_v48 = vpack.c.bf16 %v5819_v17, %v5818_v37  ;;  %v6902_v26 = vmax.f32 %v6486_v59, 0.0  ;;  %v7542_v49 = vadd.f32 %v14148_v33, %v7541_v10 }
 0x6e6   : > { %v7985_v12 = vmax.f32 %v7542_v49, 0.0  ;;  %6527 = vmatmul.bf16.gmra.mxu2 %v6008_v48  ;;  %v7100_v32 = vpack.c.bf16 %v6902_v26, %v6901_v53 }
 0x6e8   : > { %7583 = vmatmul.bf16.gmra.mxu3 %v7100_v32  ;;  %v14317_v16 = vpop.f32.mrf.mxu0  ;;  %v14319_v42 = vpack.c.bf16 %v7985_v12, %v7984_v58  ;;  %v16162_v58 = vld [vmem:[#allocation98_spill] sm:$0xff] }
 0x6e9   : > { %v5432_v18 = vpop.f32.mrf.mxu1  ;;  %v6488_v46 = vpop.f32.mrf.mxu2 }
 0x6ea   : > { %8341 = vmatpush.bf16.xpose.msra.mxu3 %v14187_v54  ;;  %v6489_v2 = vadd.f32 %v14220_v40, %v6488_v46  ;;  %v5820_v11 = vmul.f32 %v5432_v18, %v14109_v22 }
 0x6eb   : > { %v7544_v52 = vpop.f32.mrf.mxu3  ;;  %9656 = vmatmul.msk.bf16.gmra.mxu0 %vm9655_vm13, %v15514_v8  ;;  %9926 = vmatmul.msk.bf16.gmra.mxu1 %vm12798_vm14, %v15514_v8  ;;  %vm1615_vm14 = vcmp.eq.s32.totalorder %v10504_v1, %v16162_v58 }
 0x6ec   : > { %v7545_v30 = vadd.f32 %v14148_v33, %v7544_v52  ;;  %v6903_v17 = vmax.f32 %v6489_v2, 0.0  ;;  %vm9657_vm1 = vmpackc.low %vm1615_vm14, %vm1614_vm12 }
 0x6ee   : > { %v7986_v48 = vmax.f32 %v7545_v30, 0.0 }
 0x6f0   : > { %v14329_v4 = vpop.f32.mrf.mxu0 }
 0x6f1   : > { %v5434_v63 = vpop.f32.mrf.mxu1  ;;  %v6490_v44 = vpop.f32.mrf.mxu2 }
 0x6f2   : > { %v5821_v37 = vmul.f32 %v5434_v63, %v14118_v51  ;;  %v6491_v54 = vadd.f32 %v14220_v40, %v6490_v44  ;;  %8342 = vmatpush.bf16.xpose.msra.mxu3 %v14163_v56 }
 0x6f3   : > { %v7546_v19 = vpop.f32.mrf.mxu3 }
 0x6f4   : > { %v6009_v59 = vpack.c.bf16 %v5821_v37, %v5820_v11  ;;  %v6904_v10 = vmax.f32 %v6491_v54, 0.0  ;;  %v7547_v53 = vadd.f32 %v14148_v33, %v7546_v19 }
 0x6f6   : > { %v7987_v26 = vmax.f32 %v7547_v53, 0.0  ;;  %6532 = vmatmul.bf16.gmra.mxu2 %v6009_v59  ;;  %v7101_v49 = vpack.c.bf16 %v6904_v10, %v6903_v17  ;;  %v16164_v10 = vld [vmem:[#allocation77_spill] sm:$0xff] }
 0x6f7   : > { %vm1617_vm3 = vcmp.eq.s32.totalorder %v10504_v1, %v16164_v10 }
 0x6f8   : > { %7588 = vmatmul.bf16.gmra.mxu3 %v7101_v49  ;;  %v14341_v22 = vpop.f32.mrf.mxu0  ;;  %v14343_v51 = vpack.c.bf16 %v7987_v26, %v7986_v48 }
 0x6f9   : > { %v5437_v56 = vpop.f32.mrf.mxu1  ;;  %v6493_v12 = vpop.f32.mrf.mxu2 }
 0x6fa   : > { %8343 = vmatpush.bf16.xpose.msra.mxu3 %v14136_v36  ;;  %v6494_v18 = vadd.f32 %v14220_v40, %v6493_v12  ;;  %v5822_v50 = vmul.f32 %v5437_v56, %v14134_v3 }
 0x6fb   : > { %v7549_v32 = vpop.f32.mrf.mxu3  ;;  %9658 = vmatmul.msk.bf16.gmra.mxu0 %vm9657_vm1, %v15514_v8  ;;  %9928 = vmatmul.msk.bf16.gmra.mxu1 %vm12855_vm8, %v15514_v8  ;;  %vm1616_vm8 = vcmp.eq.s32.totalorder %v10504_v1, %v13152_v43 }
 0x6fc   : > { %v7550_v2 = vadd.f32 %v14148_v33, %v7549_v32  ;;  %v6905_v11 = vmax.f32 %v6494_v18, 0.0  ;;  %vm9659_vm10 = vmpackc.low %vm1617_vm3, %vm1616_vm8 }
 0x6fe   : > { %v7988_v19 = vmax.f32 %v7550_v2, 0.0 }
 0x700   : > { %v14351_v31 = vpop.f32.mrf.mxu0 }
 0x701   : > { %v5439_v46 = vpop.f32.mrf.mxu1  ;;  %v6495_v52 = vpop.f32.mrf.mxu2 }
 0x702   : > { %v5823_v63 = vmul.f32 %v5439_v46, %v14142_v61  ;;  %v6496_v36 = vadd.f32 %v14220_v40, %v6495_v52  ;;  %8344 = vmatpush.bf16.xpose.msra.mxu3 %v14111_v35 }
 0x703   : > { %v7551_v44 = vpop.f32.mrf.mxu3 }
 0x704   : > { %v6010_v30 = vpack.c.bf16 %v5823_v63, %v5822_v50  ;;  %v6906_v37 = vmax.f32 %v6496_v36, 0.0  ;;  %v7552_v54 = vadd.f32 %v14148_v33, %v7551_v44 }
 0x706   : > { %v7989_v17 = vmax.f32 %v7552_v54, 0.0  ;;  %6537 = vmatmul.bf16.gmra.mxu2 %v6010_v30  ;;  %v7102_v59 = vpack.c.bf16 %v6906_v37, %v6905_v11 }
 0x708   : > { %7593 = vmatmul.bf16.gmra.mxu3 %v7102_v59  ;;  %v14361_v3 = vpop.f32.mrf.mxu0  ;;  %v14363_v61 = vpack.c.bf16 %v7989_v17, %v7988_v19 }
 0x709   : > { %v5442_v35 = vpop.f32.mrf.mxu1  ;;  %v6498_v53 = vpop.f32.mrf.mxu2 }
 0x70a   : > { %v6499_v43 = vadd.f32 %v14220_v40, %v6498_v53  ;;  %v5824_v12 = vmul.f32 %v5442_v35, %v14161_v57 }
 0x70b   : > { %v7554_v48 = vpop.f32.mrf.mxu3  ;;  %9660 = vmatmul.msk.bf16.gmra.mxu0 %vm9659_vm10, %v15514_v8  ;;  %9930 = vmatmul.msk.bf16.gmra.mxu1 %vm12876_vm11, %v15514_v8  ;;  %vm1619_vm11 = vcmp.eq.s32.totalorder %v10504_v1, %v13230_v20 }
 0x70c   : > { %v7555_v32 = vadd.f32 %v14148_v33, %v7554_v48  ;;  %v6907_v52 = vmax.f32 %v6499_v43, 0.0 }
 0x70e   : > { %v7990_v36 = vmax.f32 %v7555_v32, 0.0 }
 0x710   : > { %v14372_v49 = vpop.f32.mrf.mxu0 }
 0x711   : > { %v5444_v58 = vpop.f32.mrf.mxu1  ;;  %v6500_v56 = vpop.f32.mrf.mxu2 }
 0x712   : > { %v5825_v24 = vmul.f32 %v5444_v58, %v14171_v15  ;;  %v6501_v18 = vadd.f32 %v14220_v40, %v6500_v56  ;;  %v16166_v15 = vld [vmem:[#allocation85_spill] sm:$0xff] }
 0x713   : > { %v7556_v46 = vpop.f32.mrf.mxu3  ;;  %vm1618_vm9 = vcmp.eq.s32.totalorder %v10504_v1, %v16166_v15 }
 0x714   : > { %v6011_v50 = vpack.c.bf16 %v5825_v24, %v5824_v12  ;;  %v6908_v2 = vmax.f32 %v6501_v18, 0.0  ;;  %v7557_v63 = vadd.f32 %v14148_v33, %v7556_v46  ;;  %vm9661_vm5 = vmpackc.low %vm1619_vm11, %vm1618_vm9 }
 0x716   : > { %v7991_v44 = vmax.f32 %v7557_v63, 0.0  ;;  %6542 = vmatmul.bf16.gmra.mxu2 %v6011_v50  ;;  %v7103_v11 = vpack.c.bf16 %v6908_v2, %v6907_v52 }
 0x718   : > { %7598 = vmatmul.bf16.gmra.mxu3 %v7103_v11  ;;  %v14381_v57 = vpop.f32.mrf.mxu0  ;;  %v14383_v30 = vpack.c.bf16 %v7991_v44, %v7990_v36 }
 0x719   : > { %v5447_v37 = vpop.f32.mrf.mxu1  ;;  %v6503_v54 = vpop.f32.mrf.mxu2 }
 0x71a   : > { %v6504_v20 = vadd.f32 %v14220_v40, %v6503_v54  ;;  %v5826_v53 = vmul.f32 %v5447_v37, %v14185_v9 }
 0x71b   : > { %v7559_v19 = vpop.f32.mrf.mxu3  ;;  %9662 = vmatmul.msk.bf16.gmra.mxu0 %vm9661_vm5, %v15514_v8  ;;  %9932 = vmatmul.msk.bf16.gmra.mxu1 %vm12905_vm6, %v15514_v8  ;;  %vm1621_vm6 = vcmp.eq.s32.totalorder %v10504_v1, %v13243_v39 }
 0x71c   : > { %v7560_v48 = vadd.f32 %v14148_v33, %v7559_v19  ;;  %v6909_v56 = vmax.f32 %v6504_v20, 0.0  ;;  %vm9663_vm13 = vmpackc.low %vm1621_vm6, %vm1620_vm15 }
 0x71e   : > { %v7992_v18 = vmax.f32 %v7560_v48, 0.0 }
 0x720   : > { %v14392_v59 = vpop.f32.mrf.mxu0 }
 0x721   : > { %v5449_v10 = vpop.f32.mrf.mxu1  ;;  %v6505_v35 = vpop.f32.mrf.mxu2 }
 0x722   : > { %v5827_v26 = vmul.f32 %v5449_v10, %v14194_v55  ;;  %v6506_v43 = vadd.f32 %v14220_v40, %v6505_v35 }
 0x723   : > { %v7561_v58 = vpop.f32.mrf.mxu3 }
 0x724   : > { %v6012_v12 = vpack.c.bf16 %v5827_v26, %v5826_v53  ;;  %v6910_v32 = vmax.f32 %v6506_v43, 0.0  ;;  %v7562_v24 = vadd.f32 %v14148_v33, %v7561_v58 }
 0x726   : > { %v7993_v46 = vmax.f32 %v7562_v24, 0.0  ;;  %6547 = vmatmul.bf16.gmra.mxu2 %v6012_v12  ;;  %v7104_v52 = vpack.c.bf16 %v6910_v32, %v6909_v56 }
 0x728   : > { %7603 = vmatmul.bf16.gmra.mxu3 %v7104_v52  ;;  %v14403_v9 = vpop.f32.mrf.mxu0  ;;  %v14405_v55 = vpack.c.bf16 %v7993_v46, %v7992_v18 }
 0x729   : > { %v5452_v50 = vpop.f32.mrf.mxu1  ;;  %v6508_v2 = vpop.f32.mrf.mxu2 }
 0x72a   : > { %v6509_v39 = vadd.f32 %v14220_v40, %v6508_v2  ;;  %v5828_v15 = vmul.f32 %v5452_v50, %v14209_v38 }
 0x72b   : > { %v7564_v63 = vpop.f32.mrf.mxu3  ;;  %9664 = vmatmul.msk.bf16.gmra.mxu0 %vm9663_vm13, %v15514_v8  ;;  %9934 = vmatmul.msk.bf16.gmra.mxu1 %vm12964_vm2, %v15514_v8  ;;  %vm1622_vm2 = vcmp.eq.s32.totalorder %v10504_v1, %v13266_v23 }
 0x72c   : > { %v7565_v37 = vadd.f32 %v14148_v33, %v7564_v63  ;;  %v6911_v20 = vmax.f32 %v6509_v39, 0.0 }
 0x72e   : > { %v7994_v48 = vmax.f32 %v7565_v37, 0.0 }
 0x730   : > { %v14412_v44 = vpop.f32.mrf.mxu0 }
 0x731   : > { %v5454_v41 = vpop.f32.mrf.mxu1  ;;  %v6510_v11 = vpop.f32.mrf.mxu2 }
 0x732   : > { %v5829_v54 = vmul.f32 %v5454_v41, %v14223_v13  ;;  %v6511_v19 = vadd.f32 %v14220_v40, %v6510_v11  ;;  %v16169_v13 = vld [vmem:[#allocation83_spill] sm:$0xff] }
 0x733   : > { %v7566_v17 = vpop.f32.mrf.mxu3  ;;  %vm1623_vm14 = vcmp.eq.s32.totalorder %v10504_v1, %v16169_v13 }
 0x734   : > { %v6013_v10 = vpack.c.bf16 %v5829_v54, %v5828_v15  ;;  %v6912_v35 = vmax.f32 %v6511_v19, 0.0  ;;  %v7567_v53 = vadd.f32 %v14148_v33, %v7566_v17  ;;  %vm9665_vm12 = vmpackc.low %vm1623_vm14, %vm1622_vm2 }
 0x736   : > { %v7995_v26 = vmax.f32 %v7567_v53, 0.0  ;;  %6552 = vmatmul.bf16.gmra.mxu2 %v6013_v10  ;;  %v7105_v43 = vpack.c.bf16 %v6912_v35, %v6911_v20  ;;  %v16171_v20 = vld [vmem:[#allocation21_spill] sm:$0xff] }
 0x738   : > { %7608 = vmatmul.bf16.gmra.mxu3 %v7105_v43  ;;  %v14421_v38 = vpop.f32.mrf.mxu0  ;;  %v14423_v58 = vpack.c.bf16 %v7995_v26, %v7994_v48  ;;  %v16173_v26 = vld [vmem:[#allocation7_spill] sm:$0xff] }
 0x739   : > { %v5457_v56 = vpop.f32.mrf.mxu1  ;;  %v6513_v12 = vpop.f32.mrf.mxu2  ;;  %vm16174_vm3 = vnez %v16173_v26 }
 0x73a   : > { %v6514_v23 = vadd.f32 %v14220_v40, %v6513_v12  ;;  %v5830_v50 = vmul.f32 %v5457_v56, %v14236_v7 }
 0x73b   : > { %v7569_v32 = vpop.f32.mrf.mxu3  ;;  %9666 = vmatmul.msk.bf16.gmra.mxu0 %vm9665_vm12, %v15514_v8  ;;  %9936 = vmatmul.msk.bf16.gmra.mxu1 %vm12985_vm7, %v15514_v8  ;;  %vm1625_vm7 = vcmp.eq.s32.totalorder %v10504_v1, %v16171_v20  ;;  %v16177_v20 = vld [vmem:[#allocation102_spill] sm:$0xff] }
 0x73c   : > { %v7570_v2 = vadd.f32 %v14148_v33, %v7569_v32  ;;  %v6913_v41 = vmax.f32 %v6514_v23, 0.0  ;;  %vm16178_vm5 = vnez %v16177_v20 }
 0x73e   : > { %v7996_v54 = vmax.f32 %v7570_v2, 0.0 }
 0x740   : > { %v14432_v18 = vpop.f32.mrf.mxu0 }
 0x741   : > { %v5459_v46 = vpop.f32.mrf.mxu1  ;;  %v6515_v52 = vpop.f32.mrf.mxu2 }
 0x742   : > { %v5831_v63 = vmul.f32 %v5459_v46, %v14243_v45  ;;  %v6516_v36 = vadd.f32 %v14220_v40, %v6515_v52  ;;  %v16172_v45 = vld [vmem:[#allocation54_spill] sm:$0xff] }
 0x743   : > { %v7571_v39 = vpop.f32.mrf.mxu3  ;;  %vm1624_vm1 = vcmp.eq.s32.totalorder %v10504_v1, %v16172_v45 }
 0x744   : > { %v6014_v11 = vpack.c.bf16 %v5831_v63, %v5830_v50  ;;  %v6914_v15 = vmax.f32 %v6516_v36, 0.0  ;;  %v7572_v37 = vadd.f32 %v14148_v33, %v7571_v39  ;;  %vm9667_vm8 = vmpackc.low %vm1625_vm7, %vm1624_vm1 }
 0x746   : > { %v7997_v19 = vmax.f32 %v7572_v37, 0.0  ;;  %6557 = vmatmul.bf16.gmra.mxu2 %v6014_v11  ;;  %v7106_v17 = vpack.c.bf16 %v6914_v15, %v6913_v41  ;;  %v16175_v15 = vld [vmem:[#allocation142_spill] sm:$0xff] }
 0x747   : > { %vm1627_vm10 = vcmp.eq.s32.totalorder %v10504_v1, %v16175_v15 }
 0x748   : > { %v14441_v7 = vpack.c.bf16 %v7997_v19, %v7996_v54  ;;  %7613 = vmatmul.bf16.gmra.mxu3 %v7106_v17  ;;  %v14443_v10 = vpop.f32.mrf.mxu0 }
 0x749   : > { %v5462_v35 = vpop.f32.mrf.mxu1  ;;  %v6518_v53 = vpop.f32.mrf.mxu2 }
 0x74a   : > { %v6519_v43 = vadd.f32 %v14220_v40, %v6518_v53  ;;  %v5832_v32 = vmul.f32 %v5462_v35, %v14254_v21  ;;  %v16176_v21 = vld [vmem:[#allocation143_spill] sm:$0xff] }
 0x74b   : > { %v7574_v48 = vpop.f32.mrf.mxu3  ;;  %9668 = vmatmul.msk.bf16.gmra.mxu0 %vm9667_vm8, %v15514_v8  ;;  %9938 = vmatmul.msk.bf16.gmra.mxu1 %vm16174_vm3, %v15514_v8  ;;  %vm1626_vm11 = vcmp.eq.s32.totalorder %v10504_v1, %v16176_v21  ;;  %v16181_v21 = vld [vmem:[#allocation140_spill] sm:$0xff] }
 0x74c   : > { %v7575_v24 = vadd.f32 %v14148_v33, %v7574_v48  ;;  %v6915_v50 = vmax.f32 %v6519_v43, 0.0  ;;  %vm9669_vm9 = vmpackc.low %vm1627_vm10, %vm1626_vm11  ;;  %vm16182_vm2 = vnez %v16181_v21 }
 0x74e   : > { %v7998_v39 = vmax.f32 %v7575_v24, 0.0 }
 0x750   : > { %v14452_v13 = vpop.f32.mrf.mxu0 }
 0x751   : > { %v5464_v56 = vpop.f32.mrf.mxu1  ;;  %v6520_v12 = vpop.f32.mrf.mxu2 }
 0x752   : > { %v5833_v23 = vmul.f32 %v5464_v56, %v14261_v28  ;;  %v6521_v46 = vadd.f32 %v14220_v40, %v6520_v12 }
 0x753   : > { %v7576_v52 = vpop.f32.mrf.mxu3 }
 0x754   : > { %v6015_v2 = vpack.c.bf16 %v5833_v23, %v5832_v32  ;;  %v6916_v63 = vmax.f32 %v6521_v46, 0.0  ;;  %v7577_v36 = vadd.f32 %v14148_v33, %v7576_v52 }
 0x756   : > { %v7999_v41 = vmax.f32 %v7577_v36, 0.0  ;;  %6562 = vmatmul.bf16.gmra.mxu2 %v6015_v2  ;;  %v7107_v11 = vpack.c.bf16 %v6916_v63, %v6915_v50  ;;  %v16179_v36 = vld [vmem:[#allocation12_spill] sm:$0xff] }
 0x757   : > { %vm1628_vm6 = vcmp.eq.s32.totalorder %v10504_v1, %v16179_v36 }
 0x758   : > { %7618 = vmatmul.bf16.gmra.mxu3 %v7107_v11  ;;  %v14463_v28 = vpop.f32.mrf.mxu0  ;;  %v14465_v37 = vpack.c.bf16 %v7999_v41, %v7998_v39 }
 0x759   : > { %v5467_v54 = vpop.f32.mrf.mxu1  ;;  %v6523_v19 = vpop.f32.mrf.mxu2 }
 0x75a   : > { %v6524_v45 = vadd.f32 %v14220_v40, %v6523_v19  ;;  %v5834_v26 = vmul.f32 %v5467_v54, %v14277_v62 }
 0x75b   : > { %v7579_v17 = vpop.f32.mrf.mxu3  ;;  %9670 = vmatmul.msk.bf16.gmra.mxu0 %vm9669_vm9, %v15514_v8  ;;  %9940 = vmatmul.msk.bf16.gmra.mxu1 %vm16178_vm5, %v15514_v8 }
 0x75c   : > { %v7580_v43 = vadd.f32 %v14148_v33, %v7579_v17  ;;  %v6917_v24 = vmax.f32 %v6524_v45, 0.0 }
 0x75e   : > { %v8000_v50 = vmax.f32 %v7580_v43, 0.0 }
 0x760   : > { %v14472_v35 = vpop.f32.mrf.mxu0 }
 0x761   : > { %v5469_v53 = vpop.f32.mrf.mxu1  ;;  %v6525_v48 = vpop.f32.mrf.mxu2 }
 0x762   : > { %v5835_v56 = vmul.f32 %v5469_v53, %v14285_v34  ;;  %v6526_v12 = vadd.f32 %v14220_v40, %v6525_v48  ;;  %v16180_v34 = vld [vmem:[#allocation95_spill] sm:$0xff] }
 0x763   : > { %v7581_v32 = vpop.f32.mrf.mxu3  ;;  %vm1629_vm15 = vcmp.eq.s32.totalorder %v10504_v1, %v16180_v34 }
 0x764   : > { %v6016_v23 = vpack.c.bf16 %v5835_v56, %v5834_v26  ;;  %v6918_v46 = vmax.f32 %v6526_v12, 0.0  ;;  %v7582_v52 = vadd.f32 %v14148_v33, %v7581_v32  ;;  %vm9671_vm13 = vmpackc.low %vm1629_vm15, %vm1628_vm6 }
 0x766   : > { %v8001_v2 = vmax.f32 %v7582_v52, 0.0  ;;  %6567 = vmatmul.bf16.gmra.mxu2 %v6016_v23  ;;  %v7108_v63 = vpack.c.bf16 %v6918_v46, %v6917_v24 }
 0x768   : > { %7623 = vmatmul.bf16.gmra.mxu3 %v7108_v63  ;;  %v14481_v62 = vpop.f32.mrf.mxu0  ;;  %v14483_v39 = vpack.c.bf16 %v8001_v2, %v8000_v50  ;;  %v16183_v50 = vld [vmem:[#allocation58_spill] sm:$0xff] }
 0x769   : > { %v5472_v41 = vpop.f32.mrf.mxu1  ;;  %v6528_v11 = vpop.f32.mrf.mxu2  ;;  %vm1631_vm14 = vcmp.eq.s32.totalorder %v10504_v1, %v16183_v50 }
 0x76a   : > { %v6529_v54 = vadd.f32 %v14220_v40, %v6528_v11  ;;  %v5836_v45 = vmul.f32 %v5472_v41, %v14296_v29  ;;  %v16185_v41 = vld [vmem:[#allocation86_spill] sm:$0xff] }
 0x76b   : > { %v7584_v15 = vpop.f32.mrf.mxu3  ;;  %9672 = vmatmul.msk.bf16.gmra.mxu0 %vm9671_vm13, %v15514_v8  ;;  %9942 = vmatmul.msk.bf16.gmra.mxu1 %vm16182_vm2, %v15514_v8  ;;  %vm16186_vm1 = vnez %v16185_v41 }
 0x76c   : > { %v7585_v53 = vadd.f32 %v14148_v33, %v7584_v15  ;;  %v6919_v56 = vmax.f32 %v6529_v54, 0.0 }
 0x76e   : > { %v8002_v23 = vmax.f32 %v7585_v53, 0.0 }
 0x770   : > { %v14492_v19 = vpop.f32.mrf.mxu0 }
 0x771   : > { %v5474_v17 = vpop.f32.mrf.mxu1  ;;  %v6530_v20 = vpop.f32.mrf.mxu2 }
 0x772   : > { %v5837_v48 = vmul.f32 %v5474_v17, %v14307_v25  ;;  %v6531_v26 = vadd.f32 %v14220_v40, %v6530_v20  ;;  %v16184_v25 = vld [vmem:[#allocation52_spill] sm:$0xff] }
 0x773   : > { %v7586_v43 = vpop.f32.mrf.mxu3  ;;  %vm1630_vm12 = vcmp.eq.s32.totalorder %v10504_v1, %v16184_v25 }
 0x774   : > { %v6017_v12 = vpack.c.bf16 %v5837_v48, %v5836_v45  ;;  %v6920_v32 = vmax.f32 %v6531_v26, 0.0  ;;  %v7587_v24 = vadd.f32 %v14148_v33, %v7586_v43  ;;  %vm9673_vm7 = vmpackc.low %vm1631_vm14, %vm1630_vm12 }
 0x776   : > { %v8003_v46 = vmax.f32 %v7587_v24, 0.0  ;;  %6572 = vmatmul.bf16.gmra.mxu2 %v6017_v12  ;;  %v7109_v52 = vpack.c.bf16 %v6920_v32, %v6919_v56  ;;  %v14521_v12 = vld [vmem:[%s15440_s7] ss:$0 sm:$0xff] }
 0x778   : > { %7628 = vmatmul.bf16.gmra.mxu3 %v7109_v52  ;;  %v14501_v29 = vpop.f32.mrf.mxu0  ;;  %v14503_v2 = vpack.c.bf16 %v8003_v46, %v8002_v23 }
 0x779   : > { %v5477_v63 = vpop.f32.mrf.mxu1  ;;  %v6533_v36 = vpop.f32.mrf.mxu2 }
 0x77a   : > { %v6534_v11 = vadd.f32 %v14220_v40, %v6533_v36  ;;  %v5838_v17 = vmul.f32 %v5477_v63, %v14317_v16  ;;  %v16189_v36 = vld [vmem:[#allocation88_spill] sm:$0xff] }
 0x77b   : > { %v7589_v34 = vpop.f32.mrf.mxu3  ;;  %9674 = vmatmul.msk.bf16.gmra.mxu0 %vm9673_vm7, %v15514_v8  ;;  %9944 = vmatmul.msk.bf16.gmra.mxu1 %vm16186_vm1, %v15514_v8  ;;  %vm16190_vm11 = vnez %v16189_v36  ;;  %vm1638_vm1 = vcmp.eq.s32.totalorder %v10504_v1, %v13571_v6 }
 0x77c   : > { %v7590_v20 = vadd.f32 %v14148_v33, %v7589_v34  ;;  %v6921_v26 = vmax.f32 %v6534_v11, 0.0  ;;  %v16187_v33 = vld [vmem:[#allocation60_spill] sm:$0xff] }
 0x77d   : > { %vm1633_vm8 = vcmp.eq.s32.totalorder %v10504_v1, %v16187_v33 }
 0x77e   : > { %v8004_v24 = vmax.f32 %v7590_v20, 0.0 }
 0x780   : > { %v14512_v15 = vpop.f32.mrf.mxu0 }
 0x781   : > { %v5479_v21 = vpop.f32.mrf.mxu1  ;;  %v6535_v54 = vpop.f32.mrf.mxu2 }
 0x782   : > { %v5839_v45 = vmul.f32 %v5479_v21, %v14329_v4  ;;  %v6536_v53 = vadd.f32 %v14220_v40, %v6535_v54  ;;  %v16188_v4 = vld [vmem:[#allocation144_spill] sm:$0xff] }
 0x783   : > { %v7591_v48 = vpop.f32.mrf.mxu3  ;;  %vm1632_vm3 = vcmp.eq.s32.totalorder %v10504_v1, %v16188_v4 }
 0x784   : > { %v6018_v43 = vpack.c.bf16 %v5839_v45, %v5838_v17  ;;  %v6922_v56 = vmax.f32 %v6536_v53, 0.0  ;;  %v7592_v32 = vadd.f32 %v14521_v12, %v7591_v48  ;;  %vm9675_vm10 = vmpackc.low %vm1633_vm8, %vm1632_vm3 }
 0x786   : > { %v8005_v23 = vmax.f32 %v7592_v32, 0.0  ;;  %6577 = vmatmul.bf16.gmra.mxu2 %v6018_v43  ;;  %v7110_v16 = vpack.c.bf16 %v6922_v56, %v6921_v26 }
 0x788   : > { %7633 = vmatmul.bf16.gmra.mxu3 %v7110_v16  ;;  %v14528_v46 = vpop.f32.mrf.mxu0  ;;  %v14530_v52 = vpack.c.bf16 %v8005_v23, %v8004_v24  ;;  %v16191_v16 = vld [vmem:[#allocation45_spill] sm:$0xff] }
 0x789   : > { %v5482_v50 = vpop.f32.mrf.mxu1  ;;  %v6538_v25 = vpop.f32.mrf.mxu2  ;;  %vm1634_vm9 = vcmp.eq.s32.totalorder %v10504_v1, %v16191_v16  ;;  %v16195_v16 = vld [vmem:[#allocation113_spill] sm:$0xff] }
 0x78a   : > { %v6539_v34 = vadd.f32 %v14220_v40, %v6538_v25  ;;  %v5840_v54 = vmul.f32 %v5482_v50, %v14341_v22  ;;  %vm1637_vm13 = vcmp.eq.s32.totalorder %v10504_v1, %v16195_v16 }
 0x78b   : > { %v7594_v63 = vpop.f32.mrf.mxu3  ;;  %9676 = vmatmul.msk.bf16.gmra.mxu0 %vm9675_vm10, %v15514_v8  ;;  %9946 = vmatmul.msk.bf16.gmra.mxu1 %vm16190_vm11, %v15514_v8  ;;  %vm1640_vm10 = vcmp.eq.s32.totalorder %v10504_v1, %v13585_v27 }
 0x78c   : > { %v7595_v17 = vadd.f32 %v14521_v12, %v7594_v63  ;;  %v6923_v48 = vmax.f32 %v6539_v34, 0.0  ;;  %v16193_v63 = vld [vmem:[#allocation50_spill] sm:$0xff] }
 0x78d   : > { %vm16194_vm15 = vnez %v16193_v63  ;;  %v16197_v63 = vld [vmem:[#allocation41_spill] sm:$0xff] }
 0x78e   : > { %v8006_v32 = vmax.f32 %v7595_v17, 0.0  ;;  %vm16198_vm12 = vnez %v16197_v63  ;;  %v14599_v63 = vld [vmem:[%s15438_s5] ss:$0 sm:$0xff] }
 0x790   : > { %v14537_v41 = vpop.f32.mrf.mxu0 }
 0x791   : > { %v5484_v11 = vpop.f32.mrf.mxu1  ;;  %v6540_v21 = vpop.f32.mrf.mxu2 }
 0x792   : > { %v5841_v20 = vmul.f32 %v5484_v11, %v14351_v31  ;;  %v6541_v45 = vadd.f32 %v14220_v40, %v6540_v21  ;;  %v16192_v31 = vld [vmem:[#allocation108_spill] sm:$0xff] }
 0x793   : > { %v7596_v53 = vpop.f32.mrf.mxu3  ;;  %vm1635_vm5 = vcmp.eq.s32.totalorder %v10504_v1, %v16192_v31 }
 0x794   : > { %v6019_v26 = vpack.c.bf16 %v5841_v20, %v5840_v54  ;;  %v6924_v43 = vmax.f32 %v6541_v45, 0.0  ;;  %v7597_v56 = vadd.f32 %v14521_v12, %v7596_v53  ;;  %vm9677_vm6 = vmpackc.low %vm1635_vm5, %vm1634_vm9 }
 0x796   : > { %v8007_v24 = vmax.f32 %v7597_v56, 0.0  ;;  %6582 = vmatmul.bf16.gmra.mxu2 %v6019_v26  ;;  %v7111_v23 = vpack.c.bf16 %v6924_v43, %v6923_v48 }
 0x798   : > { %7638 = vmatmul.bf16.gmra.mxu3 %v7111_v23  ;;  %v14546_v22 = vpop.f32.mrf.mxu0  ;;  %v14548_v33 = vpack.c.bf16 %v8007_v24, %v8006_v32 }
 0x799   : > { %v5487_v4 = vpop.f32.mrf.mxu1  ;;  %v6543_v50 = vpop.f32.mrf.mxu2 }
 0x79a   : > { %v6544_v36 = vadd.f32 %v14220_v40, %v6543_v50  ;;  %v5842_v54 = vmul.f32 %v5487_v4, %v14361_v3 }
 0x79b   : > { %v7599_v25 = vpop.f32.mrf.mxu3  ;;  %9678 = vmatmul.msk.bf16.gmra.mxu0 %vm9677_vm6, %v15514_v8  ;;  %9948 = vmatmul.msk.bf16.gmra.mxu1 %vm16194_vm15, %v15514_v8  ;;  %vm1643_vm6 = vcmp.eq.s32.totalorder %v10504_v1, %v13658_v14 }
 0x79c   : > { %v7600_v17 = vadd.f32 %v14521_v12, %v7599_v25  ;;  %v6925_v48 = vmax.f32 %v6544_v36, 0.0 }
 0x79e   : > { %v8008_v32 = vmax.f32 %v7600_v17, 0.0 }
 0x7a0   : > { %v14557_v34 = vpop.f32.mrf.mxu0 }
 0x7a1   : > { %v5489_v11 = vpop.f32.mrf.mxu1  ;;  %v6545_v21 = vpop.f32.mrf.mxu2 }
 0x7a2   : > { %v5843_v20 = vmul.f32 %v5489_v11, %v14372_v49  ;;  %v6546_v45 = vadd.f32 %v14220_v40, %v6545_v21  ;;  %v16196_v49 = vld [vmem:[#allocation99_spill] sm:$0xff] }
 0x7a3   : > { %v7601_v53 = vpop.f32.mrf.mxu3  ;;  %vm1636_vm2 = vcmp.eq.s32.totalorder %v10504_v1, %v16196_v49  ;;  %v16199_v49 = vld [vmem:[#allocation51_spill] sm:$0xff] }
 0x7a4   : > { %v6020_v26 = vpack.c.bf16 %v5843_v20, %v5842_v54  ;;  %v6926_v43 = vmax.f32 %v6546_v45, 0.0  ;;  %v7602_v56 = vadd.f32 %v14521_v12, %v7601_v53  ;;  %vm9679_vm14 = vmpackc.low %vm1637_vm13, %vm1636_vm2  ;;  %vm1639_vm7 = vcmp.eq.s32.totalorder %v10504_v1, %v16199_v49 }
 0x7a5   : > { %vm9681_vm8 = vmpackc.low %vm1639_vm7, %vm1638_vm1 }
 0x7a6   : > { %v8009_v24 = vmax.f32 %v7602_v56, 0.0  ;;  %6587 = vmatmul.bf16.gmra.mxu2 %v6020_v26  ;;  %v7112_v23 = vpack.c.bf16 %v6926_v43, %v6925_v48 }
 0x7a8   : > { %7643 = vmatmul.bf16.gmra.mxu3 %v7112_v23  ;;  %v14566_v3 = vpop.f32.mrf.mxu0  ;;  %v14568_v31 = vpack.c.bf16 %v8009_v24, %v8008_v32 }
 0x7a9   : > { %v5492_v4 = vpop.f32.mrf.mxu1  ;;  %v6548_v50 = vpop.f32.mrf.mxu2 }
 0x7aa   : > { %v6549_v36 = vadd.f32 %v14220_v40, %v6548_v50  ;;  %v5844_v17 = vmul.f32 %v5492_v4, %v14381_v57 }
 0x7ab   : > { %v7604_v25 = vpop.f32.mrf.mxu3  ;;  %9680 = vmatmul.msk.bf16.gmra.mxu0 %vm9679_vm14, %v15514_v8  ;;  %9950 = vmatmul.msk.bf16.gmra.mxu1 %vm16198_vm12, %v15514_v8  ;;  %vm1645_vm14 = vcmp.eq.s32.totalorder %v10504_v1, %v13668_v60  ;;  %vm1644_vm12 = vcmp.eq.s32.totalorder %v10504_v1, %v13676_v5 }
 0x7ac   : > { %v7605_v20 = vadd.f32 %v14521_v12, %v7604_v25  ;;  %v6927_v26 = vmax.f32 %v6549_v36, 0.0  ;;  %v16200_v25 = vld [vmem:[#allocation94_spill] sm:$0xff]  ;;  %vm9687_vm7 = vmpackc.low %vm1645_vm14, %vm1644_vm12 }
 0x7ad   : > { %vm16201_vm3 = vnez %v16200_v25  ;;  %v16203_v25 = vld [vmem:[#allocation141_spill] sm:$0xff] }
 0x7ae   : > { %v8010_v24 = vmax.f32 %v7605_v20, 0.0  ;;  %vm16204_vm5 = vnez %v16203_v25  ;;  %v16207_v25 = vld [vmem:[#allocation90_spill] sm:$0xff] }
 0x7af   : > { %vm16208_vm2 = vnez %v16207_v25 }
 0x7b0   : > { %v14577_v11 = vpop.f32.mrf.mxu0 }
 0x7b1   : > { %v5494_v21 = vpop.f32.mrf.mxu1  ;;  %v6550_v54 = vpop.f32.mrf.mxu2 }
 0x7b2   : > { %v5845_v45 = vmul.f32 %v5494_v21, %v14392_v59  ;;  %v6551_v53 = vadd.f32 %v14220_v40, %v6550_v54 }
 0x7b3   : > { %v7606_v48 = vpop.f32.mrf.mxu3 }
 0x7b4   : > { %v6021_v43 = vpack.c.bf16 %v5845_v45, %v5844_v17  ;;  %v6928_v56 = vmax.f32 %v6551_v53, 0.0  ;;  %v7607_v32 = vadd.f32 %v14521_v12, %v7606_v48 }
 0x7b6   : > { %v8011_v23 = vmax.f32 %v7607_v32, 0.0  ;;  %6592 = vmatmul.bf16.gmra.mxu2 %v6021_v43  ;;  %v7113_v16 = vpack.c.bf16 %v6928_v56, %v6927_v26 }
 0x7b8   : > { %7648 = vmatmul.bf16.gmra.mxu3 %v7113_v16  ;;  %v14588_v57 = vpop.f32.mrf.mxu0  ;;  %v14590_v40 = vpack.c.bf16 %v8011_v23, %v8010_v24 }
 0x7b9   : > { %v5497_v59 = vpop.f32.mrf.mxu1  ;;  %v6553_v4 = vpop.f32.mrf.mxu2 }
 0x7ba   : > { %v6554_v6 = vadd.f32 %v14599_v63, %v6553_v4  ;;  %v5846_v17 = vmul.f32 %v5497_v59, %v14403_v9 }
 0x7bb   : > { %v7609_v50 = vpop.f32.mrf.mxu3  ;;  %9682 = vmatmul.msk.bf16.gmra.mxu0 %vm9681_vm8, %v15514_v8  ;;  %9952 = vmatmul.msk.bf16.gmra.mxu1 %vm16201_vm3, %v15514_v8  ;;  %vm1646_vm8 = vcmp.eq.s32.totalorder %v10504_v1, %v13690_v0 }
 0x7bc   : > { %v7610_v20 = vadd.f32 %v14521_v12, %v7609_v50  ;;  %v6929_v26 = vmax.f32 %v6554_v6, 0.0 }
 0x7be   : > { %v8012_v24 = vmax.f32 %v7610_v20, 0.0 }
 0x7c0   : > { %v14602_v36 = vpop.f32.mrf.mxu0 }
 0x7c1   : > { %v5499_v21 = vpop.f32.mrf.mxu1  ;;  %v6555_v54 = vpop.f32.mrf.mxu2 }
 0x7c2   : > { %v5847_v45 = vmul.f32 %v5499_v21, %v14412_v44  ;;  %v6556_v53 = vadd.f32 %v14599_v63, %v6555_v54  ;;  %v16202_v44 = vld [vmem:[#allocation49_spill] sm:$0xff] }
 0x7c3   : > { %v7611_v48 = vpop.f32.mrf.mxu3  ;;  %vm1641_vm11 = vcmp.eq.s32.totalorder %v10504_v1, %v16202_v44 }
 0x7c4   : > { %v6022_v43 = vpack.c.bf16 %v5847_v45, %v5846_v17  ;;  %v6930_v56 = vmax.f32 %v6556_v53, 0.0  ;;  %v7612_v32 = vadd.f32 %v14521_v12, %v7611_v48  ;;  %vm9683_vm9 = vmpackc.low %vm1641_vm11, %vm1640_vm10 }
 0x7c6   : > { %v8013_v23 = vmax.f32 %v7612_v32, 0.0  ;;  %6597 = vmatmul.bf16.gmra.mxu2 %v6022_v43  ;;  %v7114_v16 = vpack.c.bf16 %v6930_v56, %v6929_v26 }
 0x7c8   : > { %v14611_v9 = vpack.c.bf16 %v8013_v23, %v8012_v24  ;;  %7653 = vmatmul.bf16.gmra.mxu3 %v7114_v16  ;;  %v14613_v49 = vpop.f32.mrf.mxu0 }
 0x7c9   : > { %v5502_v59 = vpop.f32.mrf.mxu1  ;;  %v6558_v4 = vpop.f32.mrf.mxu2 }
 0x7ca   : > { %v6559_v27 = vadd.f32 %v14599_v63, %v6558_v4  ;;  %v5848_v17 = vmul.f32 %v5502_v59, %v14421_v38 }
 0x7cb   : > { %v7614_v50 = vpop.f32.mrf.mxu3  ;;  %9684 = vmatmul.msk.bf16.gmra.mxu0 %vm9683_vm9, %v15514_v8  ;;  %9954 = vmatmul.msk.bf16.gmra.mxu1 %vm16204_vm5, %v15514_v8 }
 0x7cc   : > { %v7615_v20 = vadd.f32 %v14521_v12, %v7614_v50  ;;  %v6931_v26 = vmax.f32 %v6559_v27, 0.0 }
 0x7ce   : > { %v8014_v24 = vmax.f32 %v7615_v20, 0.0 }
 0x7d0   : > { %v14622_v6 = vpop.f32.mrf.mxu0 }
 0x7d1   : > { %v5504_v21 = vpop.f32.mrf.mxu1  ;;  %v6560_v54 = vpop.f32.mrf.mxu2 }
 0x7d2   : > { %v5849_v45 = vmul.f32 %v5504_v21, %v14432_v18  ;;  %v6561_v53 = vadd.f32 %v14599_v63, %v6560_v54  ;;  %v16206_v18 = vld [vmem:[#allocation46_spill] sm:$0xff] }
 0x7d3   : > { %v7616_v48 = vpop.f32.mrf.mxu3  ;;  %vm1642_vm15 = vcmp.eq.s32.totalorder %v10504_v1, %v16206_v18 }
 0x7d4   : > { %v6023_v43 = vpack.c.bf16 %v5849_v45, %v5848_v17  ;;  %v6932_v56 = vmax.f32 %v6561_v53, 0.0  ;;  %v7617_v32 = vadd.f32 %v14521_v12, %v7616_v48  ;;  %vm9685_vm13 = vmpackc.low %vm1643_vm6, %vm1642_vm15 }
 0x7d6   : > { %v8015_v23 = vmax.f32 %v7617_v32, 0.0  ;;  %6602 = vmatmul.bf16.gmra.mxu2 %v6023_v43  ;;  %v7115_v16 = vpack.c.bf16 %v6932_v56, %v6931_v26 }
 0x7d8   : > { %7658 = vmatmul.bf16.gmra.mxu3 %v7115_v16  ;;  %v14631_v38 = vpop.f32.mrf.mxu0  ;;  %v14633_v44 = vpack.c.bf16 %v8015_v23, %v8014_v24 }
 0x7d9   : > { %v5507_v59 = vpop.f32.mrf.mxu1  ;;  %v6563_v4 = vpop.f32.mrf.mxu2 }
 0x7da   : > { %16205 = vst [vmem:[#allocation39_spill] sm:$0xff] %v14633_v44  ;;  %v6564_v14 = vadd.f32 %v14599_v63, %v6563_v4  ;;  %v5850_v17 = vmul.f32 %v5507_v59, %v14443_v10  ;;  %v16233_v44 = vld [vmem:[#allocation120_spill] sm:$0xff] }
 0x7db   : > { %v7619_v50 = vpop.f32.mrf.mxu3  ;;  %9686 = vmatmul.msk.bf16.gmra.mxu0 %vm9685_vm13, %v15514_v8  ;;  %9956 = vmatmul.msk.bf16.gmra.mxu1 %vm16208_vm2, %v15514_v8 }
 0x7dc   : > { %v7620_v20 = vadd.f32 %v14521_v12, %v7619_v50  ;;  %v6933_v26 = vmax.f32 %v6564_v14, 0.0  ;;  %v16210_v50 = vld [vmem:[#allocation107_spill] sm:$0xff] }
 0x7dd   : > { %vm16211_vm1 = vnez %v16210_v50 }
 0x7de   : > { %v8016_v24 = vmax.f32 %v7620_v20, 0.0 }
 0x7e0   : > { %v14642_v27 = vpop.f32.mrf.mxu0 }
 0x7e1   : > { %v5509_v21 = vpop.f32.mrf.mxu1  ;;  %v6565_v54 = vpop.f32.mrf.mxu2 }
 0x7e2   : > { %v5851_v45 = vmul.f32 %v5509_v21, %v14452_v13  ;;  %v6566_v53 = vadd.f32 %v14599_v63, %v6565_v54 }
 0x7e3   : > { %v7621_v48 = vpop.f32.mrf.mxu3 }
 0x7e4   : > { %v6024_v43 = vpack.c.bf16 %v5851_v45, %v5850_v17  ;;  %v6934_v56 = vmax.f32 %v6566_v53, 0.0  ;;  %v7622_v32 = vadd.f32 %v14521_v12, %v7621_v48 }
 0x7e6   : > { %v8017_v23 = vmax.f32 %v7622_v32, 0.0  ;;  %6607 = vmatmul.bf16.gmra.mxu2 %v6024_v43  ;;  %v7116_v16 = vpack.c.bf16 %v6934_v56, %v6933_v26 }
 0x7e8   : > { %7663 = vmatmul.bf16.gmra.mxu3 %v7116_v16  ;;  %v14653_v10 = vpop.f32.mrf.mxu0  ;;  %v14655_v13 = vpack.c.bf16 %v8017_v23, %v8016_v24 }
 0x7e9   : > { %v5512_v18 = vpop.f32.mrf.mxu1  ;;  %v6568_v59 = vpop.f32.mrf.mxu2 }
 0x7ea   : > { %16209 = vst [vmem:[#allocation11_spill] sm:$0xff] %v14655_v13  ;;  %v6569_v60 = vadd.f32 %v14599_v63, %v6568_v59  ;;  %v5852_v21 = vmul.f32 %v5512_v18, %v14463_v28  ;;  %v16237_v13 = vld [vmem:[#allocation110_spill] sm:$0xff] }
 0x7eb   : > { %v7624_v4 = vpop.f32.mrf.mxu3  ;;  %9688 = vmatmul.msk.bf16.gmra.mxu0 %vm9687_vm7, %v15514_v8  ;;  %9958 = vmatmul.msk.bf16.gmra.mxu1 %vm16211_vm1, %v15514_v8 }
 0x7ec   : > { %v7625_v54 = vadd.f32 %v14521_v12, %v7624_v4  ;;  %v6935_v53 = vmax.f32 %v6569_v60, 0.0  ;;  %v16214_v4 = vld [vmem:[#allocation6_spill] sm:$0xff] }
 0x7ed   : > { %vm16215_vm11 = vnez %v16214_v4  ;;  %v16219_v4 = vld [vmem:[#allocation100_spill] sm:$0xff] }
 0x7ee   : > { %v8018_v56 = vmax.f32 %v7625_v54, 0.0  ;;  %vm16220_vm15 = vnez %v16219_v4 }
 0x7f0   : > { %v14662_v25 = vpop.f32.mrf.mxu0 }
 0x7f1   : > { %v5514_v5 = vpop.f32.mrf.mxu1  ;;  %v6570_v14 = vpop.f32.mrf.mxu2 }
 0x7f2   : > { %v5853_v17 = vmul.f32 %v5514_v5, %v14472_v35  ;;  %v6571_v20 = vadd.f32 %v14599_v63, %v6570_v14  ;;  %v16213_v35 = vld [vmem:[#allocation103_spill] sm:$0xff] }
 0x7f3   : > { %v7626_v45 = vpop.f32.mrf.mxu3  ;;  %vm1647_vm3 = vcmp.eq.s32.totalorder %v10504_v1, %v16213_v35 }
 0x7f4   : > { %v6025_v48 = vpack.c.bf16 %v5853_v17, %v5852_v21  ;;  %v6936_v26 = vmax.f32 %v6571_v20, 0.0  ;;  %v7627_v43 = vadd.f32 %v14521_v12, %v7626_v45  ;;  %vm9689_vm10 = vmpackc.low %vm1647_vm3, %vm1646_vm8 }
 0x7f6   : > { %v8019_v32 = vmax.f32 %v7627_v43, 0.0  ;;  %6612 = vmatmul.bf16.gmra.mxu2 %v6025_v48  ;;  %v7117_v24 = vpack.c.bf16 %v6936_v26, %v6935_v53 }
 0x7f8   : > { %7668 = vmatmul.bf16.gmra.mxu3 %v7117_v24  ;;  %v14671_v28 = vpop.f32.mrf.mxu0  ;;  %v14673_v23 = vpack.c.bf16 %v8019_v32, %v8018_v56  ;;  %v16216_v24 = vld [vmem:[#allocation53_spill] sm:$0xff] }
 0x7f9   : > { %v5517_v16 = vpop.f32.mrf.mxu1  ;;  %v6573_v18 = vpop.f32.mrf.mxu2  ;;  %vm1649_vm9 = vcmp.eq.s32.totalorder %v10504_v1, %v16216_v24 }
 0x7fa   : > { %16212 = vst [vmem:[#allocation63_spill] sm:$0xff] %v14673_v23  ;;  %v6574_v0 = vadd.f32 %v14599_v63, %v6573_v18  ;;  %v5854_v14 = vmul.f32 %v5517_v16, %v14481_v62 }
 0x7fb   : > { %v7629_v59 = vpop.f32.mrf.mxu3  ;;  %9690 = vmatmul.msk.bf16.gmra.mxu0 %vm9689_vm10, %v15514_v8  ;;  %9960 = vmatmul.msk.bf16.gmra.mxu1 %vm16215_vm11, %v15514_v8 }
 0x7fc   : > { %v7630_v21 = vadd.f32 %v14521_v12, %v7629_v59  ;;  %v6937_v45 = vmax.f32 %v6574_v0, 0.0 }
 0x7fe   : > { %v8020_v43 = vmax.f32 %v7630_v21, 0.0 }
 0x800   : > { %v14682_v50 = vpop.f32.mrf.mxu0 }
 0x801   : > { %v5519_v60 = vpop.f32.mrf.mxu1  ;;  %v6575_v5 = vpop.f32.mrf.mxu2 }
 0x802   : > { %v5855_v54 = vmul.f32 %v5519_v60, %v14492_v19  ;;  %v6576_v17 = vadd.f32 %v14599_v63, %v6575_v5  ;;  %v16218_v19 = vld [vmem:[#allocation109_spill] sm:$0xff] }
 0x803   : > { %v7631_v20 = vpop.f32.mrf.mxu3  ;;  %vm1648_vm5 = vcmp.eq.s32.totalorder %v10504_v1, %v16218_v19  ;;  %v16221_v19 = vld [vmem:[#allocation105_spill] sm:$0xff] }
 0x804   : > { %v6026_v53 = vpack.c.bf16 %v5855_v54, %v5854_v14  ;;  %v6938_v48 = vmax.f32 %v6576_v17, 0.0  ;;  %v7632_v26 = vadd.f32 %v14521_v12, %v7631_v20  ;;  %vm9691_vm6 = vmpackc.low %vm1649_vm9, %vm1648_vm5  ;;  %vm1651_vm13 = vcmp.eq.s32.totalorder %v10504_v1, %v16221_v19 }
 0x806   : > { %v8021_v56 = vmax.f32 %v7632_v26, 0.0  ;;  %6617 = vmatmul.bf16.gmra.mxu2 %v6026_v53  ;;  %v7118_v32 = vpack.c.bf16 %v6938_v48, %v6937_v45 }
 0x808   : > { %7673 = vmatmul.bf16.gmra.mxu3 %v7118_v32  ;;  %v14691_v62 = vpop.f32.mrf.mxu0  ;;  %v14693_v35 = vpack.c.bf16 %v8021_v56, %v8020_v43 }
 0x809   : > { %v5522_v16 = vpop.f32.mrf.mxu1  ;;  %v6578_v18 = vpop.f32.mrf.mxu2 }
 0x80a   : > { %16217 = vst [vmem:[#allocation20_spill] sm:$0xff] %v14693_v35  ;;  %v6579_v0 = vadd.f32 %v14599_v63, %v6578_v18  ;;  %v5856_v21 = vmul.f32 %v5522_v16, %v14501_v29  ;;  %v16222_v29 = vld [vmem:[#allocation106_spill] sm:$0xff] }
 0x80b   : > { %v7634_v59 = vpop.f32.mrf.mxu3  ;;  %9692 = vmatmul.msk.bf16.gmra.mxu0 %vm9691_vm6, %v15514_v8  ;;  %9962 = vmatmul.msk.bf16.gmra.mxu1 %vm16220_vm15, %v15514_v8  ;;  %vm1650_vm2 = vcmp.eq.s32.totalorder %v10504_v1, %v16222_v29  ;;  %vm1657_vm6 = vcmp.eq.s32.totalorder %v10504_v1, %v16233_v44 }
 0x80c   : > { %v7635_v54 = vadd.f32 %v14521_v12, %v7634_v59  ;;  %v6939_v53 = vmax.f32 %v6579_v0, 0.0  ;;  %vm9693_vm14 = vmpackc.low %vm1651_vm13, %vm1650_vm2  ;;  %v16223_v0 = vld [vmem:[#allocation55_spill] sm:$0xff] }
 0x80d   : > { %vm16224_vm12 = vnez %v16223_v0 }
 0x80e   : > { %v8022_v56 = vmax.f32 %v7635_v54, 0.0 }
 0x810   : > { %v14702_v60 = vpop.f32.mrf.mxu0 }
 0x811   : > { %v5524_v5 = vpop.f32.mrf.mxu1  ;;  %v6580_v14 = vpop.f32.mrf.mxu2 }
 0x812   : > { %v5857_v17 = vmul.f32 %v5524_v5, %v14512_v15  ;;  %v6581_v20 = vadd.f32 %v14599_v63, %v6580_v14 }
 0x813   : > { %v7636_v45 = vpop.f32.mrf.mxu3 }
 0x814   : > { %v6027_v48 = vpack.c.bf16 %v5857_v17, %v5856_v21  ;;  %v6940_v26 = vmax.f32 %v6581_v20, 0.0  ;;  %v7637_v43 = vadd.f32 %v14521_v12, %v7636_v45 }
 0x816   : > { %v8023_v32 = vmax.f32 %v7637_v43, 0.0  ;;  %6622 = vmatmul.bf16.gmra.mxu2 %v6027_v48  ;;  %v7119_v24 = vpack.c.bf16 %v6940_v26, %v6939_v53 }
 0x818   : > { %7678 = vmatmul.bf16.gmra.mxu3 %v7119_v24  ;;  %v14713_v15 = vpop.f32.mrf.mxu0  ;;  %v14715_v16 = vpack.c.bf16 %v8023_v32, %v8022_v56 }
 0x819   : > { %v5527_v18 = vpop.f32.mrf.mxu1  ;;  %v6583_v59 = vpop.f32.mrf.mxu2 }
 0x81a   : > { %v6584_v5 = vadd.f32 %v14599_v63, %v6583_v59  ;;  %v5858_v17 = vmul.f32 %v5527_v18, %v14528_v46  ;;  %v16225_v59 = vld [vmem:[#allocation22_spill] sm:$0xff] }
 0x81b   : > { %v7639_v4 = vpop.f32.mrf.mxu3  ;;  %9694 = vmatmul.msk.bf16.gmra.mxu0 %vm9693_vm14, %v15514_v8  ;;  %9964 = vmatmul.msk.bf16.gmra.mxu1 %vm16224_vm12, %v15514_v8  ;;  %vm1652_vm7 = vcmp.eq.s32.totalorder %v10504_v1, %v16225_v59  ;;  %vm1658_vm14 = vcmp.eq.s32.totalorder %v10504_v1, %v16237_v13 }
 0x81c   : > { %v7640_v20 = vadd.f32 %v14521_v12, %v7639_v4  ;;  %v6941_v26 = vmax.f32 %v6584_v5, 0.0 }
 0x81e   : > { %v8024_v24 = vmax.f32 %v7640_v20, 0.0 }
 0x820   : > { %v14722_v14 = vpop.f32.mrf.mxu0 }
 0x821   : > { %v5529_v21 = vpop.f32.mrf.mxu1  ;;  %v6585_v54 = vpop.f32.mrf.mxu2 }
 0x822   : > { %v5859_v45 = vmul.f32 %v5529_v21, %v14537_v41  ;;  %v6586_v53 = vadd.f32 %v14599_v63, %v6585_v54  ;;  %v16226_v41 = vld [vmem:[#allocation29_spill] sm:$0xff]  ;;  %v16227_v21 = vld [vmem:[#allocation10_spill] sm:$0xff] }
 0x823   : > { %v7641_v48 = vpop.f32.mrf.mxu3  ;;  %vm1653_vm1 = vcmp.eq.s32.totalorder %v10504_v1, %v16226_v41  ;;  %vm16228_vm3 = vnez %v16227_v21  ;;  %v16229_v21 = vld [vmem:[#allocation25_spill] sm:$0xff] }
 0x824   : > { %v6028_v43 = vpack.c.bf16 %v5859_v45, %v5858_v17  ;;  %v6942_v56 = vmax.f32 %v6586_v53, 0.0  ;;  %v7642_v32 = vadd.f32 %v14521_v12, %v7641_v48  ;;  %vm9695_vm8 = vmpackc.low %vm1653_vm1, %vm1652_vm7  ;;  %vm1655_vm10 = vcmp.eq.s32.totalorder %v10504_v1, %v16229_v21 }
 0x826   : > { %v8025_v19 = vmax.f32 %v7642_v32, 0.0  ;;  %6627 = vmatmul.bf16.gmra.mxu2 %v6028_v43  ;;  %v7120_v29 = vpack.c.bf16 %v6942_v56, %v6941_v26 }
 0x828   : > { %7683 = vmatmul.bf16.gmra.mxu3 %v7120_v29  ;;  %v14731_v46 = vpop.f32.mrf.mxu0  ;;  %v14733_v18 = vpack.c.bf16 %v8025_v19, %v8024_v24 }
 0x829   : > { %v5532_v4 = vpop.f32.mrf.mxu1  ;;  %v6588_v0 = vpop.f32.mrf.mxu2 }
 0x82a   : > { %v6589_v54 = vadd.f32 %v14599_v63, %v6588_v0  ;;  %v5860_v53 = vmul.f32 %v5532_v4, %v14546_v22 }
 0x82b   : > { %v7644_v5 = vpop.f32.mrf.mxu3  ;;  %9696 = vmatmul.msk.bf16.gmra.mxu0 %vm9695_vm8, %v15514_v8  ;;  %9966 = vmatmul.msk.bf16.gmra.mxu1 %vm16228_vm3, %v15514_v8 }
 0x82c   : > { %v7645_v48 = vadd.f32 %v14521_v12, %v7644_v5  ;;  %v6943_v32 = vmax.f32 %v6589_v54, 0.0 }
 0x82e   : > { %v8026_v59 = vmax.f32 %v7645_v48, 0.0 }
 0x830   : > { %v14742_v17 = vpop.f32.mrf.mxu0 }
 0x831   : > { %v5534_v20 = vpop.f32.mrf.mxu1  ;;  %v6590_v45 = vpop.f32.mrf.mxu2 }
 0x832   : > { %v5861_v26 = vmul.f32 %v5534_v20, %v14557_v34  ;;  %v6591_v43 = vadd.f32 %v14599_v63, %v6590_v45  ;;  %v16230_v34 = vld [vmem:[#allocation114_spill] sm:$0xff]  ;;  %v16231_v45 = vld [vmem:[#allocation112_spill] sm:$0xff] }
 0x833   : > { %v7646_v56 = vpop.f32.mrf.mxu3  ;;  %vm1654_vm11 = vcmp.eq.s32.totalorder %v10504_v1, %v16230_v34  ;;  %vm16232_vm5 = vnez %v16231_v45 }
 0x834   : > { %v6029_v24 = vpack.c.bf16 %v5861_v26, %v5860_v53  ;;  %v6944_v19 = vmax.f32 %v6591_v43, 0.0  ;;  %v7647_v29 = vadd.f32 %v14521_v12, %v7646_v56  ;;  %vm9697_vm9 = vmpackc.low %vm1655_vm10, %vm1654_vm11 }
 0x836   : > { %v8027_v41 = vmax.f32 %v7647_v29, 0.0  ;;  %6632 = vmatmul.bf16.gmra.mxu2 %v6029_v24  ;;  %v7121_v0 = vpack.c.bf16 %v6944_v19, %v6943_v32 }
 0x838   : > { %7688 = vmatmul.bf16.gmra.mxu3 %v7121_v0  ;;  %v14751_v22 = vpop.f32.mrf.mxu0  ;;  %v14753_v4 = vpack.c.bf16 %v8027_v41, %v8026_v59 }
 0x839   : > { %v5537_v5 = vpop.f32.mrf.mxu1  ;;  %v6593_v54 = vpop.f32.mrf.mxu2 }
 0x83a   : > { %v6594_v53 = vadd.f32 %v14599_v63, %v6593_v54  ;;  %v5862_v56 = vmul.f32 %v5537_v5, %v14566_v3  ;;  %v16234_v3 = vld [vmem:[#allocation145_spill] sm:$0xff] }
 0x83b   : > { %v7649_v20 = vpop.f32.mrf.mxu3  ;;  %9698 = vmatmul.msk.bf16.gmra.mxu0 %vm9697_vm9, %v15514_v8  ;;  %9968 = vmatmul.msk.bf16.gmra.mxu1 %vm16232_vm5, %v15514_v8  ;;  %vm1656_vm15 = vcmp.eq.s32.totalorder %v10504_v1, %v16234_v3 }
 0x83c   : > { %v7650_v32 = vadd.f32 %v14521_v12, %v7649_v20  ;;  %v6945_v59 = vmax.f32 %v6594_v53, 0.0  ;;  %vm9699_vm13 = vmpackc.low %vm1657_vm6, %vm1656_vm15 }
 0x83e   : > { %v8028_v34 = vmax.f32 %v7650_v32, 0.0 }
 0x840   : > { %v14762_v48 = vpop.f32.mrf.mxu0 }
 0x841   : > { %v5539_v26 = vpop.f32.mrf.mxu1  ;;  %v6595_v43 = vpop.f32.mrf.mxu2 }
 0x842   : > { %v5863_v24 = vmul.f32 %v5539_v26, %v14577_v11  ;;  %v6596_v19 = vadd.f32 %v14599_v63, %v6595_v43  ;;  %v16235_v43 = vld [vmem:[#allocation32_spill] sm:$0xff] }
 0x843   : > { %v7651_v29 = vpop.f32.mrf.mxu3  ;;  %vm16236_vm2 = vnez %v16235_v43 }
 0x844   : > { %v6030_v41 = vpack.c.bf16 %v5863_v24, %v5862_v56  ;;  %v6946_v0 = vmax.f32 %v6596_v19, 0.0  ;;  %v7652_v21 = vadd.f32 %v14521_v12, %v7651_v29 }
 0x846   : > { %v8029_v54 = vmax.f32 %v7652_v21, 0.0  ;;  %6637 = vmatmul.bf16.gmra.mxu2 %v6030_v41  ;;  %v7122_v45 = vpack.c.bf16 %v6946_v0, %v6945_v59 }
 0x848   : > { %v14773_v5 = vpack.c.bf16 %v8029_v54, %v8028_v34  ;;  %7693 = vmatmul.bf16.gmra.mxu3 %v7122_v45  ;;  %v14775_v11 = vpop.f32.mrf.mxu0 }
 0x849   : > { %v5542_v20 = vpop.f32.mrf.mxu1  ;;  %v6598_v53 = vpop.f32.mrf.mxu2 }
 0x84a   : > { %v6599_v44 = vadd.f32 %v14599_v63, %v6598_v53  ;;  %v5864_v19 = vmul.f32 %v5542_v20, %v14588_v57 }
 0x84b   : > { %v7654_v26 = vpop.f32.mrf.mxu3  ;;  %9700 = vmatmul.msk.bf16.gmra.mxu0 %vm9699_vm13, %v15514_v8  ;;  %9970 = vmatmul.msk.bf16.gmra.mxu1 %vm16236_vm2, %v15514_v8 }
 0x84c   : > { %v7655_v29 = vadd.f32 %v14521_v12, %v7654_v26  ;;  %v6947_v21 = vmax.f32 %v6599_v44, 0.0 }
 0x84e   : > { %v8030_v3 = vmax.f32 %v7655_v29, 0.0 }
 0x850   : > { %v14782_v56 = vpop.f32.mrf.mxu0 }
 0x851   : > { %v5544_v32 = vpop.f32.mrf.mxu1  ;;  %v6600_v24 = vpop.f32.mrf.mxu2 }
 0x852   : > { %v5865_v59 = vmul.f32 %v5544_v32, %v14602_v36  ;;  %v6601_v41 = vadd.f32 %v14599_v63, %v6600_v24  ;;  %v16239_v36 = vld [vmem:[#allocation57_spill] sm:$0xff]  ;;  %v16240_v24 = vld [vmem:[#allocation56_spill] sm:$0xff] }
 0x853   : > { %v7656_v0 = vpop.f32.mrf.mxu3  ;;  %vm1659_vm12 = vcmp.eq.s32.totalorder %v10504_v1, %v16239_v36  ;;  %vm16241_vm1 = vnez %v16240_v24 }
 0x854   : > { %v6031_v34 = vpack.c.bf16 %v5865_v59, %v5864_v19  ;;  %v6948_v54 = vmax.f32 %v6601_v41, 0.0  ;;  %v7657_v45 = vadd.f32 %v14521_v12, %v7656_v0  ;;  %vm9701_vm7 = vmpackc.low %vm1659_vm12, %vm1658_vm14 }
 0x856   : > { %v8031_v53 = vmax.f32 %v7657_v45, 0.0  ;;  %6642 = vmatmul.bf16.gmra.mxu2 %v6031_v34  ;;  %v7123_v43 = vpack.c.bf16 %v6948_v54, %v6947_v21  ;;  %v1397_v45 = vpop.permute.xlu0 %1396 }
 0x857   : > { %vm1661_vm8 = vcmp.eq.s32.totalorder %v10504_v1, %v1397_v45 }
 0x858   : > { %7698 = vmatmul.bf16.gmra.mxu3 %v7123_v43  ;;  %v14791_v57 = vpop.f32.mrf.mxu0  ;;  %v14793_v20 = vpack.c.bf16 %v8031_v53, %v8030_v3 }
 0x859   : > { %v5547_v26 = vpop.f32.mrf.mxu1  ;;  %v6603_v44 = vpop.f32.mrf.mxu2 }
 0x85a   : > { %16238 = vst [vmem:[#allocation124_spill] sm:$0xff] %v14793_v20  ;;  %v6604_v13 = vadd.f32 %v14599_v63, %v6603_v44  ;;  %v5866_v41 = vmul.f32 %v5547_v26, %v14613_v49 }
 0x85b   : > { %v7659_v32 = vpop.f32.mrf.mxu3  ;;  %9702 = vmatmul.msk.bf16.gmra.mxu0 %vm9701_vm7, %v15514_v8  ;;  %9972 = vmatmul.msk.bf16.gmra.mxu1 %vm16241_vm1, %v15514_v8 }
 0x85c   : > { %v7660_v0 = vadd.f32 %v14521_v12, %v7659_v32  ;;  %v6949_v3 = vmax.f32 %v6604_v13, 0.0 }
 0x85e   : > { %v8032_v44 = vmax.f32 %v7660_v0, 0.0 }
 0x860   : > { %v14802_v19 = vpop.f32.mrf.mxu0 }
 0x861   : > { %v5549_v29 = vpop.f32.mrf.mxu1  ;;  %v6605_v59 = vpop.f32.mrf.mxu2 }
 0x862   : > { %v5867_v21 = vmul.f32 %v5549_v29, %v14622_v6  ;;  %v6606_v34 = vadd.f32 %v14599_v63, %v6605_v59  ;;  %v16243_v6 = vld [vmem:[#allocation111_spill] sm:$0xff] }
 0x863   : > { %v7661_v54 = vpop.f32.mrf.mxu3  ;;  %vm1660_vm3 = vcmp.eq.s32.totalorder %v10504_v1, %v16243_v6  ;;  %v16244_v59 = vld [vmem:[#allocation47_spill] sm:$0xff] }
 0x864   : > { %v6032_v53 = vpack.c.bf16 %v5867_v21, %v5866_v41  ;;  %v6950_v43 = vmax.f32 %v6606_v34, 0.0  ;;  %v7662_v36 = vadd.f32 %v14521_v12, %v7661_v54  ;;  %vm9703_vm10 = vmpackc.low %vm1661_vm8, %vm1660_vm3  ;;  %vm16245_vm11 = vnez %v16244_v59 }
 0x866   : > { %v8033_v24 = vmax.f32 %v7662_v36, 0.0  ;;  %6647 = vmatmul.bf16.gmra.mxu2 %v6032_v53  ;;  %v7124_v20 = vpack.c.bf16 %v6950_v43, %v6949_v3  ;;  %v1403_v43 = vpop.permute.xlu1 %1402  ;;  %v1400_v36 = vpop.permute.xlu0 %1399 }
 0x867   : > { %vm1663_vm9 = vcmp.eq.s32.totalorder %v10504_v1, %v1403_v43  ;;  %vm1662_vm5 = vcmp.eq.s32.totalorder %v10504_v1, %v1400_v36 }
 0x868   : > { %7703 = vmatmul.bf16.gmra.mxu3 %v7124_v20  ;;  %v14810_v49 = vpop.f32.mrf.mxu0  ;;  %v14812_v26 = vpack.c.bf16 %v8033_v24, %v8032_v44  ;;  %vm9705_vm6 = vmpackc.low %vm1663_vm9, %vm1662_vm5 }
 0x869   : > { %v5552_v32 = vpop.f32.mrf.mxu1  ;;  %v6608_v13 = vpop.f32.mrf.mxu2 }
 0x86a   : > { %16242 = vst [vmem:[#allocation125_spill] sm:$0xff] %v14812_v26  ;;  %v6609_v41 = vadd.f32 %v14599_v63, %v6608_v13  ;;  %v5868_v34 = vmul.f32 %v5552_v32, %v14631_v38 }
 0x86b   : > { %v7664_v29 = vpop.f32.mrf.mxu3  ;;  %9704 = vmatmul.msk.bf16.gmra.mxu0 %vm9703_vm10, %v15514_v8  ;;  %9974 = vmatmul.msk.bf16.gmra.mxu1 %vm16245_vm11, %v15514_v8 }
 0x86c   : > { %v7665_v54 = vadd.f32 %v14521_v12, %v7664_v29  ;;  %v6951_v44 = vmax.f32 %v6609_v41, 0.0 }
 0x86e   : > { %v8034_v59 = vmax.f32 %v7665_v54, 0.0 }
 0x870   : > { %v14821_v20 = vpop.f32.mrf.mxu0 }
 0x871   : > { %v5554_v0 = vpop.f32.mrf.mxu1  ;;  %v6610_v21 = vpop.f32.mrf.mxu2 }
 0x872   : > { %v5869_v45 = vmul.f32 %v5554_v0, %v14642_v27  ;;  %v6611_v3 = vadd.f32 %v14599_v63, %v6610_v21  ;;  %v16247_v0 = vld [vmem:[#allocation101_spill] sm:$0xff]  ;;  %v14838_v21 = vpop.permute.xlu2 %3319 }
 0x873   : > { %v7666_v53 = vpop.f32.mrf.mxu3  ;;  %vm16248_vm15 = vnez %v16247_v0  ;;  %vm3582_vm10 = vcmp.eq.s32.totalorder %v10504_v1, %v14838_v21 }
 0x874   : > { %v6033_v24 = vpack.c.bf16 %v5869_v45, %v5868_v34  ;;  %v6952_v6 = vmax.f32 %v6611_v3, 0.0  ;;  %v7667_v13 = vadd.f32 %v14521_v12, %v7666_v53 }
 0x876   : > { %v8035_v26 = vmax.f32 %v7667_v13, 0.0  ;;  %6652 = vmatmul.bf16.gmra.mxu2 %v6033_v24  ;;  %v7125_v23 = vpack.c.bf16 %v6952_v6, %v6951_v44  ;;  %v1406_v44 = vpop.permute.xlu1 %1405 }
 0x877   : > { %vm1664_vm13 = vcmp.eq.s32.totalorder %v10504_v1, %v1406_v44 }
 0x878   : > { %7708 = vmatmul.bf16.gmra.mxu3 %v7125_v23  ;;  %v14830_v38 = vpop.f32.mrf.mxu0  ;;  %v14832_v27 = vpack.c.bf16 %v8035_v26, %v8034_v59 }
 0x879   : > { %v5557_v32 = vpop.f32.mrf.mxu1  ;;  %v6613_v29 = vpop.f32.mrf.mxu2 }
 0x87a   : > { %16246 = vst [vmem:[#allocation33_spill] sm:$0xff] %v14832_v27  ;;  %v6614_v34 = vadd.f32 %v14599_v63, %v6613_v29  ;;  %v5870_v26 = vmul.f32 %v5557_v32, %v14653_v10  ;;  %v1409_v29 = vpop.permute.xlu2 %1408 }
 0x87b   : > { %v7669_v41 = vpop.f32.mrf.mxu3  ;;  %9706 = vmatmul.msk.bf16.gmra.mxu0 %vm9705_vm6, %v15514_v8  ;;  %9976 = vmatmul.msk.bf16.gmra.mxu1 %vm16248_vm15, %v15514_v8  ;;  %vm1665_vm2 = vcmp.eq.s32.totalorder %v10504_v1, %v1409_v29 }
 0x87c   : > { %v7670_v3 = vadd.f32 %v14521_v12, %v7669_v41  ;;  %v6953_v24 = vmax.f32 %v6614_v34, 0.0  ;;  %vm9707_vm14 = vmpackc.low %vm1665_vm2, %vm1664_vm13 }
 0x87e   : > { %v8036_v0 = vmax.f32 %v7670_v3, 0.0 }
 0x880   : > { %v14841_v54 = vpop.f32.mrf.mxu0 }
 0x881   : > { %v5559_v23 = vpop.f32.mrf.mxu1  ;;  %v6615_v45 = vpop.f32.mrf.mxu2 }
 0x882   : > { %v5871_v53 = vmul.f32 %v5559_v23, %v14662_v25  ;;  %v6616_v43 = vadd.f32 %v14599_v63, %v6615_v45  ;;  %v16250_v23 = vld [vmem:[#allocation13_spill] sm:$0xff] }
 0x883   : > { %v7671_v36 = vpop.f32.mrf.mxu3  ;;  %vm16251_vm12 = vnez %v16250_v23 }
 0x884   : > { %v6034_v6 = vpack.c.bf16 %v5871_v53, %v5870_v26  ;;  %v6954_v13 = vmax.f32 %v6616_v43, 0.0  ;;  %v7672_v59 = vadd.f32 %v14521_v12, %v7671_v36 }
 0x886   : > { %v8037_v27 = vmax.f32 %v7672_v59, 0.0  ;;  %6657 = vmatmul.bf16.gmra.mxu2 %v6034_v6  ;;  %v7126_v35 = vpack.c.bf16 %v6954_v13, %v6953_v24 }
 0x888   : > { %7713 = vmatmul.bf16.gmra.mxu3 %v7126_v35  ;;  %v14849_v10 = vpop.f32.mrf.mxu0  ;;  %v14851_v25 = vpack.c.bf16 %v8037_v27, %v8036_v0 }
 0x889   : > { %v5562_v32 = vpop.f32.mrf.mxu1  ;;  %v6618_v41 = vpop.f32.mrf.mxu2 }
 0x88a   : > { %16249 = vst [vmem:[#allocation115_spill] sm:$0xff] %v14851_v25  ;;  %v6619_v45 = vadd.f32 %v14599_v63, %v6618_v41  ;;  %v5872_v27 = vmul.f32 %v5562_v32, %v14671_v28  ;;  %v14871_v28 = vld [vmem:[%s15441_s8] sm:$0x1] }
 0x88b   : > { %v7674_v34 = vpop.f32.mrf.mxu3  ;;  %9708 = vmatmul.msk.bf16.gmra.mxu0 %vm9707_vm14, %v15514_v8  ;;  %9978 = vmatmul.msk.bf16.gmra.mxu1 %vm16251_vm12, %v15514_v8 }
 0x88c   : > { %v7675_v53 = vadd.f32 %v14521_v12, %v7674_v34  ;;  %v6955_v24 = vmax.f32 %v6619_v45, 0.0 }
 0x88e   : > { %v8038_v29 = vmax.f32 %v7675_v53, 0.0 }
 0x890   : > { %v14859_v26 = vpop.f32.mrf.mxu0 }
 0x891   : > { %v5564_v35 = vpop.f32.mrf.mxu1  ;;  %v6620_v3 = vpop.f32.mrf.mxu2 }
 0x892   : > { %v5873_v43 = vmul.f32 %v5564_v35, %v14682_v50  ;;  %v6621_v36 = vadd.f32 %v14599_v63, %v6620_v3  ;;  %v16252_v35 = vld [vmem:[#allocation118_spill] sm:$0xff] }
 0x893   : > { %v7676_v44 = vpop.f32.mrf.mxu3  ;;  %vm16253_vm7 = vnez %v16252_v35 }
 0x894   : > { %v6035_v6 = vpack.c.bf16 %v5873_v43, %v5872_v27  ;;  %v6956_v13 = vmax.f32 %v6621_v36, 0.0  ;;  %v7677_v59 = vadd.f32 %v14521_v12, %v7676_v44 }
 0x896   : > { %v8039_v0 = vmax.f32 %v7677_v59, 0.0  ;;  %6662 = vmatmul.bf16.gmra.mxu2 %v6035_v6  ;;  %v7127_v41 = vpack.c.bf16 %v6956_v13, %v6955_v24 }
 0x898   : > { %7718 = vmatmul.bf16.gmra.mxu3 %v7127_v41  ;;  %v14866_v23 = vpop.f32.mrf.mxu0  ;;  %v14873_v50 = vpack.c.bf16 %v8039_v0, %v8038_v29 }
 0x899   : > { %v5567_v32 = vpop.f32.mrf.mxu1  ;;  %v6623_v34 = vpop.f32.mrf.mxu2 }
 0x89a   : > { %v6624_v3 = vadd.f32 %v14599_v63, %v6623_v34  ;;  %v5874_v36 = vmul.f32 %v5567_v32, %v14691_v62 }
 0x89b   : > { %v7679_v45 = vpop.f32.mrf.mxu3  ;;  %9980 = vmatmul.msk.bf16.gmra.mxu1 %vm16253_vm7, %v15514_v8  ;;  %8254 = vmatmul.bf16.vlgmr.msrb.gmra.mxu0 %v14871_v28 }
 0x89c   : > { %8350 = vmatpush.bf16.xpose.msrb.mxu0 %v14441_v7  ;;  %v7680_v44 = vadd.f32 %v14521_v12, %v7679_v45  ;;  %v6957_v59 = vmax.f32 %v6624_v3, 0.0  ;;  %v16254_v3 = vld [vmem:[#allocation104_spill] sm:$0xff] }
 0x89d   : > { %vm16255_vm1 = vnez %v16254_v3 }
 0x89e   : > { %v8040_v41 = vmax.f32 %v7680_v44, 0.0 }
 0x8a0   : > { %v14881_v27 = vpop.f32.mrf.mxu0 }
 0x8a1   : > { %v5569_v53 = vpop.f32.mrf.mxu1  ;;  %v6625_v43 = vpop.f32.mrf.mxu2 }
 0x8a2   : > { %v5875_v24 = vmul.f32 %v5569_v53, %v14702_v60  ;;  %v6626_v6 = vadd.f32 %v14599_v63, %v6625_v43 }
 0x8a3   : > { %v7681_v13 = vpop.f32.mrf.mxu3 }
 0x8a4   : > { %v6036_v29 = vpack.c.bf16 %v5875_v24, %v5874_v36  ;;  %v6958_v0 = vmax.f32 %v6626_v6, 0.0  ;;  %v7682_v7 = vadd.f32 %v14521_v12, %v7681_v13  ;;  %8351 = vmatpush.bf16.xpose.msrb.mxu0 %v14423_v58  ;;  %v14905_v24 = vld [vmem:[%s15440_s7] ss:$0 sm:$0xff] }
 0x8a6   : > { %v8041_v34 = vmax.f32 %v7682_v7, 0.0  ;;  %6667 = vmatmul.bf16.gmra.mxu2 %v6036_v29  ;;  %v7128_v35 = vpack.c.bf16 %v6958_v0, %v6957_v59 }
 0x8a8   : > { %7723 = vmatmul.bf16.gmra.mxu3 %v7128_v35  ;;  %v14889_v62 = vpop.f32.mrf.mxu0  ;;  %v14891_v32 = vpack.c.bf16 %v8041_v34, %v8040_v41 }
 0x8a9   : > { %v5572_v60 = vpop.f32.mrf.mxu1  ;;  %v6628_v45 = vpop.f32.mrf.mxu2 }
 0x8aa   : > { %v6629_v58 = vadd.f32 %v14599_v63, %v6628_v45  ;;  %v5876_v44 = vmul.f32 %v5572_v60, %v14713_v15 }
 0x8ab   : > { %v7684_v53 = vpop.f32.mrf.mxu3  ;;  %9982 = vmatmul.msk.bf16.gmra.mxu1 %vm16255_vm1, %v15514_v8  ;;  %8306 = vmatmul.bf16.vlgmr.msra.gmra.mxu0 %v14871_v28 }
 0x8ac   : > { %8352 = vmatpush.bf16.xpose.msrb.mxu0 %v14405_v55  ;;  %v7685_v6 = vadd.f32 %v14905_v24, %v7684_v53  ;;  %v6959_v29 = vmax.f32 %v6629_v58, 0.0  ;;  %v16256_v58 = vld [vmem:[#allocation8_spill] sm:$0xff] }
 0x8ad   : > { %vm16257_vm8 = vnez %v16256_v58  ;;  %v16258_v58 = vld [vmem:[#allocation67_spill] sm:$0xff] }
 0x8ae   : > { %v8042_v15 = vmax.f32 %v7685_v6, 0.0  ;;  %vm16259_vm3 = vnez %v16258_v58 }
 0x8b0   : > { %v14899_v12 = vpop.f32.mrf.mxu0 }
 0x8b1   : > { %v5574_v43 = vpop.f32.mrf.mxu1  ;;  %v6630_v36 = vpop.f32.mrf.mxu2 }
 0x8b2   : > { %v5877_v13 = vmul.f32 %v5574_v43, %v14722_v14  ;;  %v6631_v59 = vadd.f32 %v14599_v63, %v6630_v36 }
 0x8b3   : > { %v7686_v55 = vpop.f32.mrf.mxu3 }
 0x8b4   : > { %v6037_v0 = vpack.c.bf16 %v5877_v13, %v5876_v44  ;;  %v6960_v7 = vmax.f32 %v6631_v59, 0.0  ;;  %v7687_v41 = vadd.f32 %v14905_v24, %v7686_v55  ;;  %8353 = vmatpush.bf16.xpose.msrb.mxu0 %v14383_v30 }
 0x8b6   : > { %v8043_v34 = vmax.f32 %v7687_v41, 0.0  ;;  %6672 = vmatmul.bf16.gmra.mxu2 %v6037_v0  ;;  %v7129_v35 = vpack.c.bf16 %v6960_v7, %v6959_v29 }
 0x8b8   : > { %7728 = vmatmul.bf16.gmra.mxu3 %v7129_v35  ;;  %v14912_v60 = vpop.f32.mrf.mxu0  ;;  %v14914_v45 = vpack.c.bf16 %v8043_v34, %v8042_v15 }
 0x8b9   : > { %v5577_v14 = vpop.f32.mrf.mxu1  ;;  %v6633_v53 = vpop.f32.mrf.mxu2 }
 0x8ba   : > { %v6634_v30 = vadd.f32 %v14599_v63, %v6633_v53  ;;  %v5878_v6 = vmul.f32 %v5577_v14, %v14731_v46 }
 0x8bb   : > { %v7689_v3 = vpop.f32.mrf.mxu3  ;;  %9984 = vmatmul.msk.bf16.gmra.mxu1 %vm16257_vm8, %v15514_v8  ;;  %vm8788_vm8 = vcmask 1040384  }
 0x8bc   : > { %8354 = vmatpush.bf16.xpose.msrb.mxu0 %v14363_v61  ;;  %v7690_v13 = vadd.f32 %v14905_v24, %v7689_v3  ;;  %v6961_v0 = vmax.f32 %v6634_v30, 0.0 }
 0x8be   : > { %v8044_v15 = vmax.f32 %v7690_v13, 0.0 }
 0x8c0   : > { %v14921_v43 = vpop.f32.mrf.mxu0 }
 0x8c1   : > { %v5579_v36 = vpop.f32.mrf.mxu1  ;;  %v6635_v44 = vpop.f32.mrf.mxu2 }
 0x8c2   : > { %v5879_v59 = vmul.f32 %v5579_v36, %v14742_v17  ;;  %v6636_v55 = vadd.f32 %v14599_v63, %v6635_v44 }
 0x8c3   : > { %v7691_v29 = vpop.f32.mrf.mxu3 }
 0x8c4   : > { %v6038_v7 = vpack.c.bf16 %v5879_v59, %v5878_v6  ;;  %v6962_v41 = vmax.f32 %v6636_v55, 0.0  ;;  %v7692_v61 = vadd.f32 %v14905_v24, %v7691_v29  ;;  %8355 = vmatpush.bf16.xpose.msrb.mxu0 %v14343_v51 }
 0x8c6   : > { %v8045_v34 = vmax.f32 %v7692_v61, 0.0  ;;  %6677 = vmatmul.bf16.gmra.mxu2 %v6038_v7  ;;  %v7130_v35 = vpack.c.bf16 %v6962_v41, %v6961_v0 }
 0x8c8   : > { %v14929_v53 = vpack.c.bf16 %v8045_v34, %v8044_v15  ;;  %7733 = vmatmul.bf16.gmra.mxu3 %v7130_v35  ;;  %v14931_v46 = vpop.f32.mrf.mxu0 }
 0x8c9   : > { %v5582_v17 = vpop.f32.mrf.mxu1  ;;  %v6638_v14 = vpop.f32.mrf.mxu2 }
 0x8ca   : > { %v6639_v51 = vadd.f32 %v14599_v63, %v6638_v14  ;;  %v5880_v6 = vmul.f32 %v5582_v17, %v14751_v22 }
 0x8cb   : > { %v7694_v3 = vpop.f32.mrf.mxu3  ;;  %9986 = vmatmul.msk.bf16.gmra.mxu1 %vm16259_vm3, %v15514_v8 }
 0x8cc   : > { %8356 = vmatpush.bf16.xpose.msrb.mxu0 %v14319_v42  ;;  %v7695_v13 = vadd.f32 %v14905_v24, %v7694_v3  ;;  %v6963_v0 = vmax.f32 %v6639_v51, 0.0 }
 0x8ce   : > { %v8046_v61 = vmax.f32 %v7695_v13, 0.0 }
 0x8d0   : > { %v14938_v30 = vpop.f32.mrf.mxu0 }
 0x8d1   : > { %v5584_v36 = vpop.f32.mrf.mxu1  ;;  %v6640_v44 = vpop.f32.mrf.mxu2 }
 0x8d2   : > { %v5881_v59 = vmul.f32 %v5584_v36, %v14762_v48  ;;  %v6641_v55 = vadd.f32 %v14599_v63, %v6640_v44 }
 0x8d3   : > { %v7696_v29 = vpop.f32.mrf.mxu3 }
 0x8d4   : > { %v6039_v7 = vpack.c.bf16 %v5881_v59, %v5880_v6  ;;  %v6964_v41 = vmax.f32 %v6641_v55, 0.0  ;;  %v7697_v42 = vadd.f32 %v14905_v24, %v7696_v29  ;;  %8357 = vmatpush.bf16.xpose.msrb.mxu0 %v14298_v47 }
 0x8d6   : > { %v8047_v15 = vmax.f32 %v7697_v42, 0.0  ;;  %6682 = vmatmul.bf16.gmra.mxu2 %v6039_v7  ;;  %v7131_v34 = vpack.c.bf16 %v6964_v41, %v6963_v0 }
 0x8d8   : > { %7738 = vmatmul.bf16.gmra.mxu3 %v7131_v34  ;;  %v14946_v22 = vpop.f32.mrf.mxu0  ;;  %v14948_v35 = vpack.c.bf16 %v8047_v15, %v8046_v61 }
 0x8d9   : > { %v5587_v48 = vpop.f32.mrf.mxu1  ;;  %v6643_v17 = vpop.f32.mrf.mxu2 }
 0x8da   : > { %v6644_v47 = vadd.f32 %v14599_v63, %v6643_v17  ;;  %v5882_v44 = vmul.f32 %v5587_v48, %v14775_v11 }
 0x8db   : > { %v7699_v14 = vpop.f32.mrf.mxu3  ;;  %8358 = vmatmul.bf16.vlgmr.msrb.gmra.mxu0 %v14871_v28  ;;  %9988 = vmatmul.msk.bf16.gmra.mxu1 %vm13865_vm4, %v15514_v8 }
 0x8dc   : > { %v7700_v6 = vadd.f32 %v14905_v24, %v7699_v14  ;;  %v6965_v29 = vmax.f32 %v6644_v47, 0.0  ;;  %v14972_v14 = vld [vmem:[%s15438_s5] ss:$0 sm:$0xff] }
 0x8de   : > { %v8048_v42 = vmax.f32 %v7700_v6, 0.0 }
 0x8e0   : > { %v14955_v58 = vpop.f32.mrf.mxu0 }
 0x8e1   : > { %v5589_v51 = vpop.f32.mrf.mxu1  ;;  %v6645_v36 = vpop.f32.mrf.mxu2 }
 0x8e2   : > { %v5883_v13 = vmul.f32 %v5589_v51, %v14782_v56  ;;  %v6646_v59 = vadd.f32 %v14599_v63, %v6645_v36  ;;  %v16261_v63 = vld [vmem:[#allocation71_spill] sm:$0xff] }
 0x8e3   : > { %v7701_v55 = vpop.f32.mrf.mxu3  ;;  %vm16262_vm4 = vnez %v16261_v63 }
 0x8e4   : > { %v6040_v0 = vpack.c.bf16 %v5883_v13, %v5882_v44  ;;  %v6966_v7 = vmax.f32 %v6646_v59, 0.0  ;;  %v7702_v41 = vadd.f32 %v14905_v24, %v7701_v55 }
 0x8e6   : > { %v8049_v61 = vmax.f32 %v7702_v41, 0.0  ;;  %6687 = vmatmul.bf16.gmra.mxu2 %v6040_v0  ;;  %v7132_v15 = vpack.c.bf16 %v6966_v7, %v6965_v29 }
 0x8e8   : > { %7743 = vmatmul.bf16.gmra.mxu3 %v7132_v15  ;;  %v14962_v34 = vpop.f32.mrf.mxu0  ;;  %v14964_v11 = vpack.c.bf16 %v8049_v61, %v8048_v42 }
 0x8e9   : > { %v5592_v48 = vpop.f32.mrf.mxu1  ;;  %v6648_v17 = vpop.f32.mrf.mxu2 }
 0x8ea   : > { %v6649_v3 = vadd.f32 %v14972_v14, %v6648_v17  ;;  %v5884_v44 = vmul.f32 %v5592_v48, %v14791_v57 }
 0x8eb   : > { %v7704_v56 = vpop.f32.mrf.mxu3  ;;  %9990 = vmatmul.msk.bf16.gmra.mxu1 %vm16262_vm4, %v15514_v8 }
 0x8ec   : > { %v7705_v6 = vadd.f32 %v14905_v24, %v7704_v56  ;;  %v6967_v29 = vmax.f32 %v6649_v3, 0.0 }
 0x8ee   : > { %v8050_v42 = vmax.f32 %v7705_v6, 0.0 }
 0x8f0   : > { %v14975_v47 = vpop.f32.mrf.mxu0 }
 0x8f1   : > { %v5594_v51 = vpop.f32.mrf.mxu1  ;;  %v6650_v36 = vpop.f32.mrf.mxu2 }
 0x8f2   : > { %v5885_v13 = vmul.f32 %v5594_v51, %v14802_v19  ;;  %v6651_v59 = vadd.f32 %v14972_v14, %v6650_v36 }
 0x8f3   : > { %v7706_v55 = vpop.f32.mrf.mxu3 }
 0x8f4   : > { %v6041_v0 = vpack.c.bf16 %v5885_v13, %v5884_v44  ;;  %v6968_v7 = vmax.f32 %v6651_v59, 0.0  ;;  %v7707_v41 = vadd.f32 %v14905_v24, %v7706_v55 }
 0x8f6   : > { %v8051_v61 = vmax.f32 %v7707_v41, 0.0  ;;  %6692 = vmatmul.bf16.gmra.mxu2 %v6041_v0  ;;  %v7133_v15 = vpack.c.bf16 %v6968_v7, %v6967_v29  ;;  %v3323_v0 = vpop.permute.xlu0 %3322 }
 0x8f8   : > { %7748 = vmatmul.bf16.gmra.mxu3 %v7133_v15  ;;  %v14982_v17 = vpop.f32.mrf.mxu0  ;;  %v14984_v57 = vpack.c.bf16 %v8051_v61, %v8050_v42 }
 0x8f9   : > { %v5597_v48 = vpop.f32.mrf.mxu1  ;;  %v6653_v56 = vpop.f32.mrf.mxu2 }
 0x8fa   : > { %v6654_v3 = vadd.f32 %v14972_v14, %v6653_v56  ;;  %v5886_v6 = vmul.f32 %v5597_v48, %v14810_v49 }
 0x8fb   : > { %v7709_v19 = vpop.f32.mrf.mxu3  ;;  %9992 = vmatmul.msk.bf16.gmra.mxu1 %vm13902_vm0, %v15514_v8  ;;  %vm3583_vm0 = vcmp.eq.s32.totalorder %v10504_v1, %v3323_v0 }
 0x8fc   : > { %v7710_v13 = vadd.f32 %v14905_v24, %v7709_v19  ;;  %v6969_v7 = vmax.f32 %v6654_v3, 0.0  ;;  %vm9993_vm11 = vmpackc.low %vm3583_vm0, %vm3582_vm10 }
 0x8fe   : > { %v8052_v15 = vmax.f32 %v7710_v13, 0.0 }
 0x900   : > { %v14990_v51 = vpop.f32.mrf.mxu0 }
 0x901   : > { %v5599_v36 = vpop.f32.mrf.mxu1  ;;  %v6655_v44 = vpop.f32.mrf.mxu2 }
 0x902   : > { %v5887_v59 = vmul.f32 %v5599_v36, %v14821_v20  ;;  %v6656_v55 = vadd.f32 %v14972_v14, %v6655_v44 }
 0x903   : > { %v7711_v29 = vpop.f32.mrf.mxu3 }
 0x904   : > { %v6042_v41 = vpack.c.bf16 %v5887_v59, %v5886_v6  ;;  %v6970_v42 = vmax.f32 %v6656_v55, 0.0  ;;  %v7712_v61 = vadd.f32 %v14905_v24, %v7711_v29 }
 0x906   : > { %v8053_v56 = vmax.f32 %v7712_v61, 0.0  ;;  %6697 = vmatmul.bf16.gmra.mxu2 %v6042_v41  ;;  %v7134_v63 = vpack.c.bf16 %v6970_v42, %v6969_v7  ;;  %v3329_v7 = vpop.permute.xlu1 %3328  ;;  %v3326_v41 = vpop.permute.xlu0 %3325 }
 0x907   : > { %vm3585_vm9 = vcmp.eq.s32.totalorder %v10504_v1, %v3329_v7  ;;  %vm3584_vm5 = vcmp.eq.s32.totalorder %v10504_v1, %v3326_v41 }
 0x908   : > { %7753 = vmatmul.bf16.gmra.mxu3 %v7134_v63  ;;  %v14998_v49 = vpop.f32.mrf.mxu0  ;;  %v15000_v48 = vpack.c.bf16 %v8053_v56, %v8052_v15  ;;  %vm9995_vm6 = vmpackc.low %vm3585_vm9, %vm3584_vm5 }
 0x909   : > { %v5602_v20 = vpop.f32.mrf.mxu1  ;;  %v6658_v19 = vpop.f32.mrf.mxu2 }
 0x90a   : > { %v6659_v36 = vadd.f32 %v14972_v14, %v6658_v19  ;;  %v5888_v59 = vmul.f32 %v5602_v20, %v14830_v38 }
 0x90b   : > { %v7714_v3 = vpop.f32.mrf.mxu3  ;;  %9994 = vmatmul.msk.bf16.gmra.mxu1 %vm9993_vm11, %v15514_v8 }
 0x90c   : > { %v7715_v55 = vadd.f32 %v14905_v24, %v7714_v3  ;;  %v6971_v42 = vmax.f32 %v6659_v36, 0.0 }
 0x90e   : > { %v8054_v63 = vmax.f32 %v7715_v55, 0.0 }
 0x910   : > { %v15006_v44 = vpop.f32.mrf.mxu0 }
 0x911   : > { %v5604_v6 = vpop.f32.mrf.mxu1  ;;  %v6660_v13 = vpop.f32.mrf.mxu2 }
 0x912   : > { %v5889_v29 = vmul.f32 %v5604_v6, %v14841_v54  ;;  %v6661_v21 = vadd.f32 %v14972_v14, %v6660_v13 }
 0x913   : > { %v7716_v0 = vpop.f32.mrf.mxu3 }
 0x914   : > { %v6043_v61 = vpack.c.bf16 %v5889_v29, %v5888_v59  ;;  %v6972_v15 = vmax.f32 %v6661_v21, 0.0  ;;  %v7717_v56 = vadd.f32 %v14905_v24, %v7716_v0 }
 0x916   : > { %v8055_v19 = vmax.f32 %v7717_v56, 0.0  ;;  %6702 = vmatmul.bf16.gmra.mxu2 %v6043_v61  ;;  %v7135_v25 = vpack.c.bf16 %v6972_v15, %v6971_v42 }
 0x918   : > { %7758 = vmatmul.bf16.gmra.mxu3 %v7135_v25  ;;  %v15015_v38 = vpop.f32.mrf.mxu0  ;;  %v15017_v54 = vpack.c.bf16 %v8055_v19, %v8054_v63 }
 0x919   : > { %v5607_v20 = vpop.f32.mrf.mxu1  ;;  %v6663_v3 = vpop.f32.mrf.mxu2 }
 0x91a   : > { %v6664_v13 = vadd.f32 %v14972_v14, %v6663_v3  ;;  %v5890_v29 = vmul.f32 %v5607_v20, %v14849_v10 }
 0x91b   : > { %v15019_v36 = vpop.f32.mrf.mxu3  ;;  %9996 = vmatmul.msk.bf16.gmra.mxu1 %vm9995_vm6, %v15514_v8 }
 0x91c   : > { %v6973_v41 = vmax.f32 %v6664_v13, 0.0 }
 0x920   : > { %v8257_v6 = vpop.f32.mrf.mxu0 }
 0x921   : > { %v5609_v59 = vpop.f32.mrf.mxu1  ;;  %v6665_v55 = vpop.f32.mrf.mxu2 }
 0x922   : > { %v5891_v1 = vmul.f32 %v5609_v59, %v14859_v26  ;;  %v6666_v25 = vadd.f32 %v14972_v14, %v6665_v55 }
 0x923   : > { %v7721_v21 = vpop.f32.mrf.mxu3 }
 0x924   : > { %v6044_v0 = vpack.c.bf16 %v5891_v1, %v5890_v29  ;;  %v6974_v7 = vmax.f32 %v6666_v25, 0.0 }
 0x926   : > { %6707 = vmatmul.bf16.gmra.mxu2 %v6044_v0  ;;  %v7136_v42 = vpack.c.bf16 %v6974_v7, %v6973_v41 }
 0x928   : > { %v15026_v61 = vpop.f32.mrf.mxu0  ;;  %7763 = vmatmul.bf16.gmra.mxu3 %v7136_v42 }
 0x929   : > { %v5612_v8 = vpop.f32.mrf.mxu1  ;;  %v6668_v15 = vpop.f32.mrf.mxu2 }
 0x92a   : > { %v6669_v26 = vadd.f32 %v14972_v14, %v6668_v15  ;;  %v5892_v20 = vmul.f32 %v5612_v8, %v14866_v23 }
 0x92b   : > { %v7724_v56 = vpop.f32.mrf.mxu3  ;;  %8267 = vmatmul.bf16.vlgmr.msrb.gmra.mxu1 %v14871_v28 }
 0x92c   : > { %8363 = vmatpush.bf16.xpose.msrb.mxu1 %v14611_v9  ;;  %v6975_v29 = vmax.f32 %v6669_v26, 0.0 }
 0x930   : > { %v8309_v10 = vpop.f32.mrf.mxu0 }
 0x931   : > { %v5614_v63 = vpop.f32.mrf.mxu1  ;;  %v6670_v19 = vpop.f32.mrf.mxu2 }
 0x932   : > { %v5893_v3 = vmul.f32 %v5614_v63, %v14881_v27  ;;  %v6671_v6 = vadd.f32 %v14972_v14, %v6670_v19 }
 0x933   : > { %v7726_v13 = vpop.f32.mrf.mxu3 }
 0x934   : > { %v6045_v59 = vpack.c.bf16 %v5893_v3, %v5892_v20  ;;  %v6976_v55 = vmax.f32 %v6671_v6, 0.0  ;;  %8364 = vmatpush.bf16.xpose.msrb.mxu1 %v14590_v40 }
 0x936   : > { %6712 = vmatmul.bf16.gmra.mxu2 %v6045_v59  ;;  %v7137_v1 = vpack.c.bf16 %v6976_v55, %v6975_v29  ;;  %v7725_v55 = vadd.f32 %v14905_v24, %v7724_v56 }
 0x938   : > { %7768 = vmatmul.bf16.gmra.mxu3 %v7137_v1 }
 0x939   : > { %v5617_v9 = vpop.f32.mrf.mxu1  ;;  %v6673_v25 = vpop.f32.mrf.mxu2 }
 0x93a   : > { %v6674_v23 = vadd.f32 %v14972_v14, %v6673_v25  ;;  %v5894_v41 = vmul.f32 %v5617_v9, %v14889_v62  ;;  %v7727_v62 = vadd.f32 %v14905_v24, %v7726_v13  ;;  %v8058_v9 = vmax.f32 %v7725_v55, 0.0 }
 0x93b   : > { %v7729_v0 = vpop.f32.mrf.mxu3  ;;  %8319 = vmatmul.bf16.vlgmr.msra.gmra.mxu1 %v14871_v28  ;;  %v7720_v13 = vadd.f32 %v14905_v24, %v15019_v36 }
 0x93c   : > { %8365 = vmatpush.bf16.xpose.msrb.mxu1 %v14568_v31  ;;  %v7730_v42 = vadd.f32 %v14905_v24, %v7729_v0  ;;  %v6977_v10 = vmax.f32 %v6674_v23, 0.0  ;;  %v8059_v1 = vmax.f32 %v7727_v62, 0.0 }
 0x93d   : > { %v8056_v36 = vmax.f32 %v7720_v13, 0.0 }
 0x93e   : > { %v8060_v31 = vmax.f32 %v7730_v42, 0.0  ;;  %v8213_v0 = vpack.c.bf16 %v8059_v1, %v8058_v9 }
 0x941   : > { %v5619_v27 = vpop.f32.mrf.mxu1  ;;  %v6675_v7 = vpop.f32.mrf.mxu2 }
 0x942   : > { %v5895_v40 = vmul.f32 %v5619_v27, %v14899_v12  ;;  %v6676_v8 = vadd.f32 %v14972_v14, %v6675_v7 }
 0x943   : > { %v7731_v15 = vpop.f32.mrf.mxu3 }
 0x944   : > { %v6046_v26 = vpack.c.bf16 %v5895_v40, %v5894_v41  ;;  %v6978_v63 = vmax.f32 %v6676_v8, 0.0  ;;  %v7732_v19 = vadd.f32 %v14905_v24, %v7731_v15  ;;  %8366 = vmatpush.bf16.xpose.msrb.mxu1 %v14548_v33  ;;  %v7722_v33 = vadd.f32 %v14905_v24, %v7721_v21 }
 0x946   : > { %v8061_v20 = vmax.f32 %v7732_v19, 0.0  ;;  %6717 = vmatmul.bf16.gmra.mxu2 %v6046_v26  ;;  %v7138_v3 = vpack.c.bf16 %v6978_v63, %v6977_v10 }
 0x948   : > { %v8214_v6 = vpack.c.bf16 %v8061_v20, %v8060_v31  ;;  %7773 = vmatmul.bf16.gmra.mxu3 %v7138_v3 }
 0x949   : > { %v5622_v59 = vpop.f32.mrf.mxu1  ;;  %v6678_v12 = vpop.f32.mrf.mxu2 }
 0x94a   : > { %8402 = vmatpush.bf16.xpose.msra.mxu0 %v8214_v6  ;;  %v6679_v25 = vadd.f32 %v14972_v14, %v6678_v12  ;;  %v5896_v7 = vmul.f32 %v5622_v59, %v14912_v60 }
 0x94b   : > { %v7734_v29 = vpop.f32.mrf.mxu3 }
 0x94c   : > { %8367 = vmatpush.bf16.xpose.msrb.mxu1 %v14530_v52  ;;  %v7735_v56 = vadd.f32 %v14905_v24, %v7734_v29  ;;  %v8057_v52 = vmax.f32 %v7722_v33, 0.0  ;;  %v6979_v21 = vmax.f32 %v6679_v25, 0.0 }
 0x94e   : > { %v8062_v26 = vmax.f32 %v7735_v56, 0.0 }
 0x951   : > { %v5624_v23 = vpop.f32.mrf.mxu1  ;;  %v6680_v27 = vpop.f32.mrf.mxu2 }
 0x952   : > { %v5897_v41 = vmul.f32 %v5624_v23, %v14921_v43  ;;  %v6681_v42 = vadd.f32 %v14972_v14, %v6680_v27  ;;  %8403 = vmatpush.bf16.xpose.msra.mxu0 %v8213_v0  ;;  %v8212_v43 = vpack.c.bf16 %v8057_v52, %v8056_v36 }
 0x953   : > { %v7736_v40 = vpop.f32.mrf.mxu3 }
 0x954   : > { %v6047_v8 = vpack.c.bf16 %v5897_v41, %v5896_v7  ;;  %v6980_v15 = vmax.f32 %v6681_v42, 0.0  ;;  %v7737_v10 = vadd.f32 %v14905_v24, %v7736_v40  ;;  %8368 = vmatpush.bf16.xpose.msrb.mxu1 %v14503_v2 }
 0x956   : > { %v8063_v63 = vmax.f32 %v7737_v10, 0.0  ;;  %6722 = vmatmul.bf16.gmra.mxu2 %v6047_v8  ;;  %v7139_v60 = vpack.c.bf16 %v6980_v15, %v6979_v21 }
 0x958   : > { %v15057_v19 = vpop.f32.mrf.mxu0  ;;  %v15059_v31 = vpack.c.bf16 %v8063_v63, %v8062_v26  ;;  %7778 = vmatmul.bf16.gmra.mxu3 %v7139_v60 }
 0x959   : > { %v5627_v20 = vpop.f32.mrf.mxu1  ;;  %v6683_v3 = vpop.f32.mrf.mxu2 }
 0x95a   : > { %8404 = vmatpush.bf16.xpose.msra.mxu0 %v8212_v43  ;;  %v6684_v2 = vadd.f32 %v14972_v14, %v6683_v3  ;;  %v5898_v55 = vmul.f32 %v5627_v20, %v14931_v46 }
 0x95b   : > { %v7739_v62 = vpop.f32.mrf.mxu3 }
 0x95c   : > { %8369 = vmatpush.bf16.xpose.msrb.mxu1 %v14483_v39  ;;  %v7740_v9 = vadd.f32 %v14905_v24, %v7739_v62  ;;  %v6981_v13 = vmax.f32 %v6684_v2, 0.0 }
 0x95e   : > { %v8064_v23 = vmax.f32 %v7740_v9, 0.0 }
 0x960   : > { %v8361_v6 = vpop.f32.mrf.mxu0 }
 0x961   : > { %v5629_v59 = vpop.f32.mrf.mxu1  ;;  %v6685_v12 = vpop.f32.mrf.mxu2 }
 0x962   : > { %v5899_v29 = vmul.f32 %v5629_v59, %v14938_v30  ;;  %v6686_v1 = vadd.f32 %v14972_v14, %v6685_v12  ;;  %8405 = vmatpush.bf16.xpose.msra.mxu0 %v15017_v54 }
 0x963   : > { %v7741_v33 = vpop.f32.mrf.mxu3 }
 0x964   : > { %v6048_v25 = vpack.c.bf16 %v5899_v29, %v5898_v55  ;;  %v6982_v0 = vmax.f32 %v6686_v1, 0.0  ;;  %v7742_v39 = vadd.f32 %v14905_v24, %v7741_v33  ;;  %8370 = vmatpush.bf16.xpose.msrb.mxu1 %v14465_v37 }
 0x966   : > { %6727 = vmatmul.bf16.gmra.mxu2 %v6048_v25  ;;  %v8065_v27 = vmax.f32 %v7742_v39, 0.0  ;;  %v7140_v46 = vpack.c.bf16 %v6982_v0, %v6981_v13 }
 0x968   : > { %7783 = vmatmul.bf16.gmra.mxu3 %v7140_v46  ;;  %v15070_v56 = vpack.c.bf16 %v8065_v27, %v8064_v23 }
 0x969   : > { %v5632_v30 = vpop.f32.mrf.mxu1  ;;  %v6688_v7 = vpop.f32.mrf.mxu2 }
 0x96a   : > { %8406 = vmatpush.bf16.xpose.msra.mxu0 %v15000_v48  ;;  %v6689_v41 = vadd.f32 %v14972_v14, %v6688_v7  ;;  %v5900_v37 = vmul.f32 %v5632_v30, %v14946_v22 }
 0x96b   : > { %v7744_v54 = vpop.f32.mrf.mxu3  ;;  %8371 = vmatmul.bf16.vlgmr.msrb.gmra.mxu1 %v14871_v28 }
 0x96c   : > { %v7745_v40 = vadd.f32 %v14905_v24, %v7744_v54  ;;  %v6983_v10 = vmax.f32 %v6689_v41, 0.0 }
 0x96e   : > { %v8066_v63 = vmax.f32 %v7745_v40, 0.0 }
 0x971   : > { %v5634_v42 = vpop.f32.mrf.mxu1  ;;  %v6690_v52 = vpop.f32.mrf.mxu2 }
 0x972   : > { %v5901_v21 = vmul.f32 %v5634_v42, %v14955_v58  ;;  %v6691_v8 = vadd.f32 %v14972_v14, %v6690_v52  ;;  %8407 = vmatpush.bf16.xpose.msra.mxu0 %v14984_v57  ;;  %v8243_v42 = vpop.permute.xlu2 %8242 }
 0x973   : > { %v7746_v15 = vpop.f32.mrf.mxu3 }
 0x974   : > { %v6049_v48 = vpack.c.bf16 %v5901_v21, %v5900_v37  ;;  %v6984_v36 = vmax.f32 %v6691_v8, 0.0  ;;  %v7747_v26 = vadd.f32 %v14905_v24, %v7746_v15  ;;  %v15100_v15 = vperm.slane %v8243_v42, 0 }
 0x976   : > { %v8067_v60 = vmax.f32 %v7747_v26, 0.0  ;;  %6732 = vmatmul.bf16.gmra.mxu2 %v6049_v48  ;;  %v7141_v43 = vpack.c.bf16 %v6984_v36, %v6983_v10 }
 0x978   : > { %v15081_v20 = vpack.c.bf16 %v8067_v60, %v8066_v63  ;;  %7788 = vmatmul.bf16.gmra.mxu3 %v7141_v43 }
 0x979   : > { %v5637_v22 = vpop.f32.mrf.mxu1  ;;  %v6693_v3 = vpop.f32.mrf.mxu2 }
 0x97a   : > { %8408 = vmatpush.bf16.xpose.msra.mxu0 %v14964_v11  ;;  %v6694_v57 = vadd.f32 %v14972_v14, %v6693_v3  ;;  %v5902_v2 = vmul.f32 %v5637_v22, %v14962_v34 }
 0x97b   : > { %v7749_v58 = vpop.f32.mrf.mxu3 }
 0x97c   : > { %v7750_v59 = vadd.f32 %v14905_v24, %v7749_v58  ;;  %v6985_v1 = vmax.f32 %v6694_v57, 0.0 }
 0x97e   : > { %v8068_v25 = vmax.f32 %v7750_v59, 0.0 }
 0x981   : > { %v5639_v62 = vpop.f32.mrf.mxu1  ;;  %v6695_v6 = vpop.f32.mrf.mxu2 }
 0x982   : > { %v5903_v12 = vmul.f32 %v5639_v62, %v14975_v47  ;;  %v6696_v55 = vadd.f32 %v14972_v14, %v6695_v6  ;;  %8409 = vmatpush.bf16.xpose.msra.mxu0 %v14948_v35 }
 0x983   : > { %v7751_v29 = vpop.f32.mrf.mxu3 }
 0x984   : > { %v6050_v9 = vpack.c.bf16 %v5903_v12, %v5902_v2  ;;  %v6986_v33 = vmax.f32 %v6696_v55, 0.0  ;;  %v7752_v11 = vadd.f32 %v14905_v24, %v7751_v29 }
 0x986   : > { %v8069_v0 = vmax.f32 %v7752_v11, 0.0  ;;  %6737 = vmatmul.bf16.gmra.mxu2 %v6050_v9  ;;  %v7142_v39 = vpack.c.bf16 %v6986_v33, %v6985_v1 }
 0x988   : > { %v15091_v13 = vpack.c.bf16 %v8069_v0, %v8068_v25  ;;  %7793 = vmatmul.bf16.gmra.mxu3 %v7142_v39 }
 0x989   : > { %v5642_v34 = vpop.f32.mrf.mxu1  ;;  %v6698_v23 = vpop.f32.mrf.mxu2  ;;  %8410 = vmatmul.bf16.vlgmr.msra.gmra.mxu0 %v14871_v28 }
 0x98a   : > { %v6699_v35 = vadd.f32 %v14972_v14, %v6698_v23  ;;  %v5904_v30 = vmul.f32 %v5642_v34, %v14982_v17  ;;  %v8256_v17 = vadd.f32 %v15015_v38, %v15100_v15  ;;  %v8308_v38 = vadd.f32 %v15026_v61, %v15100_v15 }
 0x98b   : > { %v7754_v47 = vpop.f32.mrf.mxu3 }
 0x98c   : > { %v7755_v7 = vadd.f32 %v14905_v24, %v7754_v47  ;;  %v6987_v37 = vmax.f32 %v6699_v35, 0.0  ;;  %v10061_v43 = vmul.f32 -1.442695, %v8256_v17  ;;  %v10065_v9 = vmul.f32 -1.442695, %v8308_v38 }
 0x98e   : > { %v8070_v10 = vmax.f32 %v7755_v7, 0.0  ;;  %10159 = vpow2.f32 %v10061_v43 }
 0x98f   : > { %10161 = vpow2.f32 %v10065_v9 }
 0x991   : > { %v5644_v27 = vpop.f32.mrf.mxu1  ;;  %v6700_v46 = vpop.f32.mrf.mxu2 }
 0x992   : > { %v5905_v54 = vmul.f32 %v5644_v27, %v14990_v51  ;;  %v6701_v41 = vadd.f32 %v14972_v14, %v6700_v46 }
 0x993   : > { %v7756_v52 = vpop.f32.mrf.mxu3 }
 0x994   : > { %v6051_v40 = vpack.c.bf16 %v5905_v54, %v5904_v30  ;;  %v6988_v21 = vmax.f32 %v6701_v41, 0.0  ;;  %v7757_v8 = vadd.f32 %v14905_v24, %v7756_v52  ;;  %v10160_v29 = vpop.eup %10159 }
 0x995   : > { %v15116_v33 = vadd.f32 1.0, %v10160_v29  ;;  %v10162_v39 = vpop.eup %10161 }
 0x996   : > { %v8071_v48 = vmax.f32 %v7757_v8, 0.0  ;;  %6742 = vmatmul.bf16.gmra.mxu2 %v6051_v40  ;;  %v7143_v36 = vpack.c.bf16 %v6988_v21, %v6987_v37  ;;  %v15126_v46 = vadd.f32 1.0, %v10162_v39 }
 0x997   : > { %10163 = vrcp.f32 %v15116_v33  ;;  %vm8523_vm15 = vweird.f32 %v15116_v33 }
 0x998   : > { %v15104_v26 = vpack.c.bf16 %v8071_v48, %v8070_v10  ;;  %7798 = vmatmul.bf16.gmra.mxu3 %v7143_v36  ;;  %vm8583_vm0 = vweird.f32 %v15126_v46 }
 0x999   : > { %v5647_v51 = vpop.f32.mrf.mxu1  ;;  %v6703_v63 = vpop.f32.mrf.mxu2 }
 0x99a   : > { %v6704_v22 = vadd.f32 %v14972_v14, %v6703_v63  ;;  %v5906_v57 = vmul.f32 %v5647_v51, %v14998_v49 }
 0x99b   : > { %v15106_v60 = vpop.f32.mrf.mxu3 }
 0x99c   : > { %v6989_v59 = vmax.f32 %v6704_v22, 0.0  ;;  %v8529_v22 = vand.u32 2147483648, %v15116_v33 }
 0x99d   : > { %v15124_v35 = vpop.eup %10163 }
 0x99e   : > { %v8519_v52 = vmul.f32 %v15124_v35, %v15116_v33  ;;  %vm8524_vm2 = vweird.f32 %v15124_v35 }
 0x99f   : > { %vm15160_vm7 = vmor %vm8523_vm15, %vm8524_vm2 }
 0x9a0   : > { %v8520_v8 = vsub.f32 1.0, %v8519_v52 }
 0x9a1   : > { %v5649_v3 = vpop.f32.mrf.mxu1  ;;  %v6705_v58 = vpop.f32.mrf.mxu2 }
 0x9a2   : > { %v5907_v62 = vmul.f32 %v5649_v3, %v15006_v44  ;;  %v6706_v6 = vadd.f32 %v14972_v14, %v6705_v58  ;;  %v8521_v63 = vmul.f32 %v15124_v35, %v8520_v8 }
 0x9a3   : > { %v15114_v2 = vpop.f32.mrf.mxu3 }
 0x9a4   : > { %v6052_v12 = vpack.c.bf16 %v5907_v62, %v5906_v57  ;;  %v6990_v55 = vmax.f32 %v6706_v6, 0.0 }
 0x9a6   : > { %6747 = vmatmul.bf16.gmra.mxu2 %v6052_v12  ;;  %v7144_v1 = vpack.c.bf16 %v6990_v55, %v6989_v59  ;;  %v8522_v59 = vadd.f32 %v15124_v35, %v8521_v63  ;;  %v8587_v63 = vand.u32 2147483647, %v15126_v46 }
 0x9a8   : > { %7803 = vmatmul.bf16.gmra.mxu3 %v7144_v1  ;;  %vm8588_vm9 = vcmp.eq.f32.partialorder %v8587_v63, 8.507059e+37 }
 0x9a9   : > { %v6708_v49 = vpop.f32.mrf.mxu2  ;;  %v8268_v11 = vpop.f32.mrf.mxu1 }
 0x9aa   : > { %v8269_v44 = vadd.f32 %v8268_v11, %v15100_v15  ;;  %v6709_v61 = vadd.f32 %v14972_v14, %v6708_v49  ;;  %v8527_v11 = vand.u32 2147483647, %v15116_v33  ;;  %v8526_v33 = vsel %vm15160_vm7, %v15124_v35, %v8522_v59 }
 0x9ab   : > { %v15119_v0 = vpop.f32.mrf.mxu3 }
 0x9ac   : > { %v10062_v25 = vmul.f32 -1.442695, %v8269_v44  ;;  %v6991_v30 = vmax.f32 %v6709_v61, 0.0  ;;  %vm8528_vm3 = vcmp.eq.f32.partialorder %v8527_v11, 8.507059e+37  ;;  %v15208_v11 = vld [vmem:[%s15440_s7] ss:$0 sm:$0xff] }
 0x9ae   : > { %10165 = vpow2.f32 %v10062_v25 }
 0x9b1   : > { %v6710_v34 = vpop.f32.mrf.mxu2  ;;  %v8270_v23 = vpop.f32.mrf.mxu1 }
 0x9b2   : > { %v6711_v47 = vadd.f32 %v14972_v14, %v6710_v34 }
 0x9b3   : > { %v7766_v54 = vpop.f32.mrf.mxu3 }
 0x9b4   : > { %v10166_v27 = vpop.eup %10165  ;;  %v6992_v7 = vmax.f32 %v6711_v47, 0.0 }
 0x9b5   : > { %v8503_v41 = vadd.f32 1.0, %v10166_v27 }
 0x9b6   : > { %8280 = vmatmul.bf16.vlgmr.msrb.gmra.mxu2 %v14871_v28  ;;  %v7145_v42 = vpack.c.bf16 %v6992_v7, %v6991_v30  ;;  %v8530_v30 = vor.u32 1.1754944e-38, %v8529_v22 }
 0x9b7   : > { %10167 = vrcp.f32 %v8503_v41  ;;  %8376 = vmatpush.bf16.xpose.msrb.mxu2 %v14773_v5  ;;  %v8544_v6 = vand.u32 2147483648, %v8503_v41  ;;  %vm8538_vm14 = vweird.f32 %v8503_v41 }
 0x9b8   : > { %10169 = vrcp.f32 %v15126_v46  ;;  %7808 = vmatmul.bf16.gmra.mxu3 %v7145_v42  ;;  %v8531_v8 = vsel %vm8528_vm3, %v8530_v30, %v8526_v33 }
 0x9b9   : > { %v6713_v37 = vpop.f32.mrf.mxu2  ;;  %v8320_v40 = vpop.f32.mrf.mxu1  ;;  %v8545_v23 = vor.u32 1.1754944e-38, %v8544_v6 }
 0x9ba   : > { %v8321_v21 = vadd.f32 %v8320_v40, %v15100_v15  ;;  %v6714_v43 = vadd.f32 %v14972_v14, %v6713_v37 }
 0x9bb   : > { %v7769_v48 = vpop.f32.mrf.mxu3 }
 0x9bc   : > { %v10066_v10 = vmul.f32 -1.442695, %v8321_v21  ;;  %v6993_v29 = vmax.f32 %v6714_v43, 0.0  ;;  %v7770_v1 = vadd.f32 %v14905_v24, %v7769_v48  ;;  %v16272_v43 = vld [vmem:[#allocation11_spill] sm:$0xff] }
 0x9bd   : > { %v10168_v36 = vpop.eup %10167 }
 0x9be   : > { %v15134_v17 = vpop.eup %10169  ;;  %v8534_v51 = vmul.f32 %v10168_v36, %v8503_v41  ;;  %10171 = vpow2.f32 %v10066_v10  ;;  %vm8539_vm13 = vweird.f32 %v10168_v36  ;;  %v8076_v7 = vmax.f32 %v7770_v1, 0.0 }
 0x9bf   : > { %8377 = vmatpush.bf16.xpose.msrb.mxu2 %v14753_v4  ;;  %v8579_v3 = vmul.f32 %v15134_v17, %v15126_v46  ;;  %v8542_v4 = vand.u32 2147483647, %v8503_v41  ;;  %vm15149_vm12 = vmor %vm8538_vm14, %vm8539_vm13  ;;  %vm8584_vm4 = vweird.f32 %v15134_v17  ;;  %vm8794_vm13 = vcmask 1044484  }
 0x9c0   : > { %v8535_v5 = vsub.f32 1.0, %v8534_v51  ;;  %vm15186_vm10 = vmor %vm8583_vm0, %vm8584_vm4 }
 0x9c1   : > { %v6715_v58 = vpop.f32.mrf.mxu2  ;;  %v8322_v57 = vpop.f32.mrf.mxu1  ;;  %v8580_v44 = vsub.f32 1.0, %v8579_v3  ;;  %vm8543_vm1 = vcmp.eq.f32.partialorder %v8542_v4, 8.507059e+37 }
 0x9c2   : > { %v8536_v62 = vmul.f32 %v10168_v36, %v8535_v5  ;;  %v6716_v38 = vadd.f32 %v14972_v14, %v6715_v58  ;;  %v8589_v5 = vand.u32 2147483648, %v15126_v46  ;;  %v7762_v58 = vadd.f32 %v14905_v24, %v15114_v2 }
 0x9c3   : > { %v7771_v49 = vpop.f32.mrf.mxu3  ;;  %v8581_v52 = vmul.f32 %v15134_v17, %v8580_v44 }
 0x9c4   : > { %v10172_v12 = vpop.eup %10171  ;;  %v8537_v55 = vadd.f32 %v10168_v36, %v8536_v62  ;;  %v6994_v9 = vmax.f32 %v6716_v38, 0.0  ;;  %v7772_v39 = vadd.f32 %v14905_v24, %v7771_v49  ;;  %v8590_v59 = vor.u32 1.1754944e-38, %v8589_v5 }
 0x9c5   : > { %v15153_v61 = vadd.f32 1.0, %v10172_v12  ;;  %v7760_v12 = vadd.f32 %v14905_v24, %v15106_v60  ;;  %v8073_v44 = vmax.f32 %v7762_v58, 0.0 }
 0x9c6   : > { %v7146_v47 = vpack.c.bf16 %v6994_v9, %v6993_v29  ;;  %8332 = vmatmul.bf16.vlgmr.msra.gmra.mxu2 %v14871_v28  ;;  %v8541_v27 = vsel %vm15149_vm12, %v10168_v36, %v8537_v55  ;;  %v8077_v41 = vmax.f32 %v7772_v39, 0.0  ;;  %v7767_v28 = vadd.f32 %v14905_v24, %v7766_v54 }
 0x9c7   : > { %10173 = vrcp.f32 %v15153_v61  ;;  %8378 = vmatpush.bf16.xpose.msrb.mxu2 %v14733_v18  ;;  %v8546_v42 = vsel %vm8543_vm1, %v8545_v23, %v8541_v27  ;;  %v7765_v18 = vadd.f32 %v14905_v24, %v15119_v0  ;;  %v8582_v36 = vadd.f32 %v15134_v17, %v8581_v52  ;;  %v16270_v23 = vld [vmem:[#allocation20_spill] sm:$0xff] }
 0x9c8   : > { %7813 = vmatmul.bf16.gmra.mxu3 %v7146_v47  ;;  %v8774_v40 = vrot.slane %v8546_v42, 7  ;;  %v8222_v21 = vpack.c.bf16 %v8077_v41, %v8076_v7  ;;  %v8075_v54 = vmax.f32 %v7767_v28, 0.0  ;;  %v8604_v57 = vand.u32 2147483648, %v15153_v61 }
 0x9c9   : > { %v6718_v37 = vpop.f32.mrf.mxu2  ;;  %v8074_v0 = vmax.f32 %v7765_v18, 0.0  ;;  %v8586_v46 = vsel %vm15186_vm10, %v15134_v17, %v8582_v36  ;;  %vm8598_vm5 = vweird.f32 %v15153_v61  ;;  %v8360_v9 = vadd.f32 %v15057_v19, %v15100_v15 }
 0x9ca   : > { %v15177_v10 = vsel %vm8788_vm8, %v8531_v8, %v8774_v40  ;;  %8415 = vmatpush.bf16.xpose.msra.mxu1 %v8222_v21  ;;  %v6719_v3 = vadd.f32 %v14972_v14, %v6718_v37  ;;  %v8605_v49 = vor.u32 1.1754944e-38, %v8604_v57  ;;  %v8072_v19 = vmax.f32 %v7760_v12, 0.0  ;;  %v16271_v37 = vld [vmem:[#allocation63_spill] sm:$0xff] }
 0x9cb   : > { %v7774_v35 = vpop.f32.mrf.mxu3  ;;  %v8221_v6 = vpack.c.bf16 %v8075_v54, %v8074_v0  ;;  %v10069_v52 = vmul.f32 -1.442695, %v8360_v9 }
 0x9cc   : > { %v7775_v2 = vadd.f32 %v14905_v24, %v7774_v35  ;;  %v6995_v29 = vmax.f32 %v6719_v3, 0.0  ;;  %v8591_v24 = vsel %vm8588_vm9, %v8590_v59, %v8586_v46  ;;  %v8220_v41 = vpack.c.bf16 %v8073_v44, %v8072_v19  ;;  %v16273_v46 = vld [vmem:[#allocation39_spill] sm:$0xff] }
 0x9cd   : > { %v10174_v48 = vpop.eup %10173  ;;  %v8777_v27 = vrot.slane %v8591_v24, 4  ;;  %10175 = vpow2.f32 %v10069_v52 }
 0x9ce   : > { %v8594_v51 = vmul.f32 %v10174_v48, %v15153_v61  ;;  %vm8599_vm11 = vweird.f32 %v10174_v48  ;;  %v8078_v39 = vmax.f32 %v7775_v2, 0.0 }
 0x9cf   : > { %8379 = vmatpush.bf16.xpose.msrb.mxu2 %v14715_v16  ;;  %v8602_v16 = vand.u32 2147483647, %v15153_v61  ;;  %vm8600_vm6 = vmor %vm8598_vm5, %vm8599_vm11 }
 0x9d0   : > { %v8595_v22 = vsub.f32 1.0, %v8594_v51 }
 0x9d1   : > { %v6720_v62 = vpop.f32.mrf.mxu2  ;;  %vm8603_vm15 = vcmp.eq.f32.partialorder %v8602_v16, 8.507059e+37 }
 0x9d2   : > { %v8596_v38 = vmul.f32 %v10174_v48, %v8595_v22  ;;  %v6721_v4 = vadd.f32 %v14972_v14, %v6720_v62  ;;  %8416 = vmatpush.bf16.xpose.msra.mxu1 %v8221_v6 }
 0x9d3   : > { %v7776_v17 = vpop.f32.mrf.mxu3  ;;  %v10176_v54 = vpop.eup %10175 }
 0x9d4   : > { %v8597_v55 = vadd.f32 %v10174_v48, %v8596_v38  ;;  %v6996_v1 = vmax.f32 %v6721_v4, 0.0  ;;  %v7777_v60 = vadd.f32 %v15208_v11, %v7776_v17  ;;  %v15224_v22 = vadd.f32 1.0, %v10176_v54 }
 0x9d6   : > { %v7147_v25 = vpack.c.bf16 %v6996_v1, %v6995_v29  ;;  %v8601_v61 = vsel %vm8600_vm6, %v10174_v48, %v8597_v55  ;;  %v8079_v34 = vmax.f32 %v7777_v60, 0.0  ;;  %10177 = vrcp.f32 %v15224_v22  ;;  %v15244_v60 = vld [vmem:[%s15441_s8] sm:$0x1] }
 0x9d7   : > { %8380 = vmatpush.bf16.xpose.msrb.mxu2 %v16270_v23  ;;  %v8606_v47 = vsel %vm8603_vm15, %v8605_v49, %v8601_v61  ;;  %vm8643_vm12 = vweird.f32 %v15224_v22 }
 0x9d8   : > { %v8778_v30 = vrot.slane %v8606_v47, 3  ;;  %7818 = vmatmul.bf16.gmra.mxu3 %v7147_v25  ;;  %v15212_v7 = vpack.c.bf16 %v8079_v34, %v8078_v39 }
 0x9d9   : > { %v6723_v33 = vpop.f32.mrf.mxu2 }
 0x9da   : > { %v15215_v42 = vsel %vm8794_vm13, %v8777_v27, %v8778_v30  ;;  %8417 = vmatpush.bf16.xpose.msra.mxu1 %v8220_v41  ;;  %v6724_v40 = vadd.f32 %v14972_v14, %v6723_v33 }
 0x9db   : > { %v7779_v28 = vpop.f32.mrf.mxu3 }
 0x9dc   : > { %v7780_v18 = vadd.f32 %v15208_v11, %v7779_v28  ;;  %v6997_v35 = vmax.f32 %v6724_v40, 0.0  ;;  %v15233_v59 = vpop.eup %10177 }
 0x9dd   : > { %v8639_v17 = vmul.f32 %v15233_v59, %v15224_v22  ;;  %vm8644_vm2 = vweird.f32 %v15233_v59 }
 0x9de   : > { %v8080_v5 = vmax.f32 %v7780_v18, 0.0  ;;  %vm15257_vm7 = vmor %vm8643_vm12, %vm8644_vm2 }
 0x9df   : > { %8381 = vmatpush.bf16.xpose.msrb.mxu2 %v16271_v37  ;;  %v8640_v61 = vsub.f32 1.0, %v8639_v17 }
 0x9e1   : > { %v6725_v21 = vpop.f32.mrf.mxu2  ;;  %v8641_v47 = vmul.f32 %v15233_v59, %v8640_v61 }
 0x9e2   : > { %v6726_v8 = vadd.f32 %v14972_v14, %v6725_v21  ;;  %8418 = vmatpush.bf16.xpose.msra.mxu1 %v15104_v26 }
 0x9e3   : > { %v7781_v36 = vpop.f32.mrf.mxu3  ;;  %v8642_v37 = vadd.f32 %v15233_v59, %v8641_v47 }
 0x9e4   : > { %v6998_v48 = vmax.f32 %v6726_v8, 0.0  ;;  %v7782_v51 = vadd.f32 %v15208_v11, %v7781_v36  ;;  %v8647_v8 = vand.u32 2147483647, %v15224_v22 }
 0x9e6   : > { %v7148_v63 = vpack.c.bf16 %v6998_v48, %v6997_v35  ;;  %v8081_v0 = vmax.f32 %v7782_v51, 0.0  ;;  %vm8648_vm0 = vcmp.eq.f32.partialorder %v8647_v8, 8.507059e+37 }
 0x9e7   : > { %8382 = vmatpush.bf16.xpose.msrb.mxu2 %v16272_v43 }
 0x9e8   : > { %v8372_v3 = vpop.f32.mrf.mxu1  ;;  %7823 = vmatmul.bf16.gmra.mxu3 %v7148_v63  ;;  %v15227_v62 = vpack.c.bf16 %v8081_v0, %v8080_v5  ;;  %v8646_v63 = vsel %vm15257_vm7, %v15233_v59, %v8642_v37  ;;  %v10240_v59 = vld [vmem:[%s15438_s5] ss:$0 sm:$0xff] }
 0x9e9   : > { %v8373_v58 = vadd.f32 %v8372_v3, %v15100_v15  ;;  %v6728_v57 = vpop.f32.mrf.mxu2 }
 0x9ea   : > { %8419 = vmatpush.bf16.xpose.msra.mxu1 %v15091_v13  ;;  %v6729_v16 = vadd.f32 %v14972_v14, %v6728_v57 }
 0x9eb   : > { %v10070_v6 = vmul.f32 -1.442695, %v8373_v58  ;;  %v7784_v26 = vpop.f32.mrf.mxu3 }
 0x9ec   : > { %v7785_v55 = vadd.f32 %v15208_v11, %v7784_v26  ;;  %v6999_v9 = vmax.f32 %v6729_v16, 0.0 }
 0x9ed   : > { %10179 = vpow2.f32 %v10070_v6 }
 0x9ee   : > { %v8082_v24 = vmax.f32 %v7785_v55, 0.0 }
 0x9ef   : > { %8383 = vmatpush.bf16.xpose.msrb.mxu2 %v16273_v46 }
 0x9f0   : > { %v8374_v38 = vpop.f32.mrf.mxu1 }
 0x9f1   : > { %v6730_v4 = vpop.f32.mrf.mxu2 }
 0x9f2   : > { %v6731_v12 = vadd.f32 %v14972_v14, %v6730_v4  ;;  %8420 = vmatpush.bf16.xpose.msra.mxu1 %v15081_v20 }
 0x9f3   : > { %v10180_v2 = vpop.eup %10179  ;;  %v7786_v13 = vpop.f32.mrf.mxu3 }
 0x9f4   : > { %v8511_v29 = vadd.f32 1.0, %v10180_v2  ;;  %v7000_v1 = vmax.f32 %v6731_v12, 0.0  ;;  %v7787_v49 = vadd.f32 %v15208_v11, %v7786_v13 }
 0x9f6   : > { %10181 = vrcp.f32 %v8511_v29  ;;  %8384 = vmatmul.bf16.vlgmr.msrb.gmra.mxu2 %v15244_v60  ;;  %v7149_v44 = vpack.c.bf16 %v7000_v1, %v6999_v9  ;;  %v8083_v25 = vmax.f32 %v7787_v49, 0.0  ;;  %v8664_v30 = vand.u32 2147483648, %v8511_v29 }
 0x9f7   : > { %v8662_v52 = vand.u32 2147483647, %v8511_v29  ;;  %vm8658_vm1 = vweird.f32 %v8511_v29 }
 0x9f8   : > { %7828 = vmatmul.bf16.gmra.mxu3 %v7149_v44  ;;  %v15247_v39 = vpack.c.bf16 %v8083_v25, %v8082_v24  ;;  %v8665_v48 = vor.u32 1.1754944e-38, %v8664_v30 }
 0x9f9   : > { %v6733_v20 = vpop.f32.mrf.mxu2  ;;  %vm8663_vm4 = vcmp.eq.f32.partialorder %v8662_v52, 8.507059e+37 }
 0x9fa   : > { %8421 = vmatpush.bf16.xpose.msra.mxu1 %v15070_v56  ;;  %v6734_v33 = vadd.f32 %v14972_v14, %v6733_v20  ;;  %v8649_v56 = vand.u32 2147483648, %v15224_v22 }
 0x9fb   : > { %v7789_v23 = vpop.f32.mrf.mxu3 }
 0x9fc   : > { %v10182_v34 = vpop.eup %10181  ;;  %v7790_v35 = vadd.f32 %v15208_v11, %v7789_v23  ;;  %v7001_v36 = vmax.f32 %v6734_v33, 0.0  ;;  %v8650_v0 = vor.u32 1.1754944e-38, %v8649_v56 }
 0x9fd   : > { %v8654_v19 = vmul.f32 %v10182_v34, %v8511_v29  ;;  %vm8659_vm14 = vweird.f32 %v10182_v34 }
 0x9fe   : > { %vm8660_vm3 = vmor %vm8658_vm1, %vm8659_vm14  ;;  %v8084_v58 = vmax.f32 %v7790_v35, 0.0  ;;  %v8651_v26 = vsel %vm8648_vm0, %v8650_v0, %v8646_v63 }
 0x9ff   : > { %v8655_v27 = vsub.f32 1.0, %v8654_v19 }
 0xa01   : > { %v8656_v41 = vmul.f32 %v10182_v34, %v8655_v27  ;;  %v6735_v28 = vpop.f32.mrf.mxu2 }
 0xa02   : > { %v6736_v40 = vadd.f32 %v14972_v14, %v6735_v28  ;;  %8422 = vmatpush.bf16.xpose.msra.mxu1 %v15059_v31 }
 0xa03   : > { %v8657_v18 = vadd.f32 %v10182_v34, %v8656_v41  ;;  %v7791_v51 = vpop.f32.mrf.mxu3 }
 0xa04   : > { %v7002_v54 = vmax.f32 %v6736_v40, 0.0  ;;  %v7792_v14 = vadd.f32 %v15208_v11, %v7791_v51 }
 0xa05   : > { %v8661_v5 = vsel %vm8660_vm3, %v10182_v34, %v8657_v18 }
 0xa06   : > { %v7150_v43 = vpack.c.bf16 %v7002_v54, %v7001_v36  ;;  %v15268_v22 = vpop.f32.mrf.mxu0  ;;  %v8666_v3 = vsel %vm8663_vm4, %v8665_v48, %v8661_v5  ;;  %v8085_v57 = vmax.f32 %v7792_v14, 0.0 }
 0xa07   : > { %v8781_v6 = vrot.slane %v8666_v3, 7 }
 0xa08   : > { %7833 = vmatmul.bf16.gmra.mxu3 %v7150_v43  ;;  %v15270_v46 = vpack.c.bf16 %v8085_v57, %v8084_v58 }
 0xa09   : > { %v6738_v31 = vpop.f32.mrf.mxu2  ;;  %v15273_v38 = vsel %vm8788_vm8, %v8651_v26, %v8781_v6  ;;  %8423 = vmatmul.bf16.vlgmr.msra.gmra.mxu1 %v15244_v60 }
 0xa0a   : > { %v6739_v12 = vadd.f32 %v10240_v59, %v6738_v31 }
 0xa0b   : > { %v7794_v16 = vpop.f32.mrf.mxu3 }
 0xa0c   : > { %v7795_v29 = vadd.f32 %v15208_v11, %v7794_v16  ;;  %v7003_v13 = vmax.f32 %v6739_v12, 0.0 }
 0xa0e   : > { %v8413_v4 = vpop.f32.mrf.mxu0  ;;  %v8086_v49 = vmax.f32 %v7795_v29, 0.0 }
 0xa11   : > { %v6740_v2 = vpop.f32.mrf.mxu2 }
 0xa12   : > { %v6741_v55 = vadd.f32 %v10240_v59, %v6740_v2 }
 0xa13   : > { %v7796_v1 = vpop.f32.mrf.mxu3 }
 0xa14   : > { %v7004_v17 = vmax.f32 %v6741_v55, 0.0  ;;  %v7797_v9 = vadd.f32 %v15208_v11, %v7796_v1 }
 0xa16   : > { %v7151_v24 = vpack.c.bf16 %v7004_v17, %v7003_v13  ;;  %v8087_v44 = vmax.f32 %v7797_v9, 0.0 }
 0xa18   : > { %7838 = vmatmul.bf16.gmra.mxu3 %v7151_v24  ;;  %v8227_v61 = vpack.c.bf16 %v8087_v44, %v8086_v49 }
 0xa19   : > { %v6743_v25 = vpop.f32.mrf.mxu2 }
 0xa1a   : > { %v6744_v34 = vadd.f32 %v10240_v59, %v6743_v25 }
 0xa1b   : > { %v7799_v20 = vpop.f32.mrf.mxu3 }
 0xa1c   : > { %v7005_v19 = vmax.f32 %v6744_v34, 0.0 }
 0xa21   : > { %v6745_v23 = vpop.f32.mrf.mxu2 }
 0xa22   : > { %v6746_v47 = vadd.f32 %v10240_v59, %v6745_v23  ;;  %v16276_v23 = vld [vmem:[#allocation115_spill] sm:$0xff] }
 0xa23   : > { %v7801_v30 = vpop.f32.mrf.mxu3 }
 0xa24   : > { %v7006_v27 = vmax.f32 %v6746_v47, 0.0  ;;  %v7802_v16 = vadd.f32 %v15208_v11, %v7801_v30  ;;  %v16277_v47 = vld [vmem:[#allocation33_spill] sm:$0xff] }
 0xa26   : > { %v7152_v33 = vpack.c.bf16 %v7006_v27, %v7005_v19  ;;  %v8089_v55 = vmax.f32 %v7802_v16, 0.0 }
 0xa28   : > { %7843 = vmatmul.bf16.gmra.mxu3 %v7152_v33 }
 0xa29   : > { %v6748_v41 = vpop.f32.mrf.mxu2 }
 0xa2a   : > { %v6749_v28 = vadd.f32 %v10240_v59, %v6748_v41 }
 0xa2b   : > { %v7804_v52 = vpop.f32.mrf.mxu3 }
 0xa2c   : > { %v7007_v40 = vmax.f32 %v6749_v28, 0.0  ;;  %v7805_v58 = vadd.f32 %v15208_v11, %v7804_v52 }
 0xa2e   : > { %v8090_v26 = vmax.f32 %v7805_v58, 0.0 }
 0xa31   : > { %v6750_v37 = vpop.f32.mrf.mxu2 }
 0xa32   : > { %v6751_v56 = vadd.f32 %v10240_v59, %v6750_v37  ;;  %v7800_v59 = vadd.f32 %v15208_v11, %v7799_v20 }
 0xa33   : > { %v7806_v8 = vpop.f32.mrf.mxu3 }
 0xa34   : > { %v7008_v21 = vmax.f32 %v6751_v56, 0.0  ;;  %v7807_v43 = vadd.f32 %v15208_v11, %v7806_v8  ;;  %v8088_v29 = vmax.f32 %v7800_v59, 0.0 }
 0xa36   : > { %v7153_v18 = vpack.c.bf16 %v7008_v21, %v7007_v40  ;;  %v8091_v6 = vmax.f32 %v7807_v43, 0.0  ;;  %v16279_v40 = vld [vmem:[#allocation124_spill] sm:$0xff] }
 0xa38   : > { %7848 = vmatmul.bf16.gmra.mxu3 %v7153_v18  ;;  %v8229_v4 = vpack.c.bf16 %v8091_v6, %v8090_v26 }
 0xa39   : > { %v15281_v35 = vpop.f32.mrf.mxu2 }
 0xa3b   : > { %v7809_v48 = vpop.f32.mrf.mxu3 }
 0xa3c   : > { %v7810_v54 = vadd.f32 %v15208_v11, %v7809_v48 }
 0xa3e   : > { %v8092_v63 = vmax.f32 %v7810_v54, 0.0 }
 0xa41   : > { %v8283_v36 = vpop.f32.mrf.mxu2 }
 0xa43   : > { %v7811_v51 = vpop.f32.mrf.mxu3 }
 0xa44   : > { %v7812_v14 = vadd.f32 %v15208_v11, %v7811_v51 }
 0xa46   : > { %v8093_v5 = vmax.f32 %v7812_v14, 0.0 }
 0xa48   : > { %8293 = vmatmul.bf16.vlgmr.msrb.gmra.mxu3 %v15244_v60  ;;  %v8230_v3 = vpack.c.bf16 %v8093_v5, %v8092_v63 }
 0xa49   : > { %v15286_v0 = vpop.f32.mrf.mxu2  ;;  %8389 = vmatpush.bf16.xpose.msrb.mxu3 %v14929_v53 }
 0xa4a   : > { %8428 = vmatpush.bf16.xpose.msra.mxu2 %v8230_v3 }
 0xa4b   : > { %v7814_v57 = vpop.f32.mrf.mxu3 }
 0xa4c   : > { %v7815_v12 = vadd.f32 %v15208_v11, %v7814_v57 }
 0xa4e   : > { %v8094_v1 = vmax.f32 %v7815_v12, 0.0 }
 0xa51   : > { %v8335_v31 = vpop.f32.mrf.mxu2  ;;  %8390 = vmatpush.bf16.xpose.msrb.mxu3 %v14914_v45  ;;  %v8228_v45 = vpack.c.bf16 %v8089_v55, %v8088_v29 }
 0xa52   : > { %8429 = vmatpush.bf16.xpose.msra.mxu2 %v8229_v4 }
 0xa53   : > { %v7816_v2 = vpop.f32.mrf.mxu3 }
 0xa54   : > { %v7817_v53 = vadd.f32 %v15208_v11, %v7816_v2 }
 0xa56   : > { %v8095_v13 = vmax.f32 %v7817_v53, 0.0 }
 0xa58   : > { %8345 = vmatmul.bf16.vlgmr.msra.gmra.mxu3 %v15244_v60  ;;  %v15297_v17 = vpack.c.bf16 %v8095_v13, %v8094_v1 }
 0xa59   : > { %8391 = vmatpush.bf16.xpose.msrb.mxu3 %v14891_v32 }
 0xa5a   : > { %8430 = vmatpush.bf16.xpose.msra.mxu2 %v8228_v45 }
 0xa5b   : > { %v7819_v9 = vpop.f32.mrf.mxu3 }
 0xa5c   : > { %v7820_v49 = vadd.f32 %v15208_v11, %v7819_v9 }
 0xa5e   : > { %v8096_v25 = vmax.f32 %v7820_v49, 0.0 }
 0xa61   : > { %8392 = vmatpush.bf16.xpose.msrb.mxu3 %v14873_v50  ;;  %v8412_v50 = vadd.f32 %v15268_v22, %v15100_v15 }
 0xa62   : > { %8431 = vmatpush.bf16.xpose.msra.mxu2 %v8227_v61 }
 0xa63   : > { %v7821_v24 = vpop.f32.mrf.mxu3  ;;  %v10073_v30 = vmul.f32 -1.442695, %v8412_v50 }
 0xa64   : > { %v7822_v44 = vadd.f32 %v15208_v11, %v7821_v24 }
 0xa65   : > { %10183 = vpow2.f32 %v10073_v30 }
 0xa66   : > { %v8097_v20 = vmax.f32 %v7822_v44, 0.0 }
 0xa68   : > { %v15303_v34 = vpack.c.bf16 %v8097_v20, %v8096_v25 }
 0xa69   : > { %8393 = vmatpush.bf16.xpose.msrb.mxu3 %v16276_v23 }
 0xa6a   : > { %8432 = vmatpush.bf16.xpose.msra.mxu2 %v15270_v46  ;;  %v16278_v46 = vld [vmem:[#allocation125_spill] sm:$0xff] }
 0xa6b   : > { %v7824_v32 = vpop.f32.mrf.mxu3  ;;  %v10184_v37 = vpop.eup %10183 }
 0xa6c   : > { %v7825_v19 = vadd.f32 %v15208_v11, %v7824_v32 }
 0xa6e   : > { %v8098_v33 = vmax.f32 %v7825_v19, 0.0 }
 0xa71   : > { %8394 = vmatpush.bf16.xpose.msrb.mxu3 %v16277_v47 }
 0xa72   : > { %8433 = vmatpush.bf16.xpose.msra.mxu2 %v15247_v39  ;;  %v8514_v39 = vadd.f32 1.0, %v10184_v37 }
 0xa73   : > { %v7826_v61 = vpop.f32.mrf.mxu3 }
 0xa74   : > { %v7827_v27 = vadd.f32 %v15208_v11, %v7826_v61  ;;  %10185 = vrcp.f32 %v8514_v39  ;;  %v8709_v1 = vand.u32 2147483648, %v8514_v39  ;;  %vm8703_vm10 = vweird.f32 %v8514_v39 }
 0xa75   : > { %v8707_v13 = vand.u32 2147483647, %v8514_v39 }
 0xa76   : > { %v8099_v41 = vmax.f32 %v7827_v27, 0.0  ;;  %v8710_v25 = vor.u32 1.1754944e-38, %v8709_v1 }
 0xa77   : > { %vm8708_vm5 = vcmp.eq.f32.partialorder %v8707_v13, 8.507059e+37 }
 0xa78   : > { %v15313_v52 = vpack.c.bf16 %v8099_v41, %v8098_v33 }
 0xa79   : > { %v15315_v28 = vpop.f32.mrf.mxu2  ;;  %8395 = vmatpush.bf16.xpose.msrb.mxu3 %v16278_v46  ;;  %v8282_v46 = vadd.f32 %v15281_v35, %v15100_v15 }
 0xa7a   : > { %8434 = vmatpush.bf16.xpose.msra.mxu2 %v15227_v62  ;;  %v10186_v5 = vpop.eup %10185 }
 0xa7b   : > { %v7829_v22 = vpop.f32.mrf.mxu3  ;;  %v8699_v43 = vmul.f32 %v10186_v5, %v8514_v39  ;;  %vm8704_vm8 = vweird.f32 %v10186_v5 }
 0xa7c   : > { %v7830_v21 = vadd.f32 %v15208_v11, %v7829_v22  ;;  %vm8705_vm11 = vmor %vm8703_vm10, %vm8704_vm8  ;;  %v10063_v22 = vmul.f32 -1.442695, %v8282_v46  ;;  %vm8790_vm8 = vcmask 1042434   ;;  %vm8792_vm10 = vcmask 1041408  }
 0xa7d   : > { %v8700_v26 = vsub.f32 1.0, %v8699_v43 }
 0xa7e   : > { %v8100_v48 = vmax.f32 %v7830_v21, 0.0 }
 0xa7f   : > { %v8701_v59 = vmul.f32 %v10186_v5, %v8700_v26 }
 0xa81   : > { %v8387_v56 = vpop.f32.mrf.mxu2  ;;  %8396 = vmatpush.bf16.xpose.msrb.mxu3 %v16279_v40  ;;  %v8702_v55 = vadd.f32 %v10186_v5, %v8701_v59 }
 0xa82   : > { %8435 = vmatpush.bf16.xpose.msra.mxu2 %v15212_v7 }
 0xa83   : > { %v7831_v8 = vpop.f32.mrf.mxu3  ;;  %v8706_v44 = vsel %vm8705_vm11, %v10186_v5, %v8702_v55 }
 0xa84   : > { %v7832_v18 = vadd.f32 %v15208_v11, %v7831_v8  ;;  %v8711_v47 = vsel %vm8708_vm5, %v8710_v25, %v8706_v44  ;;  %v8334_v8 = vadd.f32 %v15286_v0, %v15100_v15 }
 0xa85   : > { %v8784_v61 = vrot.slane %v8711_v47, 4 }
 0xa86   : > { %v8101_v36 = vmax.f32 %v7832_v18, 0.0  ;;  %v8424_v54 = vpop.f32.mrf.mxu1 }
 0xa87   : > { %v8425_v51 = vadd.f32 %v8424_v54, %v15100_v15 }
 0xa88   : > { %8397 = vmatmul.bf16.vlgmr.msrb.gmra.mxu3 %v15244_v60  ;;  %v15325_v62 = vpack.c.bf16 %v8101_v36, %v8100_v48 }
 0xa89   : > { %v10074_v14 = vmul.f32 -1.442695, %v8425_v51  ;;  %8436 = vmatmul.bf16.vlgmr.msra.gmra.mxu2 %v15244_v60 }
 0xa8b   : > { %v7834_v63 = vpop.f32.mrf.mxu3  ;;  %10187 = vpow2.f32 %v10074_v14  ;;  %v10067_v14 = vmul.f32 -1.442695, %v8334_v8 }
 0xa8c   : > { %v7835_v58 = vadd.f32 %v15208_v11, %v7834_v63 }
 0xa8e   : > { %v8426_v7 = vpop.f32.mrf.mxu1  ;;  %v8102_v16 = vmax.f32 %v7835_v58, 0.0 }
 0xa91   : > { %v10188_v3 = vpop.eup %10187 }
 0xa92   : > { %v8515_v57 = vadd.f32 1.0, %v10188_v3 }
 0xa93   : > { %v7836_v6 = vpop.f32.mrf.mxu3 }
 0xa94   : > { %v7837_v31 = vadd.f32 %v15208_v11, %v7836_v6  ;;  %10189 = vrcp.f32 %v8515_v57  ;;  %v8724_v9 = vand.u32 2147483648, %v8515_v57  ;;  %v8722_v24 = vand.u32 2147483647, %v8515_v57 }
 0xa95   : > { %vm8718_vm6 = vweird.f32 %v8515_v57  ;;  %10191 = vpow2.f32 %v10063_v22 }
 0xa96   : > { %v8103_v4 = vmax.f32 %v7837_v31, 0.0  ;;  %v8725_v23 = vor.u32 1.1754944e-38, %v8724_v9  ;;  %vm8723_vm2 = vcmp.eq.f32.partialorder %v8722_v24, 8.507059e+37 }
 0xa98   : > { %v15330_v12 = vpack.c.bf16 %v8103_v4, %v8102_v16 }
 0xa9a   : > { %v10190_v2 = vpop.eup %10189 }
 0xa9b   : > { %v7839_v53 = vpop.f32.mrf.mxu3  ;;  %v8714_v29 = vmul.f32 %v10190_v2, %v8515_v57  ;;  %vm8719_vm9 = vweird.f32 %v10190_v2  ;;  %v10192_v21 = vpop.eup %10191 }
 0xa9c   : > { %vm8720_vm15 = vmor %vm8718_vm6, %vm8719_vm9  ;;  %v8504_v36 = vadd.f32 1.0, %v10192_v21  ;;  %v7840_v6 = vadd.f32 %v15208_v11, %v7839_v53 }
 0xa9d   : > { %v8715_v45 = vsub.f32 1.0, %v8714_v29 }
 0xa9e   : > { %10193 = vrcp.f32 %v8504_v36  ;;  %vm8553_vm14 = vweird.f32 %v8504_v36 }
 0xa9f   : > { %v8716_v49 = vmul.f32 %v10190_v2, %v8715_v45  ;;  %10195 = vpow2.f32 %v10067_v14 }
 0xaa1   : > { %v8717_v20 = vadd.f32 %v10190_v2, %v8716_v49 }
 0xaa3   : > { %v7841_v32 = vpop.f32.mrf.mxu3  ;;  %v8721_v50 = vsel %vm8720_vm15, %v10190_v2, %v8717_v20  ;;  %v8104_v2 = vmax.f32 %v7840_v6, 0.0  ;;  %v8559_v20 = vand.u32 2147483648, %v8504_v36 }
 0xaa4   : > { %v8726_v19 = vsel %vm8723_vm2, %v8725_v23, %v8721_v50  ;;  %v7842_v0 = vadd.f32 %v15208_v11, %v7841_v32  ;;  %v10194_v57 = vpop.eup %10193  ;;  %v8557_v32 = vand.u32 2147483647, %v8504_v36 }
 0xaa5   : > { %v8785_v27 = vrot.slane %v8726_v19, 3  ;;  %v10196_v31 = vpop.eup %10195  ;;  %v8549_v4 = vmul.f32 %v10194_v57, %v8504_v36  ;;  %v8560_v22 = vor.u32 1.1754944e-38, %v8559_v20 }
 0xaa6   : > { %v8105_v16 = vmax.f32 %v7842_v0, 0.0  ;;  %v15346_v55 = vadd.f32 1.0, %v10196_v31  ;;  %vm8558_vm3 = vcmp.eq.f32.partialorder %v8557_v32, 8.507059e+37 }
 0xaa7   : > { %v15333_v30 = vsel %vm8794_vm13, %v8784_v61, %v8785_v27  ;;  %v8550_v13 = vsub.f32 1.0, %v8549_v4  ;;  %vm8554_vm13 = vweird.f32 %v10194_v57 }
 0xaa8   : > { %v8236_v1 = vpack.c.bf16 %v8105_v16, %v8104_v2  ;;  %vm15353_vm12 = vmor %vm8553_vm14, %vm8554_vm13  ;;  %vm8613_vm9 = vweird.f32 %v15346_v55 }
 0xaab   : > { %v7844_v33 = vpop.f32.mrf.mxu3 }
 0xaac   : > { %v7845_v35 = vadd.f32 %v15208_v11, %v7844_v33 }
 0xaae   : > { %v8106_v43 = vmax.f32 %v7845_v35, 0.0 }
 0xab3   : > { %v7846_v41 = vpop.f32.mrf.mxu3 }
 0xab4   : > { %v7847_v54 = vadd.f32 %v15208_v11, %v7846_v41 }
 0xab6   : > { %v8107_v5 = vmax.f32 %v7847_v54, 0.0 }
 0xab8   : > { %v8237_v58 = vpack.c.bf16 %v8107_v5, %v8106_v43  ;;  %v8617_v5 = vand.u32 2147483647, %v15346_v55 }
 0xaba   : > { %vm8618_vm15 = vcmp.eq.f32.partialorder %v8617_v5, 8.507059e+37 }
 0xabb   : > { %v7849_v37 = vpop.f32.mrf.mxu3 }
 0xabc   : > { %v7850_v56 = vadd.f32 %v15208_v11, %v7849_v37 }
 0xabe   : > { %v8108_v18 = vmax.f32 %v7850_v56, 0.0 }
 0xac3   : > { %v7851_v40 = vpop.f32.mrf.mxu3 }
 0xac4   : > { %v7852_v39 = vadd.f32 %v15208_v11, %v7851_v40  ;;  %v8551_v11 = vmul.f32 %v10194_v57, %v8550_v13 }
 0xac6   : > { %v8109_v48 = vmax.f32 %v7852_v39, 0.0  ;;  %v8552_v25 = vadd.f32 %v10194_v57, %v8551_v11 }
 0xac8   : > { %v8238_v51 = vpack.c.bf16 %v8109_v48, %v8108_v18  ;;  %v8556_v41 = vsel %vm15353_vm12, %v10194_v57, %v8552_v25  ;;  %v8386_v57 = vadd.f32 %v15315_v28, %v15100_v15  ;;  %vm8796_vm12 = vcmask 1046534  }
 0xac9   : > { %v8561_v39 = vsel %vm8558_vm3, %v8560_v22, %v8556_v41 }
 0xaca   : > { %8441 = vmatpush.bf16.xpose.msra.mxu3 %v8238_v51  ;;  %v8775_v18 = vrot.slane %v8561_v39, 6  ;;  %v10071_v4 = vmul.f32 -1.442695, %v8386_v57 }
 0xacb   : > { %v8294_v63 = vpop.f32.mrf.mxu3 }
 0xacc   : > { %v8295_v7 = vadd.f32 %v8294_v63, %v15100_v15 }
 0xace   : > { %v10064_v3 = vmul.f32 -1.442695, %v8295_v7 }
 0xad0   : > { %10197 = vpow2.f32 %v10064_v3 }
 0xad2   : > { %8442 = vmatpush.bf16.xpose.msra.mxu3 %v8237_v58 }
 0xad3   : > { %v8296_v26 = vpop.f32.mrf.mxu3 }
 0xad6   : > { %v10198_v59 = vpop.eup %10197 }
 0xad7   : > { %v8505_v29 = vadd.f32 1.0, %v10198_v59 }
 0xad9   : > { %10199 = vrcp.f32 %v8505_v29  ;;  %v8574_v27 = vand.u32 2147483648, %v8505_v29  ;;  %v8572_v33 = vand.u32 2147483647, %v8505_v29  ;;  %vm8568_vm1 = vweird.f32 %v8505_v29 }
 0xada   : > { %8443 = vmatpush.bf16.xpose.msra.mxu3 %v8236_v1  ;;  %10201 = vrcp.f32 %v15346_v55 }
 0xadb   : > { %v8346_v45 = vpop.f32.mrf.mxu3  ;;  %v8575_v40 = vor.u32 1.1754944e-38, %v8574_v27  ;;  %vm8573_vm0 = vcmp.eq.f32.partialorder %v8572_v33, 8.507059e+37 }
 0xadc   : > { %v8347_v9 = vadd.f32 %v8346_v45, %v15100_v15 }
 0xade   : > { %v10068_v53 = vmul.f32 -1.442695, %v8347_v9 }
 0xadf   : > { %v10200_v49 = vpop.eup %10199 }
 0xae0   : > { %v8564_v24 = vmul.f32 %v10200_v49, %v8505_v29  ;;  %10203 = vpow2.f32 %v10068_v53  ;;  %v15350_v44 = vpop.eup %10201  ;;  %vm8569_vm7 = vweird.f32 %v10200_v49 }
 0xae1   : > { %v8609_v19 = vmul.f32 %v15350_v44, %v15346_v55  ;;  %vm8570_vm4 = vmor %vm8568_vm1, %vm8569_vm7  ;;  %vm8614_vm11 = vweird.f32 %v15350_v44  ;;  %vm8798_vm7 = vcmask 1045508   ;;  %vm8800_vm1 = vcmask 1043456  }
 0xae2   : > { %v8565_v23 = vsub.f32 1.0, %v8564_v24  ;;  %8444 = vmatpush.bf16.xpose.msra.mxu3 %v15330_v12  ;;  %vm8615_vm5 = vmor %vm8613_vm9, %vm8614_vm11 }
 0xae3   : > { %v8348_v47 = vpop.f32.mrf.mxu3  ;;  %v8610_v56 = vsub.f32 1.0, %v8609_v19 }
 0xae4   : > { %v8566_v61 = vmul.f32 %v10200_v49, %v8565_v23 }
 0xae5   : > { %v8611_v36 = vmul.f32 %v15350_v44, %v8610_v56 }
 0xae6   : > { %v10204_v46 = vpop.eup %10203  ;;  %v8567_v12 = vadd.f32 %v10200_v49, %v8566_v61 }
 0xae7   : > { %v8509_v37 = vadd.f32 1.0, %v10204_v46  ;;  %v8612_v35 = vadd.f32 %v15350_v44, %v8611_v36 }
 0xae8   : > { %v8571_v21 = vsel %vm8570_vm4, %v10200_v49, %v8567_v12 }
 0xae9   : > { %10205 = vrcp.f32 %v8509_v37  ;;  %v8576_v8 = vsel %vm8573_vm0, %v8575_v40, %v8571_v21  ;;  %v8634_v43 = vand.u32 2147483648, %v8509_v37  ;;  %v8632_v3 = vand.u32 2147483647, %v8509_v37 }
 0xaea   : > { %8445 = vmatpush.bf16.xpose.msra.mxu3 %v15325_v62  ;;  %v8776_v48 = vrot.slane %v8576_v8, 5  ;;  %v8619_v62 = vand.u32 2147483648, %v15346_v55  ;;  %v8616_v0 = vsel %vm8615_vm5, %v15350_v44, %v8612_v35  ;;  %vm8628_vm2 = vweird.f32 %v8509_v37 }
 0xaeb   : > { %v8635_v26 = vor.u32 1.1754944e-38, %v8634_v43  ;;  %vm8633_vm14 = vcmp.eq.f32.partialorder %v8632_v3, 8.507059e+37  ;;  %10207 = vpow2.f32 %v10071_v4 }
 0xaec   : > { %v8791_v54 = vsel %vm8790_vm8, %v8775_v18, %v8776_v48  ;;  %v8620_v58 = vor.u32 1.1754944e-38, %v8619_v62 }
 0xaed   : > { %v8793_v51 = vsel %vm8792_vm10, %v15177_v10, %v8791_v54 }
 0xaee   : > { %v8621_v31 = vsel %vm8618_vm15, %v8620_v58, %v8616_v0 }
 0xaef   : > { %v10206_v14 = vpop.eup %10205  ;;  %v8779_v59 = vrot.slane %v8621_v31, 2 }
 0xaf0   : > { %v8624_v63 = vmul.f32 %v10206_v14, %v8509_v37  ;;  %vm8629_vm6 = vweird.f32 %v10206_v14 }
 0xaf1   : > { %vm8630_vm13 = vmor %vm8628_vm2, %vm8629_vm6  ;;  %v10208_v1 = vpop.eup %10207 }
 0xaf2   : > { %v8625_v7 = vsub.f32 1.0, %v8624_v63  ;;  %8446 = vmatpush.bf16.xpose.msra.mxu3 %v15313_v52 }
 0xaf4   : > { %v8626_v10 = vmul.f32 %v10206_v14, %v8625_v7 }
 0xaf6   : > { %v8627_v6 = vadd.f32 %v10206_v14, %v8626_v10 }
 0xaf8   : > { %v8631_v52 = vsel %vm8630_vm13, %v10206_v14, %v8627_v6 }
 0xaf9   : > { %v8636_v16 = vsel %vm8633_vm14, %v8635_v26, %v8631_v52 }
 0xafa   : > { %8447 = vmatpush.bf16.xpose.msra.mxu3 %v15303_v34  ;;  %v8780_v2 = vrot.slane %v8636_v16, 1  ;;  %v8512_v34 = vadd.f32 1.0, %v10208_v1 }
 0xafc   : > { %v8797_v28 = vsel %vm8796_vm12, %v8779_v59, %v8780_v2  ;;  %10209 = vrcp.f32 %v8512_v34  ;;  %v8679_v47 = vand.u32 2147483648, %v8512_v34  ;;  %vm8673_vm4 = vweird.f32 %v8512_v34 }
 0xafd   : > { %v8799_v55 = vsel %vm8798_vm7, %v15215_v42, %v8797_v28  ;;  %v8677_v50 = vand.u32 2147483647, %v8512_v34 }
 0xafe   : > { %v8801_v29 = vsel %vm8800_vm1, %v8793_v51, %v8799_v55  ;;  %v8680_v46 = vor.u32 1.1754944e-38, %v8679_v47 }
 0xaff   : > { %8811 = vst [vmem:[%s15383_s21] sm:$0xff] %v8801_v29  ;;  %vm8678_vm9 = vcmp.eq.f32.partialorder %v8677_v50, 8.507059e+37 }
 0xb02   : > { %8448 = vmatpush.bf16.xpose.msra.mxu3 %v15297_v17  ;;  %v10210_v42 = vpop.eup %10209 }
 0xb03   : > { %v8669_v49 = vmul.f32 %v10210_v42, %v8512_v34  ;;  %vm8674_vm3 = vweird.f32 %v10210_v42 }
 0xb04   : > { %vm8675_vm0 = vmor %vm8673_vm4, %vm8674_vm3 }
 0xb05   : > { %v8670_v20 = vsub.f32 1.0, %v8669_v49 }
 0xb07   : > { %v8671_v17 = vmul.f32 %v10210_v42, %v8670_v20 }
 0xb09   : > { %8449 = vmatmul.bf16.vlgmr.msra.gmra.mxu3 %v15244_v60  ;;  %v8672_v32 = vadd.f32 %v10210_v42, %v8671_v17 }
 0xb0b   : > { %v8398_v13 = vpop.f32.mrf.mxu3  ;;  %v8676_v41 = vsel %vm8675_vm0, %v10210_v42, %v8672_v32 }
 0xb0c   : > { %v8399_v45 = vadd.f32 %v8398_v13, %v15100_v15  ;;  %v8437_v9 = vpop.f32.mrf.mxu2  ;;  %v8681_v37 = vsel %vm8678_vm9, %v8680_v46, %v8676_v41 }
 0xb0d   : > { %v8782_v39 = vrot.slane %v8681_v37, 6  ;;  %v8438_v48 = vadd.f32 %v8437_v9, %v15100_v15 }
 0xb0e   : > { %v10072_v11 = vmul.f32 -1.442695, %v8399_v45 }
 0xb0f   : > { %v10075_v36 = vmul.f32 -1.442695, %v8438_v48 }
 0xb10   : > { %10211 = vpow2.f32 %v10072_v11 }
 0xb13   : > { %v8400_v53 = vpop.f32.mrf.mxu3 }
 0xb14   : > { %v8439_v24 = vpop.f32.mrf.mxu2 }
 0xb16   : > { %v10212_v44 = vpop.eup %10211 }
 0xb17   : > { %v8513_v25 = vadd.f32 1.0, %v10212_v44 }
 0xb19   : > { %10213 = vrcp.f32 %v8513_v25  ;;  %v8694_v61 = vand.u32 2147483648, %v8513_v25  ;;  %v8692_v33 = vand.u32 2147483647, %v8513_v25  ;;  %vm8688_vm5 = vweird.f32 %v8513_v25 }
 0xb1a   : > { %10215 = vpow2.f32 %v10075_v36 }
 0xb1b   : > { %v8695_v12 = vor.u32 1.1754944e-38, %v8694_v61  ;;  %vm8693_vm15 = vcmp.eq.f32.partialorder %v8692_v33, 8.507059e+37 }
 0xb1f   : > { %v10214_v23 = vpop.eup %10213 }
 0xb20   : > { %v8684_v60 = vmul.f32 %v10214_v23, %v8513_v25  ;;  %vm8689_vm11 = vweird.f32 %v10214_v23  ;;  %v10216_v54 = vpop.eup %10215 }
 0xb21   : > { %vm8690_vm6 = vmor %vm8688_vm5, %vm8689_vm11  ;;  %v8516_v51 = vadd.f32 1.0, %v10216_v54 }
 0xb22   : > { %v8685_v19 = vsub.f32 1.0, %v8684_v60 }
 0xb23   : > { %10217 = vrcp.f32 %v8516_v51  ;;  %v8739_v6 = vand.u32 2147483648, %v8516_v51  ;;  %v8737_v26 = vand.u32 2147483647, %v8516_v51 }
 0xb24   : > { %v8686_v27 = vmul.f32 %v10214_v23, %v8685_v19 }
 0xb25   : > { %v8740_v59 = vor.u32 1.1754944e-38, %v8739_v6  ;;  %vm8738_vm14 = vcmp.eq.f32.partialorder %v8737_v26, 8.507059e+37 }
 0xb26   : > { %v8687_v22 = vadd.f32 %v10214_v23, %v8686_v27 }
 0xb28   : > { %v8691_v56 = vsel %vm8690_vm6, %v10214_v23, %v8687_v22 }
 0xb29   : > { %v8696_v40 = vsel %vm8693_vm15, %v8695_v12, %v8691_v56  ;;  %v10218_v62 = vpop.eup %10217 }
 0xb2a   : > { %v8783_v21 = vrot.slane %v8696_v40, 5  ;;  %v8729_v7 = vmul.f32 %v10218_v62, %v8516_v51 }
 0xb2c   : > { %v8803_v8 = vsel %vm8790_vm8, %v8782_v39, %v8783_v21  ;;  %v8730_v3 = vsub.f32 1.0, %v8729_v7  ;;  %vm8734_vm8 = vweird.f32 %v10218_v62 }
 0xb2d   : > { %v8804_v18 = vsel %vm8792_vm10, %v15273_v38, %v8803_v8  ;;  %vm8733_vm10 = vweird.f32 %v8516_v51 }
 0xb2e   : > { %v8731_v38 = vmul.f32 %v10218_v62, %v8730_v3  ;;  %vm8735_vm2 = vmor %vm8733_vm10, %vm8734_vm8 }
 0xb30   : > { %v8732_v58 = vadd.f32 %v10218_v62, %v8731_v38 }
 0xb32   : > { %v8736_v4 = vsel %vm8735_vm2, %v10218_v62, %v8732_v58 }
 0xb33   : > { %v8741_v55 = vsel %vm8738_vm14, %v8740_v59, %v8736_v4 }
 0xb34   : > { %v8786_v34 = vrot.slane %v8741_v55, 2 }
 0xb8c   : > { %v8450_v14 = vpop.f32.mrf.mxu3 }
 0xb8d   : > { %v8451_v35 = vadd.f32 %v8450_v14, %v15100_v15 }
 0xb8f   : > { %v10076_v63 = vmul.f32 -1.442695, %v8451_v35 }
 0xb91   : > { %10219 = vpow2.f32 %v10076_v63 }
 0xb94   : > { %v8452_v5 = vpop.f32.mrf.mxu3 }
 0xb97   : > { %v10220_v43 = vpop.eup %10219 }
 0xb98   : > { %v8517_v10 = vadd.f32 1.0, %v10220_v43 }
 0xb9a   : > { %10221 = vrcp.f32 %v8517_v10  ;;  %v8754_v15 = vand.u32 2147483648, %v8517_v10  ;;  %v8752_v16 = vand.u32 2147483647, %v8517_v10  ;;  %vm8748_vm3 = vweird.f32 %v8517_v10 }
 0xb9c   : > { %v8755_v28 = vor.u32 1.1754944e-38, %v8754_v15  ;;  %vm8753_vm0 = vcmp.eq.f32.partialorder %v8752_v16, 8.507059e+37 }
 0xba0   : > { %v10222_v0 = vpop.eup %10221 }
 0xba1   : > { %v8744_v57 = vmul.f32 %v10222_v0, %v8517_v10  ;;  %vm8749_vm13 = vweird.f32 %v10222_v0 }
 0xba2   : > { %vm8750_vm4 = vmor %vm8748_vm3, %vm8749_vm13 }
 0xba3   : > { %v8745_v31 = vsub.f32 1.0, %v8744_v57 }
 0xba5   : > { %v8746_v52 = vmul.f32 %v10222_v0, %v8745_v31 }
 0xba7   : > { %v8747_v2 = vadd.f32 %v10222_v0, %v8746_v52 }
 0xba9   : > { %v8751_v29 = vsel %vm8750_vm4, %v10222_v0, %v8747_v2 }
 0xbaa   : > { %v8756_v1 = vsel %vm8753_vm0, %v8755_v28, %v8751_v29 }
 0xbab   : > { %v8787_v13 = vrot.slane %v8756_v1, 1 }
 0xbad   : > { %v8806_v45 = vsel %vm8796_vm12, %v8786_v34, %v8787_v13 }
 0xbae   : > { %v8807_v9 = vsel %vm8798_vm7, %v15333_v30, %v8806_v45 }
 0xbaf   : > { %v8808_v11 = vsel %vm8800_vm1, %v8804_v18, %v8807_v9 }
 0xbb0   : > { %8812 = vst [vmem:[%s15383_s21 + $0x8] sm:$0xff] %v8808_v11 }
 0xbb1   : > { %10268 = shalt.err (!%p10265_p3)
}
 0xbb2   : > { %10113 = dma.vmem_to_hbm [thread:$0]  (%p10403_p5), %s8827_s9, 256, %s8829_s27, %s8814_s12  }
 0xbb3 PF: > { %p10119_p4 = scmp.ge.s32.totalorder %s10303_s18, 2  ;;  %s8840_s30 = sand.u32 1, %s10291_s15  }
 0xbb4   : > { %s8841_s21 = scalar_lea.sflag [#allocation4], %s8840_s30 }
 0xbb5   : > { %p10116_p7 = pnand %p10119_p4, %p10407_p6 }
 0xbb7   : > { %p10117_p8 = pneg %p10116_p7 }
 0xbb9   : > { %10286 = dma.done.wait (%p10117_p8), %s8841_s21, 256  }
 0xbba   : > { %10288 = vsyncadd (%p10117_p8), %s8841_s21, 4294967040  ;;  %p22_p9 = scmp.ge.s32.totalorder %s10390_s20, 5   ;;  %s16282_s15 = smov %s10295_s16 }
 0xbbb   : > { %s16283_s16 = smov %s10299_s17  ;;  %s16284_s17 = smov %s10401_s23 }
 0xbbc   : > { %s16285_s18 = smov %s10390_s20  ;;  %24 = sbr.rel (!%p22_p9) target bundleno = 6 (0x6), region = 98 }
 0xbc1   :  { %8847 = vsyncpa [#allocation4], 1 }
 0xbc2   :  { %8849 = vsyncpa [#allocation4 + $0x1], 1 }

</bundles_post_ra>
